<compile_context>
chip_gen: v7x
topology: tpu7x:2x2x1
jax: 0.10.0
libtpu: 0.0.40
codegen_flags: <defaults>
</compile_context>

<pallas_src>
import functools

import jax
import jax.numpy as jnp
from jax.experimental import pallas as pl
from jax.experimental.pallas import tpu as pltpu

COMPUTE_DTYPE = jnp.float32   # jnp.bfloat16 on v6e/v7x (loosen test tolerance)
TM_CAP = 2048                 # max flattened pixels (lanes) per grid step
PRELU_ALPHA = 0.25            # PyTorch nn.PReLU() default init


def _round_up(x, m):
    return ((x + m - 1) // m) * m


# ---------------------------------------------------------------------------
# Pallas kernel: tap-accumulated conv (+ bias + PReLU) with an optional fused
# 1x1 conv (+ bias + PReLU) epilogue.  Everything is laid out channel-major:
#   x_ref : (Cin_p,  M_in)   flattened padded activation, resident in VMEM
#   w_ref : (ntaps, Cout_p, Cin_p)  per-tap weight matrices
#   b_ref : (Cout_p, 1)
#   w2_ref: (Cout2_p, Cout_p), b2_ref: (Cout2_p, 1)      [only if has_pw]
#   a_ref : (2,) f32 PReLU alphas in SMEM
#   o_ref : (Cout_final_p, TM)   lane-dense output tile
# ---------------------------------------------------------------------------
def _conv_taps_kernel(*refs, shifts, tm, tail, act1, act2, has_pw, single_tile):
    if has_pw:
        x_ref, w_ref, b_ref, w2_ref, b2_ref, a_ref, o_ref = refs
    else:
        x_ref, w_ref, b_ref, a_ref, o_ref = refs
        w2_ref = b2_ref = None

    ntaps, cout_p, _ = w_ref.shape

    if single_tile:
        # grid == (1,): all tap windows are static slices of the resident ref.
        def tap_slice(sh):
            return x_ref[:, sh:sh + tm]
    else:
        # tiled path (large images): one aligned dynamic window per grid step,
        # static per-tap sub-slices of the loaded value.
        base = pl.multiple_of(pl.program_id(0) * tm, 128)
        xwin = x_ref[:, pl.ds(base, tm + tail)]

        def tap_slice(sh):
            return xwin[:, sh:sh + tm]

    acc = jnp.zeros((cout_p, tm), jnp.float32)
    for t, sh in enumerate(shifts):           # unrolled: kh*kw small matmuls
        acc = acc + jax.lax.dot_general(
            w_ref[t], tap_slice(sh),
            dimension_numbers=(((1,), (0,)), ((), ())),
            preferred_element_type=jnp.float32)

    acc = acc + b_ref[...]                    # (Cout_p, 1) lane-broadcast
    if act1:
        a1 = a_ref[0]
        acc = jnp.where(acc >= 0.0, acc, a1 * acc)       # PReLU

    if has_pw:                                # fused 1x1 conv epilogue
        acc = jax.lax.dot_general(
            w2_ref[...], acc,
            dimension_numbers=(((1,), (0,)), ((), ())),
            preferred_element_type=jnp.float32) + b2_ref[...]
        if act2:
            a2 = a_ref[1]
            acc = jnp.where(acc >= 0.0, acc, a2 * acc)   # PReLU

    o_ref[...] = acc.astype(o_ref.dtype)


# ---------------------------------------------------------------------------
# Wrapper: build the channel-major flattened operands and call the kernel.
# ---------------------------------------------------------------------------
def fused_tap_conv(act, taps, w_taps, b1, *, alpha1, pw, out_hw,
                   compute_dtype=COMPUTE_DTYPE, tm_cap=TM_CAP):
    """act: (Cin, N, Hp, Wp) spatially padded activation, f32.
    taps: list of (dy, dx); w_taps: list of (Cout, Cin) f32 matrices (per tap).
    b1: (Cout,).  alpha1: None or PReLU alpha after the spatial conv.
    pw: None or (w2 (Cout2, Cout), b2 (Cout2,), alpha2-or-None) fused 1x1 conv.
    out_hw: (Ho, Wo) valid output window.  Returns (Cout_final, N, Ho, Wo).
    """
    cin, n, hp, wp = act.shape
    ho, wo = out_hw
    cin_p = _round_up(cin, 8)
    cout1 = w_taps[0].shape[0]
    cout1_p = _round_up(cout1, 8)

    m_grid = n * hp * wp
    tm = min(_round_up(m_grid, 128), tm_cap)
    num_tiles = -(-m_grid // tm)
    m_out = num_tiles * tm
    shifts = [dy * wp + dx for dy, dx in taps]
    tail = _round_up(max(shifts), 128)
    m_in = m_out + tail
    # NOTE: the input stays fully resident in VMEM; for very large images the
    # tiled path would additionally need a halo-tiled input (manual DMA).

    x_flat = jnp.pad(act.reshape(cin, m_grid),
                     ((0, cin_p - cin), (0, m_in - m_grid))
                     ).astype(compute_dtype)

    w_stack = jnp.stack(w_taps, axis=0)                       # (ntaps, Co, Ci)
    w_stack = jnp.pad(w_stack, ((0, 0), (0, cout1_p - cout1),
                                (0, cin_p - cin))).astype(compute_dtype)
    b1_col = jnp.pad(b1, (0, cout1_p - cout1)).reshape(cout1_p, 1)
    b1_col = b1_col.astype(jnp.float32)

    has_pw = pw is not None
    if has_pw:
        w2, b2, alpha2 = pw
        cout2 = w2.shape[0]
        cout2_p = _round_up(cout2, 8)
        w2_m = jnp.pad(w2, ((0, cout2_p - cout2),
                            (0, cout1_p - cout1))).astype(jnp.float32)
        b2_col = jnp.pad(b2, (0, cout2_p - cout2)).reshape(cout2_p, 1)
        b2_col = b2_col.astype(jnp.float32)
        cout_f, cout_f_p = cout2, cout2_p
    else:
        alpha2 = None
        cout_f, cout_f_p = cout1, cout1_p

    alphas = jnp.array([alpha1 if alpha1 is not None else 0.0,
                        alpha2 if alpha2 is not None else 0.0], jnp.float32)

    ntaps = len(taps)
    kernel = functools.partial(
        _conv_taps_kernel, shifts=tuple(shifts), tm=tm, tail=tail,
        act1=alpha1 is not None, act2=(has_pw and alpha2 is not None),
        has_pw=has_pw, single_tile=(num_tiles == 1))

    in_specs = [
        pl.BlockSpec((cin_p, m_in), lambda i: (0, 0)),            # activation
        pl.BlockSpec((ntaps, cout1_p, cin_p), lambda i: (0, 0, 0)),  # taps W
        pl.BlockSpec((cout1_p, 1), lambda i: (0, 0)),             # bias
    ]
    args = [x_flat, w_stack, b1_col]
    if has_pw:
        in_specs += [pl.BlockSpec((cout_f_p, cout1_p), lambda i: (0, 0)),
                     pl.BlockSpec((cout_f_p, 1), lambda i: (0, 0))]
        args += [w2_m, b2_col]
    in_specs += [pl.BlockSpec(memory_space=pltpu.MemorySpace.SMEM)]  # alphas
    args += [alphas]

    out = pl.pallas_call(
        kernel,
        out_shape=jax.ShapeDtypeStruct((cout_f_p, m_out), jnp.float32),
        grid_spec=pltpu.PrefetchScalarGridSpec(
            num_scalar_prefetch=0,
            grid=(num_tiles,),
            in_specs=in_specs,
            out_specs=pl.BlockSpec((cout_f_p, tm), lambda i: (0, i)),
        ),
        compiler_params=pltpu.CompilerParams(
            dimension_semantics=("parallel",),
            vmem_limit_bytes=64 * 1024 * 1024),
    )(*args)

    out = out[:cout_f, :m_grid].reshape(cout_f, n, hp, wp)
    return out[:, :, :ho, :wo]


# ---------------------------------------------------------------------------
# Layer glue (plain JAX: padding / flattening / depth-to-space only)
# ---------------------------------------------------------------------------
def conv_layer(act, w_oihw, b, alpha1, pad, pw=None):
    """act: (Cin, N, H, W).  w_oihw: (Cout, Cin, kh, kw).  Returns (Cout', N, Ho, Wo)."""
    cout, cin, kh, kw = w_oihw.shape
    if pad:
        act = jnp.pad(act, ((0, 0), (0, 0), (pad, pad), (pad, pad)))
    _, _, hp, wp = act.shape
    ho, wo = hp - kh + 1, wp - kw + 1
    taps = [(dy, dx) for dy in range(kh) for dx in range(kw)]
    w_taps = [w_oihw[:, :, dy, dx] for dy, dx in taps]
    return fused_tap_conv(act, taps, w_taps, b, alpha1=alpha1, pw=pw,
                          out_hw=(ho, wo))


def deconv_subpixel_layer(act, wT, bT, stride, padding=3, output_padding=1):
    """nn.ConvTranspose2d(d, nc, 9, stride, padding, output_padding) via the
    sub-pixel decomposition: stride^2 sub-convolutions + depth-to-space."""
    cin, nc, k, _ = wT.shape
    _, n, hin, win = act.shape
    hout = (hin - 1) * stride - 2 * padding + k + output_padding
    wout = (win - 1) * stride - 2 * padding + k + output_padding
    # TODO(synk): ragged sub-grids for strides where the output size is not a
    # multiple of the stride (not needed for scale_factor=2 with these pads).
    assert hout % stride == 0 and wout % stride == 0
    hsub, wsub = hout // stride, wout // stride

    ntap = -(-k // stride)               # taps per axis in each sub-conv
    ofs = (k - 1 - padding) // stride    # top/left pad (in low-res pixels)
    pad_hi_h = max(0, (hsub - 1) - ofs + (ntap - 1) - (hin - 1))
    pad_hi_w = max(0, (wsub - 1) - ofs + (ntap - 1) - (win - 1))
    act_p = jnp.pad(act, ((0, 0), (0, 0), (ofs, pad_hi_h), (ofs, pad_hi_w)))

    # Combined sub-pixel weights: output row = (ry*stride + rx)*nc + co,
    # tap (ty, tx) uses original kernel index ky = ry + padding + stride*(ofs - ty).
    taps = [(ty, tx) for ty in range(ntap) for tx in range(ntap)]
    w_taps = []
    for ty, tx in taps:
        rows = []
        for ry in range(stride):
            for rx in range(stride):
                ky = ry + padding + stride * (ofs - ty)
                kx = rx + padding + stride * (ofs - tx)
                if 0 <= ky < k and 0 <= kx < k:
                    rows.append(wT[:, :, ky, kx].T)            # (nc, cin)
                else:
                    rows.append(jnp.zeros((nc, cin), wT.dtype))
        w_taps.append(jnp.concatenate(rows, axis=0))           # (s*s*nc, cin)
    b_comb = jnp.tile(bT, stride * stride)                     # (s*s*nc,)

    sub = fused_tap_conv(act_p, taps, w_taps, b_comb, alpha1=None, pw=None,
                         out_hw=(hsub, wsub))                  # (s*s*nc,N,hs,ws)
    sub = sub.reshape(stride, stride, nc, n, hsub, wsub)
    out = jnp.transpose(sub, (2, 3, 4, 0, 5, 1)).reshape(nc, n, hout, wout)
    return out


# ---------------------------------------------------------------------------
# Net (FSRCNN) parameters + forward
# ---------------------------------------------------------------------------
def init_params(key, num_channels, d, s, m):
    ks = iter(jax.random.split(key, 4 * (m + 4)))
    cw = lambda co, ci, kh, kw: 0.02 * jax.random.normal(
        next(ks), (co, ci, kh, kw), jnp.float32)
    bv = lambda co: 0.01 * jax.random.normal(next(ks), (co,), jnp.float32)
    p = {
        "w1": cw(d, num_channels, 5, 5), "b1": bv(d),
        "w2": cw(s, d, 1, 1), "b2": bv(s),
        "mid3x3": [(cw(s, s, 3, 3), bv(s)) for _ in range(m)],
        "w5": cw(d, s, 1, 1), "b5": bv(d),
        # ConvTranspose2d weight layout: (in_channels, out_channels, kh, kw)
        "wT": 1e-4 * jax.random.normal(next(ks), (d, num_channels, 9, 9),
                                       jnp.float32),
        "bT": bv(num_channels),
    }
    return p


def fsrcnn_forward_pallas(x_nchw, p, scale_factor, m):
    act = jnp.transpose(x_nchw, (1, 0, 2, 3))          # NCHW -> (C, N, H, W)

    # first_part Conv(nc->d,5)+PReLU fused with mid Conv(d->s,1)+PReLU
    w2 = p["w2"][:, :, 0, 0]                            # (s, d)
    act = conv_layer(act, p["w1"], p["b1"], PRELU_ALPHA, pad=0,
                     pw=(w2, p["b2"], PRELU_ALPHA))

    # m x Conv(s->s,3,pad 1), no activation; the standalone nn.PReLU() and the
    # Conv(s->d,1)+PReLU are fused into the last 3x3 kernel (exact semantics).
    for i in range(m):
        w3, b3 = p["mid3x3"][i]
        if i < m - 1:
            act = conv_layer(act, w3, b3, None, pad=1, pw=None)
        else:
            w5 = p["w5"][:, :, 0, 0]                    # (d, s)
            act = conv_layer(act, w3, b3, PRELU_ALPHA, pad=1,
                             pw=(w5, p["b5"], PRELU_ALPHA))

    # last_part: ConvTranspose2d(d, nc, 9, scale_factor, 3, output_padding=1)
    act = deconv_subpixel_layer(act, p["wT"], p["bT"], scale_factor)
    return jnp.transpose(act, (1, 0, 2, 3))             # (C,N,H,W) -> NCHW


# ---------------------------------------------------------------------------
# Pure-JAX reference (lax.conv) for the correctness check
# ---------------------------------------------------------------------------
def _prelu(x, a):
    return jnp.where(x >= 0, x, a * x)


def _ref_conv(x_nhwc, w_oihw, b, padding):
    w_hwio = jnp.transpose(w_oihw, (2, 3, 1, 0))
    out = jax.lax.conv_general_dilated(
        x_nhwc, w_hwio, window_strides=(1, 1),
        padding=[(padding, padding), (padding, padding)],
        dimension_numbers=("NHWC", "HWIO", "NHWC"))
    return out + b.reshape(1, 1, 1, -1)


def fsrcnn_forward_ref(x_nchw, p, scale_factor, m):
    x = jnp.transpose(x_nchw, (0, 2, 3, 1))
    out = _prelu(_ref_conv(x, p["w1"], p["b1"], 0), PRELU_ALPHA)
    out = _prelu(_ref_conv(out, p["w2"], p["b2"], 0), PRELU_ALPHA)
    for i, (w3, b3) in enumerate(p["mid3x3"]):
        out = _ref_conv(out, w3, b3, 1)
        if i == m - 1:
            out = _prelu(out, PRELU_ALPHA)
    out = _prelu(_ref_conv(out, p["w5"], p["b5"], 0), PRELU_ALPHA)
    # transposed conv via lhs dilation
    w_conv = jnp.transpose(p["wT"], (1, 0, 2, 3))[:, :, ::-1, ::-1]
    w_hwio = jnp.transpose(w_conv, (2, 3, 1, 0))
    out = jax.lax.conv_general_dilated(
        out, w_hwio, window_strides=(1, 1),
        padding=[(5, 6), (5, 6)], lhs_dilation=(scale_factor, scale_factor),
        dimension_numbers=("NHWC", "HWIO", "NHWC"))
    out = out + p["bT"].reshape(1, 1, 1, -1)
    return jnp.transpose(out, (0, 3, 1, 2))


# ---------------------------------------------------------------------------
if __name__ == "__main__":
    num_channels, scale_factor, d, s, m = 1, 2, 16, 8, 2
    key = jax.random.PRNGKey(0)
    k_param, k_x = jax.random.split(key)
    params = init_params(k_param, num_channels, d, s, m)

    x = jax.random.normal(k_x, (2, num_channels, 16, 16), jnp.float32)  # NCHW

    fwd = jax.jit(functools.partial(fsrcnn_forward_pallas,
                                    scale_factor=scale_factor, m=m))
    y = jax.block_until_ready(fwd(x, params))

    # expected output spatial: ((16-4) - 1) * 2 - 6 + 9 + 1 = 26
    assert y.shape == (2, num_channels, 26, 26), y.shape

    y_ref = jax.block_until_ready(
        fsrcnn_forward_ref(x, params, scale_factor, m))
    err = float(jnp.max(jnp.abs(y - y_ref)))
    assert bool(jnp.allclose(y, y_ref, atol=1e-5, rtol=1e-3)), err

    print("KERNEL_OK")
</pallas_src>

<mosaic_0001>
module attributes {stable_mosaic.version = 11 : i64} {
  func.func @_conv_taps_kernel(%arg0: i32, %arg1: memref<8x640xf32, #tpu.memory_space<vmem>>, %arg2: memref<25x16x8xf32, #tpu.memory_space<vmem>>, %arg3: memref<16x1xf32, #tpu.memory_space<vmem>>, %arg4: memref<8x16xf32, #tpu.memory_space<vmem>>, %arg5: memref<8x1xf32, #tpu.memory_space<vmem>>, %arg6: memref<2xf32, #tpu.memory_space<smem>>, %arg7: memref<8x512xf32, #tpu.memory_space<vmem>>) attributes {dimension_semantics = [#tpu.dimension_semantics<parallel>], iteration_bounds = array<i64: 1>, scalar_prefetch = 0 : i64, scratch_operands = 0 : i64, tpu.core_type = #tpu.core_type<tc>, window_params = [{pipeline_mode = #tpu.pipeline_mode<synchronous>, transform_indices = @transform_0, window_bounds = array<i64: 8, 640>}, {pipeline_mode = #tpu.pipeline_mode<synchronous>, transform_indices = @transform_1, window_bounds = array<i64: 25, 16, 8>}, {pipeline_mode = #tpu.pipeline_mode<synchronous>, transform_indices = @transform_2, window_bounds = array<i64: 16, 1>}, {pipeline_mode = #tpu.pipeline_mode<synchronous>, transform_indices = @transform_3, window_bounds = array<i64: 8, 16>}, {pipeline_mode = #tpu.pipeline_mode<synchronous>, transform_indices = @transform_4, window_bounds = array<i64: 8, 1>}, {transform_indices = @transform_5, window_bounds = array<i64: 2>}, {transform_indices = @transform_6, window_bounds = array<i64: 8, 512>}]} {
    %cst = arith.constant 0.000000e+00 : f32
    %0 = vector.broadcast %cst : f32 to vector<16x512xf32>
    %c0 = arith.constant 0 : index
    %c0_0 = arith.constant 0 : index
    %c0_1 = arith.constant 0 : index
    %1 = vector.load %arg2[%c0, %c0_0, %c0_1] : memref<25x16x8xf32, #tpu.memory_space<vmem>>, vector<1x16x8xf32>
    %2 = vector.shape_cast %1 : vector<1x16x8xf32> to vector<16x8xf32>
    %c0_2 = arith.constant 0 : index
    %c0_3 = arith.constant 0 : index
    %3 = vector.load %arg1[%c0_2, %c0_3] : memref<8x640xf32, #tpu.memory_space<vmem>>, vector<8x512xf32>
    %cst_4 = arith.constant dense<0.000000e+00> : vector<16x512xf32>
    %4 = tpu.matmul %2, %3, %cst_4 {dimension_numbers = #tpu.dot_dimension_numbers<[1], [0], [0], [1], [0, 0, 1, 1], [], []>} : vector<16x8xf32>, vector<8x512xf32>, vector<16x512xf32> -> vector<16x512xf32>
    %5 = arith.addf %0, %4 : vector<16x512xf32>
    %c1 = arith.constant 1 : index
    %c0_5 = arith.constant 0 : index
    %c0_6 = arith.constant 0 : index
    %6 = vector.load %arg2[%c1, %c0_5, %c0_6] : memref<25x16x8xf32, #tpu.memory_space<vmem>>, vector<1x16x8xf32>
    %7 = vector.shape_cast %6 : vector<1x16x8xf32> to vector<16x8xf32>
    %c0_7 = arith.constant 0 : index
    %c1_8 = arith.constant 1 : index
    %8 = vector.load %arg1[%c0_7, %c1_8] : memref<8x640xf32, #tpu.memory_space<vmem>>, vector<8x512xf32>
    %cst_9 = arith.constant dense<0.000000e+00> : vector<16x512xf32>
    %9 = tpu.matmul %7, %8, %cst_9 {dimension_numbers = #tpu.dot_dimension_numbers<[1], [0], [0], [1], [0, 0, 1, 1], [], []>} : vector<16x8xf32>, vector<8x512xf32>, vector<16x512xf32> -> vector<16x512xf32>
    %10 = arith.addf %5, %9 : vector<16x512xf32>
    %c2 = arith.constant 2 : index
    %c0_10 = arith.constant 0 : index
    %c0_11 = arith.constant 0 : index
    %11 = vector.load %arg2[%c2, %c0_10, %c0_11] : memref<25x16x8xf32, #tpu.memory_space<vmem>>, vector<1x16x8xf32>
    %12 = vector.shape_cast %11 : vector<1x16x8xf32> to vector<16x8xf32>
    %c0_12 = arith.constant 0 : index
    %c2_13 = arith.constant 2 : index
    %13 = vector.load %arg1[%c0_12, %c2_13] : memref<8x640xf32, #tpu.memory_space<vmem>>, vector<8x512xf32>
    %cst_14 = arith.constant dense<0.000000e+00> : vector<16x512xf32>
    %14 = tpu.matmul %12, %13, %cst_14 {dimension_numbers = #tpu.dot_dimension_numbers<[1], [0], [0], [1], [0, 0, 1, 1], [], []>} : vector<16x8xf32>, vector<8x512xf32>, vector<16x512xf32> -> vector<16x512xf32>
    %15 = arith.addf %10, %14 : vector<16x512xf32>
    %c3 = arith.constant 3 : index
    %c0_15 = arith.constant 0 : index
    %c0_16 = arith.constant 0 : index
    %16 = vector.load %arg2[%c3, %c0_15, %c0_16] : memref<25x16x8xf32, #tpu.memory_space<vmem>>, vector<1x16x8xf32>
    %17 = vector.shape_cast %16 : vector<1x16x8xf32> to vector<16x8xf32>
    %c0_17 = arith.constant 0 : index
    %c3_18 = arith.constant 3 : index
    %18 = vector.load %arg1[%c0_17, %c3_18] : memref<8x640xf32, #tpu.memory_space<vmem>>, vector<8x512xf32>
    %cst_19 = arith.constant dense<0.000000e+00> : vector<16x512xf32>
    %19 = tpu.matmul %17, %18, %cst_19 {dimension_numbers = #tpu.dot_dimension_numbers<[1], [0], [0], [1], [0, 0, 1, 1], [], []>} : vector<16x8xf32>, vector<8x512xf32>, vector<16x512xf32> -> vector<16x512xf32>
    %20 = arith.addf %15, %19 : vector<16x512xf32>
    %c4 = arith.constant 4 : index
    %c0_20 = arith.constant 0 : index
    %c0_21 = arith.constant 0 : index
    %21 = vector.load %arg2[%c4, %c0_20, %c0_21] : memref<25x16x8xf32, #tpu.memory_space<vmem>>, vector<1x16x8xf32>
    %22 = vector.shape_cast %21 : vector<1x16x8xf32> to vector<16x8xf32>
    %c0_22 = arith.constant 0 : index
    %c4_23 = arith.constant 4 : index
    %23 = vector.load %arg1[%c0_22, %c4_23] : memref<8x640xf32, #tpu.memory_space<vmem>>, vector<8x512xf32>
    %cst_24 = arith.constant dense<0.000000e+00> : vector<16x512xf32>
    %24 = tpu.matmul %22, %23, %cst_24 {dimension_numbers = #tpu.dot_dimension_numbers<[1], [0], [0], [1], [0, 0, 1, 1], [], []>} : vector<16x8xf32>, vector<8x512xf32>, vector<16x512xf32> -> vector<16x512xf32>
    %25 = arith.addf %20, %24 : vector<16x512xf32>
    %c5 = arith.constant 5 : index
    %c0_25 = arith.constant 0 : index
    %c0_26 = arith.constant 0 : index
    %26 = vector.load %arg2[%c5, %c0_25, %c0_26] : memref<25x16x8xf32, #tpu.memory_space<vmem>>, vector<1x16x8xf32>
    %27 = vector.shape_cast %26 : vector<1x16x8xf32> to vector<16x8xf32>
    %c0_27 = arith.constant 0 : index
    %c16 = arith.constant 16 : index
    %28 = vector.load %arg1[%c0_27, %c16] : memref<8x640xf32, #tpu.memory_space<vmem>>, vector<8x512xf32>
    %cst_28 = arith.constant dense<0.000000e+00> : vector<16x512xf32>
    %29 = tpu.matmul %27, %28, %cst_28 {dimension_numbers = #tpu.dot_dimension_numbers<[1], [0], [0], [1], [0, 0, 1, 1], [], []>} : vector<16x8xf32>, vector<8x512xf32>, vector<16x512xf32> -> vector<16x512xf32>
    %30 = arith.addf %25, %29 : vector<16x512xf32>
    %c6 = arith.constant 6 : index
    %c0_29 = arith.constant 0 : index
    %c0_30 = arith.constant 0 : index
    %31 = vector.load %arg2[%c6, %c0_29, %c0_30] : memref<25x16x8xf32, #tpu.memory_space<vmem>>, vector<1x16x8xf32>
    %32 = vector.shape_cast %31 : vector<1x16x8xf32> to vector<16x8xf32>
    %c0_31 = arith.constant 0 : index
    %c17 = arith.constant 17 : index
    %33 = vector.load %arg1[%c0_31, %c17] : memref<8x640xf32, #tpu.memory_space<vmem>>, vector<8x512xf32>
    %cst_32 = arith.constant dense<0.000000e+00> : vector<16x512xf32>
    %34 = tpu.matmul %32, %33, %cst_32 {dimension_numbers = #tpu.dot_dimension_numbers<[1], [0], [0], [1], [0, 0, 1, 1], [], []>} : vector<16x8xf32>, vector<8x512xf32>, vector<16x512xf32> -> vector<16x512xf32>
    %35 = arith.addf %30, %34 : vector<16x512xf32>
    %c7 = arith.constant 7 : index
    %c0_33 = arith.constant 0 : index
    %c0_34 = arith.constant 0 : index
    %36 = vector.load %arg2[%c7, %c0_33, %c0_34] : memref<25x16x8xf32, #tpu.memory_space<vmem>>, vector<1x16x8xf32>
    %37 = vector.shape_cast %36 : vector<1x16x8xf32> to vector<16x8xf32>
    %c0_35 = arith.constant 0 : index
    %c18 = arith.constant 18 : index
    %38 = vector.load %arg1[%c0_35, %c18] : memref<8x640xf32, #tpu.memory_space<vmem>>, vector<8x512xf32>
    %cst_36 = arith.constant dense<0.000000e+00> : vector<16x512xf32>
    %39 = tpu.matmul %37, %38, %cst_36 {dimension_numbers = #tpu.dot_dimension_numbers<[1], [0], [0], [1], [0, 0, 1, 1], [], []>} : vector<16x8xf32>, vector<8x512xf32>, vector<16x512xf32> -> vector<16x512xf32>
    %40 = arith.addf %35, %39 : vector<16x512xf32>
    %c8 = arith.constant 8 : index
    %c0_37 = arith.constant 0 : index
    %c0_38 = arith.constant 0 : index
    %41 = vector.load %arg2[%c8, %c0_37, %c0_38] : memref<25x16x8xf32, #tpu.memory_space<vmem>>, vector<1x16x8xf32>
    %42 = vector.shape_cast %41 : vector<1x16x8xf32> to vector<16x8xf32>
    %c0_39 = arith.constant 0 : index
    %c19 = arith.constant 19 : index
    %43 = vector.load %arg1[%c0_39, %c19] : memref<8x640xf32, #tpu.memory_space<vmem>>, vector<8x512xf32>
    %cst_40 = arith.constant dense<0.000000e+00> : vector<16x512xf32>
    %44 = tpu.matmul %42, %43, %cst_40 {dimension_numbers = #tpu.dot_dimension_numbers<[1], [0], [0], [1], [0, 0, 1, 1], [], []>} : vector<16x8xf32>, vector<8x512xf32>, vector<16x512xf32> -> vector<16x512xf32>
    %45 = arith.addf %40, %44 : vector<16x512xf32>
    %c9 = arith.constant 9 : index
    %c0_41 = arith.constant 0 : index
    %c0_42 = arith.constant 0 : index
    %46 = vector.load %arg2[%c9, %c0_41, %c0_42] : memref<25x16x8xf32, #tpu.memory_space<vmem>>, vector<1x16x8xf32>
    %47 = vector.shape_cast %46 : vector<1x16x8xf32> to vector<16x8xf32>
    %c0_43 = arith.constant 0 : index
    %c20 = arith.constant 20 : index
    %48 = vector.load %arg1[%c0_43, %c20] : memref<8x640xf32, #tpu.memory_space<vmem>>, vector<8x512xf32>
    %cst_44 = arith.constant dense<0.000000e+00> : vector<16x512xf32>
    %49 = tpu.matmul %47, %48, %cst_44 {dimension_numbers = #tpu.dot_dimension_numbers<[1], [0], [0], [1], [0, 0, 1, 1], [], []>} : vector<16x8xf32>, vector<8x512xf32>, vector<16x512xf32> -> vector<16x512xf32>
    %50 = arith.addf %45, %49 : vector<16x512xf32>
    %c10 = arith.constant 10 : index
    %c0_45 = arith.constant 0 : index
    %c0_46 = arith.constant 0 : index
    %51 = vector.load %arg2[%c10, %c0_45, %c0_46] : memref<25x16x8xf32, #tpu.memory_space<vmem>>, vector<1x16x8xf32>
    %52 = vector.shape_cast %51 : vector<1x16x8xf32> to vector<16x8xf32>
    %c0_47 = arith.constant 0 : index
    %c32 = arith.constant 32 : index
    %53 = vector.load %arg1[%c0_47, %c32] : memref<8x640xf32, #tpu.memory_space<vmem>>, vector<8x512xf32>
    %cst_48 = arith.constant dense<0.000000e+00> : vector<16x512xf32>
    %54 = tpu.matmul %52, %53, %cst_48 {dimension_numbers = #tpu.dot_dimension_numbers<[1], [0], [0], [1], [0, 0, 1, 1], [], []>} : vector<16x8xf32>, vector<8x512xf32>, vector<16x512xf32> -> vector<16x512xf32>
    %55 = arith.addf %50, %54 : vector<16x512xf32>
    %c11 = arith.constant 11 : index
    %c0_49 = arith.constant 0 : index
    %c0_50 = arith.constant 0 : index
    %56 = vector.load %arg2[%c11, %c0_49, %c0_50] : memref<25x16x8xf32, #tpu.memory_space<vmem>>, vector<1x16x8xf32>
    %57 = vector.shape_cast %56 : vector<1x16x8xf32> to vector<16x8xf32>
    %c0_51 = arith.constant 0 : index
    %c33 = arith.constant 33 : index
    %58 = vector.load %arg1[%c0_51, %c33] : memref<8x640xf32, #tpu.memory_space<vmem>>, vector<8x512xf32>
    %cst_52 = arith.constant dense<0.000000e+00> : vector<16x512xf32>
    %59 = tpu.matmul %57, %58, %cst_52 {dimension_numbers = #tpu.dot_dimension_numbers<[1], [0], [0], [1], [0, 0, 1, 1], [], []>} : vector<16x8xf32>, vector<8x512xf32>, vector<16x512xf32> -> vector<16x512xf32>
    %60 = arith.addf %55, %59 : vector<16x512xf32>
    %c12 = arith.constant 12 : index
    %c0_53 = arith.constant 0 : index
    %c0_54 = arith.constant 0 : index
    %61 = vector.load %arg2[%c12, %c0_53, %c0_54] : memref<25x16x8xf32, #tpu.memory_space<vmem>>, vector<1x16x8xf32>
    %62 = vector.shape_cast %61 : vector<1x16x8xf32> to vector<16x8xf32>
    %c0_55 = arith.constant 0 : index
    %c34 = arith.constant 34 : index
    %63 = vector.load %arg1[%c0_55, %c34] : memref<8x640xf32, #tpu.memory_space<vmem>>, vector<8x512xf32>
    %cst_56 = arith.constant dense<0.000000e+00> : vector<16x512xf32>
    %64 = tpu.matmul %62, %63, %cst_56 {dimension_numbers = #tpu.dot_dimension_numbers<[1], [0], [0], [1], [0, 0, 1, 1], [], []>} : vector<16x8xf32>, vector<8x512xf32>, vector<16x512xf32> -> vector<16x512xf32>
    %65 = arith.addf %60, %64 : vector<16x512xf32>
    %c13 = arith.constant 13 : index
    %c0_57 = arith.constant 0 : index
    %c0_58 = arith.constant 0 : index
    %66 = vector.load %arg2[%c13, %c0_57, %c0_58] : memref<25x16x8xf32, #tpu.memory_space<vmem>>, vector<1x16x8xf32>
    %67 = vector.shape_cast %66 : vector<1x16x8xf32> to vector<16x8xf32>
    %c0_59 = arith.constant 0 : index
    %c35 = arith.constant 35 : index
    %68 = vector.load %arg1[%c0_59, %c35] : memref<8x640xf32, #tpu.memory_space<vmem>>, vector<8x512xf32>
    %cst_60 = arith.constant dense<0.000000e+00> : vector<16x512xf32>
    %69 = tpu.matmul %67, %68, %cst_60 {dimension_numbers = #tpu.dot_dimension_numbers<[1], [0], [0], [1], [0, 0, 1, 1], [], []>} : vector<16x8xf32>, vector<8x512xf32>, vector<16x512xf32> -> vector<16x512xf32>
    %70 = arith.addf %65, %69 : vector<16x512xf32>
    %c14 = arith.constant 14 : index
    %c0_61 = arith.constant 0 : index
    %c0_62 = arith.constant 0 : index
    %71 = vector.load %arg2[%c14, %c0_61, %c0_62] : memref<25x16x8xf32, #tpu.memory_space<vmem>>, vector<1x16x8xf32>
    %72 = vector.shape_cast %71 : vector<1x16x8xf32> to vector<16x8xf32>
    %c0_63 = arith.constant 0 : index
    %c36 = arith.constant 36 : index
    %73 = vector.load %arg1[%c0_63, %c36] : memref<8x640xf32, #tpu.memory_space<vmem>>, vector<8x512xf32>
    %cst_64 = arith.constant dense<0.000000e+00> : vector<16x512xf32>
    %74 = tpu.matmul %72, %73, %cst_64 {dimension_numbers = #tpu.dot_dimension_numbers<[1], [0], [0], [1], [0, 0, 1, 1], [], []>} : vector<16x8xf32>, vector<8x512xf32>, vector<16x512xf32> -> vector<16x512xf32>
    %75 = arith.addf %70, %74 : vector<16x512xf32>
    %c15 = arith.constant 15 : index
    %c0_65 = arith.constant 0 : index
    %c0_66 = arith.constant 0 : index
    %76 = vector.load %arg2[%c15, %c0_65, %c0_66] : memref<25x16x8xf32, #tpu.memory_space<vmem>>, vector<1x16x8xf32>
    %77 = vector.shape_cast %76 : vector<1x16x8xf32> to vector<16x8xf32>
    %c0_67 = arith.constant 0 : index
    %c48 = arith.constant 48 : index
    %78 = vector.load %arg1[%c0_67, %c48] : memref<8x640xf32, #tpu.memory_space<vmem>>, vector<8x512xf32>
    %cst_68 = arith.constant dense<0.000000e+00> : vector<16x512xf32>
    %79 = tpu.matmul %77, %78, %cst_68 {dimension_numbers = #tpu.dot_dimension_numbers<[1], [0], [0], [1], [0, 0, 1, 1], [], []>} : vector<16x8xf32>, vector<8x512xf32>, vector<16x512xf32> -> vector<16x512xf32>
    %80 = arith.addf %75, %79 : vector<16x512xf32>
    %c16_69 = arith.constant 16 : index
    %c0_70 = arith.constant 0 : index
    %c0_71 = arith.constant 0 : index
    %81 = vector.load %arg2[%c16_69, %c0_70, %c0_71] : memref<25x16x8xf32, #tpu.memory_space<vmem>>, vector<1x16x8xf32>
    %82 = vector.shape_cast %81 : vector<1x16x8xf32> to vector<16x8xf32>
    %c0_72 = arith.constant 0 : index
    %c49 = arith.constant 49 : index
    %83 = vector.load %arg1[%c0_72, %c49] : memref<8x640xf32, #tpu.memory_space<vmem>>, vector<8x512xf32>
    %cst_73 = arith.constant dense<0.000000e+00> : vector<16x512xf32>
    %84 = tpu.matmul %82, %83, %cst_73 {dimension_numbers = #tpu.dot_dimension_numbers<[1], [0], [0], [1], [0, 0, 1, 1], [], []>} : vector<16x8xf32>, vector<8x512xf32>, vector<16x512xf32> -> vector<16x512xf32>
    %85 = arith.addf %80, %84 : vector<16x512xf32>
    %c17_74 = arith.constant 17 : index
    %c0_75 = arith.constant 0 : index
    %c0_76 = arith.constant 0 : index
    %86 = vector.load %arg2[%c17_74, %c0_75, %c0_76] : memref<25x16x8xf32, #tpu.memory_space<vmem>>, vector<1x16x8xf32>
    %87 = vector.shape_cast %86 : vector<1x16x8xf32> to vector<16x8xf32>
    %c0_77 = arith.constant 0 : index
    %c50 = arith.constant 50 : index
    %88 = vector.load %arg1[%c0_77, %c50] : memref<8x640xf32, #tpu.memory_space<vmem>>, vector<8x512xf32>
    %cst_78 = arith.constant dense<0.000000e+00> : vector<16x512xf32>
    %89 = tpu.matmul %87, %88, %cst_78 {dimension_numbers = #tpu.dot_dimension_numbers<[1], [0], [0], [1], [0, 0, 1, 1], [], []>} : vector<16x8xf32>, vector<8x512xf32>, vector<16x512xf32> -> vector<16x512xf32>
    %90 = arith.addf %85, %89 : vector<16x512xf32>
    %c18_79 = arith.constant 18 : index
    %c0_80 = arith.constant 0 : index
    %c0_81 = arith.constant 0 : index
    %91 = vector.load %arg2[%c18_79, %c0_80, %c0_81] : memref<25x16x8xf32, #tpu.memory_space<vmem>>, vector<1x16x8xf32>
    %92 = vector.shape_cast %91 : vector<1x16x8xf32> to vector<16x8xf32>
    %c0_82 = arith.constant 0 : index
    %c51 = arith.constant 51 : index
    %93 = vector.load %arg1[%c0_82, %c51] : memref<8x640xf32, #tpu.memory_space<vmem>>, vector<8x512xf32>
    %cst_83 = arith.constant dense<0.000000e+00> : vector<16x512xf32>
    %94 = tpu.matmul %92, %93, %cst_83 {dimension_numbers = #tpu.dot_dimension_numbers<[1], [0], [0], [1], [0, 0, 1, 1], [], []>} : vector<16x8xf32>, vector<8x512xf32>, vector<16x512xf32> -> vector<16x512xf32>
    %95 = arith.addf %90, %94 : vector<16x512xf32>
    %c19_84 = arith.constant 19 : index
    %c0_85 = arith.constant 0 : index
    %c0_86 = arith.constant 0 : index
    %96 = vector.load %arg2[%c19_84, %c0_85, %c0_86] : memref<25x16x8xf32, #tpu.memory_space<vmem>>, vector<1x16x8xf32>
    %97 = vector.shape_cast %96 : vector<1x16x8xf32> to vector<16x8xf32>
    %c0_87 = arith.constant 0 : index
    %c52 = arith.constant 52 : index
    %98 = vector.load %arg1[%c0_87, %c52] : memref<8x640xf32, #tpu.memory_space<vmem>>, vector<8x512xf32>
    %cst_88 = arith.constant dense<0.000000e+00> : vector<16x512xf32>
    %99 = tpu.matmul %97, %98, %cst_88 {dimension_numbers = #tpu.dot_dimension_numbers<[1], [0], [0], [1], [0, 0, 1, 1], [], []>} : vector<16x8xf32>, vector<8x512xf32>, vector<16x512xf32> -> vector<16x512xf32>
    %100 = arith.addf %95, %99 : vector<16x512xf32>
    %c20_89 = arith.constant 20 : index
    %c0_90 = arith.constant 0 : index
    %c0_91 = arith.constant 0 : index
    %101 = vector.load %arg2[%c20_89, %c0_90, %c0_91] : memref<25x16x8xf32, #tpu.memory_space<vmem>>, vector<1x16x8xf32>
    %102 = vector.shape_cast %101 : vector<1x16x8xf32> to vector<16x8xf32>
    %c0_92 = arith.constant 0 : index
    %c64 = arith.constant 64 : index
    %103 = vector.load %arg1[%c0_92, %c64] : memref<8x640xf32, #tpu.memory_space<vmem>>, vector<8x512xf32>
    %cst_93 = arith.constant dense<0.000000e+00> : vector<16x512xf32>
    %104 = tpu.matmul %102, %103, %cst_93 {dimension_numbers = #tpu.dot_dimension_numbers<[1], [0], [0], [1], [0, 0, 1, 1], [], []>} : vector<16x8xf32>, vector<8x512xf32>, vector<16x512xf32> -> vector<16x512xf32>
    %105 = arith.addf %100, %104 : vector<16x512xf32>
    %c21 = arith.constant 21 : index
    %c0_94 = arith.constant 0 : index
    %c0_95 = arith.constant 0 : index
    %106 = vector.load %arg2[%c21, %c0_94, %c0_95] : memref<25x16x8xf32, #tpu.memory_space<vmem>>, vector<1x16x8xf32>
    %107 = vector.shape_cast %106 : vector<1x16x8xf32> to vector<16x8xf32>
    %c0_96 = arith.constant 0 : index
    %c65 = arith.constant 65 : index
    %108 = vector.load %arg1[%c0_96, %c65] : memref<8x640xf32, #tpu.memory_space<vmem>>, vector<8x512xf32>
    %cst_97 = arith.constant dense<0.000000e+00> : vector<16x512xf32>
    %109 = tpu.matmul %107, %108, %cst_97 {dimension_numbers = #tpu.dot_dimension_numbers<[1], [0], [0], [1], [0, 0, 1, 1], [], []>} : vector<16x8xf32>, vector<8x512xf32>, vector<16x512xf32> -> vector<16x512xf32>
    %110 = arith.addf %105, %109 : vector<16x512xf32>
    %c22 = arith.constant 22 : index
    %c0_98 = arith.constant 0 : index
    %c0_99 = arith.constant 0 : index
    %111 = vector.load %arg2[%c22, %c0_98, %c0_99] : memref<25x16x8xf32, #tpu.memory_space<vmem>>, vector<1x16x8xf32>
    %112 = vector.shape_cast %111 : vector<1x16x8xf32> to vector<16x8xf32>
    %c0_100 = arith.constant 0 : index
    %c66 = arith.constant 66 : index
    %113 = vector.load %arg1[%c0_100, %c66] : memref<8x640xf32, #tpu.memory_space<vmem>>, vector<8x512xf32>
    %cst_101 = arith.constant dense<0.000000e+00> : vector<16x512xf32>
    %114 = tpu.matmul %112, %113, %cst_101 {dimension_numbers = #tpu.dot_dimension_numbers<[1], [0], [0], [1], [0, 0, 1, 1], [], []>} : vector<16x8xf32>, vector<8x512xf32>, vector<16x512xf32> -> vector<16x512xf32>
    %115 = arith.addf %110, %114 : vector<16x512xf32>
    %c23 = arith.constant 23 : index
    %c0_102 = arith.constant 0 : index
    %c0_103 = arith.constant 0 : index
    %116 = vector.load %arg2[%c23, %c0_102, %c0_103] : memref<25x16x8xf32, #tpu.memory_space<vmem>>, vector<1x16x8xf32>
    %117 = vector.shape_cast %116 : vector<1x16x8xf32> to vector<16x8xf32>
    %c0_104 = arith.constant 0 : index
    %c67 = arith.constant 67 : index
    %118 = vector.load %arg1[%c0_104, %c67] : memref<8x640xf32, #tpu.memory_space<vmem>>, vector<8x512xf32>
    %cst_105 = arith.constant dense<0.000000e+00> : vector<16x512xf32>
    %119 = tpu.matmul %117, %118, %cst_105 {dimension_numbers = #tpu.dot_dimension_numbers<[1], [0], [0], [1], [0, 0, 1, 1], [], []>} : vector<16x8xf32>, vector<8x512xf32>, vector<16x512xf32> -> vector<16x512xf32>
    %120 = arith.addf %115, %119 : vector<16x512xf32>
    %c24 = arith.constant 24 : index
    %c0_106 = arith.constant 0 : index
    %c0_107 = arith.constant 0 : index
    %121 = vector.load %arg2[%c24, %c0_106, %c0_107] : memref<25x16x8xf32, #tpu.memory_space<vmem>>, vector<1x16x8xf32>
    %122 = vector.shape_cast %121 : vector<1x16x8xf32> to vector<16x8xf32>
    %c0_108 = arith.constant 0 : index
    %c68 = arith.constant 68 : index
    %123 = vector.load %arg1[%c0_108, %c68] : memref<8x640xf32, #tpu.memory_space<vmem>>, vector<8x512xf32>
    %cst_109 = arith.constant dense<0.000000e+00> : vector<16x512xf32>
    %124 = tpu.matmul %122, %123, %cst_109 {dimension_numbers = #tpu.dot_dimension_numbers<[1], [0], [0], [1], [0, 0, 1, 1], [], []>} : vector<16x8xf32>, vector<8x512xf32>, vector<16x512xf32> -> vector<16x512xf32>
    %125 = arith.addf %120, %124 : vector<16x512xf32>
    %c0_110 = arith.constant 0 : index
    %c0_111 = arith.constant 0 : index
    %126 = vector.load %arg3[%c0_110, %c0_111] : memref<16x1xf32, #tpu.memory_space<vmem>>, vector<16x1xf32>
    %127 = vector.broadcast %126 : vector<16x1xf32> to vector<16x512xf32>
    %128 = arith.addf %125, %127 : vector<16x512xf32>
    %c0_112 = arith.constant 0 : index
    %129 = memref.load %arg6[%c0_112] : memref<2xf32, #tpu.memory_space<smem>>
    %cst_113 = arith.constant 0.000000e+00 : f32
    %130 = vector.broadcast %cst_113 : f32 to vector<16x512xf32>
    %131 = arith.cmpf oge, %128, %130 : vector<16x512xf32>
    %132 = vector.broadcast %129 : f32 to vector<16x512xf32>
    %133 = arith.mulf %132, %128 : vector<16x512xf32>
    %134 = arith.select %131, %128, %133 : vector<16x512xi1>, vector<16x512xf32>
    %c0_114 = arith.constant 0 : index
    %c0_115 = arith.constant 0 : index
    %135 = vector.load %arg4[%c0_114, %c0_115] : memref<8x16xf32, #tpu.memory_space<vmem>>, vector<8x16xf32>
    %cst_116 = arith.constant dense<0.000000e+00> : vector<8x512xf32>
    %136 = tpu.matmul %135, %134, %cst_116 {dimension_numbers = #tpu.dot_dimension_numbers<[1], [0], [0], [1], [0, 0, 1, 1], [], []>} : vector<8x16xf32>, vector<16x512xf32>, vector<8x512xf32> -> vector<8x512xf32>
    %c0_117 = arith.constant 0 : index
    %c0_118 = arith.constant 0 : index
    %137 = vector.load %arg5[%c0_117, %c0_118] : memref<8x1xf32, #tpu.memory_space<vmem>>, vector<8x1xf32>
    %138 = vector.broadcast %137 : vector<8x1xf32> to vector<8x512xf32>
    %139 = arith.addf %136, %138 : vector<8x512xf32>
    %c1_119 = arith.constant 1 : index
    %140 = memref.load %arg6[%c1_119] : memref<2xf32, #tpu.memory_space<smem>>
    %cst_120 = arith.constant 0.000000e+00 : f32
    %141 = vector.broadcast %cst_120 : f32 to vector<8x512xf32>
    %142 = arith.cmpf oge, %139, %141 : vector<8x512xf32>
    %143 = vector.broadcast %140 : f32 to vector<8x512xf32>
    %144 = arith.mulf %143, %139 : vector<8x512xf32>
    %145 = arith.select %142, %139, %144 : vector<8x512xi1>, vector<8x512xf32>
    %c0_121 = arith.constant 0 : index
    %c0_122 = arith.constant 0 : index
    %146 = vector.load %arg7[%c0_121, %c0_122] : memref<8x512xf32, #tpu.memory_space<vmem>>, vector<8x512xf32>
    tpu.vector_store %arg7[%c0_121, %c0_122], %145 {strides = array<i32>} : memref<8x512xf32, #tpu.memory_space<vmem>>, vector<8x512xf32>,
    return
  }
  func.func @transform_0(%arg0: i32) -> (i32, i32) {
    %c0_i32 = arith.constant 0 : i32
    %c0_i32_0 = arith.constant 0 : i32
    %c0_i32_1 = arith.constant 0 : i32
    return %c0_i32, %c0_i32_0 : i32, i32
  }
  func.func @transform_1(%arg0: i32) -> (i32, i32, i32) {
    %c0_i32 = arith.constant 0 : i32
    %c0_i32_0 = arith.constant 0 : i32
    %c0_i32_1 = arith.constant 0 : i32
    %c0_i32_2 = arith.constant 0 : i32
    return %c0_i32, %c0_i32_0, %c0_i32_1 : i32, i32, i32
  }
  func.func @transform_2(%arg0: i32) -> (i32, i32) {
    %c0_i32 = arith.constant 0 : i32
    %c0_i32_0 = arith.constant 0 : i32
    %c0_i32_1 = arith.constant 0 : i32
    return %c0_i32, %c0_i32_0 : i32, i32
  }
  func.func @transform_3(%arg0: i32) -> (i32, i32) {
    %c0_i32 = arith.constant 0 : i32
    %c0_i32_0 = arith.constant 0 : i32
    %c0_i32_1 = arith.constant 0 : i32
    return %c0_i32, %c0_i32_0 : i32, i32
  }
  func.func @transform_4(%arg0: i32) -> (i32, i32) {
    %c0_i32 = arith.constant 0 : i32
    %c0_i32_0 = arith.constant 0 : i32
    %c0_i32_1 = arith.constant 0 : i32
    return %c0_i32, %c0_i32_0 : i32, i32
  }
  func.func @transform_5(%arg0: i32) -> i32 {
    %c0_i32 = arith.constant 0 : i32
    %c0_i32_0 = arith.constant 0 : i32
    return %c0_i32 : i32
  }
  func.func @transform_6(%arg0: i32) -> (i32, i32) {
    %c0_i32 = arith.constant 0 : i32
    %c0_i32_0 = arith.constant 0 : i32
    return %c0_i32, %arg0 : i32, i32
  }
}

module attributes {stable_mosaic.version = 11 : i64} {
  func.func @_conv_taps_kernel(%arg0: i32, %arg1: memref<8x640xf32, #tpu.memory_space<vmem>>, %arg2: memref<9x8x8xf32, #tpu.memory_space<vmem>>, %arg3: memref<8x1xf32, #tpu.memory_space<vmem>>, %arg4: memref<2xf32, #tpu.memory_space<smem>>, %arg5: memref<8x512xf32, #tpu.memory_space<vmem>>) attributes {dimension_semantics = [#tpu.dimension_semantics<parallel>], iteration_bounds = array<i64: 1>, scalar_prefetch = 0 : i64, scratch_operands = 0 : i64, tpu.core_type = #tpu.core_type<tc>, window_params = [{pipeline_mode = #tpu.pipeline_mode<synchronous>, transform_indices = @transform_0, window_bounds = array<i64: 8, 640>}, {pipeline_mode = #tpu.pipeline_mode<synchronous>, transform_indices = @transform_1, window_bounds = array<i64: 9, 8, 8>}, {pipeline_mode = #tpu.pipeline_mode<synchronous>, transform_indices = @transform_2, window_bounds = array<i64: 8, 1>}, {transform_indices = @transform_3, window_bounds = array<i64: 2>}, {transform_indices = @transform_4, window_bounds = array<i64: 8, 512>}]} {
    %cst = arith.constant 0.000000e+00 : f32
    %0 = vector.broadcast %cst : f32 to vector<8x512xf32>
    %c0 = arith.constant 0 : index
    %c0_0 = arith.constant 0 : index
    %c0_1 = arith.constant 0 : index
    %1 = vector.load %arg2[%c0, %c0_0, %c0_1] : memref<9x8x8xf32, #tpu.memory_space<vmem>>, vector<1x8x8xf32>
    %2 = vector.shape_cast %1 : vector<1x8x8xf32> to vector<8x8xf32>
    %c0_2 = arith.constant 0 : index
    %c0_3 = arith.constant 0 : index
    %3 = vector.load %arg1[%c0_2, %c0_3] : memref<8x640xf32, #tpu.memory_space<vmem>>, vector<8x512xf32>
    %cst_4 = arith.constant dense<0.000000e+00> : vector<8x512xf32>
    %4 = tpu.matmul %2, %3, %cst_4 {dimension_numbers = #tpu.dot_dimension_numbers<[1], [0], [0], [1], [0, 0, 1, 1], [], []>} : vector<8x8xf32>, vector<8x512xf32>, vector<8x512xf32> -> vector<8x512xf32>
    %5 = arith.addf %0, %4 : vector<8x512xf32>
    %c1 = arith.constant 1 : index
    %c0_5 = arith.constant 0 : index
    %c0_6 = arith.constant 0 : index
    %6 = vector.load %arg2[%c1, %c0_5, %c0_6] : memref<9x8x8xf32, #tpu.memory_space<vmem>>, vector<1x8x8xf32>
    %7 = vector.shape_cast %6 : vector<1x8x8xf32> to vector<8x8xf32>
    %c0_7 = arith.constant 0 : index
    %c1_8 = arith.constant 1 : index
    %8 = vector.load %arg1[%c0_7, %c1_8] : memref<8x640xf32, #tpu.memory_space<vmem>>, vector<8x512xf32>
    %cst_9 = arith.constant dense<0.000000e+00> : vector<8x512xf32>
    %9 = tpu.matmul %7, %8, %cst_9 {dimension_numbers = #tpu.dot_dimension_numbers<[1], [0], [0], [1], [0, 0, 1, 1], [], []>} : vector<8x8xf32>, vector<8x512xf32>, vector<8x512xf32> -> vector<8x512xf32>
    %10 = arith.addf %5, %9 : vector<8x512xf32>
    %c2 = arith.constant 2 : index
    %c0_10 = arith.constant 0 : index
    %c0_11 = arith.constant 0 : index
    %11 = vector.load %arg2[%c2, %c0_10, %c0_11] : memref<9x8x8xf32, #tpu.memory_space<vmem>>, vector<1x8x8xf32>
    %12 = vector.shape_cast %11 : vector<1x8x8xf32> to vector<8x8xf32>
    %c0_12 = arith.constant 0 : index
    %c2_13 = arith.constant 2 : index
    %13 = vector.load %arg1[%c0_12, %c2_13] : memref<8x640xf32, #tpu.memory_space<vmem>>, vector<8x512xf32>
    %cst_14 = arith.constant dense<0.000000e+00> : vector<8x512xf32>
    %14 = tpu.matmul %12, %13, %cst_14 {dimension_numbers = #tpu.dot_dimension_numbers<[1], [0], [0], [1], [0, 0, 1, 1], [], []>} : vector<8x8xf32>, vector<8x512xf32>, vector<8x512xf32> -> vector<8x512xf32>
    %15 = arith.addf %10, %14 : vector<8x512xf32>
    %c3 = arith.constant 3 : index
    %c0_15 = arith.constant 0 : index
    %c0_16 = arith.constant 0 : index
    %16 = vector.load %arg2[%c3, %c0_15, %c0_16] : memref<9x8x8xf32, #tpu.memory_space<vmem>>, vector<1x8x8xf32>
    %17 = vector.shape_cast %16 : vector<1x8x8xf32> to vector<8x8xf32>
    %c0_17 = arith.constant 0 : index
    %c14 = arith.constant 14 : index
    %18 = vector.load %arg1[%c0_17, %c14] : memref<8x640xf32, #tpu.memory_space<vmem>>, vector<8x512xf32>
    %cst_18 = arith.constant dense<0.000000e+00> : vector<8x512xf32>
    %19 = tpu.matmul %17, %18, %cst_18 {dimension_numbers = #tpu.dot_dimension_numbers<[1], [0], [0], [1], [0, 0, 1, 1], [], []>} : vector<8x8xf32>, vector<8x512xf32>, vector<8x512xf32> -> vector<8x512xf32>
    %20 = arith.addf %15, %19 : vector<8x512xf32>
    %c4 = arith.constant 4 : index
    %c0_19 = arith.constant 0 : index
    %c0_20 = arith.constant 0 : index
    %21 = vector.load %arg2[%c4, %c0_19, %c0_20] : memref<9x8x8xf32, #tpu.memory_space<vmem>>, vector<1x8x8xf32>
    %22 = vector.shape_cast %21 : vector<1x8x8xf32> to vector<8x8xf32>
    %c0_21 = arith.constant 0 : index
    %c15 = arith.constant 15 : index
    %23 = vector.load %arg1[%c0_21, %c15] : memref<8x640xf32, #tpu.memory_space<vmem>>, vector<8x512xf32>
    %cst_22 = arith.constant dense<0.000000e+00> : vector<8x512xf32>
    %24 = tpu.matmul %22, %23, %cst_22 {dimension_numbers = #tpu.dot_dimension_numbers<[1], [0], [0], [1], [0, 0, 1, 1], [], []>} : vector<8x8xf32>, vector<8x512xf32>, vector<8x512xf32> -> vector<8x512xf32>
    %25 = arith.addf %20, %24 : vector<8x512xf32>
    %c5 = arith.constant 5 : index
    %c0_23 = arith.constant 0 : index
    %c0_24 = arith.constant 0 : index
    %26 = vector.load %arg2[%c5, %c0_23, %c0_24] : memref<9x8x8xf32, #tpu.memory_space<vmem>>, vector<1x8x8xf32>
    %27 = vector.shape_cast %26 : vector<1x8x8xf32> to vector<8x8xf32>
    %c0_25 = arith.constant 0 : index
    %c16 = arith.constant 16 : index
    %28 = vector.load %arg1[%c0_25, %c16] : memref<8x640xf32, #tpu.memory_space<vmem>>, vector<8x512xf32>
    %cst_26 = arith.constant dense<0.000000e+00> : vector<8x512xf32>
    %29 = tpu.matmul %27, %28, %cst_26 {dimension_numbers = #tpu.dot_dimension_numbers<[1], [0], [0], [1], [0, 0, 1, 1], [], []>} : vector<8x8xf32>, vector<8x512xf32>, vector<8x512xf32> -> vector<8x512xf32>
    %30 = arith.addf %25, %29 : vector<8x512xf32>
    %c6 = arith.constant 6 : index
    %c0_27 = arith.constant 0 : index
    %c0_28 = arith.constant 0 : index
    %31 = vector.load %arg2[%c6, %c0_27, %c0_28] : memref<9x8x8xf32, #tpu.memory_space<vmem>>, vector<1x8x8xf32>
    %32 = vector.shape_cast %31 : vector<1x8x8xf32> to vector<8x8xf32>
    %c0_29 = arith.constant 0 : index
    %c28 = arith.constant 28 : index
    %33 = vector.load %arg1[%c0_29, %c28] : memref<8x640xf32, #tpu.memory_space<vmem>>, vector<8x512xf32>
    %cst_30 = arith.constant dense<0.000000e+00> : vector<8x512xf32>
    %34 = tpu.matmul %32, %33, %cst_30 {dimension_numbers = #tpu.dot_dimension_numbers<[1], [0], [0], [1], [0, 0, 1, 1], [], []>} : vector<8x8xf32>, vector<8x512xf32>, vector<8x512xf32> -> vector<8x512xf32>
    %35 = arith.addf %30, %34 : vector<8x512xf32>
    %c7 = arith.constant 7 : index
    %c0_31 = arith.constant 0 : index
    %c0_32 = arith.constant 0 : index
    %36 = vector.load %arg2[%c7, %c0_31, %c0_32] : memref<9x8x8xf32, #tpu.memory_space<vmem>>, vector<1x8x8xf32>
    %37 = vector.shape_cast %36 : vector<1x8x8xf32> to vector<8x8xf32>
    %c0_33 = arith.constant 0 : index
    %c29 = arith.constant 29 : index
    %38 = vector.load %arg1[%c0_33, %c29] : memref<8x640xf32, #tpu.memory_space<vmem>>, vector<8x512xf32>
    %cst_34 = arith.constant dense<0.000000e+00> : vector<8x512xf32>
    %39 = tpu.matmul %37, %38, %cst_34 {dimension_numbers = #tpu.dot_dimension_numbers<[1], [0], [0], [1], [0, 0, 1, 1], [], []>} : vector<8x8xf32>, vector<8x512xf32>, vector<8x512xf32> -> vector<8x512xf32>
    %40 = arith.addf %35, %39 : vector<8x512xf32>
    %c8 = arith.constant 8 : index
    %c0_35 = arith.constant 0 : index
    %c0_36 = arith.constant 0 : index
    %41 = vector.load %arg2[%c8, %c0_35, %c0_36] : memref<9x8x8xf32, #tpu.memory_space<vmem>>, vector<1x8x8xf32>
    %42 = vector.shape_cast %41 : vector<1x8x8xf32> to vector<8x8xf32>
    %c0_37 = arith.constant 0 : index
    %c30 = arith.constant 30 : index
    %43 = vector.load %arg1[%c0_37, %c30] : memref<8x640xf32, #tpu.memory_space<vmem>>, vector<8x512xf32>
    %cst_38 = arith.constant dense<0.000000e+00> : vector<8x512xf32>
    %44 = tpu.matmul %42, %43, %cst_38 {dimension_numbers = #tpu.dot_dimension_numbers<[1], [0], [0], [1], [0, 0, 1, 1], [], []>} : vector<8x8xf32>, vector<8x512xf32>, vector<8x512xf32> -> vector<8x512xf32>
    %45 = arith.addf %40, %44 : vector<8x512xf32>
    %c0_39 = arith.constant 0 : index
    %c0_40 = arith.constant 0 : index
    %46 = vector.load %arg3[%c0_39, %c0_40] : memref<8x1xf32, #tpu.memory_space<vmem>>, vector<8x1xf32>
    %47 = vector.broadcast %46 : vector<8x1xf32> to vector<8x512xf32>
    %48 = arith.addf %45, %47 : vector<8x512xf32>
    %c0_41 = arith.constant 0 : index
    %c0_42 = arith.constant 0 : index
    %49 = vector.load %arg5[%c0_41, %c0_42] : memref<8x512xf32, #tpu.memory_space<vmem>>, vector<8x512xf32>
    tpu.vector_store %arg5[%c0_41, %c0_42], %48 {strides = array<i32>} : memref<8x512xf32, #tpu.memory_space<vmem>>, vector<8x512xf32>,
    return
  }
  func.func @transform_0(%arg0: i32) -> (i32, i32) {
    %c0_i32 = arith.constant 0 : i32
    %c0_i32_0 = arith.constant 0 : i32
    %c0_i32_1 = arith.constant 0 : i32
    return %c0_i32, %c0_i32_0 : i32, i32
  }
  func.func @transform_1(%arg0: i32) -> (i32, i32, i32) {
    %c0_i32 = arith.constant 0 : i32
    %c0_i32_0 = arith.constant 0 : i32
    %c0_i32_1 = arith.constant 0 : i32
    %c0_i32_2 = arith.constant 0 : i32
    return %c0_i32, %c0_i32_0, %c0_i32_1 : i32, i32, i32
  }
  func.func @transform_2(%arg0: i32) -> (i32, i32) {
    %c0_i32 = arith.constant 0 : i32
    %c0_i32_0 = arith.constant 0 : i32
    %c0_i32_1 = arith.constant 0 : i32
    return %c0_i32, %c0_i32_0 : i32, i32
  }
  func.func @transform_3(%arg0: i32) -> i32 {
    %c0_i32 = arith.constant 0 : i32
    %c0_i32_0 = arith.constant 0 : i32
    return %c0_i32 : i32
  }
  func.func @transform_4(%arg0: i32) -> (i32, i32) {
    %c0_i32 = arith.constant 0 : i32
    %c0_i32_0 = arith.constant 0 : i32
    return %c0_i32, %arg0 : i32, i32
  }
}

module attributes {stable_mosaic.version = 11 : i64} {
  func.func @_conv_taps_kernel(%arg0: i32, %arg1: memref<8x640xf32, #tpu.memory_space<vmem>>, %arg2: memref<9x8x8xf32, #tpu.memory_space<vmem>>, %arg3: memref<8x1xf32, #tpu.memory_space<vmem>>, %arg4: memref<16x8xf32, #tpu.memory_space<vmem>>, %arg5: memref<16x1xf32, #tpu.memory_space<vmem>>, %arg6: memref<2xf32, #tpu.memory_space<smem>>, %arg7: memref<16x512xf32, #tpu.memory_space<vmem>>) attributes {dimension_semantics = [#tpu.dimension_semantics<parallel>], iteration_bounds = array<i64: 1>, scalar_prefetch = 0 : i64, scratch_operands = 0 : i64, tpu.core_type = #tpu.core_type<tc>, window_params = [{pipeline_mode = #tpu.pipeline_mode<synchronous>, transform_indices = @transform_0, window_bounds = array<i64: 8, 640>}, {pipeline_mode = #tpu.pipeline_mode<synchronous>, transform_indices = @transform_1, window_bounds = array<i64: 9, 8, 8>}, {pipeline_mode = #tpu.pipeline_mode<synchronous>, transform_indices = @transform_2, window_bounds = array<i64: 8, 1>}, {pipeline_mode = #tpu.pipeline_mode<synchronous>, transform_indices = @transform_3, window_bounds = array<i64: 16, 8>}, {pipeline_mode = #tpu.pipeline_mode<synchronous>, transform_indices = @transform_4, window_bounds = array<i64: 16, 1>}, {transform_indices = @transform_5, window_bounds = array<i64: 2>}, {transform_indices = @transform_6, window_bounds = array<i64: 16, 512>}]} {
    %cst = arith.constant 0.000000e+00 : f32
    %0 = vector.broadcast %cst : f32 to vector<8x512xf32>
    %c0 = arith.constant 0 : index
    %c0_0 = arith.constant 0 : index
    %c0_1 = arith.constant 0 : index
    %1 = vector.load %arg2[%c0, %c0_0, %c0_1] : memref<9x8x8xf32, #tpu.memory_space<vmem>>, vector<1x8x8xf32>
    %2 = vector.shape_cast %1 : vector<1x8x8xf32> to vector<8x8xf32>
    %c0_2 = arith.constant 0 : index
    %c0_3 = arith.constant 0 : index
    %3 = vector.load %arg1[%c0_2, %c0_3] : memref<8x640xf32, #tpu.memory_space<vmem>>, vector<8x512xf32>
    %cst_4 = arith.constant dense<0.000000e+00> : vector<8x512xf32>
    %4 = tpu.matmul %2, %3, %cst_4 {dimension_numbers = #tpu.dot_dimension_numbers<[1], [0], [0], [1], [0, 0, 1, 1], [], []>} : vector<8x8xf32>, vector<8x512xf32>, vector<8x512xf32> -> vector<8x512xf32>
    %5 = arith.addf %0, %4 : vector<8x512xf32>
    %c1 = arith.constant 1 : index
    %c0_5 = arith.constant 0 : index
    %c0_6 = arith.constant 0 : index
    %6 = vector.load %arg2[%c1, %c0_5, %c0_6] : memref<9x8x8xf32, #tpu.memory_space<vmem>>, vector<1x8x8xf32>
    %7 = vector.shape_cast %6 : vector<1x8x8xf32> to vector<8x8xf32>
    %c0_7 = arith.constant 0 : index
    %c1_8 = arith.constant 1 : index
    %8 = vector.load %arg1[%c0_7, %c1_8] : memref<8x640xf32, #tpu.memory_space<vmem>>, vector<8x512xf32>
    %cst_9 = arith.constant dense<0.000000e+00> : vector<8x512xf32>
    %9 = tpu.matmul %7, %8, %cst_9 {dimension_numbers = #tpu.dot_dimension_numbers<[1], [0], [0], [1], [0, 0, 1, 1], [], []>} : vector<8x8xf32>, vector<8x512xf32>, vector<8x512xf32> -> vector<8x512xf32>
    %10 = arith.addf %5, %9 : vector<8x512xf32>
    %c2 = arith.constant 2 : index
    %c0_10 = arith.constant 0 : index
    %c0_11 = arith.constant 0 : index
    %11 = vector.load %arg2[%c2, %c0_10, %c0_11] : memref<9x8x8xf32, #tpu.memory_space<vmem>>, vector<1x8x8xf32>
    %12 = vector.shape_cast %11 : vector<1x8x8xf32> to vector<8x8xf32>
    %c0_12 = arith.constant 0 : index
    %c2_13 = arith.constant 2 : index
    %13 = vector.load %arg1[%c0_12, %c2_13] : memref<8x640xf32, #tpu.memory_space<vmem>>, vector<8x512xf32>
    %cst_14 = arith.constant dense<0.000000e+00> : vector<8x512xf32>
    %14 = tpu.matmul %12, %13, %cst_14 {dimension_numbers = #tpu.dot_dimension_numbers<[1], [0], [0], [1], [0, 0, 1, 1], [], []>} : vector<8x8xf32>, vector<8x512xf32>, vector<8x512xf32> -> vector<8x512xf32>
    %15 = arith.addf %10, %14 : vector<8x512xf32>
    %c3 = arith.constant 3 : index
    %c0_15 = arith.constant 0 : index
    %c0_16 = arith.constant 0 : index
    %16 = vector.load %arg2[%c3, %c0_15, %c0_16] : memref<9x8x8xf32, #tpu.memory_space<vmem>>, vector<1x8x8xf32>
    %17 = vector.shape_cast %16 : vector<1x8x8xf32> to vector<8x8xf32>
    %c0_17 = arith.constant 0 : index
    %c14 = arith.constant 14 : index
    %18 = vector.load %arg1[%c0_17, %c14] : memref<8x640xf32, #tpu.memory_space<vmem>>, vector<8x512xf32>
    %cst_18 = arith.constant dense<0.000000e+00> : vector<8x512xf32>
    %19 = tpu.matmul %17, %18, %cst_18 {dimension_numbers = #tpu.dot_dimension_numbers<[1], [0], [0], [1], [0, 0, 1, 1], [], []>} : vector<8x8xf32>, vector<8x512xf32>, vector<8x512xf32> -> vector<8x512xf32>
    %20 = arith.addf %15, %19 : vector<8x512xf32>
    %c4 = arith.constant 4 : index
    %c0_19 = arith.constant 0 : index
    %c0_20 = arith.constant 0 : index
    %21 = vector.load %arg2[%c4, %c0_19, %c0_20] : memref<9x8x8xf32, #tpu.memory_space<vmem>>, vector<1x8x8xf32>
    %22 = vector.shape_cast %21 : vector<1x8x8xf32> to vector<8x8xf32>
    %c0_21 = arith.constant 0 : index
    %c15 = arith.constant 15 : index
    %23 = vector.load %arg1[%c0_21, %c15] : memref<8x640xf32, #tpu.memory_space<vmem>>, vector<8x512xf32>
    %cst_22 = arith.constant dense<0.000000e+00> : vector<8x512xf32>
    %24 = tpu.matmul %22, %23, %cst_22 {dimension_numbers = #tpu.dot_dimension_numbers<[1], [0], [0], [1], [0, 0, 1, 1], [], []>} : vector<8x8xf32>, vector<8x512xf32>, vector<8x512xf32> -> vector<8x512xf32>
    %25 = arith.addf %20, %24 : vector<8x512xf32>
    %c5 = arith.constant 5 : index
    %c0_23 = arith.constant 0 : index
    %c0_24 = arith.constant 0 : index
    %26 = vector.load %arg2[%c5, %c0_23, %c0_24] : memref<9x8x8xf32, #tpu.memory_space<vmem>>, vector<1x8x8xf32>
    %27 = vector.shape_cast %26 : vector<1x8x8xf32> to vector<8x8xf32>
    %c0_25 = arith.constant 0 : index
    %c16 = arith.constant 16 : index
    %28 = vector.load %arg1[%c0_25, %c16] : memref<8x640xf32, #tpu.memory_space<vmem>>, vector<8x512xf32>
    %cst_26 = arith.constant dense<0.000000e+00> : vector<8x512xf32>
    %29 = tpu.matmul %27, %28, %cst_26 {dimension_numbers = #tpu.dot_dimension_numbers<[1], [0], [0], [1], [0, 0, 1, 1], [], []>} : vector<8x8xf32>, vector<8x512xf32>, vector<8x512xf32> -> vector<8x512xf32>
    %30 = arith.addf %25, %29 : vector<8x512xf32>
    %c6 = arith.constant 6 : index
    %c0_27 = arith.constant 0 : index
    %c0_28 = arith.constant 0 : index
    %31 = vector.load %arg2[%c6, %c0_27, %c0_28] : memref<9x8x8xf32, #tpu.memory_space<vmem>>, vector<1x8x8xf32>
    %32 = vector.shape_cast %31 : vector<1x8x8xf32> to vector<8x8xf32>
    %c0_29 = arith.constant 0 : index
    %c28 = arith.constant 28 : index
    %33 = vector.load %arg1[%c0_29, %c28] : memref<8x640xf32, #tpu.memory_space<vmem>>, vector<8x512xf32>
    %cst_30 = arith.constant dense<0.000000e+00> : vector<8x512xf32>
    %34 = tpu.matmul %32, %33, %cst_30 {dimension_numbers = #tpu.dot_dimension_numbers<[1], [0], [0], [1], [0, 0, 1, 1], [], []>} : vector<8x8xf32>, vector<8x512xf32>, vector<8x512xf32> -> vector<8x512xf32>
    %35 = arith.addf %30, %34 : vector<8x512xf32>
    %c7 = arith.constant 7 : index
    %c0_31 = arith.constant 0 : index
    %c0_32 = arith.constant 0 : index
    %36 = vector.load %arg2[%c7, %c0_31, %c0_32] : memref<9x8x8xf32, #tpu.memory_space<vmem>>, vector<1x8x8xf32>
    %37 = vector.shape_cast %36 : vector<1x8x8xf32> to vector<8x8xf32>
    %c0_33 = arith.constant 0 : index
    %c29 = arith.constant 29 : index
    %38 = vector.load %arg1[%c0_33, %c29] : memref<8x640xf32, #tpu.memory_space<vmem>>, vector<8x512xf32>
    %cst_34 = arith.constant dense<0.000000e+00> : vector<8x512xf32>
    %39 = tpu.matmul %37, %38, %cst_34 {dimension_numbers = #tpu.dot_dimension_numbers<[1], [0], [0], [1], [0, 0, 1, 1], [], []>} : vector<8x8xf32>, vector<8x512xf32>, vector<8x512xf32> -> vector<8x512xf32>
    %40 = arith.addf %35, %39 : vector<8x512xf32>
    %c8 = arith.constant 8 : index
    %c0_35 = arith.constant 0 : index
    %c0_36 = arith.constant 0 : index
    %41 = vector.load %arg2[%c8, %c0_35, %c0_36] : memref<9x8x8xf32, #tpu.memory_space<vmem>>, vector<1x8x8xf32>
    %42 = vector.shape_cast %41 : vector<1x8x8xf32> to vector<8x8xf32>
    %c0_37 = arith.constant 0 : index
    %c30 = arith.constant 30 : index
    %43 = vector.load %arg1[%c0_37, %c30] : memref<8x640xf32, #tpu.memory_space<vmem>>, vector<8x512xf32>
    %cst_38 = arith.constant dense<0.000000e+00> : vector<8x512xf32>
    %44 = tpu.matmul %42, %43, %cst_38 {dimension_numbers = #tpu.dot_dimension_numbers<[1], [0], [0], [1], [0, 0, 1, 1], [], []>} : vector<8x8xf32>, vector<8x512xf32>, vector<8x512xf32> -> vector<8x512xf32>
    %45 = arith.addf %40, %44 : vector<8x512xf32>
    %c0_39 = arith.constant 0 : index
    %c0_40 = arith.constant 0 : index
    %46 = vector.load %arg3[%c0_39, %c0_40] : memref<8x1xf32, #tpu.memory_space<vmem>>, vector<8x1xf32>
    %47 = vector.broadcast %46 : vector<8x1xf32> to vector<8x512xf32>
    %48 = arith.addf %45, %47 : vector<8x512xf32>
    %c0_41 = arith.constant 0 : index
    %49 = memref.load %arg6[%c0_41] : memref<2xf32, #tpu.memory_space<smem>>
    %cst_42 = arith.constant 0.000000e+00 : f32
    %50 = vector.broadcast %cst_42 : f32 to vector<8x512xf32>
    %51 = arith.cmpf oge, %48, %50 : vector<8x512xf32>
    %52 = vector.broadcast %49 : f32 to vector<8x512xf32>
    %53 = arith.mulf %52, %48 : vector<8x512xf32>
    %54 = arith.select %51, %48, %53 : vector<8x512xi1>, vector<8x512xf32>
    %c0_43 = arith.constant 0 : index
    %c0_44 = arith.constant 0 : index
    %55 = vector.load %arg4[%c0_43, %c0_44] : memref<16x8xf32, #tpu.memory_space<vmem>>, vector<16x8xf32>
    %cst_45 = arith.constant dense<0.000000e+00> : vector<16x512xf32>
    %56 = tpu.matmul %55, %54, %cst_45 {dimension_numbers = #tpu.dot_dimension_numbers<[1], [0], [0], [1], [0, 0, 1, 1], [], []>} : vector<16x8xf32>, vector<8x512xf32>, vector<16x512xf32> -> vector<16x512xf32>
    %c0_46 = arith.constant 0 : index
    %c0_47 = arith.constant 0 : index
    %57 = vector.load %arg5[%c0_46, %c0_47] : memref<16x1xf32, #tpu.memory_space<vmem>>, vector<16x1xf32>
    %58 = vector.broadcast %57 : vector<16x1xf32> to vector<16x512xf32>
    %59 = arith.addf %56, %58 : vector<16x512xf32>
    %c1_48 = arith.constant 1 : index
    %60 = memref.load %arg6[%c1_48] : memref<2xf32, #tpu.memory_space<smem>>
    %cst_49 = arith.constant 0.000000e+00 : f32
    %61 = vector.broadcast %cst_49 : f32 to vector<16x512xf32>
    %62 = arith.cmpf oge, %59, %61 : vector<16x512xf32>
    %63 = vector.broadcast %60 : f32 to vector<16x512xf32>
    %64 = arith.mulf %63, %59 : vector<16x512xf32>
    %65 = arith.select %62, %59, %64 : vector<16x512xi1>, vector<16x512xf32>
    %c0_50 = arith.constant 0 : index
    %c0_51 = arith.constant 0 : index
    %66 = vector.load %arg7[%c0_50, %c0_51] : memref<16x512xf32, #tpu.memory_space<vmem>>, vector<16x512xf32>
    tpu.vector_store %arg7[%c0_50, %c0_51], %65 {strides = array<i32>} : memref<16x512xf32, #tpu.memory_space<vmem>>, vector<16x512xf32>,
    return
  }
  func.func @transform_0(%arg0: i32) -> (i32, i32) {
    %c0_i32 = arith.constant 0 : i32
    %c0_i32_0 = arith.constant 0 : i32
    %c0_i32_1 = arith.constant 0 : i32
    return %c0_i32, %c0_i32_0 : i32, i32
  }
  func.func @transform_1(%arg0: i32) -> (i32, i32, i32) {
    %c0_i32 = arith.constant 0 : i32
    %c0_i32_0 = arith.constant 0 : i32
    %c0_i32_1 = arith.constant 0 : i32
    %c0_i32_2 = arith.constant 0 : i32
    return %c0_i32, %c0_i32_0, %c0_i32_1 : i32, i32, i32
  }
  func.func @transform_2(%arg0: i32) -> (i32, i32) {
    %c0_i32 = arith.constant 0 : i32
    %c0_i32_0 = arith.constant 0 : i32
    %c0_i32_1 = arith.constant 0 : i32
    return %c0_i32, %c0_i32_0 : i32, i32
  }
  func.func @transform_3(%arg0: i32) -> (i32, i32) {
    %c0_i32 = arith.constant 0 : i32
    %c0_i32_0 = arith.constant 0 : i32
    %c0_i32_1 = arith.constant 0 : i32
    return %c0_i32, %c0_i32_0 : i32, i32
  }
  func.func @transform_4(%arg0: i32) -> (i32, i32) {
    %c0_i32 = arith.constant 0 : i32
    %c0_i32_0 = arith.constant 0 : i32
    %c0_i32_1 = arith.constant 0 : i32
    return %c0_i32, %c0_i32_0 : i32, i32
  }
  func.func @transform_5(%arg0: i32) -> i32 {
    %c0_i32 = arith.constant 0 : i32
    %c0_i32_0 = arith.constant 0 : i32
    return %c0_i32 : i32
  }
  func.func @transform_6(%arg0: i32) -> (i32, i32) {
    %c0_i32 = arith.constant 0 : i32
    %c0_i32_0 = arith.constant 0 : i32
    return %c0_i32, %arg0 : i32, i32
  }
}

module attributes {stable_mosaic.version = 11 : i64} {
  func.func @_conv_taps_kernel(%arg0: i32, %arg1: memref<16x768xf32, #tpu.memory_space<vmem>>, %arg2: memref<25x8x16xf32, #tpu.memory_space<vmem>>, %arg3: memref<8x1xf32, #tpu.memory_space<vmem>>, %arg4: memref<2xf32, #tpu.memory_space<smem>>, %arg5: memref<8x640xf32, #tpu.memory_space<vmem>>) attributes {dimension_semantics = [#tpu.dimension_semantics<parallel>], iteration_bounds = array<i64: 1>, scalar_prefetch = 0 : i64, scratch_operands = 0 : i64, tpu.core_type = #tpu.core_type<tc>, window_params = [{pipeline_mode = #tpu.pipeline_mode<synchronous>, transform_indices = @transform_0, window_bounds = array<i64: 16, 768>}, {pipeline_mode = #tpu.pipeline_mode<synchronous>, transform_indices = @transform_1, window_bounds = array<i64: 25, 8, 16>}, {pipeline_mode = #tpu.pipeline_mode<synchronous>, transform_indices = @transform_2, window_bounds = array<i64: 8, 1>}, {transform_indices = @transform_3, window_bounds = array<i64: 2>}, {transform_indices = @transform_4, window_bounds = array<i64: 8, 640>}]} {
    %cst = arith.constant 0.000000e+00 : f32
    %0 = vector.broadcast %cst : f32 to vector<8x640xf32>
    %c0 = arith.constant 0 : index
    %c0_0 = arith.constant 0 : index
    %c0_1 = arith.constant 0 : index
    %1 = vector.load %arg2[%c0, %c0_0, %c0_1] : memref<25x8x16xf32, #tpu.memory_space<vmem>>, vector<1x8x16xf32>
    %2 = vector.shape_cast %1 : vector<1x8x16xf32> to vector<8x16xf32>
    %c0_2 = arith.constant 0 : index
    %c0_3 = arith.constant 0 : index
    %3 = vector.load %arg1[%c0_2, %c0_3] : memref<16x768xf32, #tpu.memory_space<vmem>>, vector<16x640xf32>
    %cst_4 = arith.constant dense<0.000000e+00> : vector<8x640xf32>
    %4 = tpu.matmul %2, %3, %cst_4 {dimension_numbers = #tpu.dot_dimension_numbers<[1], [0], [0], [1], [0, 0, 1, 1], [], []>} : vector<8x16xf32>, vector<16x640xf32>, vector<8x640xf32> -> vector<8x640xf32>
    %5 = arith.addf %0, %4 : vector<8x640xf32>
    %c1 = arith.constant 1 : index
    %c0_5 = arith.constant 0 : index
    %c0_6 = arith.constant 0 : index
    %6 = vector.load %arg2[%c1, %c0_5, %c0_6] : memref<25x8x16xf32, #tpu.memory_space<vmem>>, vector<1x8x16xf32>
    %7 = vector.shape_cast %6 : vector<1x8x16xf32> to vector<8x16xf32>
    %c0_7 = arith.constant 0 : index
    %c1_8 = arith.constant 1 : index
    %8 = vector.load %arg1[%c0_7, %c1_8] : memref<16x768xf32, #tpu.memory_space<vmem>>, vector<16x640xf32>
    %cst_9 = arith.constant dense<0.000000e+00> : vector<8x640xf32>
    %9 = tpu.matmul %7, %8, %cst_9 {dimension_numbers = #tpu.dot_dimension_numbers<[1], [0], [0], [1], [0, 0, 1, 1], [], []>} : vector<8x16xf32>, vector<16x640xf32>, vector<8x640xf32> -> vector<8x640xf32>
    %10 = arith.addf %5, %9 : vector<8x640xf32>
    %c2 = arith.constant 2 : index
    %c0_10 = arith.constant 0 : index
    %c0_11 = arith.constant 0 : index
    %11 = vector.load %arg2[%c2, %c0_10, %c0_11] : memref<25x8x16xf32, #tpu.memory_space<vmem>>, vector<1x8x16xf32>
    %12 = vector.shape_cast %11 : vector<1x8x16xf32> to vector<8x16xf32>
    %c0_12 = arith.constant 0 : index
    %c2_13 = arith.constant 2 : index
    %13 = vector.load %arg1[%c0_12, %c2_13] : memref<16x768xf32, #tpu.memory_space<vmem>>, vector<16x640xf32>
    %cst_14 = arith.constant dense<0.000000e+00> : vector<8x640xf32>
    %14 = tpu.matmul %12, %13, %cst_14 {dimension_numbers = #tpu.dot_dimension_numbers<[1], [0], [0], [1], [0, 0, 1, 1], [], []>} : vector<8x16xf32>, vector<16x640xf32>, vector<8x640xf32> -> vector<8x640xf32>
    %15 = arith.addf %10, %14 : vector<8x640xf32>
    %c3 = arith.constant 3 : index
    %c0_15 = arith.constant 0 : index
    %c0_16 = arith.constant 0 : index
    %16 = vector.load %arg2[%c3, %c0_15, %c0_16] : memref<25x8x16xf32, #tpu.memory_space<vmem>>, vector<1x8x16xf32>
    %17 = vector.shape_cast %16 : vector<1x8x16xf32> to vector<8x16xf32>
    %c0_17 = arith.constant 0 : index
    %c3_18 = arith.constant 3 : index
    %18 = vector.load %arg1[%c0_17, %c3_18] : memref<16x768xf32, #tpu.memory_space<vmem>>, vector<16x640xf32>
    %cst_19 = arith.constant dense<0.000000e+00> : vector<8x640xf32>
    %19 = tpu.matmul %17, %18, %cst_19 {dimension_numbers = #tpu.dot_dimension_numbers<[1], [0], [0], [1], [0, 0, 1, 1], [], []>} : vector<8x16xf32>, vector<16x640xf32>, vector<8x640xf32> -> vector<8x640xf32>
    %20 = arith.addf %15, %19 : vector<8x640xf32>
    %c4 = arith.constant 4 : index
    %c0_20 = arith.constant 0 : index
    %c0_21 = arith.constant 0 : index
    %21 = vector.load %arg2[%c4, %c0_20, %c0_21] : memref<25x8x16xf32, #tpu.memory_space<vmem>>, vector<1x8x16xf32>
    %22 = vector.shape_cast %21 : vector<1x8x16xf32> to vector<8x16xf32>
    %c0_22 = arith.constant 0 : index
    %c4_23 = arith.constant 4 : index
    %23 = vector.load %arg1[%c0_22, %c4_23] : memref<16x768xf32, #tpu.memory_space<vmem>>, vector<16x640xf32>
    %cst_24 = arith.constant dense<0.000000e+00> : vector<8x640xf32>
    %24 = tpu.matmul %22, %23, %cst_24 {dimension_numbers = #tpu.dot_dimension_numbers<[1], [0], [0], [1], [0, 0, 1, 1], [], []>} : vector<8x16xf32>, vector<16x640xf32>, vector<8x640xf32> -> vector<8x640xf32>
    %25 = arith.addf %20, %24 : vector<8x640xf32>
    %c5 = arith.constant 5 : index
    %c0_25 = arith.constant 0 : index
    %c0_26 = arith.constant 0 : index
    %26 = vector.load %arg2[%c5, %c0_25, %c0_26] : memref<25x8x16xf32, #tpu.memory_space<vmem>>, vector<1x8x16xf32>
    %27 = vector.shape_cast %26 : vector<1x8x16xf32> to vector<8x16xf32>
    %c0_27 = arith.constant 0 : index
    %c17 = arith.constant 17 : index
    %28 = vector.load %arg1[%c0_27, %c17] : memref<16x768xf32, #tpu.memory_space<vmem>>, vector<16x640xf32>
    %cst_28 = arith.constant dense<0.000000e+00> : vector<8x640xf32>
    %29 = tpu.matmul %27, %28, %cst_28 {dimension_numbers = #tpu.dot_dimension_numbers<[1], [0], [0], [1], [0, 0, 1, 1], [], []>} : vector<8x16xf32>, vector<16x640xf32>, vector<8x640xf32> -> vector<8x640xf32>
    %30 = arith.addf %25, %29 : vector<8x640xf32>
    %c6 = arith.constant 6 : index
    %c0_29 = arith.constant 0 : index
    %c0_30 = arith.constant 0 : index
    %31 = vector.load %arg2[%c6, %c0_29, %c0_30] : memref<25x8x16xf32, #tpu.memory_space<vmem>>, vector<1x8x16xf32>
    %32 = vector.shape_cast %31 : vector<1x8x16xf32> to vector<8x16xf32>
    %c0_31 = arith.constant 0 : index
    %c18 = arith.constant 18 : index
    %33 = vector.load %arg1[%c0_31, %c18] : memref<16x768xf32, #tpu.memory_space<vmem>>, vector<16x640xf32>
    %cst_32 = arith.constant dense<0.000000e+00> : vector<8x640xf32>
    %34 = tpu.matmul %32, %33, %cst_32 {dimension_numbers = #tpu.dot_dimension_numbers<[1], [0], [0], [1], [0, 0, 1, 1], [], []>} : vector<8x16xf32>, vector<16x640xf32>, vector<8x640xf32> -> vector<8x640xf32>
    %35 = arith.addf %30, %34 : vector<8x640xf32>
    %c7 = arith.constant 7 : index
    %c0_33 = arith.constant 0 : index
    %c0_34 = arith.constant 0 : index
    %36 = vector.load %arg2[%c7, %c0_33, %c0_34] : memref<25x8x16xf32, #tpu.memory_space<vmem>>, vector<1x8x16xf32>
    %37 = vector.shape_cast %36 : vector<1x8x16xf32> to vector<8x16xf32>
    %c0_35 = arith.constant 0 : index
    %c19 = arith.constant 19 : index
    %38 = vector.load %arg1[%c0_35, %c19] : memref<16x768xf32, #tpu.memory_space<vmem>>, vector<16x640xf32>
    %cst_36 = arith.constant dense<0.000000e+00> : vector<8x640xf32>
    %39 = tpu.matmul %37, %38, %cst_36 {dimension_numbers = #tpu.dot_dimension_numbers<[1], [0], [0], [1], [0, 0, 1, 1], [], []>} : vector<8x16xf32>, vector<16x640xf32>, vector<8x640xf32> -> vector<8x640xf32>
    %40 = arith.addf %35, %39 : vector<8x640xf32>
    %c8 = arith.constant 8 : index
    %c0_37 = arith.constant 0 : index
    %c0_38 = arith.constant 0 : index
    %41 = vector.load %arg2[%c8, %c0_37, %c0_38] : memref<25x8x16xf32, #tpu.memory_space<vmem>>, vector<1x8x16xf32>
    %42 = vector.shape_cast %41 : vector<1x8x16xf32> to vector<8x16xf32>
    %c0_39 = arith.constant 0 : index
    %c20 = arith.constant 20 : index
    %43 = vector.load %arg1[%c0_39, %c20] : memref<16x768xf32, #tpu.memory_space<vmem>>, vector<16x640xf32>
    %cst_40 = arith.constant dense<0.000000e+00> : vector<8x640xf32>
    %44 = tpu.matmul %42, %43, %cst_40 {dimension_numbers = #tpu.dot_dimension_numbers<[1], [0], [0], [1], [0, 0, 1, 1], [], []>} : vector<8x16xf32>, vector<16x640xf32>, vector<8x640xf32> -> vector<8x640xf32>
    %45 = arith.addf %40, %44 : vector<8x640xf32>
    %c9 = arith.constant 9 : index
    %c0_41 = arith.constant 0 : index
    %c0_42 = arith.constant 0 : index
    %46 = vector.load %arg2[%c9, %c0_41, %c0_42] : memref<25x8x16xf32, #tpu.memory_space<vmem>>, vector<1x8x16xf32>
    %47 = vector.shape_cast %46 : vector<1x8x16xf32> to vector<8x16xf32>
    %c0_43 = arith.constant 0 : index
    %c21 = arith.constant 21 : index
    %48 = vector.load %arg1[%c0_43, %c21] : memref<16x768xf32, #tpu.memory_space<vmem>>, vector<16x640xf32>
    %cst_44 = arith.constant dense<0.000000e+00> : vector<8x640xf32>
    %49 = tpu.matmul %47, %48, %cst_44 {dimension_numbers = #tpu.dot_dimension_numbers<[1], [0], [0], [1], [0, 0, 1, 1], [], []>} : vector<8x16xf32>, vector<16x640xf32>, vector<8x640xf32> -> vector<8x640xf32>
    %50 = arith.addf %45, %49 : vector<8x640xf32>
    %c10 = arith.constant 10 : index
    %c0_45 = arith.constant 0 : index
    %c0_46 = arith.constant 0 : index
    %51 = vector.load %arg2[%c10, %c0_45, %c0_46] : memref<25x8x16xf32, #tpu.memory_space<vmem>>, vector<1x8x16xf32>
    %52 = vector.shape_cast %51 : vector<1x8x16xf32> to vector<8x16xf32>
    %c0_47 = arith.constant 0 : index
    %c34 = arith.constant 34 : index
    %53 = vector.load %arg1[%c0_47, %c34] : memref<16x768xf32, #tpu.memory_space<vmem>>, vector<16x640xf32>
    %cst_48 = arith.constant dense<0.000000e+00> : vector<8x640xf32>
    %54 = tpu.matmul %52, %53, %cst_48 {dimension_numbers = #tpu.dot_dimension_numbers<[1], [0], [0], [1], [0, 0, 1, 1], [], []>} : vector<8x16xf32>, vector<16x640xf32>, vector<8x640xf32> -> vector<8x640xf32>
    %55 = arith.addf %50, %54 : vector<8x640xf32>
    %c11 = arith.constant 11 : index
    %c0_49 = arith.constant 0 : index
    %c0_50 = arith.constant 0 : index
    %56 = vector.load %arg2[%c11, %c0_49, %c0_50] : memref<25x8x16xf32, #tpu.memory_space<vmem>>, vector<1x8x16xf32>
    %57 = vector.shape_cast %56 : vector<1x8x16xf32> to vector<8x16xf32>
    %c0_51 = arith.constant 0 : index
    %c35 = arith.constant 35 : index
    %58 = vector.load %arg1[%c0_51, %c35] : memref<16x768xf32, #tpu.memory_space<vmem>>, vector<16x640xf32>
    %cst_52 = arith.constant dense<0.000000e+00> : vector<8x640xf32>
    %59 = tpu.matmul %57, %58, %cst_52 {dimension_numbers = #tpu.dot_dimension_numbers<[1], [0], [0], [1], [0, 0, 1, 1], [], []>} : vector<8x16xf32>, vector<16x640xf32>, vector<8x640xf32> -> vector<8x640xf32>
    %60 = arith.addf %55, %59 : vector<8x640xf32>
    %c12 = arith.constant 12 : index
    %c0_53 = arith.constant 0 : index
    %c0_54 = arith.constant 0 : index
    %61 = vector.load %arg2[%c12, %c0_53, %c0_54] : memref<25x8x16xf32, #tpu.memory_space<vmem>>, vector<1x8x16xf32>
    %62 = vector.shape_cast %61 : vector<1x8x16xf32> to vector<8x16xf32>
    %c0_55 = arith.constant 0 : index
    %c36 = arith.constant 36 : index
    %63 = vector.load %arg1[%c0_55, %c36] : memref<16x768xf32, #tpu.memory_space<vmem>>, vector<16x640xf32>
    %cst_56 = arith.constant dense<0.000000e+00> : vector<8x640xf32>
    %64 = tpu.matmul %62, %63, %cst_56 {dimension_numbers = #tpu.dot_dimension_numbers<[1], [0], [0], [1], [0, 0, 1, 1], [], []>} : vector<8x16xf32>, vector<16x640xf32>, vector<8x640xf32> -> vector<8x640xf32>
    %65 = arith.addf %60, %64 : vector<8x640xf32>
    %c13 = arith.constant 13 : index
    %c0_57 = arith.constant 0 : index
    %c0_58 = arith.constant 0 : index
    %66 = vector.load %arg2[%c13, %c0_57, %c0_58] : memref<25x8x16xf32, #tpu.memory_space<vmem>>, vector<1x8x16xf32>
    %67 = vector.shape_cast %66 : vector<1x8x16xf32> to vector<8x16xf32>
    %c0_59 = arith.constant 0 : index
    %c37 = arith.constant 37 : index
    %68 = vector.load %arg1[%c0_59, %c37] : memref<16x768xf32, #tpu.memory_space<vmem>>, vector<16x640xf32>
    %cst_60 = arith.constant dense<0.000000e+00> : vector<8x640xf32>
    %69 = tpu.matmul %67, %68, %cst_60 {dimension_numbers = #tpu.dot_dimension_numbers<[1], [0], [0], [1], [0, 0, 1, 1], [], []>} : vector<8x16xf32>, vector<16x640xf32>, vector<8x640xf32> -> vector<8x640xf32>
    %70 = arith.addf %65, %69 : vector<8x640xf32>
    %c14 = arith.constant 14 : index
    %c0_61 = arith.constant 0 : index
    %c0_62 = arith.constant 0 : index
    %71 = vector.load %arg2[%c14, %c0_61, %c0_62] : memref<25x8x16xf32, #tpu.memory_space<vmem>>, vector<1x8x16xf32>
    %72 = vector.shape_cast %71 : vector<1x8x16xf32> to vector<8x16xf32>
    %c0_63 = arith.constant 0 : index
    %c38 = arith.constant 38 : index
    %73 = vector.load %arg1[%c0_63, %c38] : memref<16x768xf32, #tpu.memory_space<vmem>>, vector<16x640xf32>
    %cst_64 = arith.constant dense<0.000000e+00> : vector<8x640xf32>
    %74 = tpu.matmul %72, %73, %cst_64 {dimension_numbers = #tpu.dot_dimension_numbers<[1], [0], [0], [1], [0, 0, 1, 1], [], []>} : vector<8x16xf32>, vector<16x640xf32>, vector<8x640xf32> -> vector<8x640xf32>
    %75 = arith.addf %70, %74 : vector<8x640xf32>
    %c15 = arith.constant 15 : index
    %c0_65 = arith.constant 0 : index
    %c0_66 = arith.constant 0 : index
    %76 = vector.load %arg2[%c15, %c0_65, %c0_66] : memref<25x8x16xf32, #tpu.memory_space<vmem>>, vector<1x8x16xf32>
    %77 = vector.shape_cast %76 : vector<1x8x16xf32> to vector<8x16xf32>
    %c0_67 = arith.constant 0 : index
    %c51 = arith.constant 51 : index
    %78 = vector.load %arg1[%c0_67, %c51] : memref<16x768xf32, #tpu.memory_space<vmem>>, vector<16x640xf32>
    %cst_68 = arith.constant dense<0.000000e+00> : vector<8x640xf32>
    %79 = tpu.matmul %77, %78, %cst_68 {dimension_numbers = #tpu.dot_dimension_numbers<[1], [0], [0], [1], [0, 0, 1, 1], [], []>} : vector<8x16xf32>, vector<16x640xf32>, vector<8x640xf32> -> vector<8x640xf32>
    %80 = arith.addf %75, %79 : vector<8x640xf32>
    %c16 = arith.constant 16 : index
    %c0_69 = arith.constant 0 : index
    %c0_70 = arith.constant 0 : index
    %81 = vector.load %arg2[%c16, %c0_69, %c0_70] : memref<25x8x16xf32, #tpu.memory_space<vmem>>, vector<1x8x16xf32>
    %82 = vector.shape_cast %81 : vector<1x8x16xf32> to vector<8x16xf32>
    %c0_71 = arith.constant 0 : index
    %c52 = arith.constant 52 : index
    %83 = vector.load %arg1[%c0_71, %c52] : memref<16x768xf32, #tpu.memory_space<vmem>>, vector<16x640xf32>
    %cst_72 = arith.constant dense<0.000000e+00> : vector<8x640xf32>
    %84 = tpu.matmul %82, %83, %cst_72 {dimension_numbers = #tpu.dot_dimension_numbers<[1], [0], [0], [1], [0, 0, 1, 1], [], []>} : vector<8x16xf32>, vector<16x640xf32>, vector<8x640xf32> -> vector<8x640xf32>
    %85 = arith.addf %80, %84 : vector<8x640xf32>
    %c17_73 = arith.constant 17 : index
    %c0_74 = arith.constant 0 : index
    %c0_75 = arith.constant 0 : index
    %86 = vector.load %arg2[%c17_73, %c0_74, %c0_75] : memref<25x8x16xf32, #tpu.memory_space<vmem>>, vector<1x8x16xf32>
    %87 = vector.shape_cast %86 : vector<1x8x16xf32> to vector<8x16xf32>
    %c0_76 = arith.constant 0 : index
    %c53 = arith.constant 53 : index
    %88 = vector.load %arg1[%c0_76, %c53] : memref<16x768xf32, #tpu.memory_space<vmem>>, vector<16x640xf32>
    %cst_77 = arith.constant dense<0.000000e+00> : vector<8x640xf32>
    %89 = tpu.matmul %87, %88, %cst_77 {dimension_numbers = #tpu.dot_dimension_numbers<[1], [0], [0], [1], [0, 0, 1, 1], [], []>} : vector<8x16xf32>, vector<16x640xf32>, vector<8x640xf32> -> vector<8x640xf32>
    %90 = arith.addf %85, %89 : vector<8x640xf32>
    %c18_78 = arith.constant 18 : index
    %c0_79 = arith.constant 0 : index
    %c0_80 = arith.constant 0 : index
    %91 = vector.load %arg2[%c18_78, %c0_79, %c0_80] : memref<25x8x16xf32, #tpu.memory_space<vmem>>, vector<1x8x16xf32>
    %92 = vector.shape_cast %91 : vector<1x8x16xf32> to vector<8x16xf32>
    %c0_81 = arith.constant 0 : index
    %c54 = arith.constant 54 : index
    %93 = vector.load %arg1[%c0_81, %c54] : memref<16x768xf32, #tpu.memory_space<vmem>>, vector<16x640xf32>
    %cst_82 = arith.constant dense<0.000000e+00> : vector<8x640xf32>
    %94 = tpu.matmul %92, %93, %cst_82 {dimension_numbers = #tpu.dot_dimension_numbers<[1], [0], [0], [1], [0, 0, 1, 1], [], []>} : vector<8x16xf32>, vector<16x640xf32>, vector<8x640xf32> -> vector<8x640xf32>
    %95 = arith.addf %90, %94 : vector<8x640xf32>
    %c19_83 = arith.constant 19 : index
    %c0_84 = arith.constant 0 : index
    %c0_85 = arith.constant 0 : index
    %96 = vector.load %arg2[%c19_83, %c0_84, %c0_85] : memref<25x8x16xf32, #tpu.memory_space<vmem>>, vector<1x8x16xf32>
    %97 = vector.shape_cast %96 : vector<1x8x16xf32> to vector<8x16xf32>
    %c0_86 = arith.constant 0 : index
    %c55 = arith.constant 55 : index
    %98 = vector.load %arg1[%c0_86, %c55] : memref<16x768xf32, #tpu.memory_space<vmem>>, vector<16x640xf32>
    %cst_87 = arith.constant dense<0.000000e+00> : vector<8x640xf32>
    %99 = tpu.matmul %97, %98, %cst_87 {dimension_numbers = #tpu.dot_dimension_numbers<[1], [0], [0], [1], [0, 0, 1, 1], [], []>} : vector<8x16xf32>, vector<16x640xf32>, vector<8x640xf32> -> vector<8x640xf32>
    %100 = arith.addf %95, %99 : vector<8x640xf32>
    %c20_88 = arith.constant 20 : index
    %c0_89 = arith.constant 0 : index
    %c0_90 = arith.constant 0 : index
    %101 = vector.load %arg2[%c20_88, %c0_89, %c0_90] : memref<25x8x16xf32, #tpu.memory_space<vmem>>, vector<1x8x16xf32>
    %102 = vector.shape_cast %101 : vector<1x8x16xf32> to vector<8x16xf32>
    %c0_91 = arith.constant 0 : index
    %c68 = arith.constant 68 : index
    %103 = vector.load %arg1[%c0_91, %c68] : memref<16x768xf32, #tpu.memory_space<vmem>>, vector<16x640xf32>
    %cst_92 = arith.constant dense<0.000000e+00> : vector<8x640xf32>
    %104 = tpu.matmul %102, %103, %cst_92 {dimension_numbers = #tpu.dot_dimension_numbers<[1], [0], [0], [1], [0, 0, 1, 1], [], []>} : vector<8x16xf32>, vector<16x640xf32>, vector<8x640xf32> -> vector<8x640xf32>
    %105 = arith.addf %100, %104 : vector<8x640xf32>
    %c21_93 = arith.constant 21 : index
    %c0_94 = arith.constant 0 : index
    %c0_95 = arith.constant 0 : index
    %106 = vector.load %arg2[%c21_93, %c0_94, %c0_95] : memref<25x8x16xf32, #tpu.memory_space<vmem>>, vector<1x8x16xf32>
    %107 = vector.shape_cast %106 : vector<1x8x16xf32> to vector<8x16xf32>
    %c0_96 = arith.constant 0 : index
    %c69 = arith.constant 69 : index
    %108 = vector.load %arg1[%c0_96, %c69] : memref<16x768xf32, #tpu.memory_space<vmem>>, vector<16x640xf32>
    %cst_97 = arith.constant dense<0.000000e+00> : vector<8x640xf32>
    %109 = tpu.matmul %107, %108, %cst_97 {dimension_numbers = #tpu.dot_dimension_numbers<[1], [0], [0], [1], [0, 0, 1, 1], [], []>} : vector<8x16xf32>, vector<16x640xf32>, vector<8x640xf32> -> vector<8x640xf32>
    %110 = arith.addf %105, %109 : vector<8x640xf32>
    %c22 = arith.constant 22 : index
    %c0_98 = arith.constant 0 : index
    %c0_99 = arith.constant 0 : index
    %111 = vector.load %arg2[%c22, %c0_98, %c0_99] : memref<25x8x16xf32, #tpu.memory_space<vmem>>, vector<1x8x16xf32>
    %112 = vector.shape_cast %111 : vector<1x8x16xf32> to vector<8x16xf32>
    %c0_100 = arith.constant 0 : index
    %c70 = arith.constant 70 : index
    %113 = vector.load %arg1[%c0_100, %c70] : memref<16x768xf32, #tpu.memory_space<vmem>>, vector<16x640xf32>
    %cst_101 = arith.constant dense<0.000000e+00> : vector<8x640xf32>
    %114 = tpu.matmul %112, %113, %cst_101 {dimension_numbers = #tpu.dot_dimension_numbers<[1], [0], [0], [1], [0, 0, 1, 1], [], []>} : vector<8x16xf32>, vector<16x640xf32>, vector<8x640xf32> -> vector<8x640xf32>
    %115 = arith.addf %110, %114 : vector<8x640xf32>
    %c23 = arith.constant 23 : index
    %c0_102 = arith.constant 0 : index
    %c0_103 = arith.constant 0 : index
    %116 = vector.load %arg2[%c23, %c0_102, %c0_103] : memref<25x8x16xf32, #tpu.memory_space<vmem>>, vector<1x8x16xf32>
    %117 = vector.shape_cast %116 : vector<1x8x16xf32> to vector<8x16xf32>
    %c0_104 = arith.constant 0 : index
    %c71 = arith.constant 71 : index
    %118 = vector.load %arg1[%c0_104, %c71] : memref<16x768xf32, #tpu.memory_space<vmem>>, vector<16x640xf32>
    %cst_105 = arith.constant dense<0.000000e+00> : vector<8x640xf32>
    %119 = tpu.matmul %117, %118, %cst_105 {dimension_numbers = #tpu.dot_dimension_numbers<[1], [0], [0], [1], [0, 0, 1, 1], [], []>} : vector<8x16xf32>, vector<16x640xf32>, vector<8x640xf32> -> vector<8x640xf32>
    %120 = arith.addf %115, %119 : vector<8x640xf32>
    %c24 = arith.constant 24 : index
    %c0_106 = arith.constant 0 : index
    %c0_107 = arith.constant 0 : index
    %121 = vector.load %arg2[%c24, %c0_106, %c0_107] : memref<25x8x16xf32, #tpu.memory_space<vmem>>, vector<1x8x16xf32>
    %122 = vector.shape_cast %121 : vector<1x8x16xf32> to vector<8x16xf32>
    %c0_108 = arith.constant 0 : index
    %c72 = arith.constant 72 : index
    %123 = vector.load %arg1[%c0_108, %c72] : memref<16x768xf32, #tpu.memory_space<vmem>>, vector<16x640xf32>
    %cst_109 = arith.constant dense<0.000000e+00> : vector<8x640xf32>
    %124 = tpu.matmul %122, %123, %cst_109 {dimension_numbers = #tpu.dot_dimension_numbers<[1], [0], [0], [1], [0, 0, 1, 1], [], []>} : vector<8x16xf32>, vector<16x640xf32>, vector<8x640xf32> -> vector<8x640xf32>
    %125 = arith.addf %120, %124 : vector<8x640xf32>
    %c0_110 = arith.constant 0 : index
    %c0_111 = arith.constant 0 : index
    %126 = vector.load %arg3[%c0_110, %c0_111] : memref<8x1xf32, #tpu.memory_space<vmem>>, vector<8x1xf32>
    %127 = vector.broadcast %126 : vector<8x1xf32> to vector<8x640xf32>
    %128 = arith.addf %125, %127 : vector<8x640xf32>
    %c0_112 = arith.constant 0 : index
    %c0_113 = arith.constant 0 : index
    %129 = vector.load %arg5[%c0_112, %c0_113] : memref<8x640xf32, #tpu.memory_space<vmem>>, vector<8x640xf32>
    tpu.vector_store %arg5[%c0_112, %c0_113], %128 {strides = array<i32>} : memref<8x640xf32, #tpu.memory_space<vmem>>, vector<8x640xf32>,
    return
  }
  func.func @transform_0(%arg0: i32) -> (i32, i32) {
    %c0_i32 = arith.constant 0 : i32
    %c0_i32_0 = arith.constant 0 : i32
    %c0_i32_1 = arith.constant 0 : i32
    return %c0_i32, %c0_i32_0 : i32, i32
  }
  func.func @transform_1(%arg0: i32) -> (i32, i32, i32) {
    %c0_i32 = arith.constant 0 : i32
    %c0_i32_0 = arith.constant 0 : i32
    %c0_i32_1 = arith.constant 0 : i32
    %c0_i32_2 = arith.constant 0 : i32
    return %c0_i32, %c0_i32_0, %c0_i32_1 : i32, i32, i32
  }
  func.func @transform_2(%arg0: i32) -> (i32, i32) {
    %c0_i32 = arith.constant 0 : i32
    %c0_i32_0 = arith.constant 0 : i32
    %c0_i32_1 = arith.constant 0 : i32
    return %c0_i32, %c0_i32_0 : i32, i32
  }
  func.func @transform_3(%arg0: i32) -> i32 {
    %c0_i32 = arith.constant 0 : i32
    %c0_i32_0 = arith.constant 0 : i32
    return %c0_i32 : i32
  }
  func.func @transform_4(%arg0: i32) -> (i32, i32) {
    %c0_i32 = arith.constant 0 : i32
    %c0_i32_0 = arith.constant 0 : i32
    return %c0_i32, %arg0 : i32, i32
  }
}

</mosaic_0001>

<bundles_post_ra>
// kernel: fsrcnn_forward_pallas.5
= control target key start
LH: loop header
LB: loop body
LE: loop exit
PB: predicated region body
PF: predicated region fallthrough
CT: control target
= control target key end

     0   :  { %9 = vsyncpa [#allocation3], 0  ;;  %s1986_s0 = inlined_call_operand.hbm [shape: f32[8,640], index: 0, kind: input, shape index: {}]   ;;  %s1987_s1 = inlined_call_operand.hbm [shape: f32[9,8,8], index: 1, kind: input, shape index: {}]   ;;  %s1988_s2 = inlined_call_operand.hbm [shape: f32[8,1], index: 2, kind: input, shape index: {}]   ;;  %s1989_s3 = inlined_call_operand.hbm [shape: f32[2], index: 3, kind: input, shape index: {}]   ;;  %s1990_s4 = inlined_call_operand.hbm [shape: f32[8,512], index: 4, kind: output, shape index: {}]  }
   0x1   :  { %10 = vsyncpa [#allocation7], 0 }
   0x2   :  { %11 = vsyncpa [#allocation5], 0 }
   0x3   :  { %12 = vsyncpa [#allocation4], 0  ;;  %s1788_s15 = smov [#allocation6]   ;;  %s1682_s19 = scalar_lea.hbm %s1987_s1, 1152 }
   0x4   :  { %s28_s16 = sshll.u32 %s1788_s15, 4  ;;  %p1683_p0 = scmp.ne.s32.totalorder %s1987_s1, %s1682_s19  ;;  %s29_s16 = int_to_ptr.vmem [resolvable:$true] %s28_s16 }
   0x5   :  { %p1686_p1 = scmp.lt.u32.totalorder %s1682_s19, %s1987_s1 }
   0x7   :  { %p1688_p2 = pnand %p1686_p1, %p1683_p0 }
   0x9   :  { %1691 = shalt.err (!%p1688_p2)
}
   0xa   :  { %s1692_s24 = scalar_lea.vmem %s29_s16, 1152  ;;  %p1697_p4 = scmp.lt.s32.totalorder %s29_s16, %s29_s16 }
   0xb   :  { %p1693_p3 = scmp.ne.s32.totalorder %s29_s16, %s1692_s24  ;;  %p1698_p5 = scmp.lt.s32.totalorder %s1692_s24, %s1692_s24 }
   0xd   :  { %p1699_p6 = por %p1698_p5, %p1697_p4 }
   0xf   :  { %p1700_p7 = pnand %p1699_p6, %p1693_p3 }
  0x11   :  { %1703 = shalt.err (!%p1700_p7)
}
  0x12   :  { %s1789_s25 = smov 128   ;;  %s1790_s26 = smov 8  }
  0x13   :  { %34 = dma.hbm_to_vmem [thread:$0]  %s1987_s1, 1152, %s29_s16, [#allocation7], %s1789_s25, %s1789_s25, %s1790_s26  }
  0x14   :  { %s1791_s29 = smov [#allocation2]   ;;  %s1792_s5 = smov [#allocation8]  }
  0x15   :  { %s19_s30 = sshll.u32 %s1791_s29, 4  ;;  %s41_s6 = sshll.u32 %s1792_s5, 4  ;;  %s20_s30 = int_to_ptr.vmem [resolvable:$true] %s19_s30  ;;  %s42_s6 = int_to_ptr.vmem [resolvable:$true] %s41_s6 }
  0x16   :  { %s1704_s9 = scalar_lea.hbm %s1986_s0, 640 }
  0x17   :  { %p1705_p8 = scmp.ne.s32.totalorder %s1986_s0, %s1704_s9  ;;  %p1708_p9 = scmp.lt.u32.totalorder %s1704_s9, %s1986_s0 }
  0x19   :  { %p1710_p10 = pnand %p1708_p9, %p1705_p8 }
  0x1b   :  { %1713 = shalt.err (!%p1710_p10)
}
  0x1c   :  { %s1714_s1 = scalar_lea.vmem %s20_s30, 640  ;;  %p1719_p12 = scmp.lt.s32.totalorder %s20_s30, %s20_s30 }
  0x1d   :  { %p1715_p11 = scmp.ne.s32.totalorder %s20_s30, %s1714_s1  ;;  %p1720_p13 = scmp.lt.s32.totalorder %s1714_s1, %s1714_s1 }
  0x1f   :  { %p1721_p0 = por %p1720_p13, %p1719_p12 }
  0x21   :  { %p1722_p1 = pnand %p1721_p0, %p1715_p11 }
  0x23   :  { %1725 = shalt.err (!%p1722_p1)
}
  0x24   :  { %22 = dma.hbm_to_vmem [thread:$0]  %s1986_s0, 640, %s20_s30, [#allocation3]  }
  0x25   :  { %s1726_s18 = scalar_lea.hbm %s1988_s2, 128 }
  0x26   :  { %p1727_p2 = scmp.ne.s32.totalorder %s1988_s2, %s1726_s18  ;;  %p1730_p3 = scmp.lt.u32.totalorder %s1726_s18, %s1988_s2 }
  0x28   :  { %p1732_p4 = pnand %p1730_p3, %p1727_p2 }
  0x2a   :  { %1735 = shalt.err (!%p1732_p4)
}
  0x2b   :  { %s1736_s23 = scalar_lea.vmem %s42_s6, 128  ;;  %p1741_p6 = scmp.lt.s32.totalorder %s42_s6, %s42_s6 }
  0x2c   :  { %p1737_p5 = scmp.ne.s32.totalorder %s42_s6, %s1736_s23  ;;  %p1742_p7 = scmp.lt.s32.totalorder %s1736_s23, %s1736_s23 }
  0x2e   :  { %p1743_p8 = por %p1742_p7, %p1741_p6 }
  0x30   :  { %p1744_p9 = pnand %p1743_p8, %p1737_p5 }
  0x32   :  { %1747 = shalt.err (!%p1744_p9)
}
  0x33   :  { %44 = dma.hbm_to_vmem [thread:$0]  %s1988_s2, 128, %s42_s6, [#allocation7]  }
  0x34   :  { %s1748_s27 = scalar_lea.hbm %s1989_s3, 16 }
  0x35   :  { %p1749_p10 = scmp.ne.s32.totalorder %s1989_s3, %s1748_s27  ;;  %p1752_p11 = scmp.lt.u32.totalorder %s1748_s27, %s1989_s3 }
  0x37   :  { %p1754_p12 = pnand %p1752_p11, %p1749_p10 }
  0x39   :  { %1757 = shalt.err (!%p1754_p12)
}
  0x3a   :  { %s1793_s7 = smov [#allocation9]  }
  0x3b   :  { %52 = dma.hbm_to_smem %s1989_s3, 16, %s1793_s7, [#allocation5]  }
  0x3c   :  { %1780 = dma.done.wait [#allocation3], 640  }
  0x3d   :  { %1781 = vsyncadd [#allocation3], 4294966656 }
  0x3e   :  { %1782 = dma.done.wait [#allocation7], 1280  }
  0x3f   :  { %1783 = vsyncadd [#allocation7], 4294966016 }
  0x40   :  { %1784 = dma.done.wait [#allocation5], 16  }
  0x41   :  { %1785 = vsyncadd [#allocation5], 4294967280 }
  0x42   :  { %65 = sfence }
  0x43   :  { %v1878_v0 = vld [vmem:[#allocation2 + $0x18] sm:$0xff]  ;;  %v1880_v1 = vld [vmem:[#allocation2 + $0x8] sm:$0xff]  ;;  %s1794_s2 = smov 127   ;;  %v77_v2 = vld [vmem:[#allocation2 + $0x20] sm:$0xff]  ;;  %v1795_v4 = vmov 0.0   ;;  %s1796_s3 = smov 126  }
  0x44   :  { %89 = vrot.lane.b32.xlu1 %v1878_v0, %s1794_s2  ;;  %85 = vrot.lane.b32.xlu0 %v1880_v1, %s1794_s2  ;;  %v1884_v3 = vld [vmem:[#allocation2 + $0x10] sm:$0xff]  ;;  %v1889_v5 = vld [vmem:[#allocation2] sm:$0xff]  ;;  %s1797_s6 = smov 114   ;;  %s1798_s10 = smov 113   ;;  %v1802_v6 = vmov 0   ;;  %vm93_vm0 = vcmask 1039360  }
  0x45   :  { %170 = vmatprep.mubr.f32.mxu0 %v1795_v4  ;;  %241 = vmatprep.mubr.f32.mxu1 %v1795_v4  ;;  %s1799_s11 = smov 112   ;;  %s1800_s12 = smov 100   ;;  %v1583_v7 = vld [vmem:[#allocation8] sm:$0xff]  ;;  %vm102_vm1 = vcmask 64512   ;;  %vm405_vm2 = vcmask 1031168   ;;  %v66_v22 = vld [vmem:[#allocation6] sm:$0xff] }
  0x46   :  { %s1801_s13 = smov 99   ;;  %1681 = vset.pattern.permute.xlu0 %v1802_v6  ;;  %s1803_s1 = smov 98   ;;  %v72_v15 = vld [vmem:[#allocation6 + $0x8] sm:$0xff]  ;;  %vm575_vm3 = vcmask 932864   ;;  %v394_v31 = vld [vmem:[#allocation6 + $0x10] sm:$0xff]  ;;  %v564_v39 = vld [vmem:[#allocation6 + $0x18] sm:$0xff] }
  0x47   :  { %vm745_vm4 = vcmask 924672   ;;  %v734_v47 = vld [vmem:[#allocation6 + $0x20] sm:$0xff]  ;;  %vm915_vm5 = vcmask 916480   ;;  %v904_v56 = vld [vmem:[#allocation6 + $0x28] sm:$0xff]  ;;  %vm1085_vm6 = vcmask 818176   ;;  %vm1255_vm7 = vcmask 809984  }
  0x48   :  { %91 = vrot.lane.b32.xlu1 %v77_v2, %s1794_s2  ;;  %87 = vrot.lane.b32.xlu0 %v1884_v3, %s1794_s2  ;;  %vm1425_vm8 = vcmask 801792   ;;  %s1804_s14 = smov [#allocation10]  }
  0x49   :  { %s1603_s15 = sshll.u32 %s1804_s14, 4  ;;  %s1604_s15 = int_to_ptr.vmem [resolvable:$true] %s1603_s15 }
  0x4a   :  { %s1758_s16 = scalar_lea.vmem %s1604_s15, 512  ;;  %p1763_p0 = scmp.lt.s32.totalorder %s1604_s15, %s1604_s15 }
  0x4b   :  { %p1759_p13 = scmp.ne.s32.totalorder %s1604_s15, %s1758_s16  ;;  %p1764_p1 = scmp.lt.s32.totalorder %s1758_s16, %s1758_s16 }
  0x4c   :  { %397 = vrot.lane.b32.xlu1 %v1880_v1, %s1796_s3  ;;  %83 = vrot.lane.b32.xlu0 %v1889_v5, %s1794_s2 }
  0x4d   :  { %p1765_p2 = por %p1764_p1, %p1763_p0 }
  0x4f   :  { %p1766_p3 = pnand %p1765_p2, %p1759_p13 }
  0x50   :  { %401 = vrot.lane.b32.xlu1 %v1878_v0, %s1796_s3  ;;  %399 = vrot.lane.b32.xlu0 %v1884_v3, %s1796_s3 }
  0x54   :  { %395 = vrot.lane.b32.xlu1 %v1889_v5, %s1796_s3  ;;  %403 = vrot.lane.b32.xlu0 %v77_v2, %s1796_s3 }
  0x58   :  { %569 = vrot.lane.b32.xlu1 %v1884_v3, %s1797_s6  ;;  %567 = vrot.lane.b32.xlu0 %v1880_v1, %s1797_s6 }
  0x5c   :  { %573 = vrot.lane.b32.xlu1 %v77_v2, %s1797_s6  ;;  %571 = vrot.lane.b32.xlu0 %v1878_v0, %s1797_s6 }
  0x60   :  { %737 = vrot.lane.b32.xlu1 %v1880_v1, %s1798_s10  ;;  %565 = vrot.lane.b32.xlu0 %v1889_v5, %s1797_s6 }
  0x64   :  { %741 = vrot.lane.b32.xlu1 %v1878_v0, %s1798_s10  ;;  %739 = vrot.lane.b32.xlu0 %v1884_v3, %s1798_s10 }
  0x68   :  { %735 = vrot.lane.b32.xlu1 %v1889_v5, %s1798_s10  ;;  %743 = vrot.lane.b32.xlu0 %v77_v2, %s1798_s10 }
  0x6c   :  { %909 = vrot.lane.b32.xlu1 %v1884_v3, %s1799_s11  ;;  %907 = vrot.lane.b32.xlu0 %v1880_v1, %s1799_s11 }
  0x70   :  { %913 = vrot.lane.b32.xlu1 %v77_v2, %s1799_s11  ;;  %911 = vrot.lane.b32.xlu0 %v1878_v0, %s1799_s11 }
  0x74   :  { %1077 = vrot.lane.b32.xlu1 %v1880_v1, %s1800_s12  ;;  %905 = vrot.lane.b32.xlu0 %v1889_v5, %s1799_s11 }
  0x78   :  { %1081 = vrot.lane.b32.xlu1 %v1878_v0, %s1800_s12  ;;  %1079 = vrot.lane.b32.xlu0 %v1884_v3, %s1800_s12 }
  0x7c   :  { %1075 = vrot.lane.b32.xlu1 %v1889_v5, %s1800_s12  ;;  %1083 = vrot.lane.b32.xlu0 %v77_v2, %s1800_s12 }
  0x80   :  { %1249 = vrot.lane.b32.xlu1 %v1884_v3, %s1801_s13  ;;  %1247 = vrot.lane.b32.xlu0 %v1880_v1, %s1801_s13 }
  0x84   :  { %1253 = vrot.lane.b32.xlu1 %v77_v2, %s1801_s13  ;;  %1251 = vrot.lane.b32.xlu0 %v1878_v0, %s1801_s13 }
  0x88   :  { %1417 = vrot.lane.b32.xlu1 %v1880_v1, %s1803_s1  ;;  %1245 = vrot.lane.b32.xlu0 %v1889_v5, %s1801_s13 }
  0x8c   :  { %1421 = vrot.lane.b32.xlu1 %v1878_v0, %s1803_s1  ;;  %1419 = vrot.lane.b32.xlu0 %v1884_v3, %s1803_s1 }
  0x90   :  { %1415 = vrot.lane.b32.xlu1 %v1889_v5, %s1803_s1  ;;  %1423 = vrot.lane.b32.xlu0 %v77_v2, %s1803_s1 }
  0x94   :  { %1586 = vperm.xlu0 %1681, %v1583_v7  }
  0xb6   :  { %v90_v8 = vpop.permute.xlu1 %89  ;;  %v86_v9 = vpop.permute.xlu0 %85 }
  0xba   :  { %v92_v10 = vpop.permute.xlu1 %91  ;;  %v88_v11 = vpop.permute.xlu0 %87 }
  0xbb   :  { %v95_v12 = vsel %vm93_vm0, %v86_v9, %v88_v11  ;;  %v97_v13 = vsel %vm93_vm0, %v90_v8, %v92_v10  ;;  %v96_v14 = vsel %vm93_vm0, %v88_v11, %v90_v8 }
  0xbc   :  { %106 = vmatprep.subr.mxu0 %v95_v12  ;;  %177 = vmatprep.subr.mxu1 %v97_v13  ;;  %v1244_v13 = vld [vmem:[#allocation6 + $0x38] sm:$0xff] }
  0xbd   :  { %178 = vmatpush1.msra.mxu1 %v96_v14 }
  0xbe   :  { %v398_v16 = vpop.permute.xlu1 %397  ;;  %v84_v17 = vpop.permute.xlu0 %83  ;;  %1615 = vmatmul.mubr.msk.f32.vlgmr.msra.gmra.mrb[0].mxu1 %vm102_vm1, %v72_v15  ;;  %322 = vmatprep.subr.mxu1 %v1878_v0 }
  0xbf   :  { %v94_v18 = vsel %vm93_vm0, %v84_v17, %v86_v9  ;;  %323 = vmatpush1.msra.mxu1 %v1884_v3  ;;  %386 = vmatprep.mubr.f32.mxu1 %v1795_v4 }
  0xc0   :  { %107 = vmatpush1.msra.mxu0 %v94_v18 }
  0xc1   :  { %1614 = vmatmul.mubr.msk.f32.vlgmr.msra.gmra.mrb[0].mxu0 %vm102_vm1, %v72_v15  ;;  %251 = vmatprep.subr.mxu0 %v1880_v1  ;;  %v1074_v1 = vld [vmem:[#allocation6 + $0x30] sm:$0xff] }
  0xc2   :  { %v402_v19 = vpop.permute.xlu1 %401  ;;  %v400_v20 = vpop.permute.xlu0 %399  ;;  %252 = vmatpush1.msra.mxu0 %v1889_v5  ;;  %315 = vmatprep.mubr.f32.mxu0 %v1795_v4 }
  0xc3   :  { %v407_v21 = vsel %vm405_vm2, %v398_v16, %v400_v20  ;;  %v408_v27 = vsel %vm405_vm2, %v400_v20, %v402_v19 }
  0xc4   :  { %417 = vmatprep.subr.mxu0 %v407_v21 }
  0xc6   :  { %v396_v23 = vpop.permute.xlu1 %395  ;;  %v404_v24 = vpop.permute.xlu0 %403  ;;  %1617 = vmatmul.mubr.msk.f32.vlgmr.msra.gmra.mrb[0].mxu1 %vm102_vm1, %v66_v22 }
  0xc7   :  { %v406_v25 = vsel %vm405_vm2, %v396_v23, %v398_v16  ;;  %v409_v26 = vsel %vm405_vm2, %v402_v19, %v404_v24  ;;  %552 = vmatprep.mubr.f32.mxu1 %v1795_v4 }
  0xc8   :  { %488 = vmatprep.subr.mxu1 %v409_v26 }
  0xc9   :  { %1616 = vmatmul.mubr.msk.f32.vlgmr.msra.gmra.mrb[0].mxu0 %vm102_vm1, %v66_v22  ;;  %489 = vmatpush1.msra.mxu1 %v408_v27  ;;  %v1414_v22 = vld [vmem:[#allocation6 + $0x40] sm:$0xff] }
  0xca   :  { %418 = vmatpush1.msra.mxu0 %v406_v25  ;;  %v570_v28 = vpop.permute.xlu1 %569  ;;  %v568_v29 = vpop.permute.xlu0 %567  ;;  %481 = vmatprep.mubr.f32.mxu0 %v1795_v4 }
  0xcb   :  { %v577_v30 = vsel %vm575_vm3, %v568_v29, %v570_v28 }
  0xcc   :  { %587 = vmatprep.subr.mxu0 %v577_v30 }
  0xce   :  { %v574_v32 = vpop.permute.xlu1 %573  ;;  %v572_v33 = vpop.permute.xlu0 %571  ;;  %1619 = vmatmul.mubr.msk.f32.vlgmr.msra.gmra.mrb[0].mxu1 %vm102_vm1, %v394_v31 }
  0xcf   :  { %v578_v34 = vsel %vm575_vm3, %v570_v28, %v572_v33  ;;  %v579_v35 = vsel %vm575_vm3, %v572_v33, %v574_v32  ;;  %722 = vmatprep.mubr.f32.mxu1 %v1795_v4 }
  0xd0   :  { %658 = vmatprep.subr.mxu1 %v579_v35 }
  0xd1   :  { %659 = vmatpush1.msra.mxu1 %v578_v34  ;;  %1618 = vmatmul.mubr.msk.f32.vlgmr.msra.gmra.mrb[0].mxu0 %vm102_vm1, %v394_v31 }
  0xd2   :  { %v738_v36 = vpop.permute.xlu1 %737  ;;  %v566_v37 = vpop.permute.xlu0 %565  ;;  %651 = vmatprep.mubr.f32.mxu0 %v1795_v4 }
  0xd3   :  { %v576_v38 = vsel %vm575_vm3, %v566_v37, %v568_v29 }
  0xd4   :  { %588 = vmatpush1.msra.mxu0 %v576_v38 }
  0xd6   :  { %v742_v40 = vpop.permute.xlu1 %741  ;;  %v740_v41 = vpop.permute.xlu0 %739  ;;  %1621 = vmatmul.mubr.msk.f32.vlgmr.msra.gmra.mrb[0].mxu1 %vm102_vm1, %v564_v39 }
  0xd7   :  { %v747_v42 = vsel %vm745_vm4, %v738_v36, %v740_v41  ;;  %892 = vmatprep.mubr.f32.mxu1 %v1795_v4  ;;  %v748_v48 = vsel %vm745_vm4, %v740_v41, %v742_v40 }
  0xd8   :  { %757 = vmatprep.subr.mxu0 %v747_v42 }
  0xd9   :  { %1620 = vmatmul.mubr.msk.f32.vlgmr.msra.gmra.mrb[0].mxu0 %vm102_vm1, %v564_v39 }
  0xda   :  { %v736_v43 = vpop.permute.xlu1 %735  ;;  %v744_v44 = vpop.permute.xlu0 %743  ;;  %821 = vmatprep.mubr.f32.mxu0 %v1795_v4 }
  0xdb   :  { %v746_v45 = vsel %vm745_vm4, %v736_v43, %v738_v36  ;;  %v749_v46 = vsel %vm745_vm4, %v742_v40, %v744_v44 }
  0xdc   :  { %758 = vmatpush1.msra.mxu0 %v746_v45  ;;  %828 = vmatprep.subr.mxu1 %v749_v46 }
  0xdd   :  { %829 = vmatpush1.msra.mxu1 %v748_v48 }
  0xde   :  { %v910_v49 = vpop.permute.xlu1 %909  ;;  %v908_v50 = vpop.permute.xlu0 %907  ;;  %1623 = vmatmul.mubr.msk.f32.vlgmr.msra.gmra.mrb[0].mxu1 %vm102_vm1, %v734_v47 }
  0xdf   :  { %v917_v51 = vsel %vm915_vm5, %v908_v50, %v910_v49  ;;  %1062 = vmatprep.mubr.f32.mxu1 %v1795_v4 }
  0xe0   :  { %927 = vmatprep.subr.mxu0 %v917_v51 }
  0xe1   :  { %1622 = vmatmul.mubr.msk.f32.vlgmr.msra.gmra.mrb[0].mxu0 %vm102_vm1, %v734_v47 }
  0xe2   :  { %v914_v52 = vpop.permute.xlu1 %913  ;;  %v912_v53 = vpop.permute.xlu0 %911  ;;  %991 = vmatprep.mubr.f32.mxu0 %v1795_v4 }
  0xe3   :  { %v918_v54 = vsel %vm915_vm5, %v910_v49, %v912_v53  ;;  %v919_v55 = vsel %vm915_vm5, %v912_v53, %v914_v52 }
  0xe4   :  { %998 = vmatprep.subr.mxu1 %v919_v55 }
  0xe5   :  { %999 = vmatpush1.msra.mxu1 %v918_v54 }
  0xe6   :  { %v1078_v57 = vpop.permute.xlu1 %1077  ;;  %v906_v58 = vpop.permute.xlu0 %905  ;;  %1625 = vmatmul.mubr.msk.f32.vlgmr.msra.gmra.mrb[0].mxu1 %vm102_vm1, %v904_v56 }
  0xe7   :  { %v916_v59 = vsel %vm915_vm5, %v906_v58, %v908_v50  ;;  %1232 = vmatprep.mubr.f32.mxu1 %v1795_v4 }
  0xe8   :  { %928 = vmatpush1.msra.mxu0 %v916_v59 }
  0xe9   :  { %1624 = vmatmul.mubr.msk.f32.vlgmr.msra.gmra.mrb[0].mxu0 %vm102_vm1, %v904_v56 }
  0xea   :  { %v1082_v60 = vpop.permute.xlu1 %1081  ;;  %v1080_v61 = vpop.permute.xlu0 %1079  ;;  %1161 = vmatprep.mubr.f32.mxu0 %v1795_v4 }
  0xeb   :  { %v1087_v62 = vsel %vm1085_vm6, %v1078_v57, %v1080_v61  ;;  %v1088_v5 = vsel %vm1085_vm6, %v1080_v61, %v1082_v60 }
  0xec   :  { %1097 = vmatprep.subr.mxu0 %v1087_v62 }
  0xee   :  { %v1076_v63 = vpop.permute.xlu1 %1075  ;;  %v1084_v0 = vpop.permute.xlu0 %1083 }
  0xef   :  { %v1086_v2 = vsel %vm1085_vm6, %v1076_v63, %v1078_v57  ;;  %v1089_v3 = vsel %vm1085_vm6, %v1082_v60, %v1084_v0 }
  0xf0   :  { %1098 = vmatpush1.msra.mxu0 %v1086_v2  ;;  %1168 = vmatprep.subr.mxu1 %v1089_v3 }
  0xf1   :  { %1169 = vmatpush1.msra.mxu1 %v1088_v5  ;;  %1626 = vmatmul.mubr.msk.f32.vlgmr.msra.gmra.mrb[0].mxu0 %vm102_vm1, %v1074_v1 }
  0xf2   :  { %v1250_v6 = vpop.permute.xlu1 %1249  ;;  %v1248_v7 = vpop.permute.xlu0 %1247  ;;  %1627 = vmatmul.mubr.msk.f32.vlgmr.msra.gmra.mrb[0].mxu1 %vm102_vm1, %v1074_v1  ;;  %1331 = vmatprep.mubr.f32.mxu0 %v1795_v4 }
  0xf3   :  { %v1257_v8 = vsel %vm1255_vm7, %v1248_v7, %v1250_v6  ;;  %1402 = vmatprep.mubr.f32.mxu1 %v1795_v4 }
  0xf4   :  { %1267 = vmatprep.subr.mxu0 %v1257_v8 }
  0xf6   :  { %v1254_v9 = vpop.permute.xlu1 %1253  ;;  %v1252_v10 = vpop.permute.xlu0 %1251 }
  0xf7   :  { %v1258_v11 = vsel %vm1255_vm7, %v1250_v6, %v1252_v10  ;;  %v1259_v12 = vsel %vm1255_vm7, %v1252_v10, %v1254_v9 }
  0xf8   :  { %1338 = vmatprep.subr.mxu1 %v1259_v12 }
  0xf9   :  { %1339 = vmatpush1.msra.mxu1 %v1258_v11 }
  0xfa   :  { %v1418_v14 = vpop.permute.xlu1 %1417  ;;  %v1246_v15 = vpop.permute.xlu0 %1245  ;;  %1629 = vmatmul.mubr.msk.f32.vlgmr.msra.gmra.mrb[0].mxu1 %vm102_vm1, %v1244_v13 }
  0xfb   :  { %v1256_v16 = vsel %vm1255_vm7, %v1246_v15, %v1248_v7  ;;  %1572 = vmatprep.mubr.f32.mxu1 %v1795_v4 }
  0xfc   :  { %1268 = vmatpush1.msra.mxu0 %v1256_v16 }
  0xfd   :  { %1628 = vmatmul.mubr.msk.f32.vlgmr.msra.gmra.mrb[0].mxu0 %vm102_vm1, %v1244_v13 }
  0xfe   :  { %v1422_v17 = vpop.permute.xlu1 %1421  ;;  %v1420_v18 = vpop.permute.xlu0 %1419  ;;  %1501 = vmatprep.mubr.f32.mxu0 %v1795_v4 }
  0xff   :  { %v1427_v19 = vsel %vm1425_vm8, %v1418_v14, %v1420_v18  ;;  %v1428_v25 = vsel %vm1425_vm8, %v1420_v18, %v1422_v17 }
 0x100   :  { %1437 = vmatprep.subr.mxu0 %v1427_v19 }
 0x102   :  { %v1416_v20 = vpop.permute.xlu1 %1415  ;;  %v1424_v21 = vpop.permute.xlu0 %1423 }
 0x103   :  { %v1426_v23 = vsel %vm1425_vm8, %v1416_v20, %v1418_v14  ;;  %v1429_v24 = vsel %vm1425_vm8, %v1422_v17, %v1424_v21 }
 0x104   :  { %1438 = vmatpush1.msra.mxu0 %v1426_v23  ;;  %1508 = vmatprep.subr.mxu1 %v1429_v24 }
 0x105   :  { %1630 = vmatmul.mubr.msk.f32.vlgmr.msra.gmra.mrb[0].mxu0 %vm102_vm1, %v1414_v22  ;;  %1509 = vmatpush1.msra.mxu1 %v1428_v25 }
 0x106   :  { %1631 = vmatmul.mubr.msk.f32.vlgmr.msra.gmra.mrb[0].mxu1 %vm102_vm1, %v1414_v22 }
 0x113   :  { %v1587_v26 = vpop.permute.xlu0 %1586 }
 0x1d8   :  { %v1503_v27 = vpop.f32.mrb[0].mxu0 }
 0x1d9   :  { %v1589_v4 = vadd.f32 %v1587_v26, %v1503_v27  ;;  %v1505_v28 = vpop.f32.mrb[1].mxu0  ;;  %v1574_v29 = vpop.f32.mrb[0].mxu1 }
 0x1da   :  { %v1590_v30 = vadd.f32 %v1587_v26, %v1505_v28  ;;  %v1591_v31 = vadd.f32 %v1587_v26, %v1574_v29  ;;  %v1576_v32 = vpop.f32.mrb[1].mxu1 }
 0x1db   :  { %1593 = vst [vmem:[#allocation10] sm:$0xff] %v1589_v4  ;;  %v1592_v33 = vadd.f32 %v1587_v26, %v1576_v32 }
 0x1dc   :  { %1594 = vst [vmem:[#allocation10 + $0x8] sm:$0xff] %v1590_v30  ;;  %1595 = vst [vmem:[#allocation10 + $0x10] sm:$0xff] %v1591_v31 }
 0x1dd   :  { %1596 = vst [vmem:[#allocation10 + $0x18] sm:$0xff] %v1592_v33 }
 0x1de   :  { %1769 = shalt.err (!%p1766_p3)
}
 0x1df   :  { %s1770_s19 = scalar_lea.hbm %s1990_s4, 512 }
 0x1e0   :  { %p1771_p4 = scmp.ne.s32.totalorder %s1990_s4, %s1770_s19  ;;  %p1774_p5 = scmp.lt.u32.totalorder %s1770_s19, %s1990_s4 }
 0x1e2   :  { %p1776_p6 = pnand %p1774_p5, %p1771_p4 }
 0x1e4   :  { %1779 = shalt.err (!%p1776_p6)
}
 0x1e5   :  { %1606 = dma.vmem_to_hbm [thread:$0]  %s1604_s15, 512, %s1990_s4, [#allocation4]  }
 0x1e6   :  { %1786 = dma.done.wait [#allocation4], 512  }
 0x1e7   :  { %1787 = vsyncadd [#allocation4], 4294966784 }
 0x1e8   :  { %1610 = vsyncpa [#allocation3], 1 }
 0x1e9   :  { %1611 = vsyncpa [#allocation7], 1 }
 0x1ea   :  { %1612 = vsyncpa [#allocation4], 1 }
 0x1eb   :  { %1613 = vsyncpa [#allocation5], 1 }

// kernel: fsrcnn_forward_pallas.6
= control target key start
LH: loop header
LB: loop body
LE: loop exit
PB: predicated region body
PF: predicated region fallthrough
CT: control target
= control target key end

     0   :  { %11 = vsyncpa [#allocation3], 0  ;;  %s2351_s0 = inlined_call_operand.hbm [shape: f32[8,640], index: 0, kind: input, shape index: {}]   ;;  %s2352_s1 = inlined_call_operand.hbm [shape: f32[9,8,8], index: 1, kind: input, shape index: {}]   ;;  %s2353_s2 = inlined_call_operand.hbm [shape: f32[8,1], index: 2, kind: input, shape index: {}]   ;;  %s2354_s3 = inlined_call_operand.hbm [shape: f32[16,8], index: 3, kind: input, shape index: {}]   ;;  %s2355_s4 = inlined_call_operand.hbm [shape: f32[16,1], index: 4, kind: input, shape index: {}]   ;;  %s2356_s5 = inlined_call_operand.hbm [shape: f32[2], index: 5, kind: input, shape index: {}]   ;;  %s2357_s6 = inlined_call_operand.hbm [shape: f32[16,512], index: 6, kind: output, shape index: {}]  }
   0x1   :  { %12 = vsyncpa [#allocation7], 0 }
   0x2   :  { %13 = vsyncpa [#allocation10], 0 }
   0x3   :  { %14 = vsyncpa [#allocation5], 0 }
   0x4   :  { %15 = vsyncpa [#allocation4], 0  ;;  %s2098_s21 = smov [#allocation6]   ;;  %s1946_s25 = scalar_lea.hbm %s2352_s1, 1152 }
   0x5   :  { %s31_s22 = sshll.u32 %s2098_s21, 4  ;;  %p1947_p0 = scmp.ne.s32.totalorder %s2352_s1, %s1946_s25  ;;  %s32_s22 = int_to_ptr.vmem [resolvable:$true] %s31_s22 }
   0x6   :  { %p1950_p1 = scmp.lt.u32.totalorder %s1946_s25, %s2352_s1 }
   0x8   :  { %p1952_p2 = pnand %p1950_p1, %p1947_p0 }
   0xa   :  { %1955 = shalt.err (!%p1952_p2)
}
   0xb   :  { %s1956_s30 = scalar_lea.vmem %s32_s22, 1152  ;;  %p1961_p4 = scmp.lt.s32.totalorder %s32_s22, %s32_s22 }
   0xc   :  { %p1957_p3 = scmp.ne.s32.totalorder %s32_s22, %s1956_s30  ;;  %p1962_p5 = scmp.lt.s32.totalorder %s1956_s30, %s1956_s30 }
   0xe   :  { %p1963_p6 = por %p1962_p5, %p1961_p4 }
  0x10   :  { %p1964_p7 = pnand %p1963_p6, %p1957_p3 }
  0x12   :  { %1967 = shalt.err (!%p1964_p7)
}
  0x13   :  { %s2099_s7 = smov 128   ;;  %s2100_s8 = smov 8  }
  0x14   :  { %37 = dma.hbm_to_vmem [thread:$0]  %s2352_s1, 1152, %s32_s22, [#allocation7], %s2099_s7, %s2099_s7, %s2100_s8  }
  0x15   :  { %s2101_s11 = smov [#allocation9]   ;;  %s2102_s13 = smov [#allocation2]  }
  0x16   :  { %s53_s12 = sshll.u32 %s2101_s11, 4  ;;  %s22_s14 = sshll.u32 %s2102_s13, 4  ;;  %s54_s12 = int_to_ptr.vmem [resolvable:$true] %s53_s12  ;;  %s23_s14 = int_to_ptr.vmem [resolvable:$true] %s22_s14 }
  0x17   :  { %s1968_s17 = scalar_lea.hbm %s2354_s3, 256 }
  0x18   :  { %p1969_p8 = scmp.ne.s32.totalorder %s2354_s3, %s1968_s17  ;;  %p1972_p9 = scmp.lt.u32.totalorder %s1968_s17, %s2354_s3 }
  0x1a   :  { %p1974_p10 = pnand %p1972_p9, %p1969_p8 }
  0x1c   :  { %1977 = shalt.err (!%p1974_p10)
}
  0x1d   :  { %s1978_s1 = scalar_lea.vmem %s54_s12, 256  ;;  %p1983_p12 = scmp.lt.s32.totalorder %s54_s12, %s54_s12 }
  0x1e   :  { %p1979_p11 = scmp.ne.s32.totalorder %s54_s12, %s1978_s1  ;;  %p1984_p13 = scmp.lt.s32.totalorder %s1978_s1, %s1978_s1 }
  0x20   :  { %p1985_p0 = por %p1984_p13, %p1983_p12 }
  0x22   :  { %p1986_p1 = pnand %p1985_p0, %p1979_p11 }
  0x24   :  { %1989 = shalt.err (!%p1986_p1)
}
  0x25   :  { %59 = dma.hbm_to_vmem [thread:$0]  %s2354_s3, 256, %s54_s12, [#allocation10], %s2099_s7, %s2099_s7, %s2100_s8  }
  0x26   :  { %s1990_s26 = scalar_lea.hbm %s2351_s0, 640 }
  0x27   :  { %p1991_p2 = scmp.ne.s32.totalorder %s2351_s0, %s1990_s26  ;;  %p1994_p3 = scmp.lt.u32.totalorder %s1990_s26, %s2351_s0 }
  0x29   :  { %p1996_p4 = pnand %p1994_p3, %p1991_p2 }
  0x2b   :  { %1999 = shalt.err (!%p1996_p4)
}
  0x2c   :  { %s2000_s9 = scalar_lea.vmem %s23_s14, 640  ;;  %p2005_p6 = scmp.lt.s32.totalorder %s23_s14, %s23_s14 }
  0x2d   :  { %p2001_p5 = scmp.ne.s32.totalorder %s23_s14, %s2000_s9  ;;  %p2006_p7 = scmp.lt.s32.totalorder %s2000_s9, %s2000_s9 }
  0x2f   :  { %p2007_p8 = por %p2006_p7, %p2005_p6 }
  0x31   :  { %p2008_p9 = pnand %p2007_p8, %p2001_p5 }
  0x33   :  { %2011 = shalt.err (!%p2008_p9)
}
  0x34   :  { %25 = dma.hbm_to_vmem [thread:$0]  %s2351_s0, 640, %s23_s14, [#allocation3]  }
  0x35   :  { %s2103_s11 = smov [#allocation8]   ;;  %s2104_s13 = smov [#allocation11]  }
  0x36   :  { %s44_s12 = sshll.u32 %s2103_s11, 4  ;;  %s65_s15 = sshll.u32 %s2104_s13, 4  ;;  %s45_s12 = int_to_ptr.vmem [resolvable:$true] %s44_s12  ;;  %s66_s15 = int_to_ptr.vmem [resolvable:$true] %s65_s15 }
  0x37   :  { %s2012_s18 = scalar_lea.hbm %s2353_s2, 128 }
  0x38   :  { %p2013_p10 = scmp.ne.s32.totalorder %s2353_s2, %s2012_s18  ;;  %p2016_p11 = scmp.lt.u32.totalorder %s2012_s18, %s2353_s2 }
  0x3a   :  { %p2018_p12 = pnand %p2016_p11, %p2013_p10 }
  0x3c   :  { %2021 = shalt.err (!%p2018_p12)
}
  0x3d   :  { %s2022_s0 = scalar_lea.vmem %s45_s12, 128  ;;  %p2027_p0 = scmp.lt.s32.totalorder %s45_s12, %s45_s12 }
  0x3e   :  { %p2023_p13 = scmp.ne.s32.totalorder %s45_s12, %s2022_s0  ;;  %p2028_p1 = scmp.lt.s32.totalorder %s2022_s0, %s2022_s0 }
  0x40   :  { %p2029_p2 = por %p2028_p1, %p2027_p0 }
  0x42   :  { %p2030_p3 = pnand %p2029_p2, %p2023_p13 }
  0x44   :  { %2033 = shalt.err (!%p2030_p3)
}
  0x45   :  { %47 = dma.hbm_to_vmem [thread:$0]  %s2353_s2, 128, %s45_s12, [#allocation7]  }
  0x46   :  { %s2034_s25 = scalar_lea.hbm %s2355_s4, 256 }
  0x47   :  { %p2035_p4 = scmp.ne.s32.totalorder %s2355_s4, %s2034_s25  ;;  %p2038_p5 = scmp.lt.u32.totalorder %s2034_s25, %s2355_s4 }
  0x49   :  { %p2040_p6 = pnand %p2038_p5, %p2035_p4 }
  0x4b   :  { %2043 = shalt.err (!%p2040_p6)
}
  0x4c   :  { %s2044_s30 = scalar_lea.vmem %s66_s15, 256  ;;  %p2049_p8 = scmp.lt.s32.totalorder %s66_s15, %s66_s15 }
  0x4d   :  { %p2045_p7 = scmp.ne.s32.totalorder %s66_s15, %s2044_s30  ;;  %p2050_p9 = scmp.lt.s32.totalorder %s2044_s30, %s2044_s30 }
  0x4f   :  { %p2051_p10 = por %p2050_p9, %p2049_p8 }
  0x51   :  { %p2052_p11 = pnand %p2051_p10, %p2045_p7 }
  0x53   :  { %2055 = shalt.err (!%p2052_p11)
}
  0x54   :  { %71 = dma.hbm_to_vmem [thread:$0]  %s2355_s4, 256, %s66_s15, [#allocation10], %s2099_s7, %s2099_s7, %s2100_s8  }
  0x55   :  { %s2056_s11 = scalar_lea.hbm %s2356_s5, 16 }
  0x56   :  { %p2057_p12 = scmp.ne.s32.totalorder %s2356_s5, %s2056_s11  ;;  %p2060_p13 = scmp.lt.u32.totalorder %s2056_s11, %s2356_s5 }
  0x58   :  { %p2062_p0 = pnand %p2060_p13, %p2057_p12 }
  0x5a   :  { %2065 = shalt.err (!%p2062_p0)
}
  0x5b   :  { %s2105_s18 = smov [#allocation12]  }
  0x5c   :  { %79 = dma.hbm_to_smem %s2356_s5, 16, %s2105_s18, [#allocation5]  }
  0x5d   :  { %2088 = dma.done.wait [#allocation3], 640  }
  0x5e   :  { %2089 = vsyncadd [#allocation3], 4294966656 }
  0x5f   :  { %2090 = dma.done.wait [#allocation7], 1280  }
  0x60   :  { %2091 = vsyncadd [#allocation7], 4294966016 }
  0x61   :  { %2092 = dma.done.wait [#allocation10], 512  }
  0x62   :  { %2093 = vsyncadd [#allocation10], 4294966784 }
  0x63   :  { %2094 = dma.done.wait [#allocation5], 16  }
  0x64   :  { %2095 = vsyncadd [#allocation5], 4294967280 }
  0x65   :  { %98 = sfence }
  0x66   :  { %v2235_v0 = vld [vmem:[#allocation2 + $0x18] sm:$0xff]  ;;  %v2237_v1 = vld [vmem:[#allocation2 + $0x8] sm:$0xff]  ;;  %s2106_s4 = smov 127   ;;  %v110_v2 = vld [vmem:[#allocation2 + $0x20] sm:$0xff]  ;;  %v2107_v4 = vmov 0.0   ;;  %s2108_s5 = smov 126  }
  0x67   :  { %122 = vrot.lane.b32.xlu1 %v2235_v0, %s2106_s4  ;;  %118 = vrot.lane.b32.xlu0 %v2237_v1, %s2106_s4  ;;  %v2241_v3 = vld [vmem:[#allocation2 + $0x10] sm:$0xff]  ;;  %v2246_v5 = vld [vmem:[#allocation2] sm:$0xff]  ;;  %s2109_s7 = smov 114   ;;  %s2110_s8 = smov 113   ;;  %v2114_v6 = vmov 0   ;;  %vm126_vm0 = vcmask 1039360  }
  0x68   :  { %203 = vmatprep.mubr.f32.mxu0 %v2107_v4  ;;  %274 = vmatprep.mubr.f32.mxu1 %v2107_v4  ;;  %s2111_s15 = smov 112   ;;  %s2112_s21 = smov 100   ;;  %v1616_v7 = vld [vmem:[#allocation8] sm:$0xff]  ;;  %vm135_vm1 = vcmask 64512   ;;  %vm438_vm2 = vcmask 1031168   ;;  %v99_v22 = vld [vmem:[#allocation6] sm:$0xff] }
  0x69   :  { %s2113_s1 = smov 99   ;;  %1944 = vset.pattern.permute.xlu0 %v2114_v6  ;;  %1945 = vset.pattern.permute.xlu1 %v2114_v6  ;;  %s2115_s0 = smov 98   ;;  %v105_v15 = vld [vmem:[#allocation6 + $0x8] sm:$0xff]  ;;  %vm608_vm3 = vcmask 932864   ;;  %v427_v31 = vld [vmem:[#allocation6 + $0x10] sm:$0xff]  ;;  %v597_v39 = vld [vmem:[#allocation6 + $0x18] sm:$0xff] }
  0x6a   :  { %vm778_vm4 = vcmask 924672   ;;  %v767_v47 = vld [vmem:[#allocation6 + $0x20] sm:$0xff]  ;;  %vm948_vm5 = vcmask 916480   ;;  %v937_v56 = vld [vmem:[#allocation6 + $0x28] sm:$0xff]  ;;  %vm1118_vm6 = vcmask 818176   ;;  %vm1288_vm7 = vcmask 809984  }
  0x6b   :  { %124 = vrot.lane.b32.xlu1 %v110_v2, %s2106_s4  ;;  %120 = vrot.lane.b32.xlu0 %v2241_v3, %s2106_s4  ;;  %vm1458_vm8 = vcmask 801792   ;;  %s1626_s14 = sld [smem:[#allocation12]]  ;;  %s1890_s22 = sld [smem:[#allocation12 + $0x1]] }
  0x6c   :  { %s2116_s23 = smov [#allocation13]  }
  0x6d   :  { %s1853_s24 = sshll.u32 %s2116_s23, 4  ;;  %s1854_s24 = int_to_ptr.vmem [resolvable:$true] %s1853_s24 }
  0x6e   :  { %s2066_s25 = scalar_lea.vmem %s1854_s24, 1024  ;;  %p2071_p2 = scmp.lt.s32.totalorder %s1854_s24, %s1854_s24 }
  0x6f   :  { %430 = vrot.lane.b32.xlu1 %v2237_v1, %s2108_s5  ;;  %116 = vrot.lane.b32.xlu0 %v2246_v5, %s2106_s4  ;;  %p2067_p1 = scmp.ne.s32.totalorder %s1854_s24, %s2066_s25  ;;  %p2072_p3 = scmp.lt.s32.totalorder %s2066_s25, %s2066_s25 }
  0x71   :  { %p2073_p4 = por %p2072_p3, %p2071_p2 }
  0x73   :  { %434 = vrot.lane.b32.xlu1 %v2235_v0, %s2108_s5  ;;  %432 = vrot.lane.b32.xlu0 %v2241_v3, %s2108_s5  ;;  %p2074_p5 = pnand %p2073_p4, %p2067_p1 }
  0x77   :  { %428 = vrot.lane.b32.xlu1 %v2246_v5, %s2108_s5  ;;  %436 = vrot.lane.b32.xlu0 %v110_v2, %s2108_s5 }
  0x7b   :  { %602 = vrot.lane.b32.xlu1 %v2241_v3, %s2109_s7  ;;  %600 = vrot.lane.b32.xlu0 %v2237_v1, %s2109_s7 }
  0x7f   :  { %606 = vrot.lane.b32.xlu1 %v110_v2, %s2109_s7  ;;  %604 = vrot.lane.b32.xlu0 %v2235_v0, %s2109_s7 }
  0x83   :  { %770 = vrot.lane.b32.xlu1 %v2237_v1, %s2110_s8  ;;  %598 = vrot.lane.b32.xlu0 %v2246_v5, %s2109_s7 }
  0x87   :  { %774 = vrot.lane.b32.xlu1 %v2235_v0, %s2110_s8  ;;  %772 = vrot.lane.b32.xlu0 %v2241_v3, %s2110_s8 }
  0x8b   :  { %768 = vrot.lane.b32.xlu1 %v2246_v5, %s2110_s8  ;;  %776 = vrot.lane.b32.xlu0 %v110_v2, %s2110_s8 }
  0x8f   :  { %942 = vrot.lane.b32.xlu1 %v2241_v3, %s2111_s15  ;;  %940 = vrot.lane.b32.xlu0 %v2237_v1, %s2111_s15 }
  0x93   :  { %946 = vrot.lane.b32.xlu1 %v110_v2, %s2111_s15  ;;  %944 = vrot.lane.b32.xlu0 %v2235_v0, %s2111_s15 }
  0x97   :  { %1110 = vrot.lane.b32.xlu1 %v2237_v1, %s2112_s21  ;;  %938 = vrot.lane.b32.xlu0 %v2246_v5, %s2111_s15 }
  0x9b   :  { %1114 = vrot.lane.b32.xlu1 %v2235_v0, %s2112_s21  ;;  %1112 = vrot.lane.b32.xlu0 %v2241_v3, %s2112_s21 }
  0x9f   :  { %1108 = vrot.lane.b32.xlu1 %v2246_v5, %s2112_s21  ;;  %1116 = vrot.lane.b32.xlu0 %v110_v2, %s2112_s21 }
  0xa3   :  { %1282 = vrot.lane.b32.xlu1 %v2241_v3, %s2113_s1  ;;  %1280 = vrot.lane.b32.xlu0 %v2237_v1, %s2113_s1 }
  0xa7   :  { %1286 = vrot.lane.b32.xlu1 %v110_v2, %s2113_s1  ;;  %1284 = vrot.lane.b32.xlu0 %v2235_v0, %s2113_s1 }
  0xab   :  { %1450 = vrot.lane.b32.xlu1 %v2237_v1, %s2115_s0  ;;  %1278 = vrot.lane.b32.xlu0 %v2246_v5, %s2113_s1 }
  0xaf   :  { %1454 = vrot.lane.b32.xlu1 %v2235_v0, %s2115_s0  ;;  %1452 = vrot.lane.b32.xlu0 %v2241_v3, %s2115_s0 }
  0xb3   :  { %1448 = vrot.lane.b32.xlu1 %v2246_v5, %s2115_s0  ;;  %1456 = vrot.lane.b32.xlu0 %v110_v2, %s2115_s0 }
  0xb7   :  { %1619 = vperm.xlu0 %1944, %v1616_v7  }
  0xd9   :  { %v123_v8 = vpop.permute.xlu1 %122  ;;  %v119_v9 = vpop.permute.xlu0 %118 }
  0xdd   :  { %v125_v10 = vpop.permute.xlu1 %124  ;;  %v121_v11 = vpop.permute.xlu0 %120 }
  0xde   :  { %v128_v12 = vsel %vm126_vm0, %v119_v9, %v121_v11  ;;  %v130_v13 = vsel %vm126_vm0, %v123_v8, %v125_v10  ;;  %v129_v14 = vsel %vm126_vm0, %v121_v11, %v123_v8 }
  0xdf   :  { %139 = vmatprep.subr.mxu0 %v128_v12  ;;  %210 = vmatprep.subr.mxu1 %v130_v13  ;;  %v1277_v13 = vld [vmem:[#allocation6 + $0x38] sm:$0xff] }
  0xe0   :  { %211 = vmatpush1.msra.mxu1 %v129_v14 }
  0xe1   :  { %v431_v16 = vpop.permute.xlu1 %430  ;;  %v117_v17 = vpop.permute.xlu0 %116  ;;  %1869 = vmatmul.mubr.msk.f32.vlgmr.msra.gmra.mrb[0].mxu1 %vm135_vm1, %v105_v15  ;;  %355 = vmatprep.subr.mxu1 %v2235_v0 }
  0xe2   :  { %v127_v18 = vsel %vm126_vm0, %v117_v17, %v119_v9  ;;  %356 = vmatpush1.msra.mxu1 %v2241_v3  ;;  %419 = vmatprep.mubr.f32.mxu1 %v2107_v4 }
  0xe3   :  { %140 = vmatpush1.msra.mxu0 %v127_v18 }
  0xe4   :  { %1868 = vmatmul.mubr.msk.f32.vlgmr.msra.gmra.mrb[0].mxu0 %vm135_vm1, %v105_v15  ;;  %284 = vmatprep.subr.mxu0 %v2237_v1  ;;  %v1107_v1 = vld [vmem:[#allocation6 + $0x30] sm:$0xff] }
  0xe5   :  { %v435_v19 = vpop.permute.xlu1 %434  ;;  %v433_v20 = vpop.permute.xlu0 %432  ;;  %285 = vmatpush1.msra.mxu0 %v2246_v5  ;;  %348 = vmatprep.mubr.f32.mxu0 %v2107_v4 }
  0xe6   :  { %v440_v21 = vsel %vm438_vm2, %v431_v16, %v433_v20  ;;  %v441_v27 = vsel %vm438_vm2, %v433_v20, %v435_v19 }
  0xe7   :  { %450 = vmatprep.subr.mxu0 %v440_v21 }
  0xe9   :  { %v429_v23 = vpop.permute.xlu1 %428  ;;  %v437_v24 = vpop.permute.xlu0 %436  ;;  %1871 = vmatmul.mubr.msk.f32.vlgmr.msra.gmra.mrb[0].mxu1 %vm135_vm1, %v99_v22 }
  0xea   :  { %v439_v25 = vsel %vm438_vm2, %v429_v23, %v431_v16  ;;  %v442_v26 = vsel %vm438_vm2, %v435_v19, %v437_v24  ;;  %585 = vmatprep.mubr.f32.mxu1 %v2107_v4 }
  0xeb   :  { %521 = vmatprep.subr.mxu1 %v442_v26  ;;  %v1642_v26 = vld [vmem:[#allocation11] sm:$0xff] }
  0xec   :  { %1870 = vmatmul.mubr.msk.f32.vlgmr.msra.gmra.mrb[0].mxu0 %vm135_vm1, %v99_v22  ;;  %522 = vmatpush1.msra.mxu1 %v441_v27  ;;  %v1447_v22 = vld [vmem:[#allocation6 + $0x40] sm:$0xff]  ;;  %v1643_v27 = vld [vmem:[#allocation11 + $0x8] sm:$0xff] }
  0xed   :  { %451 = vmatpush1.msra.mxu0 %v439_v25  ;;  %v603_v28 = vpop.permute.xlu1 %602  ;;  %v601_v29 = vpop.permute.xlu0 %600  ;;  %514 = vmatprep.mubr.f32.mxu0 %v2107_v4 }
  0xee   :  { %v610_v30 = vsel %vm608_vm3, %v601_v29, %v603_v28  ;;  %1646 = vperm.xlu1 %1945, %v1642_v26  }
  0xef   :  { %620 = vmatprep.subr.mxu0 %v610_v30  ;;  %v1631_v30 = vstv %s1626_s14 }
  0xf1   :  { %v607_v32 = vpop.permute.xlu1 %606  ;;  %v605_v33 = vpop.permute.xlu0 %604  ;;  %1873 = vmatmul.mubr.msk.f32.vlgmr.msra.gmra.mrb[0].mxu1 %vm135_vm1, %v427_v31 }
  0xf2   :  { %v611_v34 = vsel %vm608_vm3, %v603_v28, %v605_v33  ;;  %v612_v35 = vsel %vm608_vm3, %v605_v33, %v607_v32  ;;  %755 = vmatprep.mubr.f32.mxu1 %v2107_v4  ;;  %1651 = vperm.xlu1 %1945, %v1643_v27  }
  0xf3   :  { %691 = vmatprep.subr.mxu1 %v612_v35 }
  0xf4   :  { %692 = vmatpush1.msra.mxu1 %v611_v34  ;;  %1872 = vmatmul.mubr.msk.f32.vlgmr.msra.gmra.mrb[0].mxu0 %vm135_vm1, %v427_v31 }
  0xf5   :  { %v771_v36 = vpop.permute.xlu1 %770  ;;  %v599_v37 = vpop.permute.xlu0 %598  ;;  %684 = vmatprep.mubr.f32.mxu0 %v2107_v4 }
  0xf6   :  { %v609_v38 = vsel %vm608_vm3, %v599_v37, %v601_v29 }
  0xf7   :  { %621 = vmatpush1.msra.mxu0 %v609_v38 }
  0xf9   :  { %v775_v40 = vpop.permute.xlu1 %774  ;;  %v773_v41 = vpop.permute.xlu0 %772  ;;  %1875 = vmatmul.mubr.msk.f32.vlgmr.msra.gmra.mrb[0].mxu1 %vm135_vm1, %v597_v39 }
  0xfa   :  { %v780_v42 = vsel %vm778_vm4, %v771_v36, %v773_v41  ;;  %925 = vmatprep.mubr.f32.mxu1 %v2107_v4  ;;  %v781_v48 = vsel %vm778_vm4, %v773_v41, %v775_v40 }
  0xfb   :  { %790 = vmatprep.subr.mxu0 %v780_v42 }
  0xfc   :  { %1874 = vmatmul.mubr.msk.f32.vlgmr.msra.gmra.mrb[0].mxu0 %vm135_vm1, %v597_v39 }
  0xfd   :  { %v769_v43 = vpop.permute.xlu1 %768  ;;  %v777_v44 = vpop.permute.xlu0 %776  ;;  %854 = vmatprep.mubr.f32.mxu0 %v2107_v4 }
  0xfe   :  { %v779_v45 = vsel %vm778_vm4, %v769_v43, %v771_v36  ;;  %v782_v46 = vsel %vm778_vm4, %v775_v40, %v777_v44  ;;  %v1640_v43 = vld [vmem:[#allocation9] sm:$0xff] }
  0xff   :  { %791 = vmatpush1.msra.mxu0 %v779_v45  ;;  %861 = vmatprep.subr.mxu1 %v782_v46 }
 0x100   :  { %862 = vmatpush1.msra.mxu1 %v781_v48 }
 0x101   :  { %v943_v49 = vpop.permute.xlu1 %942  ;;  %v941_v50 = vpop.permute.xlu0 %940  ;;  %1877 = vmatmul.mubr.msk.f32.vlgmr.msra.gmra.mrb[0].mxu1 %vm135_vm1, %v767_v47 }
 0x102   :  { %v950_v51 = vsel %vm948_vm5, %v941_v50, %v943_v49  ;;  %1095 = vmatprep.mubr.f32.mxu1 %v2107_v4 }
 0x103   :  { %960 = vmatprep.subr.mxu0 %v950_v51 }
 0x104   :  { %1876 = vmatmul.mubr.msk.f32.vlgmr.msra.gmra.mrb[0].mxu0 %vm135_vm1, %v767_v47  ;;  %v1641_v47 = vld [vmem:[#allocation9 + $0x8] sm:$0xff] }
 0x105   :  { %v947_v52 = vpop.permute.xlu1 %946  ;;  %v945_v53 = vpop.permute.xlu0 %944  ;;  %1024 = vmatprep.mubr.f32.mxu0 %v2107_v4 }
 0x106   :  { %v951_v54 = vsel %vm948_vm5, %v943_v49, %v945_v53  ;;  %v952_v55 = vsel %vm948_vm5, %v945_v53, %v947_v52 }
 0x107   :  { %1031 = vmatprep.subr.mxu1 %v952_v55 }
 0x108   :  { %1032 = vmatpush1.msra.mxu1 %v951_v54 }
 0x109   :  { %v1111_v57 = vpop.permute.xlu1 %1110  ;;  %v939_v58 = vpop.permute.xlu0 %938  ;;  %1879 = vmatmul.mubr.msk.f32.vlgmr.msra.gmra.mrb[0].mxu1 %vm135_vm1, %v937_v56 }
 0x10a   :  { %v949_v59 = vsel %vm948_vm5, %v939_v58, %v941_v50  ;;  %1265 = vmatprep.mubr.f32.mxu1 %v2107_v4  ;;  %v1823_v50 = vstv %s1890_s22 }
 0x10b   :  { %961 = vmatpush1.msra.mxu0 %v949_v59 }
 0x10c   :  { %1878 = vmatmul.mubr.msk.f32.vlgmr.msra.gmra.mrb[0].mxu0 %vm135_vm1, %v937_v56 }
 0x10d   :  { %v1115_v60 = vpop.permute.xlu1 %1114  ;;  %v1113_v61 = vpop.permute.xlu0 %1112  ;;  %1194 = vmatprep.mubr.f32.mxu0 %v2107_v4 }
 0x10e   :  { %v1120_v62 = vsel %vm1118_vm6, %v1111_v57, %v1113_v61  ;;  %v1121_v5 = vsel %vm1118_vm6, %v1113_v61, %v1115_v60 }
 0x10f   :  { %1130 = vmatprep.subr.mxu0 %v1120_v62 }
 0x111   :  { %v1109_v63 = vpop.permute.xlu1 %1108  ;;  %v1117_v0 = vpop.permute.xlu0 %1116 }
 0x112   :  { %v1119_v2 = vsel %vm1118_vm6, %v1109_v63, %v1111_v57  ;;  %v1122_v3 = vsel %vm1118_vm6, %v1115_v60, %v1117_v0 }
 0x113   :  { %1131 = vmatpush1.msra.mxu0 %v1119_v2  ;;  %1201 = vmatprep.subr.mxu1 %v1122_v3 }
 0x114   :  { %1202 = vmatpush1.msra.mxu1 %v1121_v5  ;;  %1880 = vmatmul.mubr.msk.f32.vlgmr.msra.gmra.mrb[0].mxu0 %vm135_vm1, %v1107_v1 }
 0x115   :  { %v1283_v6 = vpop.permute.xlu1 %1282  ;;  %v1281_v7 = vpop.permute.xlu0 %1280  ;;  %1881 = vmatmul.mubr.msk.f32.vlgmr.msra.gmra.mrb[0].mxu1 %vm135_vm1, %v1107_v1  ;;  %1364 = vmatprep.mubr.f32.mxu0 %v2107_v4 }
 0x116   :  { %v1290_v8 = vsel %vm1288_vm7, %v1281_v7, %v1283_v6  ;;  %1435 = vmatprep.mubr.f32.mxu1 %v2107_v4 }
 0x117   :  { %1300 = vmatprep.subr.mxu0 %v1290_v8 }
 0x119   :  { %v1287_v9 = vpop.permute.xlu1 %1286  ;;  %v1285_v10 = vpop.permute.xlu0 %1284 }
 0x11a   :  { %v1291_v11 = vsel %vm1288_vm7, %v1283_v6, %v1285_v10  ;;  %v1292_v12 = vsel %vm1288_vm7, %v1285_v10, %v1287_v9 }
 0x11b   :  { %1371 = vmatprep.subr.mxu1 %v1292_v12 }
 0x11c   :  { %1372 = vmatpush1.msra.mxu1 %v1291_v11 }
 0x11d   :  { %v1451_v14 = vpop.permute.xlu1 %1450  ;;  %v1279_v15 = vpop.permute.xlu0 %1278  ;;  %1883 = vmatmul.mubr.msk.f32.vlgmr.msra.gmra.mrb[0].mxu1 %vm135_vm1, %v1277_v13 }
 0x11e   :  { %v1289_v16 = vsel %vm1288_vm7, %v1279_v15, %v1281_v7  ;;  %1605 = vmatprep.mubr.f32.mxu1 %v2107_v4 }
 0x11f   :  { %1301 = vmatpush1.msra.mxu0 %v1289_v16 }
 0x120   :  { %1882 = vmatmul.mubr.msk.f32.vlgmr.msra.gmra.mrb[0].mxu0 %vm135_vm1, %v1277_v13 }
 0x121   :  { %v1455_v17 = vpop.permute.xlu1 %1454  ;;  %v1453_v18 = vpop.permute.xlu0 %1452  ;;  %1534 = vmatprep.mubr.f32.mxu0 %v2107_v4 }
 0x122   :  { %v1460_v19 = vsel %vm1458_vm8, %v1451_v14, %v1453_v18  ;;  %v1461_v25 = vsel %vm1458_vm8, %v1453_v18, %v1455_v17 }
 0x123   :  { %1470 = vmatprep.subr.mxu0 %v1460_v19 }
 0x125   :  { %v1449_v20 = vpop.permute.xlu1 %1448  ;;  %v1457_v21 = vpop.permute.xlu0 %1456 }
 0x126   :  { %v1459_v23 = vsel %vm1458_vm8, %v1449_v20, %v1451_v14  ;;  %v1462_v24 = vsel %vm1458_vm8, %v1455_v17, %v1457_v21 }
 0x127   :  { %1471 = vmatpush1.msra.mxu0 %v1459_v23  ;;  %1541 = vmatprep.subr.mxu1 %v1462_v24 }
 0x128   :  { %1884 = vmatmul.mubr.msk.f32.vlgmr.msra.gmra.mrb[0].mxu0 %vm135_vm1, %v1447_v22  ;;  %1542 = vmatpush1.msra.mxu1 %v1461_v25 }
 0x129   :  { %1885 = vmatmul.mubr.msk.f32.vlgmr.msra.gmra.mrb[0].mxu1 %vm135_vm1, %v1447_v22  ;;  %1724 = vmatprep.mubr.f32.mxu0 %v2107_v4 }
 0x12a   :  { %1801 = vmatprep.mubr.f32.mxu1 %v2107_v4 }
 0x136   :  { %v1620_v28 = vpop.permute.xlu0 %1619 }
 0x16d   :  { %v1647_v48 = vpop.permute.xlu1 %1646 }
 0x171   :  { %v1652_v61 = vpop.permute.xlu1 %1651 }
 0x1fb   :  { %v1536_v29 = vpop.f32.mrb[0].mxu0 }
 0x1fc   :  { %v1622_v31 = vadd.f32 %v1620_v28, %v1536_v29  ;;  %v1538_v32 = vpop.f32.mrb[1].mxu0  ;;  %v1607_v33 = vpop.f32.mrb[0].mxu1 }
 0x1fd   :  { %v1623_v34 = vadd.f32 %v1620_v28, %v1538_v32  ;;  %v1624_v35 = vadd.f32 %v1620_v28, %v1607_v33  ;;  %v1609_v36 = vpop.f32.mrb[1].mxu1 }
 0x1fe   :  { %v1632_v37 = vmul.f32 %v1631_v30, %v1622_v31  ;;  %v1625_v38 = vadd.f32 %v1620_v28, %v1609_v36  ;;  %vm1627_vm9 = vcmp.ge.f32.partialorder %v1622_v31, 0.0 }
 0x1ff   :  { %v1633_v39 = vmul.f32 %v1631_v30, %v1623_v34  ;;  %v1634_v40 = vmul.f32 %v1631_v30, %v1624_v35  ;;  %vm1628_vm10 = vcmp.ge.f32.partialorder %v1623_v34, 0.0  ;;  %vm1629_vm11 = vcmp.ge.f32.partialorder %v1624_v35, 0.0 }
 0x200   :  { %v1635_v41 = vmul.f32 %v1631_v30, %v1625_v38  ;;  %vm1630_vm12 = vcmp.ge.f32.partialorder %v1625_v38, 0.0  ;;  %v1636_v44 = vsel %vm1627_vm9, %v1622_v31, %v1632_v37 }
 0x201   :  { %v1637_v42 = vsel %vm1628_vm10, %v1623_v34, %v1633_v39  ;;  %v1638_v46 = vsel %vm1629_vm11, %v1624_v35, %v1634_v40 }
 0x202   :  { %1660 = vmatprep.subr.mxu0 %v1637_v42  ;;  %v1639_v45 = vsel %vm1630_vm12, %v1625_v38, %v1635_v41 }
 0x203   :  { %1661 = vmatpush1.msra.mxu0 %v1636_v44  ;;  %1737 = vmatprep.subr.mxu1 %v1639_v45 }
 0x204   :  { %1738 = vmatpush1.msra.mxu1 %v1638_v46  ;;  %1886 = vmatmul.mubr.msk.f32.vlgmr.msra.gmra.mrb[2].mxu0 %vm135_vm1, %v1640_v43 }
 0x205   :  { %1888 = vmatmul.mubr.msk.f32.vlgmr.msra.gmra.mrb[2].mxu1 %vm135_vm1, %v1640_v43  ;;  %1730 = vmatprep.mubr.f32.mxu0 %v2107_v4 }
 0x206   :  { %1807 = vmatprep.mubr.f32.mxu1 %v2107_v4 }
 0x208   :  { %1887 = vmatmul.mubr.msk.f32.gmra.mrb[4].mxu0 %vm135_vm1, %v1641_v47 }
 0x209   :  { %1889 = vmatmul.mubr.msk.f32.gmra.mrb[4].mxu1 %vm135_vm1, %v1641_v47 }
 0x2d7   :  { %v1726_v49 = vpop.f32.mrb[2].mxu0 }
 0x2d8   :  { %v1727_v51 = vadd.f32 %v1726_v49, %v1647_v48  ;;  %v1803_v52 = vpop.f32.mrb[2].mxu1  ;;  %v1728_v53 = vpop.f32.mrb[3].mxu0 }
 0x2d9   :  { %v1804_v54 = vadd.f32 %v1803_v52, %v1647_v48  ;;  %v1729_v55 = vadd.f32 %v1728_v53, %v1647_v48  ;;  %v1805_v56 = vpop.f32.mrb[3].mxu1 }
 0x2da   :  { %vm1815_vm13 = vcmp.ge.f32.partialorder %v1727_v51, 0.0  ;;  %v1824_v57 = vmul.f32 %v1823_v50, %v1727_v51  ;;  %v1806_v58 = vadd.f32 %v1805_v56, %v1647_v48 }
 0x2db   :  { %vm1817_vm14 = vcmp.ge.f32.partialorder %v1804_v54, 0.0  ;;  %v1826_v59 = vmul.f32 %v1823_v50, %v1804_v54  ;;  %vm1816_vm15 = vcmp.ge.f32.partialorder %v1729_v55, 0.0  ;;  %v1825_v4 = vmul.f32 %v1823_v50, %v1729_v55  ;;  %v1732_v60 = vpop.f32.mrb[4].mxu0 }
 0x2dc   :  { %v1832_v62 = vsel %vm1815_vm13, %v1727_v51, %v1824_v57  ;;  %vm1818_vm0 = vcmp.ge.f32.partialorder %v1806_v58, 0.0  ;;  %v1827_v63 = vmul.f32 %v1823_v50, %v1806_v58  ;;  %v1809_v0 = vpop.f32.mrb[4].mxu1  ;;  %v1733_v1 = vadd.f32 %v1732_v60, %v1652_v61  ;;  %v1734_v2 = vpop.f32.mrb[5].mxu0 }
 0x2dd   :  { %1840 = vst [vmem:[#allocation13] sm:$0xff] %v1832_v62  ;;  %v1834_v3 = vsel %vm1817_vm14, %v1804_v54, %v1826_v59  ;;  %v1833_v5 = vsel %vm1816_vm15, %v1729_v55, %v1825_v4  ;;  %v1810_v6 = vadd.f32 %v1809_v0, %v1652_v61  ;;  %v1735_v7 = vadd.f32 %v1734_v2, %v1652_v61  ;;  %v1811_v8 = vpop.f32.mrb[5].mxu1 }
 0x2de   :  { %1842 = vst [vmem:[#allocation13 + $0x10] sm:$0xff] %v1834_v3  ;;  %1841 = vst [vmem:[#allocation13 + $0x8] sm:$0xff] %v1833_v5  ;;  %v1835_v9 = vsel %vm1818_vm0, %v1806_v58, %v1827_v63  ;;  %vm1819_vm1 = vcmp.ge.f32.partialorder %v1733_v1, 0.0  ;;  %v1828_v10 = vmul.f32 %v1823_v50, %v1733_v1  ;;  %v1812_v11 = vadd.f32 %v1811_v8, %v1652_v61 }
 0x2df   :  { %1843 = vst [vmem:[#allocation13 + $0x18] sm:$0xff] %v1835_v9  ;;  %vm1821_vm2 = vcmp.ge.f32.partialorder %v1810_v6, 0.0  ;;  %v1830_v12 = vmul.f32 %v1823_v50, %v1810_v6  ;;  %vm1820_vm3 = vcmp.ge.f32.partialorder %v1735_v7, 0.0  ;;  %v1829_v13 = vmul.f32 %v1823_v50, %v1735_v7 }
 0x2e0   :  { %v1836_v14 = vsel %vm1819_vm1, %v1733_v1, %v1828_v10  ;;  %vm1822_vm4 = vcmp.ge.f32.partialorder %v1812_v11, 0.0  ;;  %v1831_v15 = vmul.f32 %v1823_v50, %v1812_v11 }
 0x2e1   :  { %v1838_v16 = vsel %vm1821_vm2, %v1810_v6, %v1830_v12  ;;  %1844 = vst [vmem:[#allocation13 + $0x20] sm:$0xff] %v1836_v14  ;;  %v1837_v17 = vsel %vm1820_vm3, %v1735_v7, %v1829_v13 }
 0x2e2   :  { %1846 = vst [vmem:[#allocation13 + $0x30] sm:$0xff] %v1838_v16  ;;  %1845 = vst [vmem:[#allocation13 + $0x28] sm:$0xff] %v1837_v17  ;;  %v1839_v18 = vsel %vm1822_vm4, %v1812_v11, %v1831_v15 }
 0x2e3   :  { %1847 = vst [vmem:[#allocation13 + $0x38] sm:$0xff] %v1839_v18 }
 0x2e4   :  { %2077 = shalt.err (!%p2074_p5)
}
 0x2e5   :  { %s2078_s28 = scalar_lea.hbm %s2357_s6, 1024 }
 0x2e6   :  { %p2079_p6 = scmp.ne.s32.totalorder %s2357_s6, %s2078_s28  ;;  %p2082_p7 = scmp.lt.u32.totalorder %s2078_s28, %s2357_s6 }
 0x2e8   :  { %p2084_p8 = pnand %p2082_p7, %p2079_p6 }
 0x2ea   :  { %2087 = shalt.err (!%p2084_p8)
}
 0x2eb   :  { %s2117_s3 = smov 512   ;;  %s2118_s10 = smov 32  }
 0x2ec   :  { %1859 = dma.vmem_to_hbm [thread:$0]  %s1854_s24, 1024, %s2357_s6, [#allocation4], %s2117_s3, %s2117_s3, %s2118_s10  }
 0x2ed   :  { %2096 = dma.done.wait [#allocation4], 1024  }
 0x2ee   :  { %2097 = vsyncadd [#allocation4], 4294966272 }
 0x2ef   :  { %1863 = vsyncpa [#allocation3], 1 }
 0x2f0   :  { %1864 = vsyncpa [#allocation7], 1 }
 0x2f1   :  { %1865 = vsyncpa [#allocation10], 1 }
 0x2f2   :  { %1866 = vsyncpa [#allocation4], 1 }
 0x2f3   :  { %1867 = vsyncpa [#allocation5], 1 }

// kernel: fsrcnn_forward_pallas.4
= control target key start
LH: loop header
LB: loop body
LE: loop exit
PB: predicated region body
PF: predicated region fallthrough
CT: control target
= control target key end

     0   :  { %11 = vsyncpa [#allocation3], 0  ;;  %s6148_s0 = inlined_call_operand.hbm [shape: f32[8,640], index: 0, kind: input, shape index: {}]   ;;  %s6149_s1 = inlined_call_operand.hbm [shape: f32[25,16,8], index: 1, kind: input, shape index: {}]   ;;  %s6150_s2 = inlined_call_operand.hbm [shape: f32[16,1], index: 2, kind: input, shape index: {}]   ;;  %s6151_s3 = inlined_call_operand.hbm [shape: f32[8,16], index: 3, kind: input, shape index: {}]   ;;  %s6152_s4 = inlined_call_operand.hbm [shape: f32[8,1], index: 4, kind: input, shape index: {}]   ;;  %s6153_s5 = inlined_call_operand.hbm [shape: f32[2], index: 5, kind: input, shape index: {}]   ;;  %s6154_s6 = inlined_call_operand.hbm [shape: f32[8,512], index: 6, kind: output, shape index: {}]  }
   0x1   :  { %12 = vsyncpa [#allocation7], 0 }
   0x2   :  { %13 = vsyncpa [#allocation10], 0 }
   0x3   :  { %14 = vsyncpa [#allocation5], 0 }
   0x4   :  { %15 = vsyncpa [#allocation4], 0  ;;  %s5553_s21 = smov [#allocation6]   ;;  %s5401_s25 = scalar_lea.hbm %s6149_s1, 6400 }
   0x5   :  { %s31_s22 = sshll.u32 %s5553_s21, 4  ;;  %p5402_p0 = scmp.ne.s32.totalorder %s6149_s1, %s5401_s25  ;;  %s32_s22 = int_to_ptr.vmem [resolvable:$true] %s31_s22 }
   0x6   :  { %p5405_p1 = scmp.lt.u32.totalorder %s5401_s25, %s6149_s1 }
   0x8   :  { %p5407_p2 = pnand %p5405_p1, %p5402_p0 }
   0xa   :  { %5410 = shalt.err (!%p5407_p2)
}
   0xb   :  { %s5411_s30 = scalar_lea.vmem %s32_s22, 6400  ;;  %p5416_p4 = scmp.lt.s32.totalorder %s32_s22, %s32_s22 }
   0xc   :  { %p5412_p3 = scmp.ne.s32.totalorder %s32_s22, %s5411_s30  ;;  %p5417_p5 = scmp.lt.s32.totalorder %s5411_s30, %s5411_s30 }
   0xe   :  { %p5418_p6 = por %p5417_p5, %p5416_p4 }
  0x10   :  { %p5419_p7 = pnand %p5418_p6, %p5412_p3 }
  0x12   :  { %5422 = shalt.err (!%p5419_p7)
}
  0x13   :  { %s5554_s7 = smov 128   ;;  %s5555_s8 = smov 8  }
  0x14   :  { %37 = dma.hbm_to_vmem [thread:$0]  %s6149_s1, 6400, %s32_s22, [#allocation7], %s5554_s7, %s5554_s7, %s5555_s8  }
  0x15   :  { %s5556_s11 = smov [#allocation9]   ;;  %s5557_s13 = smov [#allocation2]  }
  0x16   :  { %s56_s12 = sshll.u32 %s5556_s11, 4  ;;  %s22_s14 = sshll.u32 %s5557_s13, 4  ;;  %s57_s12 = int_to_ptr.vmem [resolvable:$true] %s56_s12  ;;  %s23_s14 = int_to_ptr.vmem [resolvable:$true] %s22_s14 }
  0x17   :  { %s5423_s17 = scalar_lea.hbm %s6151_s3, 128 }
  0x18   :  { %p5424_p8 = scmp.ne.s32.totalorder %s6151_s3, %s5423_s17  ;;  %p5427_p9 = scmp.lt.u32.totalorder %s5423_s17, %s6151_s3 }
  0x1a   :  { %p5429_p10 = pnand %p5427_p9, %p5424_p8 }
  0x1c   :  { %5432 = shalt.err (!%p5429_p10)
}
  0x1d   :  { %s5433_s1 = scalar_lea.vmem %s57_s12, 128  ;;  %p5438_p12 = scmp.lt.s32.totalorder %s57_s12, %s57_s12 }
  0x1e   :  { %p5434_p11 = scmp.ne.s32.totalorder %s57_s12, %s5433_s1  ;;  %p5439_p13 = scmp.lt.s32.totalorder %s5433_s1, %s5433_s1 }
  0x20   :  { %p5440_p0 = por %p5439_p13, %p5438_p12 }
  0x22   :  { %p5441_p1 = pnand %p5440_p0, %p5434_p11 }
  0x24   :  { %5444 = shalt.err (!%p5441_p1)
}
  0x25   :  { %59 = dma.hbm_to_vmem [thread:$0]  %s6151_s3, 128, %s57_s12, [#allocation10]  }
  0x26   :  { %s5445_s26 = scalar_lea.hbm %s6148_s0, 640 }
  0x27   :  { %p5446_p2 = scmp.ne.s32.totalorder %s6148_s0, %s5445_s26  ;;  %p5449_p3 = scmp.lt.u32.totalorder %s5445_s26, %s6148_s0 }
  0x29   :  { %p5451_p4 = pnand %p5449_p3, %p5446_p2 }
  0x2b   :  { %5454 = shalt.err (!%p5451_p4)
}
  0x2c   :  { %s5455_s9 = scalar_lea.vmem %s23_s14, 640  ;;  %p5460_p6 = scmp.lt.s32.totalorder %s23_s14, %s23_s14 }
  0x2d   :  { %p5456_p5 = scmp.ne.s32.totalorder %s23_s14, %s5455_s9  ;;  %p5461_p7 = scmp.lt.s32.totalorder %s5455_s9, %s5455_s9 }
  0x2f   :  { %p5462_p8 = por %p5461_p7, %p5460_p6 }
  0x31   :  { %p5463_p9 = pnand %p5462_p8, %p5456_p5 }
  0x33   :  { %5466 = shalt.err (!%p5463_p9)
}
  0x34   :  { %25 = dma.hbm_to_vmem [thread:$0]  %s6148_s0, 640, %s23_s14, [#allocation3]  }
  0x35   :  { %s5558_s11 = smov [#allocation8]   ;;  %s5559_s13 = smov [#allocation11]  }
  0x36   :  { %s43_s12 = sshll.u32 %s5558_s11, 4  ;;  %s66_s15 = sshll.u32 %s5559_s13, 4  ;;  %s44_s12 = int_to_ptr.vmem [resolvable:$true] %s43_s12  ;;  %s67_s15 = int_to_ptr.vmem [resolvable:$true] %s66_s15 }
  0x37   :  { %s5467_s18 = scalar_lea.hbm %s6150_s2, 256 }
  0x38   :  { %p5468_p10 = scmp.ne.s32.totalorder %s6150_s2, %s5467_s18  ;;  %p5471_p11 = scmp.lt.u32.totalorder %s5467_s18, %s6150_s2 }
  0x3a   :  { %p5473_p12 = pnand %p5471_p11, %p5468_p10 }
  0x3c   :  { %5476 = shalt.err (!%p5473_p12)
}
  0x3d   :  { %s5477_s0 = scalar_lea.vmem %s44_s12, 256  ;;  %p5482_p0 = scmp.lt.s32.totalorder %s44_s12, %s44_s12 }
  0x3e   :  { %p5478_p13 = scmp.ne.s32.totalorder %s44_s12, %s5477_s0  ;;  %p5483_p1 = scmp.lt.s32.totalorder %s5477_s0, %s5477_s0 }
  0x40   :  { %p5484_p2 = por %p5483_p1, %p5482_p0 }
  0x42   :  { %p5485_p3 = pnand %p5484_p2, %p5478_p13 }
  0x44   :  { %5488 = shalt.err (!%p5485_p3)
}
  0x45   :  { %49 = dma.hbm_to_vmem [thread:$0]  %s6150_s2, 256, %s44_s12, [#allocation7], %s5554_s7, %s5554_s7, %s5555_s8  }
  0x46   :  { %s5489_s25 = scalar_lea.hbm %s6152_s4, 128 }
  0x47   :  { %p5490_p4 = scmp.ne.s32.totalorder %s6152_s4, %s5489_s25  ;;  %p5493_p5 = scmp.lt.u32.totalorder %s5489_s25, %s6152_s4 }
  0x49   :  { %p5495_p6 = pnand %p5493_p5, %p5490_p4 }
  0x4b   :  { %5498 = shalt.err (!%p5495_p6)
}
  0x4c   :  { %s5499_s30 = scalar_lea.vmem %s67_s15, 128  ;;  %p5504_p8 = scmp.lt.s32.totalorder %s67_s15, %s67_s15 }
  0x4d   :  { %p5500_p7 = scmp.ne.s32.totalorder %s67_s15, %s5499_s30  ;;  %p5505_p9 = scmp.lt.s32.totalorder %s5499_s30, %s5499_s30 }
  0x4f   :  { %p5506_p10 = por %p5505_p9, %p5504_p8 }
  0x51   :  { %p5507_p11 = pnand %p5506_p10, %p5500_p7 }
  0x53   :  { %5510 = shalt.err (!%p5507_p11)
}
  0x54   :  { %69 = dma.hbm_to_vmem [thread:$0]  %s6152_s4, 128, %s67_s15, [#allocation10]  }
  0x55   :  { %s5511_s3 = scalar_lea.hbm %s6153_s5, 16 }
  0x56   :  { %p5512_p12 = scmp.ne.s32.totalorder %s6153_s5, %s5511_s3  ;;  %p5515_p13 = scmp.lt.u32.totalorder %s5511_s3, %s6153_s5 }
  0x58   :  { %p5517_p0 = pnand %p5515_p13, %p5512_p12 }
  0x5a   :  { %5520 = shalt.err (!%p5517_p0)
}
  0x5b   :  { %s5560_s16 = smov [#allocation12]  }
  0x5c   :  { %77 = dma.hbm_to_smem %s6153_s5, 16, %s5560_s16, [#allocation5]  }
  0x5d   :  { %5543 = dma.done.wait [#allocation3], 640  }
  0x5e   :  { %5544 = vsyncadd [#allocation3], 4294966656 }
  0x5f   :  { %5545 = dma.done.wait [#allocation7], 6656  }
  0x60   :  { %5546 = vsyncadd [#allocation7], 4294960640 }
  0x61   :  { %5547 = dma.done.wait [#allocation10], 256  }
  0x62   :  { %5548 = vsyncadd [#allocation10], 4294967040 }
  0x63   :  { %5549 = dma.done.wait [#allocation5], 16  }
  0x64   :  { %5550 = vsyncadd [#allocation5], 4294967280 }
  0x65   :  { %96 = sfence }
  0x66   :  { %v5701_v0 = vld [vmem:[#allocation2 + $0x18] sm:$0xff]  ;;  %v5703_v1 = vld [vmem:[#allocation2 + $0x8] sm:$0xff]  ;;  %s5561_s4 = smov 127   ;;  %v5707_v2 = vld [vmem:[#allocation2 + $0x20] sm:$0xff]  ;;  %v5562_v4 = vmov 0.0   ;;  %s5563_s5 = smov 126  }
  0x67   :  { %122 = vrot.lane.b32.xlu1 %v5701_v0, %s5561_s4  ;;  %118 = vrot.lane.b32.xlu0 %v5703_v1, %s5561_s4  ;;  %v5709_v3 = vld [vmem:[#allocation2 + $0x10] sm:$0xff]  ;;  %v5715_v5 = vld [vmem:[#allocation2] sm:$0xff]  ;;  %s5564_s15 = smov 125   ;;  %s5565_s19 = smov 124   ;;  %vm126_vm0 = vcmask 1039360   ;;  %v104_v13 = vld [vmem:[#allocation6 + $0x10] sm:$0xff] }
  0x68   :  { %206 = vmatprep.mubr.f32.mxu0 %v5562_v4  ;;  %283 = vmatprep.mubr.f32.mxu1 %v5562_v4  ;;  %s5566_s20 = smov 112   ;;  %s5567_s21 = smov 111   ;;  %vm135_vm1 = vcmask 64512   ;;  %vm469_vm2 = vcmask 1031168   ;;  %v105_v17 = vld [vmem:[#allocation6 + $0x18] sm:$0xff]  ;;  %v97_v21 = vld [vmem:[#allocation6] sm:$0xff] }
  0x69   :  { %s5568_s1 = smov 110   ;;  %s5569_s0 = smov 109   ;;  %vm659_vm3 = vcmask 1022976   ;;  %v98_v27 = vld [vmem:[#allocation6 + $0x8] sm:$0xff]  ;;  %v457_v31 = vld [vmem:[#allocation6 + $0x20] sm:$0xff]  ;;  %vm849_vm4 = vcmask 1014784  }
  0x6a   :  { %s5570_s14 = smov 108   ;;  %s5571_s22 = smov 96   ;;  %v458_v39 = vld [vmem:[#allocation6 + $0x28] sm:$0xff]  ;;  %v647_v43 = vld [vmem:[#allocation6 + $0x30] sm:$0xff]  ;;  %vm1039_vm5 = vcmask 916480   ;;  %v648_v48 = vld [vmem:[#allocation6 + $0x38] sm:$0xff] }
  0x6b   :  { %124 = vrot.lane.b32.xlu1 %v5707_v2, %s5561_s4  ;;  %120 = vrot.lane.b32.xlu0 %v5709_v3, %s5561_s4  ;;  %s5572_s23 = smov 95   ;;  %s5573_s24 = smov 94   ;;  %v837_v53 = vld [vmem:[#allocation6 + $0x40] sm:$0xff]  ;;  %v838_v58 = vld [vmem:[#allocation6 + $0x48] sm:$0xff]  ;;  %vm1229_vm6 = vcmask 908288   ;;  %v1027_v62 = vld [vmem:[#allocation6 + $0x50] sm:$0xff] }
  0x6c   :  { %s5574_s25 = smov 93   ;;  %s5575_s26 = smov 92   ;;  %vm1419_vm7 = vcmask 900096   ;;  %vm1609_vm8 = vcmask 891904   ;;  %vm1799_vm9 = vcmask 883712   ;;  %vm1989_vm10 = vcmask 785408  }
  0x6d   :  { %s5576_s27 = smov 80   ;;  %s5577_s28 = smov 79   ;;  %vm2179_vm11 = vcmask 777216   ;;  %vm2369_vm12 = vcmask 769024   ;;  %vm2559_vm13 = vcmask 760832   ;;  %vm2749_vm14 = vcmask 752640  }
  0x6e   :  { %s5578_s29 = smov 78   ;;  %s5579_s30 = smov 77   ;;  %vm2939_vm15 = vcmask 654336  }
  0x6f   :  { %461 = vrot.lane.b32.xlu1 %v5703_v1, %s5563_s5  ;;  %116 = vrot.lane.b32.xlu0 %v5715_v5, %s5561_s4  ;;  %s5580_s2 = smov 76   ;;  %s5581_s7 = smov 64  }
  0x70   :  { %s5582_s8 = smov 63   ;;  %s5583_s9 = smov 62  }
  0x71   :  { %s5584_s3 = smov 61   ;;  %s5585_s10 = smov 60  }
  0x72   :  { %s4846_s11 = sld [smem:[#allocation12]]  ;;  %s5163_s12 = sld [smem:[#allocation12 + $0x1]] }
  0x73   :  { %465 = vrot.lane.b32.xlu1 %v5701_v0, %s5563_s5  ;;  %463 = vrot.lane.b32.xlu0 %v5709_v3, %s5563_s5  ;;  %s5587_s13 = smov [#allocation13]  }
  0x74   :  { %s5049_s16 = sshll.u32 %s5587_s13, 4  ;;  %s5050_s16 = int_to_ptr.vmem [resolvable:$true] %s5049_s16 }
  0x75   :  { %s5521_s17 = scalar_lea.vmem %s5050_s16, 512  ;;  %p5526_p2 = scmp.lt.s32.totalorder %s5050_s16, %s5050_s16 }
  0x76   :  { %p5522_p1 = scmp.ne.s32.totalorder %s5050_s16, %s5521_s17  ;;  %p5527_p3 = scmp.lt.s32.totalorder %s5521_s17, %s5521_s17 }
  0x77   :  { %459 = vrot.lane.b32.xlu1 %v5715_v5, %s5563_s5  ;;  %467 = vrot.lane.b32.xlu0 %v5707_v2, %s5563_s5 }
  0x78   :  { %p5528_p4 = por %p5527_p3, %p5526_p2 }
  0x7a   :  { %p5529_p5 = pnand %p5528_p4, %p5522_p1 }
  0x7b   :  { %653 = vrot.lane.b32.xlu1 %v5709_v3, %s5564_s15  ;;  %651 = vrot.lane.b32.xlu0 %v5703_v1, %s5564_s15 }
  0x7f   :  { %657 = vrot.lane.b32.xlu1 %v5707_v2, %s5564_s15  ;;  %655 = vrot.lane.b32.xlu0 %v5701_v0, %s5564_s15 }
  0x83   :  { %841 = vrot.lane.b32.xlu1 %v5703_v1, %s5565_s19  ;;  %649 = vrot.lane.b32.xlu0 %v5715_v5, %s5564_s15 }
  0x87   :  { %845 = vrot.lane.b32.xlu1 %v5701_v0, %s5565_s19  ;;  %843 = vrot.lane.b32.xlu0 %v5709_v3, %s5565_s19 }
  0x8b   :  { %839 = vrot.lane.b32.xlu1 %v5715_v5, %s5565_s19  ;;  %847 = vrot.lane.b32.xlu0 %v5707_v2, %s5565_s19 }
  0x8f   :  { %1033 = vrot.lane.b32.xlu1 %v5709_v3, %s5566_s20  ;;  %1031 = vrot.lane.b32.xlu0 %v5703_v1, %s5566_s20 }
  0x93   :  { %1037 = vrot.lane.b32.xlu1 %v5707_v2, %s5566_s20  ;;  %1035 = vrot.lane.b32.xlu0 %v5701_v0, %s5566_s20 }
  0x97   :  { %1221 = vrot.lane.b32.xlu1 %v5703_v1, %s5567_s21  ;;  %1029 = vrot.lane.b32.xlu0 %v5715_v5, %s5566_s20 }
  0x9b   :  { %1225 = vrot.lane.b32.xlu1 %v5701_v0, %s5567_s21  ;;  %1223 = vrot.lane.b32.xlu0 %v5709_v3, %s5567_s21 }
  0x9f   :  { %1219 = vrot.lane.b32.xlu1 %v5715_v5, %s5567_s21  ;;  %1227 = vrot.lane.b32.xlu0 %v5707_v2, %s5567_s21 }
  0xa3   :  { %1413 = vrot.lane.b32.xlu1 %v5709_v3, %s5568_s1  ;;  %1411 = vrot.lane.b32.xlu0 %v5703_v1, %s5568_s1 }
  0xa7   :  { %1417 = vrot.lane.b32.xlu1 %v5707_v2, %s5568_s1  ;;  %1415 = vrot.lane.b32.xlu0 %v5701_v0, %s5568_s1 }
  0xab   :  { %1601 = vrot.lane.b32.xlu1 %v5703_v1, %s5569_s0  ;;  %1409 = vrot.lane.b32.xlu0 %v5715_v5, %s5568_s1 }
  0xaf   :  { %1605 = vrot.lane.b32.xlu1 %v5701_v0, %s5569_s0  ;;  %1603 = vrot.lane.b32.xlu0 %v5709_v3, %s5569_s0 }
  0xb3   :  { %1599 = vrot.lane.b32.xlu1 %v5715_v5, %s5569_s0  ;;  %1607 = vrot.lane.b32.xlu0 %v5707_v2, %s5569_s0 }
  0xb7   :  { %1793 = vrot.lane.b32.xlu1 %v5709_v3, %s5570_s14  ;;  %1791 = vrot.lane.b32.xlu0 %v5703_v1, %s5570_s14 }
  0xbb   :  { %1797 = vrot.lane.b32.xlu1 %v5707_v2, %s5570_s14  ;;  %1795 = vrot.lane.b32.xlu0 %v5701_v0, %s5570_s14 }
  0xbf   :  { %1981 = vrot.lane.b32.xlu1 %v5703_v1, %s5571_s22  ;;  %1789 = vrot.lane.b32.xlu0 %v5715_v5, %s5570_s14 }
  0xc3   :  { %1985 = vrot.lane.b32.xlu1 %v5701_v0, %s5571_s22  ;;  %1983 = vrot.lane.b32.xlu0 %v5709_v3, %s5571_s22 }
  0xc7   :  { %1979 = vrot.lane.b32.xlu1 %v5715_v5, %s5571_s22  ;;  %1987 = vrot.lane.b32.xlu0 %v5707_v2, %s5571_s22 }
  0xcb   :  { %2173 = vrot.lane.b32.xlu1 %v5709_v3, %s5572_s23  ;;  %2171 = vrot.lane.b32.xlu0 %v5703_v1, %s5572_s23 }
  0xcf   :  { %2177 = vrot.lane.b32.xlu1 %v5707_v2, %s5572_s23  ;;  %2175 = vrot.lane.b32.xlu0 %v5701_v0, %s5572_s23 }
  0xd3   :  { %2361 = vrot.lane.b32.xlu1 %v5703_v1, %s5573_s24  ;;  %2169 = vrot.lane.b32.xlu0 %v5715_v5, %s5572_s23 }
  0xd7   :  { %2365 = vrot.lane.b32.xlu1 %v5701_v0, %s5573_s24  ;;  %2363 = vrot.lane.b32.xlu0 %v5709_v3, %s5573_s24 }
  0xd9   :  { %v123_v6 = vpop.permute.xlu1 %122  ;;  %v119_v7 = vpop.permute.xlu0 %118 }
  0xdb   :  { %2359 = vrot.lane.b32.xlu1 %v5715_v5, %s5573_s24  ;;  %2367 = vrot.lane.b32.xlu0 %v5707_v2, %s5573_s24 }
  0xdd   :  { %v125_v8 = vpop.permute.xlu1 %124  ;;  %v121_v9 = vpop.permute.xlu0 %120 }
  0xde   :  { %v128_v10 = vsel %vm126_vm0, %v119_v7, %v121_v9  ;;  %v130_v11 = vsel %vm126_vm0, %v123_v6, %v125_v8  ;;  %v129_v12 = vsel %vm126_vm0, %v121_v9, %v123_v6  ;;  %v1028_v8 = vld [vmem:[#allocation6 + $0x58] sm:$0xff] }
  0xdf   :  { %142 = vmatprep.subr.mxu0 %v128_v10  ;;  %219 = vmatprep.subr.mxu1 %v130_v11 }
  0xe0   :  { %2553 = vrot.lane.b32.xlu1 %v5709_v3, %s5574_s25  ;;  %2551 = vrot.lane.b32.xlu0 %v5703_v1, %s5574_s25 }
  0xe1   :  { %220 = vmatpush1.msra.mxu1 %v129_v12  ;;  %v462_v14 = vpop.permute.xlu1 %461  ;;  %v117_v15 = vpop.permute.xlu0 %116 }
  0xe2   :  { %v127_v16 = vsel %vm126_vm0, %v117_v15, %v119_v7  ;;  %5063 = vmatmul.mubr.msk.f32.vlgmr.msra.gmra.mrb[0].mxu1 %vm135_vm1, %v104_v13  ;;  %379 = vmatprep.subr.mxu1 %v5701_v0  ;;  %vm3129_vm0 = vcmask 646144  }
  0xe3   :  { %143 = vmatpush1.msra.mxu0 %v127_v16  ;;  %289 = vmatprep.mubr.f32.mxu1 %v5562_v4 }
  0xe4   :  { %2557 = vrot.lane.b32.xlu1 %v5707_v2, %s5574_s25  ;;  %2555 = vrot.lane.b32.xlu0 %v5701_v0, %s5574_s25 }
  0xe5   :  { %5061 = vmatmul.mubr.msk.f32.vlgmr.msra.gmra.mrb[0].mxu0 %vm135_vm1, %v104_v13  ;;  %v466_v18 = vpop.permute.xlu1 %465  ;;  %v464_v19 = vpop.permute.xlu0 %463  ;;  %302 = vmatprep.subr.mxu0 %v5703_v1  ;;  %v1217_v13 = vld [vmem:[#allocation6 + $0x60] sm:$0xff] }
  0xe6   :  { %303 = vmatpush1.msra.mxu0 %v5715_v5  ;;  %212 = vmatprep.mubr.f32.mxu0 %v5562_v4  ;;  %v471_v20 = vsel %vm469_vm2, %v462_v14, %v464_v19  ;;  %v472_v26 = vsel %vm469_vm2, %v464_v19, %v466_v18 }
  0xe7   :  { %484 = vmatprep.subr.mxu0 %v471_v20  ;;  %5064 = vmatmul.mubr.msk.f32.gmra.mrb[2].mxu1 %vm135_vm1, %v105_v17 }
  0xe8   :  { %2741 = vrot.lane.b32.xlu1 %v5703_v1, %s5575_s26  ;;  %2549 = vrot.lane.b32.xlu0 %v5715_v5, %s5574_s25 }
  0xe9   :  { %5062 = vmatmul.mubr.msk.f32.gmra.mrb[2].mxu0 %vm135_vm1, %v105_v17  ;;  %v460_v22 = vpop.permute.xlu1 %459  ;;  %v468_v23 = vpop.permute.xlu0 %467  ;;  %380 = vmatpush1.msra.mxu1 %v5709_v3 }
  0xea   :  { %366 = vmatprep.mubr.f32.mxu0 %v5562_v4  ;;  %443 = vmatprep.mubr.f32.mxu1 %v5562_v4  ;;  %v473_v24 = vsel %vm469_vm2, %v466_v18, %v468_v23  ;;  %v470_v25 = vsel %vm469_vm2, %v460_v22, %v462_v14  ;;  %v1218_v18 = vld [vmem:[#allocation6 + $0x68] sm:$0xff]  ;;  %v1407_v23 = vld [vmem:[#allocation6 + $0x70] sm:$0xff]  ;;  %vm3319_vm2 = vcmask 637952  }
  0xeb   :  { %561 = vmatprep.subr.mxu1 %v473_v24  ;;  %5067 = vmatmul.mubr.msk.f32.vlgmr.msra.gmra.mrb[0].mxu1 %vm135_vm1, %v97_v21 }
  0xec   :  { %2745 = vrot.lane.b32.xlu1 %v5701_v0, %s5575_s26  ;;  %2743 = vrot.lane.b32.xlu0 %v5709_v3, %s5575_s26 }
  0xed   :  { %5065 = vmatmul.mubr.msk.f32.vlgmr.msra.gmra.mrb[0].mxu0 %vm135_vm1, %v97_v21  ;;  %562 = vmatpush1.msra.mxu1 %v472_v26  ;;  %v654_v28 = vpop.permute.xlu1 %653  ;;  %v652_v29 = vpop.permute.xlu0 %651 }
  0xee   :  { %485 = vmatpush1.msra.mxu0 %v470_v25  ;;  %449 = vmatprep.mubr.f32.mxu1 %v5562_v4  ;;  %v661_v30 = vsel %vm659_vm3, %v652_v29, %v654_v28 }
  0xef   :  { %674 = vmatprep.subr.mxu0 %v661_v30  ;;  %5068 = vmatmul.mubr.msk.f32.gmra.mrb[2].mxu1 %vm135_vm1, %v98_v27 }
  0xf0   :  { %2739 = vrot.lane.b32.xlu1 %v5715_v5, %s5575_s26  ;;  %2747 = vrot.lane.b32.xlu0 %v5707_v2, %s5575_s26 }
  0xf1   :  { %v658_v32 = vpop.permute.xlu1 %657  ;;  %v656_v33 = vpop.permute.xlu0 %655  ;;  %372 = vmatprep.mubr.f32.mxu0 %v5562_v4  ;;  %625 = vmatprep.mubr.f32.mxu1 %v5562_v4 }
  0xf2   :  { %5066 = vmatmul.mubr.msk.f32.gmra.mrb[2].mxu0 %vm135_vm1, %v98_v27  ;;  %v663_v34 = vsel %vm659_vm3, %v656_v33, %v658_v32  ;;  %v662_v35 = vsel %vm659_vm3, %v654_v28, %v656_v33  ;;  %v1408_v27 = vld [vmem:[#allocation6 + $0x78] sm:$0xff] }
  0xf3   :  { %751 = vmatprep.subr.mxu1 %v663_v34  ;;  %5071 = vmatmul.mubr.msk.f32.vlgmr.msra.gmra.mrb[0].mxu1 %vm135_vm1, %v457_v31 }
  0xf4   :  { %2933 = vrot.lane.b32.xlu1 %v5709_v3, %s5576_s27  ;;  %2931 = vrot.lane.b32.xlu0 %v5703_v1, %s5576_s27 }
  0xf5   :  { %752 = vmatpush1.msra.mxu1 %v662_v35  ;;  %v842_v36 = vpop.permute.xlu1 %841  ;;  %v650_v37 = vpop.permute.xlu0 %649  ;;  %548 = vmatprep.mubr.f32.mxu0 %v5562_v4  ;;  %v1597_v35 = vld [vmem:[#allocation6 + $0x80] sm:$0xff] }
  0xf6   :  { %v660_v38 = vsel %vm659_vm3, %v650_v37, %v652_v29  ;;  %5069 = vmatmul.mubr.msk.f32.vlgmr.msra.gmra.mrb[0].mxu0 %vm135_vm1, %v457_v31  ;;  %631 = vmatprep.mubr.f32.mxu1 %v5562_v4  ;;  %vm3509_vm3 = vcmask 629760  }
  0xf7   :  { %675 = vmatpush1.msra.mxu0 %v660_v38  ;;  %554 = vmatprep.mubr.f32.mxu0 %v5562_v4 }
  0xf8   :  { %2937 = vrot.lane.b32.xlu1 %v5707_v2, %s5576_s27  ;;  %2935 = vrot.lane.b32.xlu0 %v5701_v0, %s5576_s27 }
  0xf9   :  { %v846_v40 = vpop.permute.xlu1 %845  ;;  %v844_v41 = vpop.permute.xlu0 %843  ;;  %5072 = vmatmul.mubr.msk.f32.gmra.mrb[2].mxu1 %vm135_vm1, %v458_v39 }
  0xfa   :  { %5070 = vmatmul.mubr.msk.f32.gmra.mrb[2].mxu0 %vm135_vm1, %v458_v39  ;;  %v851_v42 = vsel %vm849_vm4, %v842_v36, %v844_v41  ;;  %815 = vmatprep.mubr.f32.mxu1 %v5562_v4  ;;  %v852_v49 = vsel %vm849_vm4, %v844_v41, %v846_v40 }
  0xfb   :  { %864 = vmatprep.subr.mxu0 %v851_v42  ;;  %738 = vmatprep.mubr.f32.mxu0 %v5562_v4 }
  0xfc   :  { %3121 = vrot.lane.b32.xlu1 %v5703_v1, %s5577_s28  ;;  %2929 = vrot.lane.b32.xlu0 %v5715_v5, %s5576_s27 }
  0xfd   :  { %v840_v44 = vpop.permute.xlu1 %839  ;;  %v848_v45 = vpop.permute.xlu0 %847  ;;  %5075 = vmatmul.mubr.msk.f32.vlgmr.msra.gmra.mrb[0].mxu1 %vm135_vm1, %v647_v43 }
  0xfe   :  { %v850_v46 = vsel %vm849_vm4, %v840_v44, %v842_v36  ;;  %5073 = vmatmul.mubr.msk.f32.vlgmr.msra.gmra.mrb[0].mxu0 %vm135_vm1, %v647_v43  ;;  %v853_v47 = vsel %vm849_vm4, %v846_v40, %v848_v45  ;;  %821 = vmatprep.mubr.f32.mxu1 %v5562_v4  ;;  %v1598_v40 = vld [vmem:[#allocation6 + $0x88] sm:$0xff]  ;;  %v1787_v45 = vld [vmem:[#allocation6 + $0x90] sm:$0xff]  ;;  %vm3699_vm4 = vcmask 621568  }
  0xff   :  { %865 = vmatpush1.msra.mxu0 %v850_v46  ;;  %941 = vmatprep.subr.mxu1 %v853_v47 }
 0x100   :  { %3125 = vrot.lane.b32.xlu1 %v5701_v0, %s5577_s28  ;;  %3123 = vrot.lane.b32.xlu0 %v5709_v3, %s5577_s28 }
 0x101   :  { %942 = vmatpush1.msra.mxu1 %v852_v49  ;;  %v1034_v50 = vpop.permute.xlu1 %1033  ;;  %v1032_v51 = vpop.permute.xlu0 %1031  ;;  %744 = vmatprep.mubr.f32.mxu0 %v5562_v4  ;;  %v1788_v49 = vld [vmem:[#allocation6 + $0x98] sm:$0xff] }
 0x102   :  { %v1041_v52 = vsel %vm1039_vm5, %v1032_v51, %v1034_v50  ;;  %5076 = vmatmul.mubr.msk.f32.gmra.mrb[2].mxu1 %vm135_vm1, %v648_v48  ;;  %5074 = vmatmul.mubr.msk.f32.gmra.mrb[2].mxu0 %vm135_vm1, %v648_v48 }
 0x103   :  { %1054 = vmatprep.subr.mxu0 %v1041_v52  ;;  %1005 = vmatprep.mubr.f32.mxu1 %v5562_v4 }
 0x104   :  { %3119 = vrot.lane.b32.xlu1 %v5715_v5, %s5577_s28  ;;  %3127 = vrot.lane.b32.xlu0 %v5707_v2, %s5577_s28 }
 0x105   :  { %v1038_v54 = vpop.permute.xlu1 %1037  ;;  %v1036_v55 = vpop.permute.xlu0 %1035  ;;  %928 = vmatprep.mubr.f32.mxu0 %v5562_v4 }
 0x106   :  { %v1043_v56 = vsel %vm1039_vm5, %v1036_v55, %v1038_v54  ;;  %5079 = vmatmul.mubr.msk.f32.vlgmr.msra.gmra.mrb[0].mxu1 %vm135_vm1, %v837_v53  ;;  %v1042_v57 = vsel %vm1039_vm5, %v1034_v50, %v1036_v55  ;;  %5077 = vmatmul.mubr.msk.f32.vlgmr.msra.gmra.mrb[0].mxu0 %vm135_vm1, %v837_v53 }
 0x107   :  { %1131 = vmatprep.subr.mxu1 %v1043_v56  ;;  %934 = vmatprep.mubr.f32.mxu0 %v5562_v4 }
 0x108   :  { %3313 = vrot.lane.b32.xlu1 %v5709_v3, %s5578_s29  ;;  %3311 = vrot.lane.b32.xlu0 %v5703_v1, %s5578_s29 }
 0x109   :  { %1132 = vmatpush1.msra.mxu1 %v1042_v57  ;;  %v1222_v59 = vpop.permute.xlu1 %1221  ;;  %v1030_v60 = vpop.permute.xlu0 %1029  ;;  %1011 = vmatprep.mubr.f32.mxu1 %v5562_v4  ;;  %v1977_v57 = vld [vmem:[#allocation6 + $0xa0] sm:$0xff] }
 0x10a   :  { %v1040_v61 = vsel %vm1039_vm5, %v1030_v60, %v1032_v51  ;;  %5078 = vmatmul.mubr.msk.f32.gmra.mrb[2].mxu0 %vm135_vm1, %v838_v58  ;;  %5080 = vmatmul.mubr.msk.f32.gmra.mrb[2].mxu1 %vm135_vm1, %v838_v58  ;;  %vm3889_vm5 = vcmask 523264  }
 0x10b   :  { %1055 = vmatpush1.msra.mxu0 %v1040_v61  ;;  %1118 = vmatprep.mubr.f32.mxu0 %v5562_v4 }
 0x10c   :  { %3317 = vrot.lane.b32.xlu1 %v5707_v2, %s5578_s29  ;;  %3315 = vrot.lane.b32.xlu0 %v5701_v0, %s5578_s29 }
 0x10d   :  { %v1226_v63 = vpop.permute.xlu1 %1225  ;;  %v1224_v6 = vpop.permute.xlu0 %1223  ;;  %1195 = vmatprep.mubr.f32.mxu1 %v5562_v4 }
 0x10e   :  { %v1231_v7 = vsel %vm1229_vm6, %v1222_v59, %v1224_v6  ;;  %5081 = vmatmul.mubr.msk.f32.vlgmr.msra.gmra.mrb[0].mxu0 %vm135_vm1, %v1027_v62  ;;  %5083 = vmatmul.mubr.msk.f32.vlgmr.msra.gmra.mrb[0].mxu1 %vm135_vm1, %v1027_v62  ;;  %v1232_v14 = vsel %vm1229_vm6, %v1224_v6, %v1226_v63  ;;  %v1978_v62 = vld [vmem:[#allocation6 + $0xa8] sm:$0xff] }
 0x10f   :  { %1244 = vmatprep.subr.mxu0 %v1231_v7  ;;  %1201 = vmatprep.mubr.f32.mxu1 %v5562_v4 }
 0x110   :  { %3501 = vrot.lane.b32.xlu1 %v5703_v1, %s5579_s30  ;;  %3309 = vrot.lane.b32.xlu0 %v5715_v5, %s5578_s29 }
 0x111   :  { %v1220_v9 = vpop.permute.xlu1 %1219  ;;  %v1228_v10 = vpop.permute.xlu0 %1227  ;;  %1124 = vmatprep.mubr.f32.mxu0 %v5562_v4 }
 0x112   :  { %v1230_v11 = vsel %vm1229_vm6, %v1220_v9, %v1222_v59  ;;  %v1233_v12 = vsel %vm1229_vm6, %v1226_v63, %v1228_v10  ;;  %5084 = vmatmul.mubr.msk.f32.gmra.mrb[2].mxu1 %vm135_vm1, %v1028_v8  ;;  %5082 = vmatmul.mubr.msk.f32.gmra.mrb[2].mxu0 %vm135_vm1, %v1028_v8  ;;  %v2167_v9 = vld [vmem:[#allocation6 + $0xb0] sm:$0xff]  ;;  %vm4079_vm6 = vcmask 515072  }
 0x113   :  { %1245 = vmatpush1.msra.mxu0 %v1230_v11  ;;  %1321 = vmatprep.subr.mxu1 %v1233_v12 }
 0x114   :  { %3505 = vrot.lane.b32.xlu1 %v5701_v0, %s5579_s30  ;;  %3503 = vrot.lane.b32.xlu0 %v5709_v3, %s5579_s30 }
 0x115   :  { %1322 = vmatpush1.msra.mxu1 %v1232_v14  ;;  %v1414_v15 = vpop.permute.xlu1 %1413  ;;  %v1412_v16 = vpop.permute.xlu0 %1411  ;;  %1385 = vmatprep.mubr.f32.mxu1 %v5562_v4 }
 0x116   :  { %v1421_v17 = vsel %vm1419_vm7, %v1412_v16, %v1414_v15  ;;  %5087 = vmatmul.mubr.msk.f32.vlgmr.msra.gmra.mrb[0].mxu1 %vm135_vm1, %v1217_v13  ;;  %1308 = vmatprep.mubr.f32.mxu0 %v5562_v4 }
 0x117   :  { %1434 = vmatprep.subr.mxu0 %v1421_v17  ;;  %5085 = vmatmul.mubr.msk.f32.vlgmr.msra.gmra.mrb[0].mxu0 %vm135_vm1, %v1217_v13  ;;  %v2168_v13 = vld [vmem:[#allocation6 + $0xb8] sm:$0xff] }
 0x118   :  { %3499 = vrot.lane.b32.xlu1 %v5715_v5, %s5579_s30  ;;  %3507 = vrot.lane.b32.xlu0 %v5707_v2, %s5579_s30 }
 0x119   :  { %v1418_v19 = vpop.permute.xlu1 %1417  ;;  %v1416_v20 = vpop.permute.xlu0 %1415  ;;  %1314 = vmatprep.mubr.f32.mxu0 %v5562_v4  ;;  %1391 = vmatprep.mubr.f32.mxu1 %v5562_v4 }
 0x11a   :  { %v1422_v21 = vsel %vm1419_vm7, %v1414_v15, %v1416_v20  ;;  %v1423_v22 = vsel %vm1419_vm7, %v1416_v20, %v1418_v19  ;;  %5088 = vmatmul.mubr.msk.f32.gmra.mrb[2].mxu1 %vm135_vm1, %v1218_v18 }
 0x11b   :  { %1511 = vmatprep.subr.mxu1 %v1423_v22  ;;  %5086 = vmatmul.mubr.msk.f32.gmra.mrb[2].mxu0 %vm135_vm1, %v1218_v18 }
 0x11c   :  { %3693 = vrot.lane.b32.xlu1 %v5709_v3, %s5580_s2  ;;  %3691 = vrot.lane.b32.xlu0 %v5703_v1, %s5580_s2 }
 0x11d   :  { %1512 = vmatpush1.msra.mxu1 %v1422_v21  ;;  %v1602_v24 = vpop.permute.xlu1 %1601  ;;  %v1410_v25 = vpop.permute.xlu0 %1409  ;;  %1498 = vmatprep.mubr.f32.mxu0 %v5562_v4  ;;  %v2357_v21 = vld [vmem:[#allocation6 + $0xc0] sm:$0xff] }
 0x11e   :  { %v1420_v26 = vsel %vm1419_vm7, %v1410_v25, %v1412_v16  ;;  %1575 = vmatprep.mubr.f32.mxu1 %v5562_v4  ;;  %vm4269_vm7 = vcmask 506880  }
 0x11f   :  { %1435 = vmatpush1.msra.mxu0 %v1420_v26  ;;  %5091 = vmatmul.mubr.msk.f32.vlgmr.msra.gmra.mrb[0].mxu1 %vm135_vm1, %v1407_v23  ;;  %v5586_v26 = vmov 0  }
 0x120   :  { %3697 = vrot.lane.b32.xlu1 %v5707_v2, %s5580_s2  ;;  %3695 = vrot.lane.b32.xlu0 %v5701_v0, %s5580_s2 }
 0x121   :  { %v1606_v28 = vpop.permute.xlu1 %1605  ;;  %v1604_v29 = vpop.permute.xlu0 %1603  ;;  %5089 = vmatmul.mubr.msk.f32.vlgmr.msra.gmra.mrb[0].mxu0 %vm135_vm1, %v1407_v23  ;;  %1581 = vmatprep.mubr.f32.mxu1 %v5562_v4 }
 0x122   :  { %v1611_v30 = vsel %vm1609_vm8, %v1602_v24, %v1604_v29  ;;  %1504 = vmatprep.mubr.f32.mxu0 %v5562_v4  ;;  %v1612_v36 = vsel %vm1609_vm8, %v1604_v29, %v1606_v28  ;;  %5399 = vset.pattern.permute.xlu0 %v5586_v26 }
 0x123   :  { %1624 = vmatprep.subr.mxu0 %v1611_v30  ;;  %5092 = vmatmul.mubr.msk.f32.gmra.mrb[2].mxu1 %vm135_vm1, %v1408_v27 }
 0x124   :  { %3881 = vrot.lane.b32.xlu1 %v5703_v1, %s5581_s7  ;;  %3689 = vrot.lane.b32.xlu0 %v5715_v5, %s5580_s2 }
 0x125   :  { %v1600_v31 = vpop.permute.xlu1 %1599  ;;  %v1608_v32 = vpop.permute.xlu0 %1607  ;;  %5090 = vmatmul.mubr.msk.f32.gmra.mrb[2].mxu0 %vm135_vm1, %v1408_v27  ;;  %1765 = vmatprep.mubr.f32.mxu1 %v5562_v4 }
 0x126   :  { %v1610_v33 = vsel %vm1609_vm8, %v1600_v31, %v1602_v24  ;;  %v1613_v34 = vsel %vm1609_vm8, %v1606_v28, %v1608_v32  ;;  %1688 = vmatprep.mubr.f32.mxu0 %v5562_v4  ;;  %v2358_v24 = vld [vmem:[#allocation6 + $0xc8] sm:$0xff]  ;;  %v4827_v28 = vld [vmem:[#allocation8 + $0x8] sm:$0xff]  ;;  %v2547_v31 = vld [vmem:[#allocation6 + $0xd0] sm:$0xff]  ;;  %5400 = vset.pattern.permute.xlu1 %v5586_v26  ;;  %vm4459_vm8 = vcmask 498688  }
 0x127   :  { %1625 = vmatpush1.msra.mxu0 %v1610_v33  ;;  %1701 = vmatprep.subr.mxu1 %v1613_v34  ;;  %v4873_v32 = vld [vmem:[#allocation11] sm:$0xff]  ;;  %v2548_v34 = vld [vmem:[#allocation6 + $0xd8] sm:$0xff] }
 0x128   :  { %3885 = vrot.lane.b32.xlu1 %v5701_v0, %s5581_s7  ;;  %3883 = vrot.lane.b32.xlu0 %v5709_v3, %s5581_s7 }
 0x129   :  { %1702 = vmatpush1.msra.mxu1 %v1612_v36  ;;  %v1794_v37 = vpop.permute.xlu1 %1793  ;;  %v1792_v38 = vpop.permute.xlu0 %1791  ;;  %5093 = vmatmul.mubr.msk.f32.vlgmr.msra.gmra.mrb[0].mxu0 %vm135_vm1, %v1597_v35 }
 0x12a   :  { %v1801_v39 = vsel %vm1799_vm9, %v1792_v38, %v1794_v37  ;;  %5095 = vmatmul.mubr.msk.f32.vlgmr.msra.gmra.mrb[0].mxu1 %vm135_vm1, %v1597_v35  ;;  %1694 = vmatprep.mubr.f32.mxu0 %v5562_v4 }
 0x12b   :  { %1814 = vmatprep.subr.mxu0 %v1801_v39  ;;  %1771 = vmatprep.mubr.f32.mxu1 %v5562_v4 }
 0x12c   :  { %3879 = vrot.lane.b32.xlu1 %v5715_v5, %s5581_s7  ;;  %3887 = vrot.lane.b32.xlu0 %v5707_v2, %s5581_s7 }
 0x12d   :  { %v1798_v41 = vpop.permute.xlu1 %1797  ;;  %v1796_v42 = vpop.permute.xlu0 %1795  ;;  %5094 = vmatmul.mubr.msk.f32.gmra.mrb[2].mxu0 %vm135_vm1, %v1598_v40 }
 0x12e   :  { %v1802_v43 = vsel %vm1799_vm9, %v1794_v37, %v1796_v42  ;;  %v1803_v44 = vsel %vm1799_vm9, %v1796_v42, %v1798_v41  ;;  %5096 = vmatmul.mubr.msk.f32.gmra.mrb[2].mxu1 %vm135_vm1, %v1598_v40  ;;  %1878 = vmatprep.mubr.f32.mxu0 %v5562_v4  ;;  %v2737_v42 = vld [vmem:[#allocation6 + $0xe0] sm:$0xff] }
 0x12f   :  { %1891 = vmatprep.subr.mxu1 %v1803_v44  ;;  %1955 = vmatprep.mubr.f32.mxu1 %v5562_v4 }
 0x130   :  { %4073 = vrot.lane.b32.xlu1 %v5709_v3, %s5582_s8  ;;  %4071 = vrot.lane.b32.xlu0 %v5703_v1, %s5582_s8 }
 0x131   :  { %1892 = vmatpush1.msra.mxu1 %v1802_v43  ;;  %v1982_v46 = vpop.permute.xlu1 %1981  ;;  %v1790_v47 = vpop.permute.xlu0 %1789 }
 0x132   :  { %v1800_v48 = vsel %vm1799_vm9, %v1790_v47, %v1792_v38  ;;  %5099 = vmatmul.mubr.msk.f32.vlgmr.msra.gmra.mrb[0].mxu1 %vm135_vm1, %v1787_v45  ;;  %vm4649_vm9 = vcmask 490496  }
 0x133   :  { %1815 = vmatpush1.msra.mxu0 %v1800_v48  ;;  %1961 = vmatprep.mubr.f32.mxu1 %v5562_v4 }
 0x134   :  { %4077 = vrot.lane.b32.xlu1 %v5707_v2, %s5582_s8  ;;  %4075 = vrot.lane.b32.xlu0 %v5701_v0, %s5582_s8 }
 0x135   :  { %v1986_v50 = vpop.permute.xlu1 %1985  ;;  %v1984_v51 = vpop.permute.xlu0 %1983  ;;  %5097 = vmatmul.mubr.msk.f32.vlgmr.msra.gmra.mrb[0].mxu0 %vm135_vm1, %v1787_v45 }
 0x136   :  { %v1991_v52 = vsel %vm1989_vm10, %v1982_v46, %v1984_v51  ;;  %5100 = vmatmul.mubr.msk.f32.gmra.mrb[2].mxu1 %vm135_vm1, %v1788_v49  ;;  %1884 = vmatprep.mubr.f32.mxu0 %v5562_v4  ;;  %v1992_v58 = vsel %vm1989_vm10, %v1984_v51, %v1986_v50 }
 0x137   :  { %2004 = vmatprep.subr.mxu0 %v1991_v52  ;;  %2145 = vmatprep.mubr.f32.mxu1 %v5562_v4  ;;  %v2927_v52 = vld [vmem:[#allocation6 + $0xf0] sm:$0xff] }
 0x138   :  { %4261 = vrot.lane.b32.xlu1 %v5703_v1, %s5583_s9  ;;  %4069 = vrot.lane.b32.xlu0 %v5715_v5, %s5582_s8 }
 0x139   :  { %v1980_v53 = vpop.permute.xlu1 %1979  ;;  %v1988_v54 = vpop.permute.xlu0 %1987  ;;  %5098 = vmatmul.mubr.msk.f32.gmra.mrb[2].mxu0 %vm135_vm1, %v1788_v49 }
 0x13a   :  { %v1990_v55 = vsel %vm1989_vm10, %v1980_v53, %v1982_v46  ;;  %v1993_v56 = vsel %vm1989_vm10, %v1986_v50, %v1988_v54  ;;  %2068 = vmatprep.mubr.f32.mxu0 %v5562_v4  ;;  %v2738_v46 = vld [vmem:[#allocation6 + $0xe8] sm:$0xff] }
 0x13b   :  { %2005 = vmatpush1.msra.mxu0 %v1990_v55  ;;  %2081 = vmatprep.subr.mxu1 %v1993_v56  ;;  %v2928_v56 = vld [vmem:[#allocation6 + $0xf8] sm:$0xff] }
 0x13c   :  { %4265 = vrot.lane.b32.xlu1 %v5701_v0, %s5583_s9  ;;  %4263 = vrot.lane.b32.xlu0 %v5709_v3, %s5583_s9 }
 0x13d   :  { %2082 = vmatpush1.msra.mxu1 %v1992_v58  ;;  %v2174_v59 = vpop.permute.xlu1 %2173  ;;  %v2172_v60 = vpop.permute.xlu0 %2171  ;;  %5101 = vmatmul.mubr.msk.f32.vlgmr.msra.gmra.mrb[0].mxu0 %vm135_vm1, %v1977_v57 }
 0x13e   :  { %v2181_v61 = vsel %vm2179_vm11, %v2172_v60, %v2174_v59  ;;  %5103 = vmatmul.mubr.msk.f32.vlgmr.msra.gmra.mrb[0].mxu1 %vm135_vm1, %v1977_v57  ;;  %2074 = vmatprep.mubr.f32.mxu0 %v5562_v4 }
 0x13f   :  { %2194 = vmatprep.subr.mxu0 %v2181_v61  ;;  %2151 = vmatprep.mubr.f32.mxu1 %v5562_v4 }
 0x140   :  { %4259 = vrot.lane.b32.xlu1 %v5715_v5, %s5583_s9  ;;  %4267 = vrot.lane.b32.xlu0 %v5707_v2, %s5583_s9 }
 0x141   :  { %v2178_v63 = vpop.permute.xlu1 %2177  ;;  %v2176_v6 = vpop.permute.xlu0 %2175  ;;  %5102 = vmatmul.mubr.msk.f32.gmra.mrb[2].mxu0 %vm135_vm1, %v1978_v62 }
 0x142   :  { %v2182_v7 = vsel %vm2179_vm11, %v2174_v59, %v2176_v6  ;;  %v2183_v8 = vsel %vm2179_vm11, %v2176_v6, %v2178_v63  ;;  %5104 = vmatmul.mubr.msk.f32.gmra.mrb[2].mxu1 %vm135_vm1, %v1978_v62  ;;  %2258 = vmatprep.mubr.f32.mxu0 %v5562_v4  ;;  %v3117_v6 = vld [vmem:[#allocation6 + $0x100] sm:$0xff] }
 0x143   :  { %2271 = vmatprep.subr.mxu1 %v2183_v8  ;;  %2335 = vmatprep.mubr.f32.mxu1 %v5562_v4 }
 0x144   :  { %4453 = vrot.lane.b32.xlu1 %v5709_v3, %s5584_s3  ;;  %4451 = vrot.lane.b32.xlu0 %v5703_v1, %s5584_s3 }
 0x145   :  { %2272 = vmatpush1.msra.mxu1 %v2182_v7  ;;  %v2362_v10 = vpop.permute.xlu1 %2361  ;;  %v2170_v11 = vpop.permute.xlu0 %2169 }
 0x146   :  { %v2180_v12 = vsel %vm2179_vm11, %v2170_v11, %v2172_v60  ;;  %5107 = vmatmul.mubr.msk.f32.vlgmr.msra.gmra.mrb[0].mxu1 %vm135_vm1, %v2167_v9 }
 0x147   :  { %2195 = vmatpush1.msra.mxu0 %v2180_v12  ;;  %2341 = vmatprep.mubr.f32.mxu1 %v5562_v4 }
 0x148   :  { %4457 = vrot.lane.b32.xlu1 %v5707_v2, %s5584_s3  ;;  %4455 = vrot.lane.b32.xlu0 %v5701_v0, %s5584_s3 }
 0x149   :  { %v2366_v14 = vpop.permute.xlu1 %2365  ;;  %v2364_v15 = vpop.permute.xlu0 %2363  ;;  %5105 = vmatmul.mubr.msk.f32.vlgmr.msra.gmra.mrb[0].mxu0 %vm135_vm1, %v2167_v9 }
 0x14a   :  { %v2371_v16 = vsel %vm2369_vm12, %v2362_v10, %v2364_v15  ;;  %5108 = vmatmul.mubr.msk.f32.gmra.mrb[2].mxu1 %vm135_vm1, %v2168_v13  ;;  %2264 = vmatprep.mubr.f32.mxu0 %v5562_v4  ;;  %v2372_v22 = vsel %vm2369_vm12, %v2364_v15, %v2366_v14 }
 0x14b   :  { %2384 = vmatprep.subr.mxu0 %v2371_v16  ;;  %2525 = vmatprep.mubr.f32.mxu1 %v5562_v4  ;;  %v3307_v16 = vld [vmem:[#allocation6 + $0x110] sm:$0xff] }
 0x14c   :  { %4641 = vrot.lane.b32.xlu1 %v5703_v1, %s5585_s10  ;;  %4449 = vrot.lane.b32.xlu0 %v5715_v5, %s5584_s3 }
 0x14d   :  { %v2360_v17 = vpop.permute.xlu1 %2359  ;;  %v2368_v18 = vpop.permute.xlu0 %2367  ;;  %5106 = vmatmul.mubr.msk.f32.gmra.mrb[2].mxu0 %vm135_vm1, %v2168_v13 }
 0x14e   :  { %v2370_v19 = vsel %vm2369_vm12, %v2360_v17, %v2362_v10  ;;  %v2373_v20 = vsel %vm2369_vm12, %v2366_v14, %v2368_v18  ;;  %2448 = vmatprep.mubr.f32.mxu0 %v5562_v4  ;;  %v3118_v10 = vld [vmem:[#allocation6 + $0x108] sm:$0xff] }
 0x14f   :  { %2385 = vmatpush1.msra.mxu0 %v2370_v19  ;;  %2461 = vmatprep.subr.mxu1 %v2373_v20  ;;  %v3308_v20 = vld [vmem:[#allocation6 + $0x118] sm:$0xff] }
 0x150   :  { %4645 = vrot.lane.b32.xlu1 %v5701_v0, %s5585_s10  ;;  %4643 = vrot.lane.b32.xlu0 %v5709_v3, %s5585_s10  ;;  %v4826_v0 = vld [vmem:[#allocation8] sm:$0xff] }
 0x151   :  { %2462 = vmatpush1.msra.mxu1 %v2372_v22  ;;  %5109 = vmatmul.mubr.msk.f32.vlgmr.msra.gmra.mrb[0].mxu0 %vm135_vm1, %v2357_v21 }
 0x152   :  { %v2554_v1 = vpop.permute.xlu1 %2553  ;;  %v2552_v23 = vpop.permute.xlu0 %2551  ;;  %5111 = vmatmul.mubr.msk.f32.vlgmr.msra.gmra.mrb[0].mxu1 %vm135_vm1, %v2357_v21  ;;  %2454 = vmatprep.mubr.f32.mxu0 %v5562_v4 }
 0x153   :  { %v2561_v25 = vsel %vm2559_vm13, %v2552_v23, %v2554_v1  ;;  %2531 = vmatprep.mubr.f32.mxu1 %v5562_v4 }
 0x154   :  { %4639 = vrot.lane.b32.xlu1 %v5715_v5, %s5585_s10  ;;  %4647 = vrot.lane.b32.xlu0 %v5707_v2, %s5585_s10 }
 0x155   :  { %2574 = vmatprep.subr.mxu0 %v2561_v25  ;;  %5110 = vmatmul.mubr.msk.f32.gmra.mrb[2].mxu0 %vm135_vm1, %v2358_v24 }
 0x156   :  { %v2558_v3 = vpop.permute.xlu1 %2557  ;;  %v2556_v27 = vpop.permute.xlu0 %2555  ;;  %5112 = vmatmul.mubr.msk.f32.gmra.mrb[2].mxu1 %vm135_vm1, %v2358_v24  ;;  %2638 = vmatprep.mubr.f32.mxu0 %v5562_v4 }
 0x157   :  { %v2562_v29 = vsel %vm2559_vm13, %v2554_v1, %v2556_v27  ;;  %v2563_v30 = vsel %vm2559_vm13, %v2556_v27, %v2558_v3  ;;  %2715 = vmatprep.mubr.f32.mxu1 %v5562_v4 }
 0x158   :  { %2651 = vmatprep.subr.mxu1 %v2563_v30  ;;  %4830 = vperm.xlu0 %5399, %v4826_v0   ;;  %v3497_v0 = vld [vmem:[#allocation6 + $0x120] sm:$0xff] }
 0x159   :  { %2652 = vmatpush1.msra.mxu1 %v2562_v29  ;;  %4835 = vperm.xlu1 %5400, %v4827_v28   ;;  %v3498_v29 = vld [vmem:[#allocation6 + $0x128] sm:$0xff] }
 0x15a   :  { %v2742_v2 = vpop.permute.xlu1 %2741  ;;  %v2550_v5 = vpop.permute.xlu0 %2549  ;;  %5115 = vmatmul.mubr.msk.f32.vlgmr.msra.gmra.mrb[0].mxu1 %vm135_vm1, %v2547_v31 }
 0x15b   :  { %v2560_v33 = vsel %vm2559_vm13, %v2550_v5, %v2552_v23  ;;  %2721 = vmatprep.mubr.f32.mxu1 %v5562_v4 }
 0x15c   :  { %2575 = vmatpush1.msra.mxu0 %v2560_v33  ;;  %v3687_v33 = vld [vmem:[#allocation6 + $0x130] sm:$0xff] }
 0x15d   :  { %5113 = vmatmul.mubr.msk.f32.vlgmr.msra.gmra.mrb[0].mxu0 %vm135_vm1, %v2547_v31  ;;  %4876 = vperm.xlu1 %5400, %v4873_v32  }
 0x15e   :  { %v2746_v35 = vpop.permute.xlu1 %2745  ;;  %v2744_v36 = vpop.permute.xlu0 %2743  ;;  %5116 = vmatmul.mubr.msk.f32.gmra.mrb[2].mxu1 %vm135_vm1, %v2548_v34  ;;  %2644 = vmatprep.mubr.f32.mxu0 %v5562_v4 }
 0x15f   :  { %v2751_v37 = vsel %vm2749_vm14, %v2742_v2, %v2744_v36  ;;  %2905 = vmatprep.mubr.f32.mxu1 %v5562_v4  ;;  %v2752_v43 = vsel %vm2749_vm14, %v2744_v36, %v2746_v35 }
 0x160   :  { %2764 = vmatprep.subr.mxu0 %v2751_v37  ;;  %v3688_v37 = vld [vmem:[#allocation6 + $0x138] sm:$0xff] }
 0x161   :  { %5114 = vmatmul.mubr.msk.f32.gmra.mrb[2].mxu0 %vm135_vm1, %v2548_v34 }
 0x162   :  { %v2740_v38 = vpop.permute.xlu1 %2739  ;;  %v2748_v39 = vpop.permute.xlu0 %2747  ;;  %2828 = vmatprep.mubr.f32.mxu0 %v5562_v4 }
 0x163   :  { %v2750_v40 = vsel %vm2749_vm14, %v2740_v38, %v2742_v2  ;;  %v2753_v41 = vsel %vm2749_vm14, %v2746_v35, %v2748_v39 }
 0x164   :  { %2765 = vmatpush1.msra.mxu0 %v2750_v40  ;;  %2841 = vmatprep.subr.mxu1 %v2753_v41 }
 0x165   :  { %2842 = vmatpush1.msra.mxu1 %v2752_v43  ;;  %5117 = vmatmul.mubr.msk.f32.vlgmr.msra.gmra.mrb[0].mxu0 %vm135_vm1, %v2737_v42  ;;  %v3877_v43 = vld [vmem:[#allocation6 + $0x140] sm:$0xff] }
 0x166   :  { %v2934_v44 = vpop.permute.xlu1 %2933  ;;  %v2932_v45 = vpop.permute.xlu0 %2931  ;;  %5119 = vmatmul.mubr.msk.f32.vlgmr.msra.gmra.mrb[0].mxu1 %vm135_vm1, %v2737_v42  ;;  %2834 = vmatprep.mubr.f32.mxu0 %v5562_v4 }
 0x167   :  { %v2941_v47 = vsel %vm2939_vm15, %v2932_v45, %v2934_v44  ;;  %2911 = vmatprep.mubr.f32.mxu1 %v5562_v4 }
 0x168   :  { %2954 = vmatprep.subr.mxu0 %v2941_v47 }
 0x169   :  { %5118 = vmatmul.mubr.msk.f32.gmra.mrb[2].mxu0 %vm135_vm1, %v2738_v46 }
 0x16a   :  { %v2938_v48 = vpop.permute.xlu1 %2937  ;;  %v2936_v49 = vpop.permute.xlu0 %2935  ;;  %5120 = vmatmul.mubr.msk.f32.gmra.mrb[2].mxu1 %vm135_vm1, %v2738_v46  ;;  %3018 = vmatprep.mubr.f32.mxu0 %v5562_v4 }
 0x16b   :  { %v2942_v50 = vsel %vm2939_vm15, %v2934_v44, %v2936_v49  ;;  %v2943_v51 = vsel %vm2939_vm15, %v2936_v49, %v2938_v48  ;;  %3095 = vmatprep.mubr.f32.mxu1 %v5562_v4  ;;  %v3878_v49 = vld [vmem:[#allocation6 + $0x148] sm:$0xff] }
 0x16c   :  { %3031 = vmatprep.subr.mxu1 %v2943_v51 }
 0x16d   :  { %3032 = vmatpush1.msra.mxu1 %v2942_v50 }
 0x16e   :  { %v3122_v53 = vpop.permute.xlu1 %3121  ;;  %v2930_v54 = vpop.permute.xlu0 %2929  ;;  %5123 = vmatmul.mubr.msk.f32.vlgmr.msra.gmra.mrb[0].mxu1 %vm135_vm1, %v2927_v52 }
 0x16f   :  { %v2940_v55 = vsel %vm2939_vm15, %v2930_v54, %v2932_v45  ;;  %3101 = vmatprep.mubr.f32.mxu1 %v5562_v4 }
 0x170   :  { %2955 = vmatpush1.msra.mxu0 %v2940_v55  ;;  %v4067_v55 = vld [vmem:[#allocation6 + $0x150] sm:$0xff] }
 0x171   :  { %5121 = vmatmul.mubr.msk.f32.vlgmr.msra.gmra.mrb[0].mxu0 %vm135_vm1, %v2927_v52 }
 0x172   :  { %v3126_v57 = vpop.permute.xlu1 %3125  ;;  %v3124_v58 = vpop.permute.xlu0 %3123  ;;  %5124 = vmatmul.mubr.msk.f32.gmra.mrb[2].mxu1 %vm135_vm1, %v2928_v56  ;;  %3024 = vmatprep.mubr.f32.mxu0 %v5562_v4 }
 0x173   :  { %v3131_v59 = vsel %vm3129_vm0, %v3122_v53, %v3124_v58  ;;  %3285 = vmatprep.mubr.f32.mxu1 %v5562_v4  ;;  %v3132_v7 = vsel %vm3129_vm0, %v3124_v58, %v3126_v57 }
 0x174   :  { %3144 = vmatprep.subr.mxu0 %v3131_v59  ;;  %v4068_v59 = vld [vmem:[#allocation6 + $0x158] sm:$0xff] }
 0x175   :  { %5122 = vmatmul.mubr.msk.f32.gmra.mrb[2].mxu0 %vm135_vm1, %v2928_v56 }
 0x176   :  { %v3120_v60 = vpop.permute.xlu1 %3119  ;;  %v3128_v61 = vpop.permute.xlu0 %3127  ;;  %3208 = vmatprep.mubr.f32.mxu0 %v5562_v4 }
 0x177   :  { %v3130_v62 = vsel %vm3129_vm0, %v3120_v60, %v3122_v53  ;;  %v3133_v63 = vsel %vm3129_vm0, %v3126_v57, %v3128_v61 }
 0x178   :  { %3145 = vmatpush1.msra.mxu0 %v3130_v62  ;;  %3221 = vmatprep.subr.mxu1 %v3133_v63 }
 0x179   :  { %3222 = vmatpush1.msra.mxu1 %v3132_v7  ;;  %5125 = vmatmul.mubr.msk.f32.vlgmr.msra.gmra.mrb[0].mxu0 %vm135_vm1, %v3117_v6  ;;  %v4257_v7 = vld [vmem:[#allocation6 + $0x160] sm:$0xff] }
 0x17a   :  { %v3314_v8 = vpop.permute.xlu1 %3313  ;;  %v3312_v9 = vpop.permute.xlu0 %3311  ;;  %5127 = vmatmul.mubr.msk.f32.vlgmr.msra.gmra.mrb[0].mxu1 %vm135_vm1, %v3117_v6  ;;  %3214 = vmatprep.mubr.f32.mxu0 %v5562_v4 }
 0x17b   :  { %v3321_v11 = vsel %vm3319_vm2, %v3312_v9, %v3314_v8  ;;  %3291 = vmatprep.mubr.f32.mxu1 %v5562_v4 }
 0x17c   :  { %3334 = vmatprep.subr.mxu0 %v3321_v11 }
 0x17d   :  { %5126 = vmatmul.mubr.msk.f32.gmra.mrb[2].mxu0 %vm135_vm1, %v3118_v10 }
 0x17e   :  { %v3318_v12 = vpop.permute.xlu1 %3317  ;;  %v3316_v13 = vpop.permute.xlu0 %3315  ;;  %5128 = vmatmul.mubr.msk.f32.gmra.mrb[2].mxu1 %vm135_vm1, %v3118_v10  ;;  %3398 = vmatprep.mubr.f32.mxu0 %v5562_v4 }
 0x17f   :  { %v3322_v14 = vsel %vm3319_vm2, %v3314_v8, %v3316_v13  ;;  %v3323_v15 = vsel %vm3319_vm2, %v3316_v13, %v3318_v12  ;;  %3475 = vmatprep.mubr.f32.mxu1 %v5562_v4  ;;  %v4258_v13 = vld [vmem:[#allocation6 + $0x168] sm:$0xff] }
 0x180   :  { %3411 = vmatprep.subr.mxu1 %v3323_v15 }
 0x181   :  { %3412 = vmatpush1.msra.mxu1 %v3322_v14 }
 0x182   :  { %v3502_v17 = vpop.permute.xlu1 %3501  ;;  %v3310_v18 = vpop.permute.xlu0 %3309  ;;  %5131 = vmatmul.mubr.msk.f32.vlgmr.msra.gmra.mrb[0].mxu1 %vm135_vm1, %v3307_v16 }
 0x183   :  { %v3320_v19 = vsel %vm3319_vm2, %v3310_v18, %v3312_v9  ;;  %3481 = vmatprep.mubr.f32.mxu1 %v5562_v4  ;;  %vm4879_vm2 = vcmask 130048  }
 0x184   :  { %3335 = vmatpush1.msra.mxu0 %v3320_v19  ;;  %v4447_v19 = vld [vmem:[#allocation6 + $0x170] sm:$0xff] }
 0x185   :  { %5129 = vmatmul.mubr.msk.f32.vlgmr.msra.gmra.mrb[0].mxu0 %vm135_vm1, %v3307_v16 }
 0x186   :  { %v3506_v21 = vpop.permute.xlu1 %3505  ;;  %v3504_v22 = vpop.permute.xlu0 %3503  ;;  %5132 = vmatmul.mubr.msk.f32.gmra.mrb[2].mxu1 %vm135_vm1, %v3308_v20  ;;  %3404 = vmatprep.mubr.f32.mxu0 %v5562_v4 }
 0x187   :  { %v3511_v1 = vsel %vm3509_vm3, %v3502_v17, %v3504_v22  ;;  %3665 = vmatprep.mubr.f32.mxu1 %v5562_v4  ;;  %v3512_v3 = vsel %vm3509_vm3, %v3504_v22, %v3506_v21 }
 0x188   :  { %3524 = vmatprep.subr.mxu0 %v3511_v1  ;;  %v4448_v1 = vld [vmem:[#allocation6 + $0x178] sm:$0xff] }
 0x189   :  { %5130 = vmatmul.mubr.msk.f32.gmra.mrb[2].mxu0 %vm135_vm1, %v3308_v20 }
 0x18a   :  { %v3500_v23 = vpop.permute.xlu1 %3499  ;;  %v3508_v24 = vpop.permute.xlu0 %3507  ;;  %3588 = vmatprep.mubr.f32.mxu0 %v5562_v4 }
 0x18b   :  { %v3510_v25 = vsel %vm3509_vm3, %v3500_v23, %v3502_v17  ;;  %v3513_v26 = vsel %vm3509_vm3, %v3506_v21, %v3508_v24 }
 0x18c   :  { %3525 = vmatpush1.msra.mxu0 %v3510_v25  ;;  %3601 = vmatprep.subr.mxu1 %v3513_v26 }
 0x18d   :  { %3602 = vmatpush1.msra.mxu1 %v3512_v3  ;;  %5133 = vmatmul.mubr.msk.f32.vlgmr.msra.gmra.mrb[0].mxu0 %vm135_vm1, %v3497_v0  ;;  %v4637_v3 = vld [vmem:[#allocation6 + $0x180] sm:$0xff] }
 0x18e   :  { %v3694_v27 = vpop.permute.xlu1 %3693  ;;  %v3692_v28 = vpop.permute.xlu0 %3691  ;;  %5135 = vmatmul.mubr.msk.f32.vlgmr.msra.gmra.mrb[0].mxu1 %vm135_vm1, %v3497_v0  ;;  %3594 = vmatprep.mubr.f32.mxu0 %v5562_v4 }
 0x18f   :  { %v3701_v30 = vsel %vm3699_vm4, %v3692_v28, %v3694_v27  ;;  %3671 = vmatprep.mubr.f32.mxu1 %v5562_v4 }
 0x190   :  { %3714 = vmatprep.subr.mxu0 %v3701_v30  ;;  %v4638_v30 = vld [vmem:[#allocation6 + $0x188] sm:$0xff] }
 0x191   :  { %5134 = vmatmul.mubr.msk.f32.gmra.mrb[2].mxu0 %vm135_vm1, %v3498_v29 }
 0x192   :  { %v3698_v31 = vpop.permute.xlu1 %3697  ;;  %v3696_v2 = vpop.permute.xlu0 %3695  ;;  %5136 = vmatmul.mubr.msk.f32.gmra.mrb[2].mxu1 %vm135_vm1, %v3498_v29  ;;  %3778 = vmatprep.mubr.f32.mxu0 %v5562_v4 }
 0x193   :  { %v3702_v5 = vsel %vm3699_vm4, %v3694_v27, %v3696_v2  ;;  %v3703_v32 = vsel %vm3699_vm4, %v3696_v2, %v3698_v31  ;;  %3855 = vmatprep.mubr.f32.mxu1 %v5562_v4 }
 0x194   :  { %3791 = vmatprep.subr.mxu1 %v3703_v32 }
 0x195   :  { %3792 = vmatpush1.msra.mxu1 %v3702_v5  ;;  %v4855_v5 = vstv %s4846_s11 }
 0x196   :  { %v3882_v34 = vpop.permute.xlu1 %3881  ;;  %v3690_v35 = vpop.permute.xlu0 %3689  ;;  %5139 = vmatmul.mubr.msk.f32.vlgmr.msra.gmra.mrb[0].mxu1 %vm135_vm1, %v3687_v33 }
 0x197   :  { %v3700_v36 = vsel %vm3699_vm4, %v3690_v35, %v3692_v28  ;;  %3861 = vmatprep.mubr.f32.mxu1 %v5562_v4 }
 0x198   :  { %3715 = vmatpush1.msra.mxu0 %v3700_v36 }
 0x199   :  { %5137 = vmatmul.mubr.msk.f32.vlgmr.msra.gmra.mrb[0].mxu0 %vm135_vm1, %v3687_v33 }
 0x19a   :  { %v3886_v38 = vpop.permute.xlu1 %3885  ;;  %v3884_v39 = vpop.permute.xlu0 %3883  ;;  %3784 = vmatprep.mubr.f32.mxu0 %v5562_v4  ;;  %5140 = vmatmul.mubr.msk.f32.gmra.mrb[2].mxu1 %vm135_vm1, %v3688_v37 }
 0x19b   :  { %v3891_v40 = vsel %vm3889_vm5, %v3882_v34, %v3884_v39  ;;  %4045 = vmatprep.mubr.f32.mxu1 %v5562_v4  ;;  %v3892_v46 = vsel %vm3889_vm5, %v3884_v39, %v3886_v38 }
 0x19c   :  { %3904 = vmatprep.subr.mxu0 %v3891_v40 }
 0x19d   :  { %5138 = vmatmul.mubr.msk.f32.gmra.mrb[2].mxu0 %vm135_vm1, %v3688_v37 }
 0x19e   :  { %v3880_v41 = vpop.permute.xlu1 %3879  ;;  %v3888_v42 = vpop.permute.xlu0 %3887  ;;  %3968 = vmatprep.mubr.f32.mxu0 %v5562_v4 }
 0x19f   :  { %v3890_v44 = vsel %vm3889_vm5, %v3880_v41, %v3882_v34  ;;  %v3893_v45 = vsel %vm3889_vm5, %v3886_v38, %v3888_v42 }
 0x1a0   :  { %3905 = vmatpush1.msra.mxu0 %v3890_v44  ;;  %3981 = vmatprep.subr.mxu1 %v3893_v45 }
 0x1a1   :  { %3982 = vmatpush1.msra.mxu1 %v3892_v46  ;;  %5141 = vmatmul.mubr.msk.f32.vlgmr.msra.gmra.mrb[0].mxu0 %vm135_vm1, %v3877_v43 }
 0x1a2   :  { %v4074_v47 = vpop.permute.xlu1 %4073  ;;  %v4072_v48 = vpop.permute.xlu0 %4071  ;;  %5143 = vmatmul.mubr.msk.f32.vlgmr.msra.gmra.mrb[0].mxu1 %vm135_vm1, %v3877_v43  ;;  %3974 = vmatprep.mubr.f32.mxu0 %v5562_v4 }
 0x1a3   :  { %v4081_v50 = vsel %vm4079_vm6, %v4072_v48, %v4074_v47  ;;  %4051 = vmatprep.mubr.f32.mxu1 %v5562_v4 }
 0x1a4   :  { %4094 = vmatprep.subr.mxu0 %v4081_v50 }
 0x1a5   :  { %5142 = vmatmul.mubr.msk.f32.gmra.mrb[2].mxu0 %vm135_vm1, %v3878_v49 }
 0x1a6   :  { %v4078_v51 = vpop.permute.xlu1 %4077  ;;  %v4076_v52 = vpop.permute.xlu0 %4075  ;;  %5144 = vmatmul.mubr.msk.f32.gmra.mrb[2].mxu1 %vm135_vm1, %v3878_v49  ;;  %4158 = vmatprep.mubr.f32.mxu0 %v5562_v4 }
 0x1a7   :  { %v4082_v53 = vsel %vm4079_vm6, %v4074_v47, %v4076_v52  ;;  %v4083_v54 = vsel %vm4079_vm6, %v4076_v52, %v4078_v51  ;;  %4235 = vmatprep.mubr.f32.mxu1 %v5562_v4 }
 0x1a8   :  { %4171 = vmatprep.subr.mxu1 %v4083_v54 }
 0x1a9   :  { %4172 = vmatpush1.msra.mxu1 %v4082_v53 }
 0x1aa   :  { %v4262_v56 = vpop.permute.xlu1 %4261  ;;  %v4070_v57 = vpop.permute.xlu0 %4069  ;;  %5147 = vmatmul.mubr.msk.f32.vlgmr.msra.gmra.mrb[0].mxu1 %vm135_vm1, %v4067_v55 }
 0x1ab   :  { %v4080_v58 = vsel %vm4079_vm6, %v4070_v57, %v4072_v48  ;;  %4241 = vmatprep.mubr.f32.mxu1 %v5562_v4 }
 0x1ac   :  { %4095 = vmatpush1.msra.mxu0 %v4080_v58 }
 0x1ad   :  { %5145 = vmatmul.mubr.msk.f32.vlgmr.msra.gmra.mrb[0].mxu0 %vm135_vm1, %v4067_v55 }
 0x1ae   :  { %v4266_v60 = vpop.permute.xlu1 %4265  ;;  %v4264_v61 = vpop.permute.xlu0 %4263  ;;  %4164 = vmatprep.mubr.f32.mxu0 %v5562_v4  ;;  %5148 = vmatmul.mubr.msk.f32.gmra.mrb[2].mxu1 %vm135_vm1, %v4068_v59 }
 0x1af   :  { %v4271_v62 = vsel %vm4269_vm7, %v4262_v56, %v4264_v61  ;;  %4425 = vmatprep.mubr.f32.mxu1 %v5562_v4  ;;  %v4272_v10 = vsel %vm4269_vm7, %v4264_v61, %v4266_v60 }
 0x1b0   :  { %4284 = vmatprep.subr.mxu0 %v4271_v62 }
 0x1b1   :  { %5146 = vmatmul.mubr.msk.f32.gmra.mrb[2].mxu0 %vm135_vm1, %v4068_v59 }
 0x1b2   :  { %v4260_v63 = vpop.permute.xlu1 %4259  ;;  %v4268_v6 = vpop.permute.xlu0 %4267  ;;  %4348 = vmatprep.mubr.f32.mxu0 %v5562_v4 }
 0x1b3   :  { %v4270_v8 = vsel %vm4269_vm7, %v4260_v63, %v4262_v56  ;;  %v4273_v9 = vsel %vm4269_vm7, %v4266_v60, %v4268_v6 }
 0x1b4   :  { %4285 = vmatpush1.msra.mxu0 %v4270_v8  ;;  %4361 = vmatprep.subr.mxu1 %v4273_v9  ;;  %v4872_v9 = vld [vmem:[#allocation9] sm:$0xff] }
 0x1b5   :  { %4362 = vmatpush1.msra.mxu1 %v4272_v10  ;;  %5149 = vmatmul.mubr.msk.f32.vlgmr.msra.gmra.mrb[0].mxu0 %vm135_vm1, %v4257_v7 }
 0x1b6   :  { %v4454_v11 = vpop.permute.xlu1 %4453  ;;  %v4452_v12 = vpop.permute.xlu0 %4451  ;;  %5151 = vmatmul.mubr.msk.f32.vlgmr.msra.gmra.mrb[0].mxu1 %vm135_vm1, %v4257_v7  ;;  %4354 = vmatprep.mubr.f32.mxu0 %v5562_v4 }
 0x1b7   :  { %v4461_v14 = vsel %vm4459_vm8, %v4452_v12, %v4454_v11  ;;  %4431 = vmatprep.mubr.f32.mxu1 %v5562_v4 }
 0x1b8   :  { %4474 = vmatprep.subr.mxu0 %v4461_v14 }
 0x1b9   :  { %5150 = vmatmul.mubr.msk.f32.gmra.mrb[2].mxu0 %vm135_vm1, %v4258_v13 }
 0x1ba   :  { %v4458_v15 = vpop.permute.xlu1 %4457  ;;  %v4456_v16 = vpop.permute.xlu0 %4455  ;;  %5152 = vmatmul.mubr.msk.f32.gmra.mrb[2].mxu1 %vm135_vm1, %v4258_v13  ;;  %4538 = vmatprep.mubr.f32.mxu0 %v5562_v4 }
 0x1bb   :  { %v4462_v17 = vsel %vm4459_vm8, %v4454_v11, %v4456_v16  ;;  %v4463_v18 = vsel %vm4459_vm8, %v4456_v16, %v4458_v15  ;;  %4615 = vmatprep.mubr.f32.mxu1 %v5562_v4 }
 0x1bc   :  { %4551 = vmatprep.subr.mxu1 %v4463_v18 }
 0x1bd   :  { %4552 = vmatpush1.msra.mxu1 %v4462_v17 }
 0x1be   :  { %v4642_v20 = vpop.permute.xlu1 %4641  ;;  %v4450_v21 = vpop.permute.xlu0 %4449  ;;  %5155 = vmatmul.mubr.msk.f32.vlgmr.msra.gmra.mrb[0].mxu1 %vm135_vm1, %v4447_v19 }
 0x1bf   :  { %v4460_v22 = vsel %vm4459_vm8, %v4450_v21, %v4452_v12  ;;  %4621 = vmatprep.mubr.f32.mxu1 %v5562_v4  ;;  %v5030_v12 = vstv %s5163_s12 }
 0x1c0   :  { %4475 = vmatpush1.msra.mxu0 %v4460_v22 }
 0x1c1   :  { %5153 = vmatmul.mubr.msk.f32.vlgmr.msra.gmra.mrb[0].mxu0 %vm135_vm1, %v4447_v19 }
 0x1c2   :  { %v4646_v23 = vpop.permute.xlu1 %4645  ;;  %v4644_v24 = vpop.permute.xlu0 %4643  ;;  %4544 = vmatprep.mubr.f32.mxu0 %v5562_v4  ;;  %5156 = vmatmul.mubr.msk.f32.gmra.mrb[2].mxu1 %vm135_vm1, %v4448_v1 }
 0x1c3   :  { %v4651_v25 = vsel %vm4649_vm9, %v4642_v20, %v4644_v24  ;;  %4805 = vmatprep.mubr.f32.mxu1 %v5562_v4  ;;  %v4652_v29 = vsel %vm4649_vm9, %v4644_v24, %v4646_v23 }
 0x1c4   :  { %4664 = vmatprep.subr.mxu0 %v4651_v25 }
 0x1c5   :  { %5154 = vmatmul.mubr.msk.f32.gmra.mrb[2].mxu0 %vm135_vm1, %v4448_v1 }
 0x1c6   :  { %v4640_v26 = vpop.permute.xlu1 %4639  ;;  %v4648_v0 = vpop.permute.xlu0 %4647  ;;  %4728 = vmatprep.mubr.f32.mxu0 %v5562_v4 }
 0x1c7   :  { %v4650_v27 = vsel %vm4649_vm9, %v4640_v26, %v4642_v20  ;;  %v4653_v28 = vsel %vm4649_vm9, %v4646_v23, %v4648_v0 }
 0x1c8   :  { %4665 = vmatpush1.msra.mxu0 %v4650_v27  ;;  %4741 = vmatprep.subr.mxu1 %v4653_v28 }
 0x1c9   :  { %5157 = vmatmul.mubr.msk.f32.vlgmr.msra.gmra.mrb[0].mxu0 %vm135_vm1, %v4637_v3  ;;  %4742 = vmatpush1.msra.mxu1 %v4652_v29 }
 0x1ca   :  { %5159 = vmatmul.mubr.msk.f32.vlgmr.msra.gmra.mrb[0].mxu1 %vm135_vm1, %v4637_v3  ;;  %4734 = vmatprep.mubr.f32.mxu0 %v5562_v4 }
 0x1cb   :  { %4811 = vmatprep.mubr.f32.mxu1 %v5562_v4 }
 0x1cd   :  { %5158 = vmatmul.mubr.msk.f32.gmra.mrb[2].mxu0 %vm135_vm1, %v4638_v30 }
 0x1ce   :  { %5160 = vmatmul.mubr.msk.f32.gmra.mrb[2].mxu1 %vm135_vm1, %v4638_v30  ;;  %4947 = vmatprep.mubr.f32.mxu0 %v5562_v4 }
 0x1cf   :  { %5018 = vmatprep.mubr.f32.mxu1 %v5562_v4 }
 0x1d7   :  { %v4831_v31 = vpop.permute.xlu0 %4830 }
 0x1d8   :  { %v4836_v40 = vpop.permute.xlu1 %4835 }
 0x1dc   :  { %v4877_v10 = vpop.permute.xlu1 %4876 }
 0x29c   :  { %v4730_v2 = vpop.f32.mrb[0].mxu0 }
 0x29d   :  { %v4838_v32 = vadd.f32 %v4831_v31, %v4730_v2  ;;  %v4732_v33 = vpop.f32.mrb[1].mxu0  ;;  %v4807_v34 = vpop.f32.mrb[0].mxu1 }
 0x29e   :  { %v4839_v35 = vadd.f32 %v4831_v31, %v4732_v33  ;;  %v4840_v36 = vadd.f32 %v4831_v31, %v4807_v34  ;;  %v4809_v37 = vpop.f32.mrb[1].mxu1 }
 0x29f   :  { %vm4847_vm10 = vcmp.ge.f32.partialorder %v4838_v32, 0.0  ;;  %v4856_v38 = vmul.f32 %v4855_v5, %v4838_v32  ;;  %v4841_v39 = vadd.f32 %v4831_v31, %v4809_v37 }
 0x2a0   :  { %vm4848_vm11 = vcmp.ge.f32.partialorder %v4839_v35, 0.0  ;;  %v4736_v41 = vpop.f32.mrb[2].mxu0  ;;  %v4857_v42 = vmul.f32 %v4855_v5, %v4839_v35  ;;  %vm4849_vm1 = vcmp.ge.f32.partialorder %v4840_v36, 0.0  ;;  %v4858_v43 = vmul.f32 %v4855_v5, %v4840_v36 }
 0x2a1   :  { %v4842_v4 = vadd.f32 %v4836_v40, %v4736_v41  ;;  %v4738_v44 = vpop.f32.mrb[3].mxu0  ;;  %v4813_v45 = vpop.f32.mrb[2].mxu1  ;;  %v4864_v46 = vsel %vm4847_vm10, %v4838_v32, %v4856_v38  ;;  %vm4850_vm12 = vcmp.ge.f32.partialorder %v4841_v39, 0.0  ;;  %v4859_v50 = vmul.f32 %v4855_v5, %v4841_v39 }
 0x2a2   :  { %v4843_v47 = vadd.f32 %v4836_v40, %v4738_v44  ;;  %v4844_v48 = vadd.f32 %v4836_v40, %v4813_v45  ;;  %v4815_v49 = vpop.f32.mrb[3].mxu1  ;;  %v4866_v55 = vsel %vm4849_vm1, %v4840_v36, %v4858_v43  ;;  %v4865_v60 = vsel %vm4848_vm11, %v4839_v35, %v4857_v42 }
 0x2a3   :  { %vm4851_vm13 = vcmp.ge.f32.partialorder %v4842_v4, 0.0  ;;  %v4860_v51 = vmul.f32 %v4855_v5, %v4842_v4  ;;  %v4845_v52 = vadd.f32 %v4836_v40, %v4815_v49  ;;  %v4867_v6 = vsel %vm4850_vm12, %v4841_v39, %v4859_v50 }
 0x2a4   :  { %vm4852_vm14 = vcmp.ge.f32.partialorder %v4843_v47, 0.0  ;;  %v4861_v53 = vmul.f32 %v4855_v5, %v4843_v47  ;;  %vm4853_vm15 = vcmp.ge.f32.partialorder %v4844_v48, 0.0  ;;  %v4862_v54 = vmul.f32 %v4855_v5, %v4844_v48 }
 0x2a5   :  { %v4868_v56 = vsel %vm4851_vm13, %v4842_v4, %v4860_v51  ;;  %vm4854_vm0 = vcmp.ge.f32.partialorder %v4845_v52, 0.0  ;;  %v4863_v57 = vmul.f32 %v4855_v5, %v4845_v52 }
 0x2a6   :  { %v5166_v58 = vpack.c.bf16 %v4868_v56, %v4864_v46  ;;  %v4870_v59 = vsel %vm4853_vm15, %v4844_v48, %v4862_v54  ;;  %v4869_v61 = vsel %vm4852_vm14, %v4843_v47, %v4861_v53 }
 0x2a7   :  { %v5170_v62 = vpack.c.bf16 %v4870_v59, %v4866_v55  ;;  %v5164_v63 = vpack.c.bf16 %v4869_v61, %v4865_v60  ;;  %v4871_v7 = vsel %vm4854_vm0, %v4845_v52, %v4863_v57 }
 0x2a8   :  { %v5168_v8 = vpack.c.bf16 %v4871_v7, %v4867_v6 }
 0x2a9   :  { %5165 = vmatprep.subr.bf16.mxu0 %v5164_v63 }
 0x2aa   :  { %5167 = vmatpush1.bf16.msra.mxu0 %v5166_v58  ;;  %5169 = vmatprep.subr.bf16.mxu1 %v5168_v8 }
 0x2ab   :  { %5171 = vmatpush1.bf16.msra.mxu1 %v5170_v62 }
 0x2ad   :  { %5161 = vmatmul.mubr.msk.f32.vlgmr.msra.gmra.mrb[4].mxu0 %vm4879_vm2, %v4872_v9 }
 0x2ae   :  { %5162 = vmatmul.mubr.msk.f32.vlgmr.msra.gmra.mrb[4].mxu1 %vm4879_vm2, %v4872_v9 }
 0x380   :  { %v4949_v11 = vpop.f32.mrb[4].mxu0 }
 0x381   :  { %v4950_v13 = vadd.f32 %v4949_v11, %v4877_v10  ;;  %v4951_v14 = vpop.f32.mrb[5].mxu0  ;;  %v5020_v15 = vpop.f32.mrb[4].mxu1 }
 0x382   :  { %v4952_v16 = vadd.f32 %v4951_v14, %v4877_v10  ;;  %v5021_v17 = vadd.f32 %v5020_v15, %v4877_v10  ;;  %v5022_v18 = vpop.f32.mrb[5].mxu1 }
 0x383   :  { %vm5026_vm3 = vcmp.ge.f32.partialorder %v4950_v13, 0.0  ;;  %v5031_v19 = vmul.f32 %v5030_v12, %v4950_v13  ;;  %v5023_v20 = vadd.f32 %v5022_v18, %v4877_v10 }
 0x384   :  { %vm5027_vm4 = vcmp.ge.f32.partialorder %v4952_v16, 0.0  ;;  %v5032_v21 = vmul.f32 %v5030_v12, %v4952_v16  ;;  %vm5028_vm5 = vcmp.ge.f32.partialorder %v5021_v17, 0.0  ;;  %v5033_v22 = vmul.f32 %v5030_v12, %v5021_v17 }
 0x385   :  { %v5035_v1 = vsel %vm5026_vm3, %v4950_v13, %v5031_v19  ;;  %vm5029_vm6 = vcmp.ge.f32.partialorder %v5023_v20, 0.0  ;;  %v5034_v23 = vmul.f32 %v5030_v12, %v5023_v20 }
 0x386   :  { %5039 = vst [vmem:[#allocation13] sm:$0xff] %v5035_v1  ;;  %v5036_v24 = vsel %vm5027_vm4, %v4952_v16, %v5032_v21  ;;  %v5037_v25 = vsel %vm5028_vm5, %v5021_v17, %v5033_v22 }
 0x387   :  { %5040 = vst [vmem:[#allocation13 + $0x8] sm:$0xff] %v5036_v24  ;;  %5041 = vst [vmem:[#allocation13 + $0x10] sm:$0xff] %v5037_v25  ;;  %v5038_v26 = vsel %vm5029_vm6, %v5023_v20, %v5034_v23 }
 0x388   :  { %5042 = vst [vmem:[#allocation13 + $0x18] sm:$0xff] %v5038_v26 }
 0x389   :  { %5532 = shalt.err (!%p5529_p5)
}
 0x38a   :  { %s5533_s5 = scalar_lea.hbm %s6154_s6, 512 }
 0x38b   :  { %p5534_p6 = scmp.ne.s32.totalorder %s6154_s6, %s5533_s5  ;;  %p5537_p7 = scmp.lt.u32.totalorder %s5533_s5, %s6154_s6 }
 0x38d   :  { %p5539_p8 = pnand %p5537_p7, %p5534_p6 }
 0x38f   :  { %5542 = shalt.err (!%p5539_p8)
}
 0x390   :  { %5052 = dma.vmem_to_hbm [thread:$0]  %s5050_s16, 512, %s6154_s6, [#allocation4]  }
 0x391   :  { %5551 = dma.done.wait [#allocation4], 512  }
 0x392   :  { %5552 = vsyncadd [#allocation4], 4294966784 }
 0x393   :  { %5056 = vsyncpa [#allocation3], 1 }
 0x394   :  { %5057 = vsyncpa [#allocation7], 1 }
 0x395   :  { %5058 = vsyncpa [#allocation10], 1 }
 0x396   :  { %5059 = vsyncpa [#allocation4], 1 }
 0x397   :  { %5060 = vsyncpa [#allocation5], 1 }

// kernel: fsrcnn_forward_pallas.7
= control target key start
LH: loop header
LB: loop body
LE: loop exit
PB: predicated region body
PF: predicated region fallthrough
CT: control target
= control target key end

     0   :  { %9 = vsyncpa [#allocation3], 0  ;;  %s9309_s0 = inlined_call_operand.hbm [shape: f32[16,768], index: 0, kind: input, shape index: {}]   ;;  %s9310_s1 = inlined_call_operand.hbm [shape: f32[25,8,16], index: 1, kind: input, shape index: {}]   ;;  %s9311_s2 = inlined_call_operand.hbm [shape: f32[8,1], index: 2, kind: input, shape index: {}]   ;;  %s9312_s3 = inlined_call_operand.hbm [shape: f32[2], index: 3, kind: input, shape index: {}]   ;;  %s9313_s4 = inlined_call_operand.hbm [shape: f32[8,640], index: 4, kind: output, shape index: {}]  }
   0x1   :  { %10 = vsyncpa [#allocation7], 0 }
   0x2   :  { %11 = vsyncpa [#allocation5], 0 }
   0x3   :  { %12 = vsyncpa [#allocation4], 0  ;;  %s8325_s15 = smov [#allocation6]   ;;  %s8219_s19 = scalar_lea.hbm %s9310_s1, 3200 }
   0x4   :  { %s30_s16 = sshll.u32 %s8325_s15, 4  ;;  %p8220_p0 = scmp.ne.s32.totalorder %s9310_s1, %s8219_s19  ;;  %s31_s16 = int_to_ptr.vmem [resolvable:$true] %s30_s16 }
   0x5   :  { %p8223_p1 = scmp.lt.u32.totalorder %s8219_s19, %s9310_s1 }
   0x7   :  { %p8225_p2 = pnand %p8223_p1, %p8220_p0 }
   0x9   :  { %8228 = shalt.err (!%p8225_p2)
}
   0xa   :  { %s8229_s24 = scalar_lea.vmem %s31_s16, 3200  ;;  %p8234_p4 = scmp.lt.s32.totalorder %s31_s16, %s31_s16 }
   0xb   :  { %p8230_p3 = scmp.ne.s32.totalorder %s31_s16, %s8229_s24  ;;  %p8235_p5 = scmp.lt.s32.totalorder %s8229_s24, %s8229_s24 }
   0xd   :  { %p8236_p6 = por %p8235_p5, %p8234_p4 }
   0xf   :  { %p8237_p7 = pnand %p8236_p6, %p8230_p3 }
  0x11   :  { %8240 = shalt.err (!%p8237_p7)
}
  0x12   :  { %s8326_s25 = smov 128   ;;  %s8327_s26 = smov 8  }
  0x13   :  { %36 = dma.hbm_to_vmem [thread:$0]  %s9310_s1, 3200, %s31_s16, [#allocation7], %s8326_s25, %s8326_s25, %s8327_s26  }
  0x14   :  { %s8328_s29 = smov [#allocation2]   ;;  %s8241_s7 = scalar_lea.hbm %s9309_s0, 1536 }
  0x15   :  { %s18_s30 = sshll.u32 %s8328_s29, 4  ;;  %p8242_p8 = scmp.ne.s32.totalorder %s9309_s0, %s8241_s7  ;;  %s19_s30 = int_to_ptr.vmem [resolvable:$true] %s18_s30 }
  0x16   :  { %p8245_p9 = scmp.lt.u32.totalorder %s8241_s7, %s9309_s0 }
  0x18   :  { %p8247_p10 = pnand %p8245_p9, %p8242_p8 }
  0x1a   :  { %8250 = shalt.err (!%p8247_p10)
}
  0x1b   :  { %s8251_s12 = scalar_lea.vmem %s19_s30, 1536  ;;  %p8256_p12 = scmp.lt.s32.totalorder %s19_s30, %s19_s30 }
  0x1c   :  { %p8252_p11 = scmp.ne.s32.totalorder %s19_s30, %s8251_s12  ;;  %p8257_p13 = scmp.lt.s32.totalorder %s8251_s12, %s8251_s12 }
  0x1e   :  { %p8258_p0 = por %p8257_p13, %p8256_p12 }
  0x20   :  { %p8259_p1 = pnand %p8258_p0, %p8252_p11 }
  0x22   :  { %8262 = shalt.err (!%p8259_p1)
}
  0x23   :  { %s8329_s1 = smov 768   ;;  %s8330_s13 = smov 48  }
  0x24   :  { %24 = dma.hbm_to_vmem [thread:$0]  %s9309_s0, 1536, %s19_s30, [#allocation3], %s8329_s1, %s8329_s1, %s8330_s13  }
  0x25   :  { %s8331_s16 = smov [#allocation8]   ;;  %s8263_s20 = scalar_lea.hbm %s9311_s2, 128 }
  0x26   :  { %s43_s17 = sshll.u32 %s8331_s16, 4  ;;  %p8264_p2 = scmp.ne.s32.totalorder %s9311_s2, %s8263_s20  ;;  %s44_s17 = int_to_ptr.vmem [resolvable:$true] %s43_s17 }
  0x27   :  { %p8267_p3 = scmp.lt.u32.totalorder %s8263_s20, %s9311_s2 }
  0x29   :  { %p8269_p4 = pnand %p8267_p3, %p8264_p2 }
  0x2b   :  { %8272 = shalt.err (!%p8269_p4)
}
  0x2c   :  { %s8273_s25 = scalar_lea.vmem %s44_s17, 128  ;;  %p8278_p6 = scmp.lt.s32.totalorder %s44_s17, %s44_s17 }
  0x2d   :  { %p8274_p5 = scmp.ne.s32.totalorder %s44_s17, %s8273_s25  ;;  %p8279_p7 = scmp.lt.s32.totalorder %s8273_s25, %s8273_s25 }
  0x2f   :  { %p8280_p8 = por %p8279_p7, %p8278_p6 }
  0x31   :  { %p8281_p9 = pnand %p8280_p8, %p8274_p5 }
  0x33   :  { %8284 = shalt.err (!%p8281_p9)
}
  0x34   :  { %46 = dma.hbm_to_vmem [thread:$0]  %s9311_s2, 128, %s44_s17, [#allocation7]  }
  0x35   :  { %s8285_s29 = scalar_lea.hbm %s9312_s3, 16 }
  0x36   :  { %p8286_p10 = scmp.ne.s32.totalorder %s9312_s3, %s8285_s29  ;;  %p8289_p11 = scmp.lt.u32.totalorder %s8285_s29, %s9312_s3 }
  0x38   :  { %p8291_p12 = pnand %p8289_p11, %p8286_p10 }
  0x3a   :  { %8294 = shalt.err (!%p8291_p12)
}
  0x3b   :  { %s8332_s8 = smov [#allocation9]  }
  0x3c   :  { %54 = dma.hbm_to_smem %s9312_s3, 16, %s8332_s8, [#allocation5]  }
  0x3d   :  { %8317 = dma.done.wait [#allocation3], 1536  }
  0x3e   :  { %8318 = vsyncadd [#allocation3], 4294965760 }
  0x3f   :  { %8319 = dma.done.wait [#allocation7], 3328  }
  0x40   :  { %8320 = vsyncadd [#allocation7], 4294963968 }
  0x41   :  { %8321 = dma.done.wait [#allocation5], 16  }
  0x42   :  { %8322 = vsyncadd [#allocation5], 4294967280 }
  0x43   :  { %67 = sfence }
  0x44   :  { %v8435_v0 = vld [vmem:[#allocation2 + $0x20] sm:$0xff]  ;;  %v8437_v1 = vld [vmem:[#allocation2 + $0x28] sm:$0xff]  ;;  %v8447_v5 = vld [vmem:[#allocation2 + $0x30] sm:$0xff]  ;;  %s8333_s2 = smov 127   ;;  %v8334_v18 = vmov 0.0   ;;  %s8335_s3 = smov 126  }
  0x45   :  { %v8439_v2 = vld [vmem:[#allocation2] sm:$0xff]  ;;  %v8443_v3 = vpack.i.bf16 %v8437_v1, %v8435_v0  ;;  %v8445_v4 = vld [vmem:[#allocation2 + $0x8] sm:$0xff]  ;;  %v8449_v6 = vld [vmem:[#allocation2 + $0x38] sm:$0xff]  ;;  %218 = vmatprep.mubr.f32.mxu0 %v8334_v18  ;;  %289 = vmatprep.mubr.f32.mxu1 %v8334_v18  ;;  %s8336_s11 = smov 125   ;;  %s8337_s12 = smov 124   ;;  %vm129_vm0 = vcmask 1039360  }
  0x46   :  { %v7488_v7 = vpack.i.bf16 %v8445_v4, %v8439_v2  ;;  %v8453_v8 = vld [vmem:[#allocation2 + $0x10] sm:$0xff]  ;;  %v8455_v9 = vld [vmem:[#allocation2 + $0x18] sm:$0xff]  ;;  %v7503_v10 = vpack.i.bf16 %v8449_v6, %v8447_v5  ;;  %v8466_v14 = vld [vmem:[#allocation2 + $0x40] sm:$0xff]  ;;  %s8338_s1 = smov 111   ;;  %s8339_s13 = smov 110   ;;  %v8507_v22 = vpack.i.bf16 %v8447_v5, %v8439_v2  ;;  %vm150_vm1 = vcmask 130048  }
  0x47   :  { %7499 = vrot.lane.b32.xlu1 %v8443_v3, %s8333_s2  ;;  %v7493_v11 = vpack.i.bf16 %v8455_v9, %v8453_v8  ;;  %v8462_v12 = vld [vmem:[#allocation2 + $0x50] sm:$0xff]  ;;  %v8464_v13 = vld [vmem:[#allocation2 + $0x58] sm:$0xff]  ;;  %v8468_v15 = vld [vmem:[#allocation2 + $0x48] sm:$0xff]  ;;  %s8340_s14 = smov 109   ;;  %v8493_v19 = vpack.i.bf16 %v8466_v14, %v8449_v6  ;;  %v8497_v20 = vpack.i.bf16 %v8453_v8, %v8445_v4  ;;  %s8341_s15 = smov 108   ;;  %v8502_v21 = vpack.i.bf16 %v8435_v0, %v8455_v9 }
  0x48   :  { %7489 = vrot.lane.b32.xlu0 %v7488_v7, %s8333_s2  ;;  %v8472_v16 = vpack.i.bf16 %v8464_v13, %v8462_v12  ;;  %v7508_v17 = vpack.i.bf16 %v8468_v15, %v8466_v14  ;;  %v8513_v23 = vpack.i.bf16 %v8468_v15, %v8437_v1  ;;  %s8342_s16 = smov 107   ;;  %v8523_v24 = vpack.i.bf16 %v8462_v12, %v8468_v15  ;;  %s8343_s17 = smov 94   ;;  %v80_v61 = vld [vmem:[#allocation6 + $0x8] sm:$0xff] }
  0x49   :  { %v8531_v25 = vpack.i.bf16 %v8464_v13, %v8437_v1  ;;  %s8344_s18 = smov 93   ;;  %s8345_s19 = smov 92   ;;  %v7095_v58 = vpack.c.bf16 %v8468_v15, %v8455_v9  ;;  %v8346_v1 = vmov 0.0|0.0   ;;  %v7097_v9 = vpack.c.bf16 %v8466_v14, %v8453_v8 }
  0x4a   :  { %vm607_vm2 = vcmask 1031168   ;;  %v7093_v15 = vpack.c.bf16 %v8447_v5, %v8439_v2  ;;  %vm8347_vm3 = vmmov 0   ;;  %s8348_s20 = smov 91   ;;  %vm874_vm4 = vcmask 1022976   ;;  %s8349_s21 = smov 90  }
  0x4b   :  { %7504 = vrot.lane.b32.xlu1 %v7503_v10, %s8333_s2  ;;  %vm1141_vm5 = vcmask 1014784   ;;  %s8350_s22 = smov 77   ;;  %vm1408_vm6 = vcmask 908288   ;;  %s8351_s23 = smov 76   ;;  %vm1675_vm7 = vcmask 900096   ;;  %vm1942_vm8 = vcmask 891904  }
  0x4c   :  { %7494 = vrot.lane.b32.xlu0 %v7493_v11, %s8333_s2  ;;  %s8352_s24 = smov 75   ;;  %vm2209_vm9 = vcmask 883712   ;;  %s8353_s25 = smov 74   ;;  %vm2476_vm10 = vcmask 875520   ;;  %vm2743_vm11 = vcmask 769024   ;;  %vm3010_vm12 = vcmask 760832  }
  0x4d   :  { %s8354_s0 = smov 73   ;;  %s8355_s26 = smov 60   ;;  %vm3277_vm13 = vcmask 752640   ;;  %vm3544_vm14 = vcmask 744448   ;;  %vm3811_vm15 = vcmask 736256  }
  0x4e   :  { %s8356_s27 = smov 59   ;;  %s8357_s28 = smov 58  }
  0x4f   :  { %7514 = vrot.lane.b32.xlu1 %v8472_v16, %s8333_s2  ;;  %s8358_s29 = smov 57   ;;  %s8359_s30 = smov 56  }
  0x50   :  { %7509 = vrot.lane.b32.xlu0 %v7508_v17, %s8333_s2  ;;  %s8361_s5 = smov [#allocation10]  }
  0x51   :  { %s6744_s6 = sshll.u32 %s8361_s5, 4  ;;  %s6745_s6 = int_to_ptr.vmem [resolvable:$true] %s6744_s6 }
  0x52   :  { %s8295_s7 = scalar_lea.vmem %s6745_s6, 640  ;;  %p8300_p0 = scmp.lt.s32.totalorder %s6745_s6, %s6745_s6 }
  0x53   :  { %7524 = vrot.lane.b32.xlu1 %v7493_v11, %s8335_s3  ;;  %p8296_p13 = scmp.ne.s32.totalorder %s6745_s6, %s8295_s7  ;;  %p8301_p1 = scmp.lt.s32.totalorder %s8295_s7, %s8295_s7 }
  0x54   :  { %7519 = vrot.lane.b32.xlu0 %v7488_v7, %s8335_s3 }
  0x55   :  { %p8302_p2 = por %p8301_p1, %p8300_p0 }
  0x57   :  { %7534 = vrot.lane.b32.xlu1 %v7503_v10, %s8335_s3  ;;  %p8303_p3 = pnand %p8302_p2, %p8296_p13 }
  0x58   :  { %7529 = vrot.lane.b32.xlu0 %v8443_v3, %s8335_s3 }
  0x5b   :  { %7544 = vrot.lane.b32.xlu1 %v8472_v16, %s8335_s3 }
  0x5c   :  { %7539 = vrot.lane.b32.xlu0 %v7508_v17, %s8335_s3 }
  0x5f   :  { %7554 = vrot.lane.b32.xlu1 %v7493_v11, %s8336_s11 }
  0x60   :  { %7549 = vrot.lane.b32.xlu0 %v7488_v7, %s8336_s11 }
  0x63   :  { %7564 = vrot.lane.b32.xlu1 %v7503_v10, %s8336_s11 }
  0x64   :  { %7559 = vrot.lane.b32.xlu0 %v8443_v3, %s8336_s11 }
  0x67   :  { %7574 = vrot.lane.b32.xlu1 %v8472_v16, %s8336_s11 }
  0x68   :  { %7569 = vrot.lane.b32.xlu0 %v7508_v17, %s8336_s11 }
  0x6b   :  { %7584 = vrot.lane.b32.xlu1 %v7493_v11, %s8337_s12 }
  0x6c   :  { %7579 = vrot.lane.b32.xlu0 %v7488_v7, %s8337_s12 }
  0x6f   :  { %7594 = vrot.lane.b32.xlu1 %v7503_v10, %s8337_s12 }
  0x70   :  { %7589 = vrot.lane.b32.xlu0 %v8443_v3, %s8337_s12 }
  0x73   :  { %7604 = vrot.lane.b32.xlu1 %v8472_v16, %s8337_s12 }
  0x74   :  { %7599 = vrot.lane.b32.xlu0 %v7508_v17, %s8337_s12 }
  0x77   :  { %7614 = vrot.lane.b32.xlu1 %v7493_v11, %s8338_s1 }
  0x78   :  { %7609 = vrot.lane.b32.xlu0 %v7488_v7, %s8338_s1 }
  0x7b   :  { %7624 = vrot.lane.b32.xlu1 %v7503_v10, %s8338_s1 }
  0x7c   :  { %7619 = vrot.lane.b32.xlu0 %v8443_v3, %s8338_s1 }
  0x7f   :  { %7634 = vrot.lane.b32.xlu1 %v8472_v16, %s8338_s1 }
  0x80   :  { %7629 = vrot.lane.b32.xlu0 %v7508_v17, %s8338_s1 }
  0x83   :  { %7644 = vrot.lane.b32.xlu1 %v7493_v11, %s8339_s13 }
  0x84   :  { %7639 = vrot.lane.b32.xlu0 %v7488_v7, %s8339_s13 }
  0x87   :  { %7654 = vrot.lane.b32.xlu1 %v7503_v10, %s8339_s13 }
  0x88   :  { %7649 = vrot.lane.b32.xlu0 %v8443_v3, %s8339_s13 }
  0x8b   :  { %7664 = vrot.lane.b32.xlu1 %v8472_v16, %s8339_s13 }
  0x8c   :  { %7659 = vrot.lane.b32.xlu0 %v7508_v17, %s8339_s13 }
  0x8f   :  { %7674 = vrot.lane.b32.xlu1 %v7493_v11, %s8340_s14 }
  0x90   :  { %7669 = vrot.lane.b32.xlu0 %v7488_v7, %s8340_s14 }
  0x93   :  { %7684 = vrot.lane.b32.xlu1 %v7503_v10, %s8340_s14 }
  0x94   :  { %7679 = vrot.lane.b32.xlu0 %v8443_v3, %s8340_s14  ;;  %v7091_v3 = vpack.c.bf16 %v8449_v6, %v8445_v4 }
  0x97   :  { %7694 = vrot.lane.b32.xlu1 %v8472_v16, %s8340_s14 }
  0x98   :  { %7689 = vrot.lane.b32.xlu0 %v7508_v17, %s8340_s14 }
  0x9b   :  { %7704 = vrot.lane.b32.xlu1 %v8493_v19, %s8341_s15 }
  0x9c   :  { %7699 = vrot.lane.b32.xlu0 %v8497_v20, %s8341_s15 }
  0x9f   :  { %7714 = vrot.lane.b32.xlu1 %v8502_v21, %s8341_s15 }
  0xa0   :  { %7709 = vrot.lane.b32.xlu0 %v8507_v22, %s8341_s15 }
  0xa3   :  { %7724 = vrot.lane.b32.xlu1 %v8472_v16, %s8341_s15 }
  0xa4   :  { %7719 = vrot.lane.b32.xlu0 %v8513_v23, %s8341_s15 }
  0xa7   :  { %7734 = vrot.lane.b32.xlu1 %v8493_v19, %s8342_s16 }
  0xa8   :  { %7729 = vrot.lane.b32.xlu0 %v8497_v20, %s8342_s16 }
  0xab   :  { %7744 = vrot.lane.b32.xlu1 %v8502_v21, %s8342_s16 }
  0xac   :  { %7739 = vrot.lane.b32.xlu0 %v8507_v22, %s8342_s16 }
  0xaf   :  { %7754 = vrot.lane.b32.xlu1 %v8497_v20, %s8343_s17 }
  0xb0   :  { %7749 = vrot.lane.b32.xlu0 %v8523_v24, %s8342_s16 }
  0xb3   :  { %7764 = vrot.lane.b32.xlu1 %v8507_v22, %s8343_s17 }
  0xb4   :  { %7759 = vrot.lane.b32.xlu0 %v8493_v19, %s8343_s17 }
  0xb7   :  { %7774 = vrot.lane.b32.xlu1 %v8502_v21, %s8343_s17 }
  0xb8   :  { %7769 = vrot.lane.b32.xlu0 %v8531_v25, %s8342_s16 }
  0xb9   :  { %v7500_v26 = vpop.permute.xlu1 %7499 }
  0xba   :  { %v7490_v27 = vpop.permute.xlu0 %7489  ;;  %v7501_v39 = vunpack.i.l.bf16 %v7500_v26  ;;  %v7502_v42 = vunpack.i.h.bf16 %v7500_v26 }
  0xbb   :  { %7784 = vrot.lane.b32.xlu1 %v8472_v16, %s8343_s17  ;;  %v7492_v35 = vunpack.i.h.bf16 %v7490_v27  ;;  %v7491_v36 = vunpack.i.l.bf16 %v7490_v27 }
  0xbc   :  { %7779 = vrot.lane.b32.xlu0 %v8513_v23, %s8343_s17  ;;  %v134_v62 = vsel %vm129_vm0, %v7501_v39, %v7502_v42 }
  0xbd   :  { %v7505_v28 = vpop.permute.xlu1 %7504  ;;  %v130_v54 = vsel %vm129_vm0, %v7491_v36, %v7492_v35 }
  0xbe   :  { %v7495_v29 = vpop.permute.xlu0 %7494  ;;  %v7507_v30 = vunpack.i.h.bf16 %v7505_v28  ;;  %v7506_v31 = vunpack.i.l.bf16 %v7505_v28 }
  0xbf   :  { %7794 = vrot.lane.b32.xlu1 %v8493_v19, %s8344_s18  ;;  %v7496_v32 = vunpack.i.l.bf16 %v7495_v29  ;;  %v7497_v33 = vunpack.i.h.bf16 %v7495_v29 }
  0xc0   :  { %7789 = vrot.lane.b32.xlu0 %v8497_v20, %s8344_s18  ;;  %v135_v45 = vsel %vm129_vm0, %v7506_v31, %v7507_v30  ;;  %v68_v31 = vld [vmem:[#allocation6] sm:$0xff] }
  0xc1   :  { %v7515_v34 = vpop.permute.xlu1 %7514  ;;  %v131_v44 = vsel %vm129_vm0, %v7492_v35, %v7496_v32  ;;  %v133_v48 = vsel %vm129_vm0, %v7497_v33, %v7501_v39  ;;  %v132_v55 = vsel %vm129_vm0, %v7496_v32, %v7497_v33  ;;  %v7082_v56 = vpack.c.bf16 %v135_v45, %v130_v54 }
  0xc2   :  { %v7516_v37 = vunpack.i.l.bf16 %v7515_v34  ;;  %v7510_v38 = vpop.permute.xlu0 %7509  ;;  %v7517_v43 = vunpack.i.h.bf16 %v7515_v34  ;;  %v7100_v35 = vpack.c.bf16 %v8462_v12, %v8435_v0 }
  0xc3   :  { %v7512_v40 = vunpack.i.h.bf16 %v7510_v38  ;;  %v7511_v41 = vunpack.i.l.bf16 %v7510_v38  ;;  %7804 = vrot.lane.b32.xlu1 %v8502_v21, %s8344_s18 }
  0xc4   :  { %7799 = vrot.lane.b32.xlu0 %v8507_v22, %s8344_s18  ;;  %v139_v59 = vsel %vm129_vm0, %v7516_v37, %v7517_v43 }
  0xc5   :  { %v8547_v46 = vpop.permute.xlu1 %7524  ;;  %v136_v47 = vsel %vm129_vm0, %v7507_v30, %v7511_v41  ;;  %v138_v49 = vsel %vm129_vm0, %v7512_v40, %v7516_v37  ;;  %v137_v50 = vsel %vm129_vm0, %v7511_v41, %v7512_v40  ;;  %v7089_v7 = vpack.c.bf16 %v139_v59, %v134_v62 }
  0xc6   :  { %v8553_v51 = vpop.permute.xlu0 %7519  ;;  %v7080_v52 = vpack.c.bf16 %v136_v47, %v131_v44  ;;  %v7084_v53 = vpack.c.bf16 %v138_v49, %v133_v48  ;;  %v7086_v57 = vpack.c.bf16 %v137_v50, %v132_v55  ;;  %v7526_v10 = vunpack.i.l.bf16 %v8547_v46 }
  0xc7   :  { %7814 = vrot.lane.b32.xlu1 %v8497_v20, %s8345_s19  ;;  %v7522_v11 = vunpack.i.h.bf16 %v8553_v51  ;;  %v7521_v26 = vunpack.i.l.bf16 %v8553_v51  ;;  %v7527_v29 = vunpack.i.h.bf16 %v8547_v46  ;;  %vm4078_vm0 = vcmask 629760  }
  0xc8   :  { %7809 = vrot.lane.b32.xlu0 %v8523_v24, %s8344_s18  ;;  %7081 = vmatprep.subr.bf16.mxu0 %v7080_v52 }
  0xc9   :  { %7085 = vmatprep.subr.bf16.mxu1 %v7084_v53  ;;  %7083 = vmatpush1.bf16.msra.mxu0 %v7082_v56  ;;  %v7535_v60 = vpop.permute.xlu1 %7534  ;;  %v609_v2 = vsel %vm607_vm2, %v7522_v11, %v7526_v10  ;;  %v608_v38 = vsel %vm607_vm2, %v7521_v26, %v7522_v11  ;;  %v610_v44 = vsel %vm607_vm2, %v7526_v10, %v7527_v29 }
  0xca   :  { %7087 = vmatpush1.bf16.msra.mxu1 %v7086_v57  ;;  %v8565_v63 = vpop.permute.xlu0 %7529  ;;  %7088 = vmatprep.subr.bf16.mxu0 %v8346_v1  ;;  %v7537_v13 = vunpack.i.h.bf16 %v7535_v60  ;;  %v7536_v4 = vunpack.i.l.bf16 %v7535_v60  ;;  %v582_v57 = vld [vmem:[#allocation6 + $0x10] sm:$0xff] }
  0xcb   :  { %7824 = vrot.lane.b32.xlu1 %v8507_v22, %s8345_s19  ;;  %7096 = vmatprep.subr.bf16.mxu1 %v7095_v58  ;;  %v7531_v8 = vunpack.i.l.bf16 %v8565_v63  ;;  %v7532_v12 = vunpack.i.h.bf16 %v8565_v63 }
  0xcc   :  { %7819 = vrot.lane.b32.xlu0 %v8493_v19, %s8345_s19  ;;  %6755 = vmatmul.mubr.msk.f32.vlgmr.msra.gmra.mrb[0].mxu0 %vm150_vm1, %v80_v61  ;;  %v613_v5 = vsel %vm607_vm2, %v7536_v4, %v7537_v13 }
  0xcd   :  { %6756 = vmatmul.mubr.msk.f32.vlgmr.msra.gmra.mrb[0].mxu1 %vm150_vm1, %v80_v61  ;;  %7090 = vmatpush3.bf16.msra.mxu0 %v7089_v7  ;;  %v7545_v6 = vpop.permute.xlu1 %7544  ;;  %v611_v37 = vsel %vm607_vm2, %v7527_v29, %v7531_v8  ;;  %v7104_v41 = vpack.c.bf16 %v613_v5, %v608_v38  ;;  %v612_v52 = vsel %vm607_vm2, %v7531_v8, %v7532_v12  ;;  %v849_v5 = vld [vmem:[#allocation6 + $0x18] sm:$0xff] }
  0xce   :  { %v7546_v14 = vunpack.i.l.bf16 %v7545_v6  ;;  %v7540_v17 = vpop.permute.xlu0 %7539  ;;  %6909 = vmatprep.mubr.msk.f32.mxu0 %vm8347_vm3, %v8334_v18  ;;  %7092 = vmatprep.subr.bf16.mxu0 %v7091_v3  ;;  %v7547_v39 = vunpack.i.h.bf16 %v7545_v6 }
  0xcf   :  { %v7542_v27 = vunpack.i.h.bf16 %v7540_v17  ;;  %v7541_v28 = vunpack.i.l.bf16 %v7540_v17  ;;  %7834 = vrot.lane.b32.xlu1 %v8502_v21, %s8345_s19  ;;  %7098 = vmatpush1.bf16.msra.mxu1 %v7097_v9 }
  0xd0   :  { %7829 = vrot.lane.b32.xlu0 %v8531_v25, %s8344_s18  ;;  %6910 = vmatmul.mubr.msk.f32.vlgmr.msra.gmra.mrb[2].mxu0 %vm150_vm1, %v80_v61  ;;  %v617_v45 = vsel %vm607_vm2, %v7546_v14, %v7547_v39 }
  0xd1   :  { %7094 = vmatpush1.bf16.msra.mxu0 %v7093_v15  ;;  %v7555_v30 = vpop.permute.xlu1 %7554  ;;  %433 = vmatprep.mubr.f32.mxu0 %v8334_v18  ;;  %v614_v32 = vsel %vm607_vm2, %v7537_v13, %v7541_v28  ;;  %v616_v33 = vsel %vm607_vm2, %v7542_v27, %v7546_v14  ;;  %v615_v42 = vsel %vm607_vm2, %v7541_v28, %v7542_v27  ;;  %vm4345_vm2 = vcmask 621568  }
  0xd2   :  { %v8597_v34 = vpop.permute.xlu0 %7549  ;;  %504 = vmatprep.mubr.f32.mxu1 %v8334_v18  ;;  %7099 = vmatprep.subr.bf16.mxu1 %v8346_v1  ;;  %v7102_v36 = vpack.c.bf16 %v614_v32, %v609_v2  ;;  %v7106_v40 = vpack.c.bf16 %v616_v33, %v611_v37  ;;  %v7557_v46 = vunpack.i.h.bf16 %v7555_v30  ;;  %v7556_v47 = vunpack.i.l.bf16 %v7555_v30 }
  0xd3   :  { %7844 = vrot.lane.b32.xlu1 %v8472_v16, %s8345_s19  ;;  %v7552_v48 = vunpack.i.h.bf16 %v8597_v34  ;;  %v7108_v50 = vpack.c.bf16 %v615_v42, %v610_v44  ;;  %v7111_v60 = vpack.c.bf16 %v617_v45, %v612_v52  ;;  %v7551_v62 = vunpack.i.l.bf16 %v8597_v34 }
  0xd4   :  { %7839 = vrot.lane.b32.xlu0 %v8513_v23, %s8345_s19  ;;  %6758 = vmatmul.mubr.msk.f32.vlgmr.msra.gmra.mrb[0].mxu0 %vm150_vm1, %v68_v31  ;;  %v877_v61 = vsel %vm874_vm4, %v7556_v47, %v7557_v46 }
  0xd5   :  { %6759 = vmatmul.mubr.msk.f32.vlgmr.msra.gmra.mrb[0].mxu1 %vm150_vm1, %v68_v31  ;;  %7103 = vmatprep.subr.bf16.mxu0 %v7102_v36  ;;  %v7565_v0 = vpop.permute.xlu1 %7564  ;;  %v876_v63 = vsel %vm874_vm4, %v7552_v48, %v7556_v47  ;;  %v875_v26 = vsel %vm874_vm4, %v7551_v62, %v7552_v48  ;;  %v1116_v62 = vld [vmem:[#allocation6 + $0x20] sm:$0xff] }
  0xd6   :  { %7101 = vmatpush3.bf16.msra.mxu1 %v7100_v35  ;;  %7105 = vmatpush1.bf16.msra.mxu0 %v7104_v41  ;;  %v8613_v43 = vpop.permute.xlu0 %7559  ;;  %v7567_v53 = vunpack.i.h.bf16 %v7565_v0  ;;  %v7566_v54 = vunpack.i.l.bf16 %v7565_v0 }
  0xd7   :  { %7107 = vmatprep.subr.bf16.mxu1 %v7106_v40  ;;  %6916 = vmatprep.mubr.msk.f32.mxu1 %vm8347_vm3, %v8334_v18  ;;  %v7561_v49 = vunpack.i.l.bf16 %v8613_v43  ;;  %v7562_v14 = vunpack.i.h.bf16 %v8613_v43 }
  0xd8   :  { %7854 = vrot.lane.b32.xlu1 %v8493_v19, %s8348_s20  ;;  %7849 = vrot.lane.b32.xlu0 %v8497_v20, %s8348_s20  ;;  %v880_v4 = vsel %vm874_vm4, %v7566_v54, %v7567_v53 }
  0xd9   :  { %6917 = vmatmul.mubr.msk.f32.vlgmr.msra.gmra.mrb[2].mxu1 %vm150_vm1, %v68_v31  ;;  %v7575_v51 = vpop.permute.xlu1 %7574  ;;  %695 = vmatprep.mubr.f32.mxu0 %v8334_v18  ;;  %v878_v3 = vsel %vm874_vm4, %v7557_v46, %v7561_v49  ;;  %v7115_v28 = vpack.c.bf16 %v880_v4, %v875_v26  ;;  %v879_v30 = vsel %vm874_vm4, %v7561_v49, %v7562_v14 }
  0xda   :  { %7109 = vmatpush1.bf16.msra.mxu1 %v7108_v50  ;;  %v7576_v55 = vunpack.i.l.bf16 %v7575_v51  ;;  %v7570_v56 = vpop.permute.xlu0 %7569  ;;  %7110 = vmatprep.subr.bf16.mxu0 %v8346_v1  ;;  %v7577_v7 = vunpack.i.h.bf16 %v7575_v51 }
  0xdb   :  { %v7572_v58 = vunpack.i.h.bf16 %v7570_v56  ;;  %v7571_v59 = vunpack.i.l.bf16 %v7570_v56  ;;  %766 = vmatprep.mubr.f32.mxu1 %v8334_v18 }
  0xdc   :  { %7864 = vrot.lane.b32.xlu1 %v8502_v21, %s8348_s20  ;;  %7859 = vrot.lane.b32.xlu0 %v8507_v22, %s8348_s20  ;;  %v884_v27 = vsel %vm874_vm4, %v7576_v55, %v7577_v7 }
  0xdd   :  { %v882_v9 = vsel %vm874_vm4, %v7571_v59, %v7572_v58  ;;  %6761 = vmatmul.mubr.msk.f32.vlgmr.msra.gmra.mrb[0].mxu0 %vm150_vm1, %v582_v57  ;;  %6762 = vmatmul.mubr.msk.f32.vlgmr.msra.gmra.mrb[0].mxu1 %vm150_vm1, %v582_v57  ;;  %v8641_v10 = vpop.permute.xlu1 %7584  ;;  %v881_v11 = vsel %vm874_vm4, %v7567_v53, %v7571_v59  ;;  %v883_v13 = vsel %vm874_vm4, %v7572_v58, %v7576_v55  ;;  %vm4612_vm4 = vcmask 613376  }
  0xde   :  { %7112 = vmatpush3.bf16.msra.mxu0 %v7111_v60  ;;  %v8646_v6 = vpop.permute.xlu0 %7579  ;;  %6923 = vmatprep.mubr.msk.f32.mxu0 %vm8347_vm3, %v8334_v18  ;;  %v7113_v15 = vpack.c.bf16 %v881_v11, %v876_v63  ;;  %v7117_v8 = vpack.c.bf16 %v883_v13, %v878_v3  ;;  %v7119_v17 = vpack.c.bf16 %v882_v9, %v877_v61  ;;  %v7586_v31 = vunpack.i.l.bf16 %v8641_v10 }
  0xdf   :  { %1033 = vmatprep.mubr.f32.mxu1 %v8334_v18  ;;  %v7582_v32 = vunpack.i.h.bf16 %v8646_v6  ;;  %v7122_v35 = vpack.c.bf16 %v884_v27, %v879_v30  ;;  %v7587_v38 = vunpack.i.h.bf16 %v8641_v10  ;;  %v7581_v41 = vunpack.i.l.bf16 %v8646_v6 }
  0xe0   :  { %7874 = vrot.lane.b32.xlu1 %v8497_v20, %s8349_s21  ;;  %7869 = vrot.lane.b32.xlu0 %v8523_v24, %s8348_s20 }
  0xe1   :  { %7114 = vmatprep.subr.bf16.mxu0 %v7113_v15  ;;  %7118 = vmatprep.subr.bf16.mxu1 %v7117_v8  ;;  %v7595_v29 = vpop.permute.xlu1 %7594  ;;  %v1143_v44 = vsel %vm1141_vm5, %v7582_v32, %v7586_v31  ;;  %v1144_v50 = vsel %vm1141_vm5, %v7586_v31, %v7587_v38  ;;  %v1142_v55 = vsel %vm1141_vm5, %v7581_v41, %v7582_v32 }
  0xe2   :  { %6924 = vmatmul.mubr.msk.f32.vlgmr.msra.gmra.mrb[4].mxu0 %vm150_vm1, %v582_v57  ;;  %7120 = vmatpush1.bf16.msra.mxu1 %v7119_v17  ;;  %v7590_v2 = vpop.permute.xlu0 %7589  ;;  %v7597_v33 = vunpack.i.h.bf16 %v7595_v29  ;;  %v7596_v34 = vunpack.i.l.bf16 %v7595_v29 }
  0xe3   :  { %7116 = vmatpush1.bf16.msra.mxu0 %v7115_v28  ;;  %7121 = vmatprep.subr.bf16.mxu1 %v8346_v1  ;;  %v7591_v36 = vunpack.i.l.bf16 %v7590_v2  ;;  %v7592_v51 = vunpack.i.h.bf16 %v7590_v2 }
  0xe4   :  { %7884 = vrot.lane.b32.xlu1 %v8507_v22, %s8349_s21  ;;  %7879 = vrot.lane.b32.xlu0 %v8493_v19, %s8349_s21  ;;  %v1147_v12 = vsel %vm1141_vm5, %v7596_v34, %v7597_v33 }
  0xe5   :  { %6765 = vmatmul.mubr.msk.f32.vlgmr.msra.gmra.mrb[0].mxu1 %vm150_vm1, %v849_v5  ;;  %v7605_v37 = vpop.permute.xlu1 %7604  ;;  %962 = vmatprep.mubr.f32.mxu0 %v8334_v18  ;;  %v1145_v48 = vsel %vm1141_vm5, %v7587_v38, %v7591_v36  ;;  %v7126_v58 = vpack.c.bf16 %v1147_v12, %v1142_v55  ;;  %v1146_v60 = vsel %vm1141_vm5, %v7591_v36, %v7592_v51  ;;  %v1383_v12 = vld [vmem:[#allocation6 + $0x28] sm:$0xff] }
  0xe6   :  { %7123 = vmatpush3.bf16.msra.mxu1 %v7122_v35  ;;  %v7606_v39 = vunpack.i.l.bf16 %v7605_v37  ;;  %v7600_v40 = vpop.permute.xlu0 %7599  ;;  %6764 = vmatmul.mubr.msk.f32.vlgmr.msra.gmra.mrb[0].mxu0 %vm150_vm1, %v849_v5  ;;  %v7607_v43 = vunpack.i.h.bf16 %v7605_v37 }
  0xe7   :  { %v7602_v42 = vunpack.i.h.bf16 %v7600_v40  ;;  %v7601_v0 = vunpack.i.l.bf16 %v7600_v40  ;;  %6930 = vmatprep.mubr.msk.f32.mxu1 %vm8347_vm3, %v8334_v18  ;;  %1229 = vmatprep.mubr.f32.mxu0 %v8334_v18 }
  0xe8   :  { %7894 = vrot.lane.b32.xlu1 %v8502_v21, %s8349_s21  ;;  %7889 = vrot.lane.b32.xlu0 %v8531_v25, %s8348_s20  ;;  %v1151_v57 = vsel %vm1141_vm5, %v7606_v39, %v7607_v43 }
  0xe9   :  { %v1149_v45 = vsel %vm1141_vm5, %v7601_v0, %v7602_v42  ;;  %v7615_v46 = vpop.permute.xlu1 %7614  ;;  %v1148_v47 = vsel %vm1141_vm5, %v7597_v33, %v7601_v0  ;;  %v1150_v49 = vsel %vm1141_vm5, %v7602_v42, %v7606_v39  ;;  %6931 = vmatmul.mubr.msk.f32.vlgmr.msra.gmra.mrb[4].mxu1 %vm150_vm1, %v849_v5  ;;  %v7133_v63 = vpack.c.bf16 %v1151_v57, %v1146_v60 }
  0xea   :  { %v7610_v52 = vpop.permute.xlu0 %7609  ;;  %v7124_v53 = vpack.c.bf16 %v1148_v47, %v1143_v44  ;;  %v7128_v54 = vpack.c.bf16 %v1150_v49, %v1145_v48  ;;  %1300 = vmatprep.mubr.f32.mxu1 %v8334_v18  ;;  %v7130_v56 = vpack.c.bf16 %v1149_v45, %v1144_v50  ;;  %v7616_v3 = vunpack.i.l.bf16 %v7615_v46 }
  0xeb   :  { %v7612_v7 = vunpack.i.h.bf16 %v7610_v52  ;;  %v7617_v4 = vunpack.i.h.bf16 %v7615_v46  ;;  %v7611_v8 = vunpack.i.l.bf16 %v7610_v52  ;;  %vm4879_vm5 = vcmask 605184  }
  0xec   :  { %7904 = vrot.lane.b32.xlu1 %v8472_v16, %s8349_s21  ;;  %7899 = vrot.lane.b32.xlu0 %v8513_v23, %s8349_s21 }
  0xed   :  { %7125 = vmatprep.subr.bf16.mxu0 %v7124_v53  ;;  %7129 = vmatprep.subr.bf16.mxu1 %v7128_v54  ;;  %v7625_v59 = vpop.permute.xlu1 %7624  ;;  %v1410_v28 = vsel %vm1408_vm6, %v7612_v7, %v7616_v3  ;;  %v1411_v32 = vsel %vm1408_vm6, %v7616_v3, %v7617_v4  ;;  %v1409_v37 = vsel %vm1408_vm6, %v7611_v8, %v7612_v7 }
  0xee   :  { %7127 = vmatpush1.bf16.msra.mxu0 %v7126_v58  ;;  %7131 = vmatpush1.bf16.msra.mxu1 %v7130_v56  ;;  %v7620_v61 = vpop.permute.xlu0 %7619  ;;  %v7627_v9 = vunpack.i.h.bf16 %v7625_v59  ;;  %v7626_v10 = vunpack.i.l.bf16 %v7625_v59 }
  0xef   :  { %7132 = vmatprep.subr.bf16.mxu0 %v8346_v1  ;;  %v7621_v11 = vunpack.i.l.bf16 %v7620_v61  ;;  %v7622_v33 = vunpack.i.h.bf16 %v7620_v61 }
  0xf0   :  { %7914 = vrot.lane.b32.xlu1 %v8493_v19, %s8350_s22  ;;  %7909 = vrot.lane.b32.xlu0 %v8497_v20, %s8350_s22  ;;  %v1414_v26 = vsel %vm1408_vm6, %v7626_v10, %v7627_v9 }
  0xf1   :  { %6767 = vmatmul.mubr.msk.f32.vlgmr.msra.gmra.mrb[0].mxu0 %vm150_vm1, %v1116_v62  ;;  %v7635_v13 = vpop.permute.xlu1 %7634  ;;  %6768 = vmatmul.mubr.msk.f32.vlgmr.msra.gmra.mrb[0].mxu1 %vm150_vm1, %v1116_v62  ;;  %v1412_v30 = vsel %vm1408_vm6, %v7617_v4, %v7621_v11  ;;  %v7137_v40 = vpack.c.bf16 %v1414_v26, %v1409_v37  ;;  %v1413_v42 = vsel %vm1408_vm6, %v7621_v11, %v7622_v33  ;;  %v1650_v26 = vld [vmem:[#allocation6 + $0x30] sm:$0xff] }
  0xf2   :  { %7134 = vmatpush3.bf16.msra.mxu0 %v7133_v63  ;;  %v7636_v6 = vunpack.i.l.bf16 %v7635_v13  ;;  %v7630_v15 = vpop.permute.xlu0 %7629  ;;  %6937 = vmatprep.mubr.msk.f32.mxu0 %vm8347_vm3, %v8334_v18  ;;  %v7637_v27 = vunpack.i.h.bf16 %v7635_v13 }
  0xf3   :  { %v7632_v14 = vunpack.i.h.bf16 %v7630_v15  ;;  %v7631_v17 = vunpack.i.l.bf16 %v7630_v15  ;;  %1567 = vmatprep.mubr.f32.mxu1 %v8334_v18 }
  0xf4   :  { %7924 = vrot.lane.b32.xlu1 %v8502_v21, %s8350_s22  ;;  %7919 = vrot.lane.b32.xlu0 %v8507_v22, %s8350_s22  ;;  %v1418_v39 = vsel %vm1408_vm6, %v7636_v6, %v7637_v27 }
  0xf5   :  { %v1416_v29 = vsel %vm1408_vm6, %v7631_v17, %v7632_v14  ;;  %v7645_v2 = vpop.permute.xlu1 %7644  ;;  %v1415_v5 = vsel %vm1408_vm6, %v7627_v9, %v7631_v17  ;;  %v1417_v31 = vsel %vm1408_vm6, %v7632_v14, %v7636_v6  ;;  %6938 = vmatmul.mubr.msk.f32.vlgmr.msra.gmra.mrb[6].mxu0 %vm150_vm1, %v1116_v62  ;;  %v7144_v43 = vpack.c.bf16 %v1418_v39, %v1413_v42 }
  0xf6   :  { %v7640_v34 = vpop.permute.xlu0 %7639  ;;  %v7135_v35 = vpack.c.bf16 %v1415_v5, %v1410_v28  ;;  %v7139_v36 = vpack.c.bf16 %v1417_v31, %v1412_v30  ;;  %1496 = vmatprep.mubr.f32.mxu0 %v8334_v18  ;;  %v7141_v38 = vpack.c.bf16 %v1416_v29, %v1411_v32  ;;  %v7646_v44 = vunpack.i.l.bf16 %v7645_v2 }
  0xf7   :  { %v7642_v45 = vunpack.i.h.bf16 %v7640_v34  ;;  %v7647_v50 = vunpack.i.h.bf16 %v7645_v2  ;;  %v7641_v53 = vunpack.i.l.bf16 %v7640_v34  ;;  %vm5146_vm6 = vcmask 596992  }
  0xf8   :  { %7934 = vrot.lane.b32.xlu1 %v8497_v20, %s8351_s23  ;;  %7929 = vrot.lane.b32.xlu0 %v8523_v24, %s8350_s22 }
  0xf9   :  { %7136 = vmatprep.subr.bf16.mxu0 %v7135_v35  ;;  %7140 = vmatprep.subr.bf16.mxu1 %v7139_v36  ;;  %v7655_v41 = vpop.permute.xlu1 %7654  ;;  %v1677_v58 = vsel %vm1675_vm7, %v7642_v45, %v7646_v44  ;;  %v1678_v3 = vsel %vm1675_vm7, %v7646_v44, %v7647_v50  ;;  %v1676_v13 = vsel %vm1675_vm7, %v7641_v53, %v7642_v45 }
  0xfa   :  { %7138 = vmatpush1.bf16.msra.mxu0 %v7137_v40  ;;  %7142 = vmatpush1.bf16.msra.mxu1 %v7141_v38  ;;  %v7650_v0 = vpop.permute.xlu0 %7649  ;;  %v7657_v46 = vunpack.i.h.bf16 %v7655_v41  ;;  %v7656_v47 = vunpack.i.l.bf16 %v7655_v41 }
  0xfb   :  { %7143 = vmatprep.subr.bf16.mxu1 %v8346_v1  ;;  %v7651_v48 = vunpack.i.l.bf16 %v7650_v0  ;;  %v7652_v7 = vunpack.i.h.bf16 %v7650_v0 }
  0xfc   :  { %7944 = vrot.lane.b32.xlu1 %v8507_v22, %s8351_s23  ;;  %7939 = vrot.lane.b32.xlu0 %v8493_v19, %s8351_s23  ;;  %v1681_v56 = vsel %vm1675_vm7, %v7656_v47, %v7657_v46 }
  0xfd   :  { %6771 = vmatmul.mubr.msk.f32.vlgmr.msra.gmra.mrb[0].mxu1 %vm150_vm1, %v1383_v12  ;;  %v7665_v49 = vpop.permute.xlu1 %7664  ;;  %6770 = vmatmul.mubr.msk.f32.vlgmr.msra.gmra.mrb[0].mxu0 %vm150_vm1, %v1383_v12  ;;  %v1679_v62 = vsel %vm1675_vm7, %v7647_v50, %v7651_v48  ;;  %v7148_v15 = vpack.c.bf16 %v1681_v56, %v1676_v13  ;;  %v1680_v14 = vsel %vm1675_vm7, %v7651_v48, %v7652_v7 }
  0xfe   :  { %7145 = vmatpush3.bf16.msra.mxu1 %v7144_v43  ;;  %v7666_v51 = vunpack.i.l.bf16 %v7665_v49  ;;  %v7660_v52 = vpop.permute.xlu0 %7659  ;;  %6944 = vmatprep.mubr.msk.f32.mxu1 %vm8347_vm3, %v8334_v18  ;;  %v7667_v57 = vunpack.i.h.bf16 %v7665_v49 }
  0xff   :  { %v7662_v54 = vunpack.i.h.bf16 %v7660_v52  ;;  %v7661_v55 = vunpack.i.l.bf16 %v7660_v52  ;;  %1763 = vmatprep.mubr.f32.mxu0 %v8334_v18 }
 0x100   :  { %7954 = vrot.lane.b32.xlu1 %v8502_v21, %s8351_s23  ;;  %7949 = vrot.lane.b32.xlu0 %v8531_v25, %s8350_s22  ;;  %v1685_v6 = vsel %vm1675_vm7, %v7666_v51, %v7667_v57 }
 0x101   :  { %v1683_v59 = vsel %vm1675_vm7, %v7661_v55, %v7662_v54  ;;  %v7675_v60 = vpop.permute.xlu1 %7674  ;;  %v1682_v61 = vsel %vm1675_vm7, %v7657_v46, %v7661_v55  ;;  %v1684_v63 = vsel %vm1675_vm7, %v7662_v54, %v7666_v51  ;;  %6945 = vmatmul.mubr.msk.f32.vlgmr.msra.gmra.mrb[6].mxu1 %vm150_vm1, %v1383_v12  ;;  %vm5413_vm7 = vcmask 490496  }
 0x102   :  { %v7670_v9 = vpop.permute.xlu0 %7669  ;;  %v7146_v10 = vpack.c.bf16 %v1682_v61, %v1677_v58  ;;  %v7150_v11 = vpack.c.bf16 %v1684_v63, %v1679_v62  ;;  %1834 = vmatprep.mubr.f32.mxu1 %v8334_v18  ;;  %v7152_v4 = vpack.c.bf16 %v1683_v59, %v1678_v3  ;;  %v7677_v27 = vunpack.i.h.bf16 %v7675_v60  ;;  %v1917_v59 = vld [vmem:[#allocation6 + $0x38] sm:$0xff] }
 0x103   :  { %v7676_v28 = vunpack.i.l.bf16 %v7675_v60  ;;  %v7672_v29 = vunpack.i.h.bf16 %v7670_v9  ;;  %v7671_v34 = vunpack.i.l.bf16 %v7670_v9 }
 0x104   :  { %7964 = vrot.lane.b32.xlu1 %v8472_v16, %s8351_s23  ;;  %7959 = vrot.lane.b32.xlu0 %v8513_v23, %s8351_s23  ;;  %v7155_v16 = vpack.c.bf16 %v1685_v6, %v1680_v14 }
 0x105   :  { %7147 = vmatprep.subr.bf16.mxu0 %v7146_v10  ;;  %7151 = vmatprep.subr.bf16.mxu1 %v7150_v11  ;;  %v7685_v8 = vpop.permute.xlu1 %7684  ;;  %v1945_v33 = vsel %vm1942_vm8, %v7676_v28, %v7677_v27  ;;  %v1944_v38 = vsel %vm1942_vm8, %v7672_v29, %v7676_v28  ;;  %v1943_v48 = vsel %vm1942_vm8, %v7671_v34, %v7672_v29  ;;  %v8823_v28 = vld [vmem:[#allocation2 + $0x48] sm:$0xff] }
 0x106   :  { %7149 = vmatpush1.bf16.msra.mxu0 %v7148_v15  ;;  %7153 = vmatpush1.bf16.msra.mxu1 %v7152_v4  ;;  %v8755_v17 = vpop.permute.xlu0 %7679  ;;  %v7687_v2 = vunpack.i.h.bf16 %v7685_v8  ;;  %v7686_v23 = vunpack.i.l.bf16 %v7685_v8  ;;  %v8805_v15 = vld [vmem:[#allocation2 + $0x50] sm:$0xff]  ;;  %v8807_v8 = vld [vmem:[#allocation2 + $0x58] sm:$0xff] }
 0x107   :  { %7154 = vmatprep.subr.bf16.mxu0 %v8346_v1  ;;  %v7681_v5 = vunpack.i.l.bf16 %v8755_v17  ;;  %v7682_v52 = vunpack.i.h.bf16 %v8755_v17  ;;  %v8811_v14 = vpack.i.bf16 %v8807_v8, %v8805_v15 }
 0x108   :  { %7974 = vrot.lane.b32.xlu1 %v8493_v19, %s8352_s24  ;;  %7969 = vrot.lane.b32.xlu0 %v8497_v20, %s8352_s24  ;;  %v1948_v37 = vsel %vm1942_vm8, %v7686_v23, %v7687_v2 }
 0x109   :  { %6773 = vmatmul.mubr.msk.f32.vlgmr.msra.gmra.mrb[0].mxu0 %vm150_vm1, %v1650_v26  ;;  %v7695_v30 = vpop.permute.xlu1 %7694  ;;  %6774 = vmatmul.mubr.msk.f32.vlgmr.msra.gmra.mrb[0].mxu1 %vm150_vm1, %v1650_v26  ;;  %v1946_v39 = vsel %vm1942_vm8, %v7677_v27, %v7681_v5  ;;  %v7159_v53 = vpack.c.bf16 %v1948_v37, %v1943_v48  ;;  %v8821_v27 = vld [vmem:[#allocation2 + $0x28] sm:$0xff] }
 0x10a   :  { %7156 = vmatpush3.bf16.msra.mxu0 %v7155_v16  ;;  %v7696_v31 = vunpack.i.l.bf16 %v7695_v30  ;;  %v7690_v32 = vpop.permute.xlu0 %7689  ;;  %6951 = vmatprep.mubr.msk.f32.mxu0 %vm8347_vm3, %v8334_v18  ;;  %v7697_v40 = vunpack.i.h.bf16 %v7695_v30  ;;  %v8827_v16 = vpack.i.bf16 %v8823_v28, %v8821_v27 }
 0x10b   :  { %v7692_v35 = vunpack.i.h.bf16 %v7690_v32  ;;  %v7691_v36 = vunpack.i.l.bf16 %v7690_v32  ;;  %2101 = vmatprep.mubr.f32.mxu1 %v8334_v18 }
 0x10c   :  { %7984 = vrot.lane.b32.xlu1 %v8502_v21, %s8352_s24  ;;  %7979 = vrot.lane.b32.xlu0 %v8507_v22, %s8352_s24  ;;  %v1952_v57 = vsel %vm1942_vm8, %v7696_v31, %v7697_v40  ;;  %v8214_v40 = vld [vmem:[#allocation2 + $0x40] sm:$0xff] }
 0x10d   :  { %v1950_v41 = vsel %vm1942_vm8, %v7691_v36, %v7692_v35  ;;  %v8777_v42 = vpop.permute.xlu1 %7704  ;;  %6952 = vmatmul.mubr.msk.f32.vlgmr.msra.gmra.mrb[8].mxu0 %vm150_vm1, %v1650_v26  ;;  %v1949_v0 = vsel %vm1942_vm8, %v7687_v2, %v7691_v36  ;;  %v1951_v12 = vsel %vm1942_vm8, %v7692_v35, %v7696_v31 }
 0x10e   :  { %v7707_v43 = vunpack.i.h.bf16 %v8777_v42  ;;  %v7706_v44 = vunpack.i.l.bf16 %v8777_v42  ;;  %v7700_v45 = vpop.permute.xlu0 %7699  ;;  %v7157_v46 = vpack.c.bf16 %v1949_v0, %v1944_v38  ;;  %v7161_v47 = vpack.c.bf16 %v1951_v12, %v1946_v39  ;;  %2030 = vmatprep.mubr.f32.mxu0 %v8334_v18  ;;  %v8213_v39 = vld [vmem:[#allocation2 + $0x38] sm:$0xff]  ;;  %v8215_v42 = vld [vmem:[#allocation2 + $0x8] sm:$0xff]  ;;  %v8216_v0 = vld [vmem:[#allocation2 + $0x10] sm:$0xff] }
 0x10f   :  { %v7702_v49 = vunpack.i.h.bf16 %v7700_v45  ;;  %v7701_v50 = vunpack.i.l.bf16 %v7700_v45  ;;  %v7163_v51 = vpack.c.bf16 %v1950_v41, %v1945_v33  ;;  %v2184_v33 = vld [vmem:[#allocation6 + $0x40] sm:$0xff]  ;;  %v8844_v41 = vpack.i.bf16 %v8214_v40, %v8213_v39 }
 0x110   :  { %7994 = vrot.lane.b32.xlu1 %v8497_v20, %s8353_s25  ;;  %7989 = vrot.lane.b32.xlu0 %v8523_v24, %s8352_s24  ;;  %v2216_v54 = vsel %vm2209_vm9, %v7706_v44, %v7707_v43  ;;  %v1947_v24 = vsel %vm1942_vm8, %v7681_v5, %v7682_v52  ;;  %v8846_v12 = vpack.i.bf16 %v8216_v0, %v8215_v42  ;;  %v8217_v52 = vld [vmem:[#allocation2] sm:$0xff]  ;;  %vm5680_vm8 = vcmask 482304  }
 0x111   :  { %7158 = vmatprep.subr.bf16.mxu0 %v7157_v46  ;;  %7162 = vmatprep.subr.bf16.mxu1 %v7161_v47  ;;  %v7715_v55 = vpop.permute.xlu1 %7714  ;;  %v2211_v56 = vsel %vm2209_vm9, %v7701_v50, %v7702_v49  ;;  %v7166_v9 = vpack.c.bf16 %v1952_v57, %v1947_v24  ;;  %v8878_v24 = vpack.i.bf16 %v8805_v15, %v8823_v28 }
 0x112   :  { %7160 = vmatpush1.bf16.msra.mxu0 %v7159_v53  ;;  %7164 = vmatpush1.bf16.msra.mxu1 %v7163_v51  ;;  %v7710_v58 = vpop.permute.xlu0 %7709  ;;  %v7168_v60 = vpack.c.bf16 %v2216_v54, %v2211_v56  ;;  %v7716_v62 = vunpack.i.l.bf16 %v7715_v55  ;;  %v7717_v63 = vunpack.i.h.bf16 %v7715_v55  ;;  %v8218_v53 = vld [vmem:[#allocation2 + $0x30] sm:$0xff] }
 0x113   :  { %v7712_v61 = vunpack.i.h.bf16 %v7710_v58  ;;  %v7711_v20 = vunpack.i.l.bf16 %v7710_v58  ;;  %7165 = vmatprep.subr.bf16.mxu1 %v8346_v1  ;;  %v8861_v54 = vpack.i.bf16 %v8218_v53, %v8217_v52 }
 0x114   :  { %8004 = vrot.lane.b32.xlu1 %v8507_v22, %s8353_s25  ;;  %7999 = vrot.lane.b32.xlu0 %v8493_v19, %s8353_s25  ;;  %v2212_v17 = vsel %vm2209_vm9, %v7702_v49, %v7716_v62  ;;  %v2213_v5 = vsel %vm2209_vm9, %v7716_v62, %v7717_v63 }
 0x115   :  { %v2215_v3 = vsel %vm2209_vm9, %v7712_v61, %v7706_v44  ;;  %v2210_v7 = vsel %vm2209_vm9, %v7711_v20, %v7701_v50  ;;  %6776 = vmatmul.mubr.msk.f32.vlgmr.msra.gmra.mrb[0].mxu0 %vm150_vm1, %v1917_v59  ;;  %7169 = vmatprep.subr.bf16.mxu0 %v7168_v60  ;;  %v7725_v10 = vpop.permute.xlu1 %7724 }
 0x116   :  { %6777 = vmatmul.mubr.msk.f32.vlgmr.msra.gmra.mrb[0].mxu1 %vm150_vm1, %v1917_v59  ;;  %v7727_v11 = vunpack.i.h.bf16 %v7725_v10  ;;  %v7726_v13 = vunpack.i.l.bf16 %v7725_v10  ;;  %v7720_v4 = vpop.permute.xlu0 %7719  ;;  %v7170_v6 = vpack.c.bf16 %v2215_v3, %v2210_v7  ;;  %2297 = vmatprep.mubr.f32.mxu0 %v8334_v18 }
 0x117   :  { %7167 = vmatpush3.bf16.msra.mxu1 %v7166_v9  ;;  %v7722_v19 = vunpack.i.h.bf16 %v7720_v4  ;;  %v7721_v22 = vunpack.i.l.bf16 %v7720_v4  ;;  %6958 = vmatprep.mubr.msk.f32.mxu1 %vm8347_vm3, %v8334_v18 }
 0x118   :  { %v2219_v26 = vsel %vm2209_vm9, %v7726_v13, %v7727_v11  ;;  %8014 = vrot.lane.b32.xlu1 %v8502_v21, %s8353_s25  ;;  %8009 = vrot.lane.b32.xlu0 %v8531_v25, %s8352_s24 }
 0x119   :  { %v2217_v29 = vsel %vm2209_vm9, %v7707_v43, %v7722_v19  ;;  %v2214_v2 = vsel %vm2209_vm9, %v7717_v63, %v7721_v22  ;;  %7171 = vmatpush1.bf16.msra.mxu0 %v7170_v6  ;;  %v8831_v23 = vpop.permute.xlu1 %7734  ;;  %v2218_v25 = vsel %vm2209_vm9, %v7722_v19, %v7726_v13  ;;  %v2451_v22 = vld [vmem:[#allocation6 + $0x48] sm:$0xff]  ;;  %vm5947_vm9 = vcmask 474112  }
 0x11a   :  { %v7737_v30 = vunpack.i.h.bf16 %v8831_v23  ;;  %v7736_v31 = vunpack.i.l.bf16 %v8831_v23  ;;  %v7730_v32 = vpop.permute.xlu0 %7729  ;;  %7176 = vmatprep.subr.bf16.mxu0 %v8346_v1  ;;  %v7172_v34 = vpack.c.bf16 %v2218_v25, %v2213_v5  ;;  %v7177_v35 = vpack.c.bf16 %v2219_v26, %v2214_v2  ;;  %6959 = vmatmul.mubr.msk.f32.vlgmr.msra.gmra.mrb[8].mxu1 %vm150_vm1, %v1917_v59 }
 0x11b   :  { %v7732_v36 = vunpack.i.h.bf16 %v7730_v32  ;;  %v7731_v37 = vunpack.i.l.bf16 %v7730_v32  ;;  %v7174_v38 = vpack.c.bf16 %v2217_v29, %v2212_v17  ;;  %2368 = vmatprep.mubr.f32.mxu1 %v8334_v18 }
 0x11c   :  { %8024 = vrot.lane.b32.xlu1 %v8811_v14, %s8353_s25  ;;  %8019 = vrot.lane.b32.xlu0 %v8827_v16, %s8353_s25  ;;  %v2483_v43 = vsel %vm2476_vm10, %v7736_v31, %v7737_v30 }
 0x11d   :  { %6779 = vmatmul.mubr.msk.f32.vlgmr.msra.gmra.mrb[0].mxu0 %vm150_vm1, %v2184_v33  ;;  %7173 = vmatprep.subr.bf16.mxu1 %v7172_v34  ;;  %v8850_v44 = vpop.permute.xlu1 %7744  ;;  %v2478_v45 = vsel %vm2476_vm10, %v7731_v37, %v7732_v36 }
 0x11e   :  { %7178 = vmatpush3.bf16.msra.mxu0 %v7177_v35  ;;  %7175 = vmatpush1.bf16.msra.mxu1 %v7174_v38  ;;  %v7740_v46 = vpop.permute.xlu0 %7739  ;;  %v7179_v47 = vpack.c.bf16 %v2483_v43, %v2478_v45  ;;  %v7747_v50 = vunpack.i.h.bf16 %v8850_v44  ;;  %v7746_v51 = vunpack.i.l.bf16 %v8850_v44  ;;  %v8904_v35 = vpack.i.bf16 %v8807_v8, %v8821_v27  ;;  %v2718_v8 = vld [vmem:[#allocation6 + $0x50] sm:$0xff] }
 0x11f   :  { %v7742_v48 = vunpack.i.h.bf16 %v7740_v46  ;;  %v7741_v49 = vunpack.i.l.bf16 %v7740_v46  ;;  %6965 = vmatprep.mubr.msk.f32.mxu0 %vm8347_vm3, %v8334_v18 }
 0x120   :  { %8034 = vrot.lane.b32.xlu1 %v8844_v41, %s8354_s0  ;;  %8029 = vrot.lane.b32.xlu0 %v8846_v12, %s8354_s0  ;;  %v2479_v20 = vsel %vm2476_vm10, %v7732_v36, %v7746_v51  ;;  %v2480_v62 = vsel %vm2476_vm10, %v7746_v51, %v7747_v50 }
 0x121   :  { %v2482_v55 = vsel %vm2476_vm10, %v7742_v48, %v7736_v31  ;;  %v2477_v56 = vsel %vm2476_vm10, %v7741_v49, %v7731_v37  ;;  %7180 = vmatprep.subr.bf16.mxu0 %v7179_v47  ;;  %v8865_v57 = vpop.permute.xlu1 %7754  ;;  %6966 = vmatmul.mubr.msk.f32.vlgmr.msra.gmra.mrb[10].mxu0 %vm150_vm1, %v2184_v33 }
 0x122   :  { %v7181_v58 = vpack.c.bf16 %v2482_v55, %v2477_v56  ;;  %v7750_v59 = vpop.permute.xlu0 %7749  ;;  %6780 = vmatmul.mubr.msk.f32.vlgmr.msra.gmra.mrb[0].mxu1 %vm150_vm1, %v2184_v33  ;;  %2564 = vmatprep.mubr.f32.mxu0 %v8334_v18  ;;  %v7757_v63 = vunpack.i.h.bf16 %v8865_v57  ;;  %v7756_v3 = vunpack.i.l.bf16 %v8865_v57 }
 0x123   :  { %v7752_v60 = vunpack.i.h.bf16 %v7750_v59  ;;  %v7751_v61 = vunpack.i.l.bf16 %v7750_v59  ;;  %2635 = vmatprep.mubr.f32.mxu1 %v8334_v18 }
 0x124   :  { %8044 = vrot.lane.b32.xlu1 %v8502_v21, %s8354_s0  ;;  %8039 = vrot.lane.b32.xlu0 %v8861_v54, %s8354_s0  ;;  %v2745_v2 = vsel %vm2743_vm11, %v7756_v3, %v7757_v63 }
 0x125   :  { %v2484_v7 = vsel %vm2476_vm10, %v7737_v30, %v7751_v61  ;;  %7182 = vmatpush1.bf16.msra.mxu0 %v7181_v58  ;;  %v7765_v9 = vpop.permute.xlu1 %7764  ;;  %v2485_v10 = vsel %vm2476_vm10, %v7751_v61, %v7752_v60 }
 0x126   :  { %v7185_v11 = vpack.c.bf16 %v2484_v7, %v2479_v20  ;;  %v7767_v13 = vunpack.i.h.bf16 %v7765_v9  ;;  %v7766_v4 = vunpack.i.l.bf16 %v7765_v9  ;;  %v7760_v6 = vpop.permute.xlu0 %7759  ;;  %v7183_v19 = vpack.c.bf16 %v2485_v10, %v2480_v62 }
 0x127   :  { %v7762_v15 = vunpack.i.h.bf16 %v7760_v6  ;;  %v7761_v17 = vunpack.i.l.bf16 %v7760_v6 }
 0x128   :  { %v2744_v26 = vsel %vm2743_vm11, %v7766_v4, %v7756_v3  ;;  %8054 = vrot.lane.b32.xlu1 %v8846_v12, %s8355_s26  ;;  %8049 = vrot.lane.b32.xlu0 %v8878_v24, %s8354_s0 }
 0x129   :  { %v2749_v28 = vsel %vm2743_vm11, %v7767_v13, %v7761_v17  ;;  %7184 = vmatprep.subr.bf16.mxu1 %v7183_v19  ;;  %v7775_v29 = vpop.permute.xlu1 %7774  ;;  %6782 = vmatmul.mubr.msk.f32.vlgmr.msra.gmra.mrb[0].mxu0 %vm150_vm1, %v2451_v22  ;;  %v2750_v23 = vsel %vm2743_vm11, %v7761_v17, %v7762_v15 }
 0x12a   :  { %v7192_v5 = vpack.c.bf16 %v2749_v28, %v2744_v26  ;;  %7186 = vmatpush1.bf16.msra.mxu1 %v7185_v11  ;;  %v7770_v25 = vpop.permute.xlu0 %7769  ;;  %v7190_v30 = vpack.c.bf16 %v2750_v23, %v2745_v2  ;;  %2831 = vmatprep.mubr.f32.mxu0 %v8334_v18  ;;  %v7777_v33 = vunpack.i.h.bf16 %v7775_v29  ;;  %v7776_v34 = vunpack.i.l.bf16 %v7775_v29  ;;  %v8955_v28 = vld [vmem:[#allocation6 + $0x58] sm:$0xff] }
 0x12b   :  { %v7772_v31 = vunpack.i.h.bf16 %v7770_v25  ;;  %v7771_v32 = vunpack.i.l.bf16 %v7770_v25  ;;  %7187 = vmatprep.subr.bf16.mxu1 %v8346_v1 }
 0x12c   :  { %8064 = vrot.lane.b32.xlu1 %v8861_v54, %s8355_s26  ;;  %8059 = vrot.lane.b32.xlu0 %v8844_v41, %s8355_s26  ;;  %v2746_v44 = vsel %vm2743_vm11, %v7757_v63, %v7776_v34  ;;  %v2747_v46 = vsel %vm2743_vm11, %v7776_v34, %v7777_v33 }
 0x12d   :  { %v2481_v36 = vsel %vm2476_vm10, %v7747_v50, %v7771_v32  ;;  %v2486_v37 = vsel %vm2476_vm10, %v7752_v60, %v7772_v31  ;;  %7191 = vmatprep.subr.bf16.mxu0 %v7190_v30  ;;  %v7785_v38 = vpop.permute.xlu1 %7784  ;;  %6783 = vmatmul.mubr.msk.f32.vlgmr.msra.gmra.mrb[0].mxu1 %vm150_vm1, %v2451_v22  ;;  %vm6214_vm10 = vcmask 465920  }
 0x12e   :  { %v7188_v39 = vpack.c.bf16 %v2486_v37, %v2481_v36  ;;  %7193 = vmatpush1.bf16.msra.mxu0 %v7192_v5  ;;  %v7787_v40 = vunpack.i.h.bf16 %v7785_v38  ;;  %v7786_v42 = vunpack.i.l.bf16 %v7785_v38  ;;  %v7780_v0 = vpop.permute.xlu0 %7779  ;;  %6972 = vmatprep.mubr.msk.f32.mxu1 %vm8347_vm3, %v8334_v18 }
 0x12f   :  { %v7782_v27 = vunpack.i.h.bf16 %v7780_v0  ;;  %v7781_v43 = vunpack.i.l.bf16 %v7780_v0  ;;  %7198 = vmatprep.subr.bf16.mxu0 %v8346_v1 }
 0x130   :  { %v2753_v45 = vsel %vm2743_vm11, %v7786_v42, %v7787_v40  ;;  %8074 = vrot.lane.b32.xlu1 %v8502_v21, %s8355_s26  ;;  %8069 = vrot.lane.b32.xlu0 %v8904_v35, %s8354_s0 }
 0x131   :  { %v2748_v47 = vsel %vm2743_vm11, %v7777_v33, %v7781_v43  ;;  %v2751_v48 = vsel %vm2743_vm11, %v7762_v15, %v7782_v27  ;;  %7189 = vmatpush3.bf16.msra.mxu1 %v7188_v39  ;;  %v7795_v49 = vpop.permute.xlu1 %7794  ;;  %6785 = vmatmul.mubr.msk.f32.vlgmr.msra.gmra.mrb[0].mxu0 %vm150_vm1, %v2718_v8  ;;  %v2752_v50 = vsel %vm2743_vm11, %v7782_v27, %v7786_v42  ;;  %vm6481_vm11 = vcmask 457728  }
 0x132   :  { %v7196_v51 = vpack.c.bf16 %v2751_v48, %v2746_v44  ;;  %v7199_v52 = vpack.c.bf16 %v2753_v45, %v2748_v47  ;;  %v7797_v53 = vunpack.i.h.bf16 %v7795_v49  ;;  %v7796_v55 = vunpack.i.l.bf16 %v7795_v49  ;;  %v7790_v56 = vpop.permute.xlu0 %7789  ;;  %6979 = vmatprep.mubr.msk.f32.mxu0 %vm8347_vm3, %v8334_v18 }
 0x133   :  { %v7792_v57 = vunpack.i.h.bf16 %v7790_v56  ;;  %v7791_v58 = vunpack.i.l.bf16 %v7790_v56  ;;  %v7194_v59 = vpack.c.bf16 %v2752_v50, %v2747_v46  ;;  %v3252_v56 = vld [vmem:[#allocation6 + $0x60] sm:$0xff] }
 0x134   :  { %6973 = vmatmul.mubr.msk.f32.vlgmr.msra.gmra.mrb[10].mxu1 %vm150_vm1, %v2451_v22  ;;  %8084 = vrot.lane.b32.xlu1 %v8811_v14, %s8355_s26  ;;  %v3017_v60 = vsel %vm3010_vm12, %v7796_v55, %v7797_v53 }
 0x135   :  { %8079 = vrot.lane.b32.xlu0 %v8827_v16, %s8355_s26  ;;  %7195 = vmatprep.subr.bf16.mxu1 %v7194_v59  ;;  %v8933_v61 = vpop.permute.xlu1 %7804  ;;  %v3012_v20 = vsel %vm3010_vm12, %v7791_v58, %v7792_v57 }
 0x136   :  { %7200 = vmatpush3.bf16.msra.mxu0 %v7199_v52  ;;  %7197 = vmatpush1.bf16.msra.mxu1 %v7196_v51  ;;  %v7800_v62 = vpop.permute.xlu0 %7799  ;;  %v7201_v63 = vpack.c.bf16 %v3017_v60, %v3012_v20  ;;  %v7807_v9 = vunpack.i.h.bf16 %v8933_v61  ;;  %v7806_v10 = vunpack.i.l.bf16 %v8933_v61 }
 0x137   :  { %v7802_v3 = vunpack.i.h.bf16 %v7800_v62  ;;  %v7801_v7 = vunpack.i.l.bf16 %v7800_v62  ;;  %2902 = vmatprep.mubr.f32.mxu1 %v8334_v18 }
 0x138   :  { %8094 = vrot.lane.b32.xlu1 %v8844_v41, %s8356_s27  ;;  %7202 = vmatprep.subr.bf16.mxu0 %v7201_v63  ;;  %v3013_v17 = vsel %vm3010_vm12, %v7792_v57, %v7806_v10  ;;  %v3014_v26 = vsel %vm3010_vm12, %v7806_v10, %v7807_v9 }
 0x139   :  { %v3016_v11 = vsel %vm3010_vm12, %v7802_v3, %v7796_v55  ;;  %v3011_v13 = vsel %vm3010_vm12, %v7801_v7, %v7791_v58  ;;  %6980 = vmatmul.mubr.msk.f32.vlgmr.msra.gmra.mrb[12].mxu0 %vm150_vm1, %v2718_v8  ;;  %8089 = vrot.lane.b32.xlu0 %v8846_v12, %s8356_s27  ;;  %v8946_v4 = vpop.permute.xlu1 %7814 }
 0x13a   :  { %v7203_v6 = vpack.c.bf16 %v3016_v11, %v3011_v13  ;;  %v7810_v19 = vpop.permute.xlu0 %7809  ;;  %6786 = vmatmul.mubr.msk.f32.vlgmr.msra.gmra.mrb[0].mxu1 %vm150_vm1, %v2718_v8  ;;  %3098 = vmatprep.mubr.f32.mxu0 %v8334_v18  ;;  %v7817_v29 = vunpack.i.h.bf16 %v8946_v4  ;;  %v7816_v2 = vunpack.i.l.bf16 %v8946_v4 }
 0x13b   :  { %v7812_v22 = vunpack.i.h.bf16 %v7810_v19  ;;  %v7811_v15 = vunpack.i.l.bf16 %v7810_v19  ;;  %3169 = vmatprep.mubr.f32.mxu1 %v8334_v18 }
 0x13c   :  { %8104 = vrot.lane.b32.xlu1 %v8502_v21, %s8356_s27  ;;  %7204 = vmatpush1.bf16.msra.mxu0 %v7203_v6  ;;  %v3279_v42 = vsel %vm3277_vm13, %v7816_v2, %v7817_v29 }
 0x13d   :  { %v3018_v23 = vsel %vm3010_vm12, %v7797_v53, %v7811_v15  ;;  %8099 = vrot.lane.b32.xlu0 %v8861_v54, %s8356_s27  ;;  %v7825_v5 = vpop.permute.xlu1 %7824  ;;  %v3019_v25 = vsel %vm3010_vm12, %v7811_v15, %v7812_v22 }
 0x13e   :  { %v7207_v30 = vpack.c.bf16 %v3018_v23, %v3013_v17  ;;  %v7827_v31 = vunpack.i.h.bf16 %v7825_v5  ;;  %v7826_v32 = vunpack.i.l.bf16 %v7825_v5  ;;  %v7820_v33 = vpop.permute.xlu0 %7819  ;;  %v7205_v34 = vpack.c.bf16 %v3019_v25, %v3014_v26 }
 0x13f   :  { %v7822_v36 = vunpack.i.h.bf16 %v7820_v33  ;;  %v7821_v37 = vunpack.i.l.bf16 %v7820_v33  ;;  %6788 = vmatmul.mubr.msk.f32.vlgmr.msra.gmra.mrb[0].mxu0 %vm150_vm1, %v8955_v28 }
 0x140   :  { %v3278_v38 = vsel %vm3277_vm13, %v7826_v32, %v7816_v2  ;;  %8114 = vrot.lane.b32.xlu1 %v8846_v12, %s8357_s28  ;;  %7206 = vmatprep.subr.bf16.mxu1 %v7205_v34 }
 0x141   :  { %v3283_v39 = vsel %vm3277_vm13, %v7827_v31, %v7821_v37  ;;  %8109 = vrot.lane.b32.xlu0 %v8878_v24, %s8356_s27  ;;  %7208 = vmatpush1.bf16.msra.mxu1 %v7207_v30  ;;  %v7835_v40 = vpop.permute.xlu1 %7834  ;;  %v3284_v0 = vsel %vm3277_vm13, %v7821_v37, %v7822_v36 }
 0x142   :  { %v7214_v8 = vpack.c.bf16 %v3283_v39, %v3278_v38  ;;  %v7830_v27 = vpop.permute.xlu0 %7829  ;;  %v7212_v43 = vpack.c.bf16 %v3284_v0, %v3279_v42  ;;  %7209 = vmatprep.subr.bf16.mxu1 %v8346_v1  ;;  %3365 = vmatprep.mubr.f32.mxu0 %v8334_v18  ;;  %v7837_v46 = vunpack.i.h.bf16 %v7835_v40  ;;  %v7836_v47 = vunpack.i.l.bf16 %v7835_v40  ;;  %v9028_v39 = vld [vmem:[#allocation6 + $0x68] sm:$0xff] }
 0x143   :  { %v7832_v44 = vunpack.i.h.bf16 %v7830_v27  ;;  %v7831_v45 = vunpack.i.l.bf16 %v7830_v27 }
 0x144   :  { %8124 = vrot.lane.b32.xlu1 %v8861_v54, %s8357_s28  ;;  %7213 = vmatprep.subr.bf16.mxu0 %v7212_v43  ;;  %v3280_v59 = vsel %vm3277_vm13, %v7817_v29, %v7836_v47  ;;  %v3281_v61 = vsel %vm3277_vm13, %v7836_v47, %v7837_v46 }
 0x145   :  { %v3015_v48 = vsel %vm3010_vm12, %v7807_v9, %v7831_v45  ;;  %v3020_v49 = vsel %vm3010_vm12, %v7812_v22, %v7832_v44  ;;  %8119 = vrot.lane.b32.xlu0 %v8844_v41, %s8357_s28  ;;  %7215 = vmatpush1.bf16.msra.mxu0 %v7214_v8  ;;  %v7845_v50 = vpop.permute.xlu1 %7844 }
 0x146   :  { %v7210_v51 = vpack.c.bf16 %v3020_v49, %v3015_v48  ;;  %v7847_v52 = vunpack.i.h.bf16 %v7845_v50  ;;  %v7846_v53 = vunpack.i.l.bf16 %v7845_v50  ;;  %v7840_v55 = vpop.permute.xlu0 %7839  ;;  %6789 = vmatmul.mubr.msk.f32.vlgmr.msra.gmra.mrb[0].mxu1 %vm150_vm1, %v8955_v28  ;;  %7220 = vmatprep.subr.bf16.mxu0 %v8346_v1 }
 0x147   :  { %v7842_v57 = vunpack.i.h.bf16 %v7840_v55  ;;  %v7841_v58 = vunpack.i.l.bf16 %v7840_v55  ;;  %6986 = vmatprep.mubr.msk.f32.mxu1 %vm8347_vm3, %v8334_v18 }
 0x148   :  { %v3287_v60 = vsel %vm3277_vm13, %v7846_v53, %v7847_v52  ;;  %8134 = vrot.lane.b32.xlu1 %v8502_v21, %s8357_s28  ;;  %7211 = vmatpush3.bf16.msra.mxu1 %v7210_v51 }
 0x149   :  { %v3282_v20 = vsel %vm3277_vm13, %v7837_v46, %v7841_v58  ;;  %v3285_v62 = vsel %vm3277_vm13, %v7822_v36, %v7842_v57  ;;  %8129 = vrot.lane.b32.xlu0 %v8904_v35, %s8356_s27  ;;  %6791 = vmatmul.mubr.msk.f32.vlgmr.msra.gmra.mrb[0].mxu0 %vm150_vm1, %v3252_v56  ;;  %v3286_v63 = vsel %vm3277_vm13, %v7842_v57, %v7846_v53 }
 0x14a   :  { %v7218_v3 = vpack.c.bf16 %v3285_v62, %v3280_v59  ;;  %v7221_v7 = vpack.c.bf16 %v3287_v60, %v3282_v20  ;;  %v7855_v9 = vpop.permute.xlu1 %7854  ;;  %v7850_v10 = vpop.permute.xlu0 %7849  ;;  %v7216_v11 = vpack.c.bf16 %v3286_v63, %v3281_v61  ;;  %6993 = vmatprep.mubr.msk.f32.mxu0 %vm8347_vm3, %v8334_v18 }
 0x14b   :  { %v7857_v13 = vunpack.i.h.bf16 %v7855_v9  ;;  %v7856_v4 = vunpack.i.l.bf16 %v7855_v9  ;;  %v7852_v6 = vunpack.i.h.bf16 %v7850_v10  ;;  %v7851_v19 = vunpack.i.l.bf16 %v7850_v10  ;;  %6987 = vmatmul.mubr.msk.f32.vlgmr.msra.gmra.mrb[12].mxu1 %vm150_vm1, %v8955_v28 }
 0x14c   :  { %8144 = vrot.lane.b32.xlu1 %v8811_v14, %s8357_s28  ;;  %7217 = vmatprep.subr.bf16.mxu1 %v7216_v11 }
 0x14d   :  { %8139 = vrot.lane.b32.xlu0 %v8827_v16, %s8357_s28  ;;  %7222 = vmatpush3.bf16.msra.mxu0 %v7221_v7  ;;  %v3546_v22 = vsel %vm3544_vm14, %v7851_v19, %v7852_v6  ;;  %v3551_v15 = vsel %vm3544_vm14, %v7856_v4, %v7857_v13  ;;  %v3786_v7 = vld [vmem:[#allocation6 + $0x70] sm:$0xff] }
 0x14e   :  { %7219 = vmatpush1.bf16.msra.mxu1 %v7218_v3  ;;  %v9007_v17 = vpop.permute.xlu1 %7864  ;;  %v7860_v26 = vpop.permute.xlu0 %7859  ;;  %v7223_v29 = vpack.c.bf16 %v3551_v15, %v3546_v22  ;;  %3436 = vmatprep.mubr.f32.mxu1 %v8334_v18 }
 0x14f   :  { %v7862_v28 = vunpack.i.h.bf16 %v7860_v26  ;;  %v7861_v2 = vunpack.i.l.bf16 %v7860_v26  ;;  %v7867_v23 = vunpack.i.h.bf16 %v9007_v17  ;;  %v7866_v5 = vunpack.i.l.bf16 %v9007_v17 }
 0x150   :  { %6994 = vmatmul.mubr.msk.f32.vlgmr.msra.gmra.mrb[14].mxu0 %vm150_vm1, %v3252_v56  ;;  %8154 = vrot.lane.b32.xlu1 %v8844_v41, %s8358_s29 }
 0x151   :  { %v3550_v25 = vsel %vm3544_vm14, %v7862_v28, %v7856_v4  ;;  %v3545_v30 = vsel %vm3544_vm14, %v7861_v2, %v7851_v19  ;;  %8149 = vrot.lane.b32.xlu0 %v8846_v12, %s8358_s29  ;;  %7224 = vmatprep.subr.bf16.mxu0 %v7223_v29  ;;  %v3547_v40 = vsel %vm3544_vm14, %v7852_v6, %v7866_v5 }
 0x152   :  { %v7225_v31 = vpack.c.bf16 %v3550_v25, %v3545_v30  ;;  %v9019_v32 = vpop.permute.xlu1 %7874  ;;  %v7870_v33 = vpop.permute.xlu0 %7869  ;;  %6792 = vmatmul.mubr.msk.f32.vlgmr.msra.gmra.mrb[0].mxu1 %vm150_vm1, %v3252_v56  ;;  %3632 = vmatprep.mubr.f32.mxu0 %v8334_v18  ;;  %v3548_v0 = vsel %vm3544_vm14, %v7866_v5, %v7867_v23 }
 0x153   :  { %v7872_v34 = vunpack.i.h.bf16 %v7870_v33  ;;  %v7871_v36 = vunpack.i.l.bf16 %v7870_v33  ;;  %3703 = vmatprep.mubr.f32.mxu1 %v8334_v18  ;;  %v7877_v37 = vunpack.i.h.bf16 %v9019_v32  ;;  %v7876_v38 = vunpack.i.l.bf16 %v9019_v32 }
 0x154   :  { %8164 = vrot.lane.b32.xlu1 %v8502_v21, %s8358_s29  ;;  %7226 = vmatpush1.bf16.msra.mxu0 %v7225_v31 }
 0x155   :  { %v3552_v42 = vsel %vm3544_vm14, %v7857_v13, %v7871_v36  ;;  %8159 = vrot.lane.b32.xlu0 %v8861_v54, %s8358_s29  ;;  %v3553_v8 = vsel %vm3544_vm14, %v7871_v36, %v7872_v34  ;;  %v3813_v50 = vsel %vm3811_vm15, %v7876_v38, %v7877_v37 }
 0x156   :  { %v7229_v27 = vpack.c.bf16 %v3552_v42, %v3547_v40  ;;  %v7885_v43 = vpop.permute.xlu1 %7884  ;;  %v7880_v44 = vpop.permute.xlu0 %7879  ;;  %v7227_v45 = vpack.c.bf16 %v3553_v8, %v3548_v0 }
 0x157   :  { %v7887_v46 = vunpack.i.h.bf16 %v7885_v43  ;;  %v7886_v47 = vunpack.i.l.bf16 %v7885_v43  ;;  %v7882_v48 = vunpack.i.h.bf16 %v7880_v44  ;;  %v7881_v49 = vunpack.i.l.bf16 %v7880_v44  ;;  %6794 = vmatmul.mubr.msk.f32.vlgmr.msra.gmra.mrb[0].mxu0 %vm150_vm1, %v9028_v39  ;;  %v9089_v43 = vld [vmem:[#allocation6 + $0x78] sm:$0xff] }
 0x158   :  { %8174 = vrot.lane.b32.xlu1 %v8846_v12, %s8359_s30  ;;  %7228 = vmatprep.subr.bf16.mxu1 %v7227_v45 }
 0x159   :  { %v3812_v51 = vsel %vm3811_vm15, %v7886_v47, %v7876_v38  ;;  %v3817_v52 = vsel %vm3811_vm15, %v7887_v46, %v7881_v49  ;;  %8169 = vrot.lane.b32.xlu0 %v8878_v24, %s8358_s29  ;;  %7230 = vmatpush1.bf16.msra.mxu1 %v7229_v27  ;;  %v3818_v53 = vsel %vm3811_vm15, %v7881_v49, %v7882_v48 }
 0x15a   :  { %v7236_v55 = vpack.c.bf16 %v3817_v52, %v3812_v51  ;;  %v7895_v56 = vpop.permute.xlu1 %7894  ;;  %v7890_v57 = vpop.permute.xlu0 %7889  ;;  %v7234_v58 = vpack.c.bf16 %v3818_v53, %v3813_v50  ;;  %7231 = vmatprep.subr.bf16.mxu1 %v8346_v1  ;;  %3899 = vmatprep.mubr.f32.mxu0 %v8334_v18 }
 0x15b   :  { %v7892_v12 = vunpack.i.h.bf16 %v7890_v57  ;;  %v7891_v59 = vunpack.i.l.bf16 %v7890_v57  ;;  %v7896_v60 = vunpack.i.l.bf16 %v7895_v56  ;;  %v7897_v20 = vunpack.i.h.bf16 %v7895_v56 }
 0x15c   :  { %8184 = vrot.lane.b32.xlu1 %v8861_v54, %s8359_s30  ;;  %7235 = vmatprep.subr.bf16.mxu0 %v7234_v58 }
 0x15d   :  { %v3549_v24 = vsel %vm3544_vm14, %v7867_v23, %v7891_v59  ;;  %v3554_v61 = vsel %vm3544_vm14, %v7872_v34, %v7892_v12  ;;  %8179 = vrot.lane.b32.xlu0 %v8844_v41, %s8359_s30  ;;  %7237 = vmatpush1.bf16.msra.mxu0 %v7236_v55  ;;  %v3814_v41 = vsel %vm3811_vm15, %v7877_v37, %v7896_v60 }
 0x15e   :  { %v7232_v62 = vpack.c.bf16 %v3554_v61, %v3549_v24  ;;  %v7905_v63 = vpop.permute.xlu1 %7904  ;;  %v7900_v3 = vpop.permute.xlu0 %7899  ;;  %6795 = vmatmul.mubr.msk.f32.vlgmr.msra.gmra.mrb[0].mxu1 %vm150_vm1, %v9028_v39  ;;  %7242 = vmatprep.subr.bf16.mxu0 %v8346_v1  ;;  %v3815_v26 = vsel %vm3811_vm15, %v7896_v60, %v7897_v20 }
 0x15f   :  { %v7907_v54 = vunpack.i.h.bf16 %v7905_v63  ;;  %v7906_v9 = vunpack.i.l.bf16 %v7905_v63  ;;  %v7902_v10 = vunpack.i.h.bf16 %v7900_v3  ;;  %v7901_v11 = vunpack.i.l.bf16 %v7900_v3  ;;  %7000 = vmatprep.mubr.msk.f32.mxu1 %vm8347_vm3, %v8334_v18 }
 0x160   :  { %8194 = vrot.lane.b32.xlu1 %v8502_v21, %s8359_s30  ;;  %7233 = vmatpush3.bf16.msra.mxu1 %v7232_v62 }
 0x161   :  { %v3821_v13 = vsel %vm3811_vm15, %v7906_v9, %v7907_v54  ;;  %v3816_v4 = vsel %vm3811_vm15, %v7897_v20, %v7901_v11  ;;  %v3819_v6 = vsel %vm3811_vm15, %v7882_v48, %v7902_v10  ;;  %8189 = vrot.lane.b32.xlu0 %v8904_v35, %s8358_s29  ;;  %6797 = vmatmul.mubr.msk.f32.vlgmr.msra.gmra.mrb[0].mxu0 %vm150_vm1, %v3786_v7 }
 0x162   :  { %v7240_v19 = vpack.c.bf16 %v3819_v6, %v3814_v41  ;;  %v7243_v22 = vpack.c.bf16 %v3821_v13, %v3816_v4  ;;  %v7915_v15 = vpop.permute.xlu1 %7914  ;;  %v7910_v17 = vpop.permute.xlu0 %7909  ;;  %v3820_v21 = vsel %vm3811_vm15, %v7902_v10, %v7906_v9  ;;  %7007 = vmatprep.mubr.msk.f32.mxu0 %vm8347_vm3, %v8334_v18  ;;  %v4320_v10 = vld [vmem:[#allocation6 + $0x80] sm:$0xff] }
 0x163   :  { %v7917_v29 = vunpack.i.h.bf16 %v7915_v15  ;;  %v7916_v28 = vunpack.i.l.bf16 %v7915_v15  ;;  %v7912_v2 = vunpack.i.h.bf16 %v7910_v17  ;;  %v7911_v23 = vunpack.i.l.bf16 %v7910_v17  ;;  %7001 = vmatmul.mubr.msk.f32.vlgmr.msra.gmra.mrb[14].mxu1 %vm150_vm1, %v9028_v39 }
 0x164   :  { %8204 = vrot.lane.b32.xlu1 %v8811_v14, %s8359_s30  ;;  %v7238_v35 = vpack.c.bf16 %v3820_v21, %v3815_v26  ;;  %7244 = vmatpush3.bf16.msra.mxu0 %v7243_v22 }
 0x165   :  { %8199 = vrot.lane.b32.xlu0 %v8827_v16, %s8359_s30  ;;  %v4080_v5 = vsel %vm4078_vm0, %v7911_v23, %v7912_v2  ;;  %v4085_v25 = vsel %vm4078_vm0, %v7916_v28, %v7917_v29  ;;  %3970 = vmatprep.mubr.f32.mxu1 %v8334_v18 }
 0x166   :  { %7239 = vmatprep.subr.bf16.mxu1 %v7238_v35  ;;  %v7925_v30 = vpop.permute.xlu1 %7924  ;;  %v7920_v31 = vpop.permute.xlu0 %7919  ;;  %v7245_v32 = vpack.c.bf16 %v4085_v25, %v4080_v5 }
 0x167   :  { %7241 = vmatpush1.bf16.msra.mxu1 %v7240_v19  ;;  %v7922_v33 = vunpack.i.h.bf16 %v7920_v31  ;;  %v7921_v34 = vunpack.i.l.bf16 %v7920_v31  ;;  %7008 = vmatmul.mubr.msk.f32.vlgmr.msra.gmra.mrb[16].mxu0 %vm150_vm1, %v3786_v7  ;;  %v7927_v14 = vunpack.i.h.bf16 %v7925_v30  ;;  %v7926_v36 = vunpack.i.l.bf16 %v7925_v30 }
 0x168   :  { %7246 = vmatprep.subr.bf16.mxu0 %v7245_v32  ;;  %4166 = vmatprep.mubr.f32.mxu0 %v8334_v18 }
 0x169   :  { %v4084_v16 = vsel %vm4078_vm0, %v7922_v33, %v7916_v28  ;;  %v4079_v37 = vsel %vm4078_vm0, %v7921_v34, %v7911_v23  ;;  %v4081_v8 = vsel %vm4078_vm0, %v7912_v2, %v7926_v36  ;;  %v4082_v27 = vsel %vm4078_vm0, %v7926_v36, %v7927_v14 }
 0x16a   :  { %v7247_v38 = vpack.c.bf16 %v4084_v16, %v4079_v37  ;;  %v7935_v39 = vpop.permute.xlu1 %7934  ;;  %v7930_v40 = vpop.permute.xlu0 %7929  ;;  %6798 = vmatmul.mubr.msk.f32.vlgmr.msra.gmra.mrb[0].mxu1 %vm150_vm1, %v3786_v7 }
 0x16b   :  { %v7932_v42 = vunpack.i.h.bf16 %v7930_v40  ;;  %v7931_v0 = vunpack.i.l.bf16 %v7930_v40  ;;  %4237 = vmatprep.mubr.f32.mxu1 %v8334_v18  ;;  %v7937_v44 = vunpack.i.h.bf16 %v7935_v39  ;;  %v7936_v45 = vunpack.i.l.bf16 %v7935_v39 }
 0x16c   :  { %7248 = vmatpush1.bf16.msra.mxu0 %v7247_v38 }
 0x16d   :  { %v4086_v46 = vsel %vm4078_vm0, %v7917_v29, %v7931_v0  ;;  %v4087_v47 = vsel %vm4078_vm0, %v7931_v0, %v7932_v42  ;;  %v4347_v12 = vsel %vm4345_vm2, %v7936_v45, %v7937_v44 }
 0x16e   :  { %v7251_v48 = vpack.c.bf16 %v4086_v46, %v4081_v8  ;;  %v7945_v49 = vpop.permute.xlu1 %7944  ;;  %v7940_v50 = vpop.permute.xlu0 %7939  ;;  %v7249_v51 = vpack.c.bf16 %v4087_v47, %v4082_v27 }
 0x16f   :  { %v7947_v52 = vunpack.i.h.bf16 %v7945_v49  ;;  %v7946_v53 = vunpack.i.l.bf16 %v7945_v49  ;;  %v7942_v55 = vunpack.i.h.bf16 %v7940_v50  ;;  %v7941_v56 = vunpack.i.l.bf16 %v7940_v50  ;;  %6800 = vmatmul.mubr.msk.f32.vlgmr.msra.gmra.mrb[0].mxu0 %vm150_vm1, %v9089_v43  ;;  %v9130_v49 = vld [vmem:[#allocation6 + $0x88] sm:$0xff] }
 0x170   :  { %7250 = vmatprep.subr.bf16.mxu1 %v7249_v51  ;;  %4433 = vmatprep.mubr.f32.mxu0 %v8334_v18 }
 0x171   :  { %v4346_v57 = vsel %vm4345_vm2, %v7946_v53, %v7936_v45  ;;  %v4351_v58 = vsel %vm4345_vm2, %v7947_v52, %v7941_v56  ;;  %7252 = vmatpush1.bf16.msra.mxu1 %v7251_v48  ;;  %v4352_v59 = vsel %vm4345_vm2, %v7941_v56, %v7942_v55 }
 0x172   :  { %v7258_v60 = vpack.c.bf16 %v4351_v58, %v4346_v57  ;;  %v7955_v24 = vpop.permute.xlu1 %7954  ;;  %v7950_v61 = vpop.permute.xlu0 %7949  ;;  %v7256_v20 = vpack.c.bf16 %v4352_v59, %v4347_v12  ;;  %7253 = vmatprep.subr.bf16.mxu1 %v8346_v1 }
 0x173   :  { %v7952_v62 = vunpack.i.h.bf16 %v7950_v61  ;;  %v7951_v63 = vunpack.i.l.bf16 %v7950_v61  ;;  %v7957_v3 = vunpack.i.h.bf16 %v7955_v24  ;;  %v7956_v7 = vunpack.i.l.bf16 %v7955_v24 }
 0x174   :  { %7257 = vmatprep.subr.bf16.mxu0 %v7256_v20  ;;  %6801 = vmatmul.mubr.msk.f32.vlgmr.msra.gmra.mrb[0].mxu1 %vm150_vm1, %v9089_v43 }
 0x175   :  { %v4083_v54 = vsel %vm4078_vm0, %v7927_v14, %v7951_v63  ;;  %v4088_v9 = vsel %vm4078_vm0, %v7932_v42, %v7952_v62  ;;  %7259 = vmatpush1.bf16.msra.mxu0 %v7258_v60  ;;  %7014 = vmatprep.mubr.msk.f32.mxu1 %vm8347_vm3, %v8334_v18  ;;  %v4348_v15 = vsel %vm4345_vm2, %v7937_v44, %v7956_v7 }
 0x176   :  { %v7254_v11 = vpack.c.bf16 %v4088_v9, %v4083_v54  ;;  %v7965_v41 = vpop.permute.xlu1 %7964  ;;  %v7960_v13 = vpop.permute.xlu0 %7959  ;;  %7264 = vmatprep.subr.bf16.mxu0 %v8346_v1  ;;  %v4349_v17 = vsel %vm4345_vm2, %v7956_v7, %v7957_v3 }
 0x177   :  { %v7967_v4 = vunpack.i.h.bf16 %v7965_v41  ;;  %v7966_v6 = vunpack.i.l.bf16 %v7965_v41  ;;  %v7962_v19 = vunpack.i.h.bf16 %v7960_v13  ;;  %v7961_v22 = vunpack.i.l.bf16 %v7960_v13 }
 0x178   :  { %7255 = vmatpush3.bf16.msra.mxu1 %v7254_v11  ;;  %6803 = vmatmul.mubr.msk.f32.vlgmr.msra.gmra.mrb[0].mxu0 %vm150_vm1, %v4320_v10 }
 0x179   :  { %v4355_v26 = vsel %vm4345_vm2, %v7966_v6, %v7967_v4  ;;  %v4350_v21 = vsel %vm4345_vm2, %v7957_v3, %v7961_v22  ;;  %v4353_v29 = vsel %vm4345_vm2, %v7942_v55, %v7962_v19  ;;  %v4354_v28 = vsel %vm4345_vm2, %v7962_v19, %v7966_v6  ;;  %7021 = vmatprep.mubr.msk.f32.mxu0 %vm8347_vm3, %v8334_v18  ;;  %v4854_v19 = vld [vmem:[#allocation6 + $0x90] sm:$0xff] }
 0x17a   :  { %v7262_v2 = vpack.c.bf16 %v4353_v29, %v4348_v15  ;;  %v7265_v23 = vpack.c.bf16 %v4355_v26, %v4350_v21  ;;  %v7975_v35 = vpop.permute.xlu1 %7974  ;;  %v7970_v5 = vpop.permute.xlu0 %7969  ;;  %v7260_v25 = vpack.c.bf16 %v4354_v28, %v4349_v17 }
 0x17b   :  { %v7977_v30 = vunpack.i.h.bf16 %v7975_v35  ;;  %v7976_v31 = vunpack.i.l.bf16 %v7975_v35  ;;  %v7972_v32 = vunpack.i.h.bf16 %v7970_v5  ;;  %v7971_v33 = vunpack.i.l.bf16 %v7970_v5  ;;  %7015 = vmatmul.mubr.msk.f32.vlgmr.msra.gmra.mrb[16].mxu1 %vm150_vm1, %v9089_v43 }
 0x17c   :  { %7261 = vmatprep.subr.bf16.mxu1 %v7260_v25  ;;  %7266 = vmatpush3.bf16.msra.mxu0 %v7265_v23 }
 0x17d   :  { %7263 = vmatpush1.bf16.msra.mxu1 %v7262_v2  ;;  %v4614_v34 = vsel %vm4612_vm4, %v7971_v33, %v7972_v32  ;;  %v4619_v14 = vsel %vm4612_vm4, %v7976_v31, %v7977_v30  ;;  %4504 = vmatprep.mubr.f32.mxu1 %v8334_v18 }
 0x17e   :  { %v7985_v36 = vpop.permute.xlu1 %7984  ;;  %v7980_v16 = vpop.permute.xlu0 %7979  ;;  %v7267_v37 = vpack.c.bf16 %v4619_v14, %v4614_v34 }
 0x17f   :  { %v7982_v38 = vunpack.i.h.bf16 %v7980_v16  ;;  %v7981_v39 = vunpack.i.l.bf16 %v7980_v16  ;;  %7022 = vmatmul.mubr.msk.f32.vlgmr.msra.gmra.mrb[18].mxu0 %vm150_vm1, %v4320_v10  ;;  %v7987_v40 = vunpack.i.h.bf16 %v7985_v36  ;;  %v7986_v42 = vunpack.i.l.bf16 %v7985_v36 }
 0x180   :  { %7268 = vmatprep.subr.bf16.mxu0 %v7267_v37  ;;  %6804 = vmatmul.mubr.msk.f32.vlgmr.msra.gmra.mrb[0].mxu1 %vm150_vm1, %v4320_v10 }
 0x181   :  { %v4618_v0 = vsel %vm4612_vm4, %v7982_v38, %v7976_v31  ;;  %v4613_v8 = vsel %vm4612_vm4, %v7981_v39, %v7971_v33  ;;  %4700 = vmatprep.mubr.f32.mxu0 %v8334_v18  ;;  %4771 = vmatprep.mubr.f32.mxu1 %v8334_v18  ;;  %v4615_v47 = vsel %vm4612_vm4, %v7972_v32, %v7986_v42 }
 0x182   :  { %v7269_v27 = vpack.c.bf16 %v4618_v0, %v4613_v8  ;;  %v7995_v43 = vpop.permute.xlu1 %7994  ;;  %v7990_v44 = vpop.permute.xlu0 %7989  ;;  %v4616_v48 = vsel %vm4612_vm4, %v7986_v42, %v7987_v40 }
 0x183   :  { %v7992_v45 = vunpack.i.h.bf16 %v7990_v44  ;;  %v7991_v46 = vunpack.i.l.bf16 %v7990_v44  ;;  %v7997_v50 = vunpack.i.h.bf16 %v7995_v43  ;;  %v7996_v51 = vunpack.i.l.bf16 %v7995_v43 }
 0x184   :  { %7270 = vmatpush1.bf16.msra.mxu0 %v7269_v27 }
 0x185   :  { %v4620_v52 = vsel %vm4612_vm4, %v7977_v30, %v7991_v46  ;;  %v4621_v53 = vsel %vm4612_vm4, %v7991_v46, %v7992_v45  ;;  %v4881_v62 = vsel %vm4879_vm5, %v7996_v51, %v7997_v50 }
 0x186   :  { %v7273_v55 = vpack.c.bf16 %v4620_v52, %v4615_v47  ;;  %v8005_v56 = vpop.permute.xlu1 %8004  ;;  %v8000_v57 = vpop.permute.xlu0 %7999  ;;  %v7271_v58 = vpack.c.bf16 %v4621_v53, %v4616_v48 }
 0x187   :  { %v8007_v12 = vunpack.i.h.bf16 %v8005_v56  ;;  %v8006_v59 = vunpack.i.l.bf16 %v8005_v56  ;;  %v8002_v60 = vunpack.i.h.bf16 %v8000_v57  ;;  %v8001_v24 = vunpack.i.l.bf16 %v8000_v57  ;;  %6806 = vmatmul.mubr.msk.f32.vlgmr.msra.gmra.mrb[0].mxu0 %vm150_vm1, %v9130_v49  ;;  %v9173_v56 = vld [vmem:[#allocation6 + $0x98] sm:$0xff] }
 0x188   :  { %7272 = vmatprep.subr.bf16.mxu1 %v7271_v58  ;;  %4967 = vmatprep.mubr.f32.mxu0 %v8334_v18 }
 0x189   :  { %v4880_v61 = vsel %vm4879_vm5, %v8006_v59, %v7996_v51  ;;  %v4885_v20 = vsel %vm4879_vm5, %v8007_v12, %v8001_v24  ;;  %7274 = vmatpush1.bf16.msra.mxu1 %v7273_v55  ;;  %v4886_v63 = vsel %vm4879_vm5, %v8001_v24, %v8002_v60 }
 0x18a   :  { %v7280_v3 = vpack.c.bf16 %v4885_v20, %v4880_v61  ;;  %v8015_v7 = vpop.permute.xlu1 %8014  ;;  %v8010_v54 = vpop.permute.xlu0 %8009  ;;  %v7278_v9 = vpack.c.bf16 %v4886_v63, %v4881_v62  ;;  %7275 = vmatprep.subr.bf16.mxu1 %v8346_v1 }
 0x18b   :  { %v8012_v10 = vunpack.i.h.bf16 %v8010_v54  ;;  %v8011_v11 = vunpack.i.l.bf16 %v8010_v54  ;;  %v8017_v41 = vunpack.i.h.bf16 %v8015_v7  ;;  %v8016_v13 = vunpack.i.l.bf16 %v8015_v7 }
 0x18c   :  { %7279 = vmatprep.subr.bf16.mxu0 %v7278_v9  ;;  %6807 = vmatmul.mubr.msk.f32.vlgmr.msra.gmra.mrb[0].mxu1 %vm150_vm1, %v9130_v49 }
 0x18d   :  { %v4617_v4 = vsel %vm4612_vm4, %v7987_v40, %v8011_v11  ;;  %v4622_v6 = vsel %vm4612_vm4, %v7992_v45, %v8012_v10  ;;  %7281 = vmatpush1.bf16.msra.mxu0 %v7280_v3  ;;  %7028 = vmatprep.mubr.msk.f32.mxu1 %vm8347_vm3, %v8334_v18  ;;  %v4882_v2 = vsel %vm4879_vm5, %v7997_v50, %v8016_v13 }
 0x18e   :  { %v7276_v22 = vpack.c.bf16 %v4622_v6, %v4617_v4  ;;  %v8025_v15 = vpop.permute.xlu1 %8024  ;;  %v8020_v17 = vpop.permute.xlu0 %8019  ;;  %7286 = vmatprep.subr.bf16.mxu0 %v8346_v1  ;;  %v4883_v23 = vsel %vm4879_vm5, %v8016_v13, %v8017_v41 }
 0x18f   :  { %v8027_v26 = vunpack.i.h.bf16 %v8025_v15  ;;  %v8026_v21 = vunpack.i.l.bf16 %v8025_v15  ;;  %v8022_v29 = vunpack.i.h.bf16 %v8020_v17  ;;  %v8021_v28 = vunpack.i.l.bf16 %v8020_v17 }
 0x190   :  { %7277 = vmatpush3.bf16.msra.mxu1 %v7276_v22  ;;  %6809 = vmatmul.mubr.msk.f32.vlgmr.msra.gmra.mrb[0].mxu0 %vm150_vm1, %v4854_v19 }
 0x191   :  { %v4889_v35 = vsel %vm4879_vm5, %v8026_v21, %v8027_v26  ;;  %v4884_v5 = vsel %vm4879_vm5, %v8017_v41, %v8021_v28  ;;  %v4887_v25 = vsel %vm4879_vm5, %v8002_v60, %v8022_v29  ;;  %v4888_v30 = vsel %vm4879_vm5, %v8022_v29, %v8026_v21  ;;  %7035 = vmatprep.mubr.msk.f32.mxu0 %vm8347_vm3, %v8334_v18  ;;  %v6722_v26 = vld [vmem:[#allocation8] sm:$0xff] }
 0x192   :  { %v7284_v31 = vpack.c.bf16 %v4887_v25, %v4882_v2  ;;  %v7287_v32 = vpack.c.bf16 %v4889_v35, %v4884_v5  ;;  %v8035_v33 = vpop.permute.xlu1 %8034  ;;  %v8030_v34 = vpop.permute.xlu0 %8029  ;;  %v7282_v14 = vpack.c.bf16 %v4888_v30, %v4883_v23  ;;  %v5388_v2 = vld [vmem:[#allocation6 + $0xa0] sm:$0xff]  ;;  %v8360_v25 = vmov 0  }
 0x193   :  { %v8037_v36 = vunpack.i.h.bf16 %v8035_v33  ;;  %v8036_v16 = vunpack.i.l.bf16 %v8035_v33  ;;  %v8032_v37 = vunpack.i.h.bf16 %v8030_v34  ;;  %v8031_v38 = vunpack.i.l.bf16 %v8030_v34  ;;  %7029 = vmatmul.mubr.msk.f32.vlgmr.msra.gmra.mrb[18].mxu1 %vm150_vm1, %v9130_v49  ;;  %8208 = vset.pattern.permute.xlu0 %v8360_v25 }
 0x194   :  { %7283 = vmatprep.subr.bf16.mxu1 %v7282_v14  ;;  %7288 = vmatpush3.bf16.msra.mxu0 %v7287_v32 }
 0x195   :  { %7285 = vmatpush1.bf16.msra.mxu1 %v7284_v31  ;;  %v5148_v39 = vsel %vm5146_vm6, %v8031_v38, %v8032_v37  ;;  %v5153_v40 = vsel %vm5146_vm6, %v8036_v16, %v8037_v36  ;;  %5038 = vmatprep.mubr.f32.mxu1 %v8334_v18 }
 0x196   :  { %v8045_v42 = vpop.permute.xlu1 %8044  ;;  %v8040_v0 = vpop.permute.xlu0 %8039  ;;  %v7289_v8 = vpack.c.bf16 %v5153_v40, %v5148_v39  ;;  %6725 = vperm.xlu0 %8208, %v6722_v26  }
 0x197   :  { %v8042_v27 = vunpack.i.h.bf16 %v8040_v0  ;;  %v8041_v43 = vunpack.i.l.bf16 %v8040_v0  ;;  %7036 = vmatmul.mubr.msk.f32.vlgmr.msra.gmra.mrb[20].mxu0 %vm150_vm1, %v4854_v19  ;;  %v8047_v44 = vunpack.i.h.bf16 %v8045_v42  ;;  %v8046_v45 = vunpack.i.l.bf16 %v8045_v42 }
 0x198   :  { %7290 = vmatprep.subr.bf16.mxu0 %v7289_v8  ;;  %6810 = vmatmul.mubr.msk.f32.vlgmr.msra.gmra.mrb[0].mxu1 %vm150_vm1, %v4854_v19 }
 0x199   :  { %v5152_v46 = vsel %vm5146_vm6, %v8042_v27, %v8036_v16  ;;  %v5147_v47 = vsel %vm5146_vm6, %v8041_v43, %v8031_v38  ;;  %5234 = vmatprep.mubr.f32.mxu0 %v8334_v18  ;;  %5305 = vmatprep.mubr.f32.mxu1 %v8334_v18  ;;  %v5149_v53 = vsel %vm5146_vm6, %v8032_v37, %v8046_v45 }
 0x19a   :  { %v7291_v48 = vpack.c.bf16 %v5152_v46, %v5147_v47  ;;  %v9168_v49 = vpop.permute.xlu1 %8054  ;;  %v8050_v50 = vpop.permute.xlu0 %8049  ;;  %v5150_v55 = vsel %vm5146_vm6, %v8046_v45, %v8047_v44 }
 0x19b   :  { %v8052_v51 = vunpack.i.h.bf16 %v8050_v50  ;;  %v8051_v52 = vunpack.i.l.bf16 %v8050_v50  ;;  %v8057_v57 = vunpack.i.h.bf16 %v9168_v49  ;;  %v8056_v58 = vunpack.i.l.bf16 %v9168_v49 }
 0x19c   :  { %7292 = vmatpush1.bf16.msra.mxu0 %v7291_v48 }
 0x19d   :  { %v5154_v12 = vsel %vm5146_vm6, %v8037_v36, %v8051_v52  ;;  %v5155_v59 = vsel %vm5146_vm6, %v8051_v52, %v8052_v51  ;;  %v5415_v10 = vsel %vm5413_vm7, %v8056_v58, %v8057_v57 }
 0x19e   :  { %v7295_v60 = vpack.c.bf16 %v5154_v12, %v5149_v53  ;;  %v8065_v24 = vpop.permute.xlu1 %8064  ;;  %v8060_v61 = vpop.permute.xlu0 %8059  ;;  %v7293_v20 = vpack.c.bf16 %v5155_v59, %v5150_v55 }
 0x19f   :  { %v8067_v62 = vunpack.i.h.bf16 %v8065_v24  ;;  %v8066_v63 = vunpack.i.l.bf16 %v8065_v24  ;;  %v8062_v3 = vunpack.i.h.bf16 %v8060_v61  ;;  %v8061_v7 = vunpack.i.l.bf16 %v8060_v61  ;;  %6812 = vmatmul.mubr.msk.f32.vlgmr.msra.gmra.mrb[0].mxu0 %vm150_vm1, %v9173_v56 }
 0x1a0   :  { %7294 = vmatprep.subr.bf16.mxu1 %v7293_v20  ;;  %5501 = vmatprep.mubr.f32.mxu0 %v8334_v18 }
 0x1a1   :  { %v5414_v54 = vsel %vm5413_vm7, %v8066_v63, %v8056_v58  ;;  %v5419_v9 = vsel %vm5413_vm7, %v8067_v62, %v8061_v7  ;;  %7296 = vmatpush1.bf16.msra.mxu1 %v7295_v60  ;;  %v5420_v11 = vsel %vm5413_vm7, %v8061_v7, %v8062_v3 }
 0x1a2   :  { %v7302_v41 = vpack.c.bf16 %v5419_v9, %v5414_v54  ;;  %v8075_v13 = vpop.permute.xlu1 %8074  ;;  %v8070_v4 = vpop.permute.xlu0 %8069  ;;  %v7300_v6 = vpack.c.bf16 %v5420_v11, %v5415_v10  ;;  %7297 = vmatprep.subr.bf16.mxu1 %v8346_v1  ;;  %v9223_v9 = vld [vmem:[#allocation6 + $0xa8] sm:$0xff] }
 0x1a3   :  { %v8072_v19 = vunpack.i.h.bf16 %v8070_v4  ;;  %v8071_v22 = vunpack.i.l.bf16 %v8070_v4  ;;  %v362_v15 = vpop.f32.mrb[2].mxu0  ;;  %v8076_v21 = vunpack.i.l.bf16 %v8075_v13  ;;  %v8077_v23 = vunpack.i.h.bf16 %v8075_v13 }
 0x1a4   :  { %7301 = vmatprep.subr.bf16.mxu0 %v7300_v6  ;;  %6813 = vmatmul.mubr.msk.f32.vlgmr.msra.gmra.mrb[0].mxu1 %vm150_vm1, %v9173_v56  ;;  %v6911_v17 = vpop.f32.mrb[3].mxu0 }
 0x1a5   :  { %v5151_v29 = vsel %vm5146_vm6, %v8047_v44, %v8071_v22  ;;  %v5156_v28 = vsel %vm5146_vm6, %v8052_v51, %v8072_v19  ;;  %7303 = vmatpush1.bf16.msra.mxu0 %v7302_v41  ;;  %7042 = vmatprep.mubr.msk.f32.mxu1 %vm8347_vm3, %v8334_v18  ;;  %v5416_v14 = vsel %vm5413_vm7, %v8057_v57, %v8076_v21 }
 0x1a6   :  { %v7298_v35 = vpack.c.bf16 %v5156_v28, %v5151_v29  ;;  %v8085_v5 = vpop.permute.xlu1 %8084  ;;  %7308 = vmatprep.subr.bf16.mxu0 %v8346_v1  ;;  %v5417_v39 = vsel %vm5413_vm7, %v8076_v21, %v8077_v23 }
 0x1a7   :  { %v8087_v30 = vunpack.i.h.bf16 %v8085_v5  ;;  %v8086_v31 = vunpack.i.l.bf16 %v8085_v5  ;;  %v8080_v32 = vpop.permute.xlu0 %8079 }
 0x1a8   :  { %v8082_v33 = vunpack.i.h.bf16 %v8080_v32  ;;  %v8081_v34 = vunpack.i.l.bf16 %v8080_v32  ;;  %7299 = vmatpush3.bf16.msra.mxu1 %v7298_v35  ;;  %6815 = vmatmul.mubr.msk.f32.vlgmr.msra.gmra.mrb[0].mxu0 %vm150_vm1, %v5388_v2 }
 0x1a9   :  { %v5423_v36 = vsel %vm5413_vm7, %v8086_v31, %v8087_v30  ;;  %7049 = vmatprep.mubr.msk.f32.mxu0 %vm8347_vm3, %v8334_v18 }
 0x1aa   :  { %v5418_v16 = vsel %vm5413_vm7, %v8077_v23, %v8081_v34  ;;  %v5421_v37 = vsel %vm5413_vm7, %v8062_v3, %v8082_v33  ;;  %v8095_v38 = vpop.permute.xlu1 %8094  ;;  %v5422_v40 = vsel %vm5413_vm7, %v8082_v33, %v8086_v31 }
 0x1ab   :  { %v7306_v42 = vpack.c.bf16 %v5421_v37, %v5416_v14  ;;  %v7309_v0 = vpack.c.bf16 %v5423_v36, %v5418_v16  ;;  %v8097_v8 = vunpack.i.h.bf16 %v8095_v38  ;;  %v8096_v27 = vunpack.i.l.bf16 %v8095_v38  ;;  %v8090_v43 = vpop.permute.xlu0 %8089  ;;  %7043 = vmatmul.mubr.msk.f32.vlgmr.msra.gmra.mrb[20].mxu1 %vm150_vm1, %v9173_v56 }
 0x1ac   :  { %v8092_v44 = vunpack.i.h.bf16 %v8090_v43  ;;  %v8091_v45 = vunpack.i.l.bf16 %v8090_v43  ;;  %v7304_v46 = vpack.c.bf16 %v5422_v40, %v5417_v39  ;;  %5572 = vmatprep.mubr.f32.mxu1 %v8334_v18  ;;  %v577_v47 = vpop.f32.mrb[2].mxu1 }
 0x1ad   :  { %7310 = vmatpush3.bf16.msra.mxu0 %v7309_v0  ;;  %v5687_v48 = vsel %vm5680_vm8, %v8096_v27, %v8097_v8  ;;  %v578_v49 = vadd.f32 %v577_v47, %v362_v15  ;;  %v6918_v50 = vpop.f32.mrb[3].mxu1  ;;  %v5922_v0 = vld [vmem:[#allocation6 + $0xb0] sm:$0xff] }
 0x1ae   :  { %7305 = vmatprep.subr.bf16.mxu1 %v7304_v46  ;;  %v9207_v51 = vpop.permute.xlu1 %8104  ;;  %v5682_v52 = vsel %vm5680_vm8, %v8091_v45, %v8092_v44 }
 0x1af   :  { %7307 = vmatpush1.bf16.msra.mxu1 %v7306_v42  ;;  %v8100_v53 = vpop.permute.xlu0 %8099  ;;  %v7311_v55 = vpack.c.bf16 %v5687_v48, %v5682_v52  ;;  %v8107_v58 = vunpack.i.h.bf16 %v9207_v51  ;;  %v8106_v12 = vunpack.i.l.bf16 %v9207_v51 }
 0x1b0   :  { %v8102_v56 = vunpack.i.h.bf16 %v8100_v53  ;;  %v8101_v57 = vunpack.i.l.bf16 %v8100_v53  ;;  %7050 = vmatmul.mubr.msk.f32.vlgmr.msra.gmra.mrb[22].mxu0 %vm150_vm1, %v5388_v2 }
 0x1b1   :  { %7312 = vmatprep.subr.bf16.mxu0 %v7311_v55  ;;  %5768 = vmatprep.mubr.f32.mxu0 %v8334_v18  ;;  %v5683_v3 = vsel %vm5680_vm8, %v8092_v44, %v8106_v12  ;;  %v5684_v54 = vsel %vm5680_vm8, %v8106_v12, %v8107_v58 }
 0x1b2   :  { %v5686_v59 = vsel %vm5680_vm8, %v8102_v56, %v8096_v27  ;;  %v5681_v60 = vsel %vm5680_vm8, %v8101_v57, %v8091_v45  ;;  %v9216_v24 = vpop.permute.xlu1 %8114  ;;  %6816 = vmatmul.mubr.msk.f32.vlgmr.msra.gmra.mrb[0].mxu1 %vm150_vm1, %v5388_v2 }
 0x1b3   :  { %v7313_v61 = vpack.c.bf16 %v5686_v59, %v5681_v60  ;;  %v8110_v20 = vpop.permute.xlu0 %8109  ;;  %5839 = vmatprep.mubr.f32.mxu1 %v8334_v18  ;;  %v8117_v7 = vunpack.i.h.bf16 %v9216_v24  ;;  %v8116_v11 = vunpack.i.l.bf16 %v9216_v24 }
 0x1b4   :  { %v8112_v62 = vunpack.i.h.bf16 %v8110_v20  ;;  %v8111_v63 = vunpack.i.l.bf16 %v8110_v20 }
 0x1b5   :  { %7314 = vmatpush1.bf16.msra.mxu0 %v7313_v61  ;;  %v839_v10 = vpop.f32.mrb[4].mxu0  ;;  %v5949_v5 = vsel %vm5947_vm9, %v8116_v11, %v8117_v7 }
 0x1b6   :  { %v5688_v41 = vsel %vm5680_vm8, %v8097_v8, %v8111_v63  ;;  %v8125_v13 = vpop.permute.xlu1 %8124  ;;  %v5689_v4 = vsel %vm5680_vm8, %v8111_v63, %v8112_v62  ;;  %v847_v6 = vadd.f32 %v839_v10, %v578_v49  ;;  %v6925_v19 = vpop.f32.mrb[5].mxu0 }
 0x1b7   :  { %v7317_v22 = vpack.c.bf16 %v5688_v41, %v5683_v3  ;;  %v8127_v15 = vunpack.i.h.bf16 %v8125_v13  ;;  %v8126_v17 = vunpack.i.l.bf16 %v8125_v13  ;;  %v8120_v26 = vpop.permute.xlu0 %8119  ;;  %v7315_v21 = vpack.c.bf16 %v5689_v4, %v5684_v54 }
 0x1b8   :  { %v8122_v29 = vunpack.i.h.bf16 %v8120_v26  ;;  %v8121_v28 = vunpack.i.l.bf16 %v8120_v26  ;;  %6818 = vmatmul.mubr.msk.f32.vlgmr.msra.gmra.mrb[0].mxu0 %vm150_vm1, %v9223_v9 }
 0x1b9   :  { %v5948_v2 = vsel %vm5947_vm9, %v8126_v17, %v8116_v11  ;;  %7316 = vmatprep.subr.bf16.mxu1 %v7315_v21  ;;  %6035 = vmatprep.mubr.f32.mxu0 %v8334_v18 }
 0x1ba   :  { %v5953_v23 = vsel %vm5947_vm9, %v8127_v15, %v8121_v28  ;;  %7318 = vmatpush1.bf16.msra.mxu1 %v7317_v22  ;;  %v8135_v35 = vpop.permute.xlu1 %8134  ;;  %v5954_v25 = vsel %vm5947_vm9, %v8121_v28, %v8122_v29 }
 0x1bb   :  { %v7324_v30 = vpack.c.bf16 %v5953_v23, %v5948_v2  ;;  %v8130_v31 = vpop.permute.xlu0 %8129  ;;  %v7322_v32 = vpack.c.bf16 %v5954_v25, %v5949_v5  ;;  %7319 = vmatprep.subr.bf16.mxu1 %v8346_v1  ;;  %v8136_v36 = vunpack.i.l.bf16 %v8135_v35  ;;  %v8137_v38 = vunpack.i.h.bf16 %v8135_v35 }
 0x1bc   :  { %v8132_v33 = vunpack.i.h.bf16 %v8130_v31  ;;  %v8131_v34 = vunpack.i.l.bf16 %v8130_v31  ;;  %v1106_v14 = vpop.f32.mrb[4].mxu1 }
 0x1bd   :  { %7323 = vmatprep.subr.bf16.mxu0 %v7322_v32  ;;  %6819 = vmatmul.mubr.msk.f32.vlgmr.msra.gmra.mrb[0].mxu1 %vm150_vm1, %v9223_v9  ;;  %v1114_v16 = vadd.f32 %v1106_v14, %v847_v6  ;;  %v6932_v37 = vpop.f32.mrb[5].mxu1  ;;  %v5950_v47 = vsel %vm5947_vm9, %v8117_v7, %v8136_v36  ;;  %v5951_v52 = vsel %vm5947_vm9, %v8136_v36, %v8137_v38 }
 0x1be   :  { %v5685_v39 = vsel %vm5680_vm8, %v8107_v58, %v8131_v34  ;;  %v5690_v40 = vsel %vm5680_vm8, %v8112_v62, %v8132_v33  ;;  %7325 = vmatpush1.bf16.msra.mxu0 %v7324_v30  ;;  %v8145_v42 = vpop.permute.xlu1 %8144  ;;  %7056 = vmatprep.mubr.msk.f32.mxu1 %vm8347_vm3, %v8334_v18 }
 0x1bf   :  { %v7320_v8 = vpack.c.bf16 %v5690_v40, %v5685_v39  ;;  %v8147_v27 = vunpack.i.h.bf16 %v8145_v42  ;;  %v8146_v43 = vunpack.i.l.bf16 %v8145_v42  ;;  %v8140_v44 = vpop.permute.xlu0 %8139  ;;  %7330 = vmatprep.subr.bf16.mxu0 %v8346_v1 }
 0x1c0   :  { %v8142_v45 = vunpack.i.h.bf16 %v8140_v44  ;;  %v8141_v46 = vunpack.i.l.bf16 %v8140_v44 }
 0x1c1   :  { %v5957_v48 = vsel %vm5947_vm9, %v8146_v43, %v8147_v27  ;;  %7321 = vmatpush3.bf16.msra.mxu1 %v7320_v8  ;;  %6821 = vmatmul.mubr.msk.f32.vlgmr.msra.gmra.mrb[0].mxu0 %vm150_vm1, %v5922_v0 }
 0x1c2   :  { %v5952_v49 = vsel %vm5947_vm9, %v8137_v38, %v8141_v46  ;;  %v5955_v50 = vsel %vm5947_vm9, %v8122_v29, %v8142_v45  ;;  %v8155_v51 = vpop.permute.xlu1 %8154  ;;  %v5956_v53 = vsel %vm5947_vm9, %v8142_v45, %v8146_v43  ;;  %7063 = vmatprep.mubr.msk.f32.mxu0 %vm8347_vm3, %v8334_v18  ;;  %v6189_v29 = vld [vmem:[#allocation6 + $0xb8] sm:$0xff] }
 0x1c3   :  { %v7328_v55 = vpack.c.bf16 %v5955_v50, %v5950_v47  ;;  %v7331_v56 = vpack.c.bf16 %v5957_v48, %v5952_v49  ;;  %v8157_v57 = vunpack.i.h.bf16 %v8155_v51  ;;  %v8156_v58 = vunpack.i.l.bf16 %v8155_v51  ;;  %v8150_v12 = vpop.permute.xlu0 %8149 }
 0x1c4   :  { %v8152_v59 = vunpack.i.h.bf16 %v8150_v12  ;;  %v8151_v60 = vunpack.i.l.bf16 %v8150_v12  ;;  %7057 = vmatmul.mubr.msk.f32.vlgmr.msra.gmra.mrb[22].mxu1 %vm150_vm1, %v9223_v9  ;;  %v7326_v24 = vpack.c.bf16 %v5956_v53, %v5951_v52  ;;  %v6456_v52 = vld [vmem:[#allocation6 + $0xc0] sm:$0xff] }
 0x1c5   :  { %7332 = vmatpush3.bf16.msra.mxu0 %v7331_v56  ;;  %v6221_v61 = vsel %vm6214_vm10, %v8156_v58, %v8157_v57  ;;  %6106 = vmatprep.mubr.f32.mxu1 %v8334_v18 }
 0x1c6   :  { %7327 = vmatprep.subr.bf16.mxu1 %v7326_v24  ;;  %v9256_v20 = vpop.permute.xlu1 %8164  ;;  %v6216_v62 = vsel %vm6214_vm10, %v8151_v60, %v8152_v59 }
 0x1c7   :  { %7329 = vmatpush1.bf16.msra.mxu1 %v7328_v55  ;;  %v8160_v63 = vpop.permute.xlu0 %8159  ;;  %v7333_v3 = vpack.c.bf16 %v6221_v61, %v6216_v62  ;;  %v8167_v9 = vunpack.i.h.bf16 %v9256_v20  ;;  %v8166_v11 = vunpack.i.l.bf16 %v9256_v20 }
 0x1c8   :  { %v8162_v7 = vunpack.i.h.bf16 %v8160_v63  ;;  %v8161_v54 = vunpack.i.l.bf16 %v8160_v63  ;;  %7064 = vmatmul.mubr.msk.f32.vlgmr.msra.gmra.mrb[24].mxu0 %vm150_vm1, %v5922_v0  ;;  %v1373_v10 = vpop.f32.mrb[6].mxu0 }
 0x1c9   :  { %7334 = vmatprep.subr.bf16.mxu0 %v7333_v3  ;;  %6302 = vmatprep.mubr.f32.mxu0 %v8334_v18  ;;  %v1381_v41 = vadd.f32 %v1373_v10, %v1114_v16  ;;  %v6939_v13 = vpop.f32.mrb[7].mxu0  ;;  %v6217_v21 = vsel %vm6214_vm10, %v8152_v59, %v8166_v11  ;;  %v6218_v28 = vsel %vm6214_vm10, %v8166_v11, %v8167_v9 }
 0x1ca   :  { %v6220_v4 = vsel %vm6214_vm10, %v8162_v7, %v8156_v58  ;;  %v6215_v6 = vsel %vm6214_vm10, %v8161_v54, %v8151_v60  ;;  %v8175_v19 = vpop.permute.xlu1 %8174  ;;  %6822 = vmatmul.mubr.msk.f32.vlgmr.msra.gmra.mrb[0].mxu1 %vm150_vm1, %v5922_v0 }
 0x1cb   :  { %v7335_v22 = vpack.c.bf16 %v6220_v4, %v6215_v6  ;;  %v8170_v15 = vpop.permute.xlu0 %8169  ;;  %6373 = vmatprep.mubr.f32.mxu1 %v8334_v18  ;;  %v8177_v2 = vunpack.i.h.bf16 %v8175_v19  ;;  %v8176_v23 = vunpack.i.l.bf16 %v8175_v19 }
 0x1cc   :  { %v8172_v17 = vunpack.i.h.bf16 %v8170_v15  ;;  %v8171_v26 = vunpack.i.l.bf16 %v8170_v15 }
 0x1cd   :  { %7336 = vmatpush1.bf16.msra.mxu0 %v7335_v22  ;;  %v6483_v39 = vsel %vm6481_vm11, %v8176_v23, %v8177_v2 }
 0x1ce   :  { %v6222_v35 = vsel %vm6214_vm10, %v8157_v57, %v8171_v26  ;;  %v8185_v5 = vpop.permute.xlu1 %8184  ;;  %v6223_v25 = vsel %vm6214_vm10, %v8171_v26, %v8172_v17 }
 0x1cf   :  { %v7339_v30 = vpack.c.bf16 %v6222_v35, %v6217_v21  ;;  %v8187_v31 = vunpack.i.h.bf16 %v8185_v5  ;;  %v8186_v32 = vunpack.i.l.bf16 %v8185_v5  ;;  %v8180_v33 = vpop.permute.xlu0 %8179  ;;  %v7337_v34 = vpack.c.bf16 %v6223_v25, %v6218_v28 }
 0x1d0   :  { %v8182_v14 = vunpack.i.h.bf16 %v8180_v33  ;;  %v8181_v36 = vunpack.i.l.bf16 %v8180_v33  ;;  %6824 = vmatmul.mubr.msk.f32.vlgmr.msra.gmra.mrb[0].mxu0 %vm150_vm1, %v6189_v29 }
 0x1d1   :  { %v6482_v16 = vsel %vm6481_vm11, %v8186_v32, %v8176_v23  ;;  %7338 = vmatprep.subr.bf16.mxu1 %v7337_v34  ;;  %6569 = vmatprep.mubr.f32.mxu0 %v8334_v18 }
 0x1d2   :  { %v6487_v37 = vsel %vm6481_vm11, %v8187_v31, %v8181_v36  ;;  %7340 = vmatpush1.bf16.msra.mxu1 %v7339_v30  ;;  %v8195_v38 = vpop.permute.xlu1 %8194  ;;  %v6488_v40 = vsel %vm6481_vm11, %v8181_v36, %v8182_v14 }
 0x1d3   :  { %v7346_v42 = vpack.c.bf16 %v6487_v37, %v6482_v16  ;;  %v8190_v0 = vpop.permute.xlu0 %8189  ;;  %v7344_v8 = vpack.c.bf16 %v6488_v40, %v6483_v39  ;;  %7341 = vmatprep.subr.bf16.mxu1 %v8346_v1  ;;  %v8196_v45 = vunpack.i.l.bf16 %v8195_v38  ;;  %v8197_v48 = vunpack.i.h.bf16 %v8195_v38 }
 0x1d4   :  { %v8192_v27 = vunpack.i.h.bf16 %v8190_v0  ;;  %v8191_v43 = vunpack.i.l.bf16 %v8190_v0  ;;  %v1640_v44 = vpop.f32.mrb[6].mxu1 }
 0x1d5   :  { %7345 = vmatprep.subr.bf16.mxu0 %v7344_v8  ;;  %6825 = vmatmul.mubr.msk.f32.vlgmr.msra.gmra.mrb[0].mxu1 %vm150_vm1, %v6189_v29  ;;  %v1648_v46 = vadd.f32 %v1640_v44, %v1381_v41  ;;  %v6946_v47 = vpop.f32.mrb[7].mxu1  ;;  %v6484_v59 = vsel %vm6481_vm11, %v8177_v2, %v8196_v45  ;;  %v6485_v20 = vsel %vm6481_vm11, %v8196_v45, %v8197_v48 }
 0x1d6   :  { %v6219_v49 = vsel %vm6214_vm10, %v8167_v9, %v8191_v43  ;;  %v6224_v50 = vsel %vm6214_vm10, %v8172_v17, %v8192_v27  ;;  %7347 = vmatpush1.bf16.msra.mxu0 %v7346_v42  ;;  %v8205_v51 = vpop.permute.xlu1 %8204  ;;  %7070 = vmatprep.mubr.msk.f32.mxu1 %vm8347_vm3, %v8334_v18 }
 0x1d7   :  { %v7342_v53 = vpack.c.bf16 %v6224_v50, %v6219_v49  ;;  %v8207_v55 = vunpack.i.h.bf16 %v8205_v51  ;;  %v8206_v56 = vunpack.i.l.bf16 %v8205_v51  ;;  %v8200_v57 = vpop.permute.xlu0 %8199  ;;  %7352 = vmatprep.subr.bf16.mxu0 %v8346_v1 }
 0x1d8   :  { %v8202_v58 = vunpack.i.h.bf16 %v8200_v57  ;;  %v8201_v12 = vunpack.i.l.bf16 %v8200_v57 }
 0x1d9   :  { %v6491_v60 = vsel %vm6481_vm11, %v8206_v56, %v8207_v55  ;;  %7343 = vmatpush3.bf16.msra.mxu1 %v7342_v53  ;;  %6827 = vmatmul.mubr.msk.f32.vlgmr.msra.gmra.mrb[0].mxu0 %vm150_vm1, %v6456_v52 }
 0x1da   :  { %v6486_v24 = vsel %vm6481_vm11, %v8197_v48, %v8201_v12  ;;  %v6489_v61 = vsel %vm6481_vm11, %v8182_v14, %v8202_v58  ;;  %v6490_v62 = vsel %vm6481_vm11, %v8202_v58, %v8206_v56  ;;  %7077 = vmatprep.mubr.msk.f32.mxu0 %vm8347_vm3, %v8334_v18 }
 0x1db   :  { %v7350_v1 = vpack.c.bf16 %v6489_v61, %v6484_v59  ;;  %v7353_v63 = vpack.c.bf16 %v6491_v60, %v6486_v24  ;;  %v7348_v3 = vpack.c.bf16 %v6490_v62, %v6485_v20 }
 0x1dc   :  { %7071 = vmatmul.mubr.msk.f32.vlgmr.msra.gmra.mrb[24].mxu1 %vm150_vm1, %v6189_v29 }
 0x1dd   :  { %7349 = vmatprep.subr.bf16.mxu1 %v7348_v3  ;;  %7354 = vmatpush3.bf16.msra.mxu0 %v7353_v63 }
 0x1de   :  { %7351 = vmatpush1.bf16.msra.mxu1 %v7350_v1  ;;  %6640 = vmatprep.mubr.f32.mxu1 %v8334_v18 }
 0x1e0   :  { %7078 = vmatmul.mubr.msk.f32.vlgmr.msra.gmra.mrb[26].mxu0 %vm150_vm1, %v6456_v52  ;;  %v1907_v7 = vpop.f32.mrb[8].mxu0 }
 0x1e1   :  { %6828 = vmatmul.mubr.msk.f32.vlgmr.msra.gmra.mrb[0].mxu1 %vm150_vm1, %v6456_v52  ;;  %v1915_v54 = vadd.f32 %v1907_v7, %v1648_v46  ;;  %v6953_v10 = vpop.f32.mrb[9].mxu0 }
 0x1ed   :  { %v2174_v9 = vpop.f32.mrb[8].mxu1 }
 0x1ee   :  { %v2182_v11 = vadd.f32 %v2174_v9, %v1915_v54  ;;  %v6960_v41 = vpop.f32.mrb[9].mxu1 }
 0x1f4   :  { %v2441_v13 = vpop.f32.mrb[10].mxu0 }
 0x1f5   :  { %v2449_v4 = vadd.f32 %v2441_v13, %v2182_v11  ;;  %v6967_v6 = vpop.f32.mrb[11].mxu0 }
 0x207   :  { %v2708_v19 = vpop.f32.mrb[10].mxu1 }
 0x208   :  { %v2716_v22 = vadd.f32 %v2708_v19, %v2449_v4  ;;  %v6974_v15 = vpop.f32.mrb[11].mxu1 }
 0x20c   :  { %v2975_v17 = vpop.f32.mrb[12].mxu0 }
 0x20d   :  { %v2983_v26 = vadd.f32 %v2975_v17, %v2716_v22  ;;  %v6981_v21 = vpop.f32.mrb[13].mxu0 }
 0x215   :  { %v6726_v56 = vpop.permute.xlu0 %6725 }
 0x21e   :  { %v3242_v18 = vpop.f32.mrb[12].mxu1 }
 0x21f   :  { %v3250_v29 = vadd.f32 %v3242_v18, %v2983_v26  ;;  %v6988_v28 = vpop.f32.mrb[13].mxu1 }
 0x223   :  { %v3509_v2 = vpop.f32.mrb[14].mxu0 }
 0x224   :  { %v3517_v23 = vadd.f32 %v3509_v2, %v3250_v29  ;;  %v6995_v35 = vpop.f32.mrb[15].mxu0 }
 0x236   :  { %v3776_v5 = vpop.f32.mrb[14].mxu1 }
 0x237   :  { %v3784_v25 = vadd.f32 %v3776_v5, %v3517_v23  ;;  %v7002_v30 = vpop.f32.mrb[15].mxu1 }
 0x23a   :  { %v4043_v31 = vpop.f32.mrb[16].mxu0 }
 0x23b   :  { %v4051_v32 = vadd.f32 %v4043_v31, %v3784_v25  ;;  %v7009_v33 = vpop.f32.mrb[17].mxu0 }
 0x24e   :  { %v4310_v34 = vpop.f32.mrb[16].mxu1 }
 0x24f   :  { %v4318_v14 = vadd.f32 %v4310_v34, %v4051_v32  ;;  %v7016_v36 = vpop.f32.mrb[17].mxu1 }
 0x252   :  { %v4577_v16 = vpop.f32.mrb[18].mxu0 }
 0x253   :  { %v4585_v37 = vadd.f32 %v4577_v16, %v4318_v14  ;;  %v7023_v38 = vpop.f32.mrb[19].mxu0 }
 0x266   :  { %v4844_v39 = vpop.f32.mrb[18].mxu1 }
 0x267   :  { %v4852_v40 = vadd.f32 %v4844_v39, %v4585_v37  ;;  %v7030_v42 = vpop.f32.mrb[19].mxu1 }
 0x26a   :  { %v5111_v0 = vpop.f32.mrb[20].mxu0 }
 0x26b   :  { %v5119_v8 = vadd.f32 %v5111_v0, %v4852_v40  ;;  %v7037_v27 = vpop.f32.mrb[21].mxu0 }
 0x27e   :  { %v5378_v43 = vpop.f32.mrb[20].mxu1 }
 0x27f   :  { %v5386_v44 = vadd.f32 %v5378_v43, %v5119_v8  ;;  %v7044_v45 = vpop.f32.mrb[21].mxu1 }
 0x283   :  { %v5645_v46 = vpop.f32.mrb[22].mxu0 }
 0x284   :  { %v5653_v47 = vadd.f32 %v5645_v46, %v5386_v44  ;;  %v7051_v48 = vpop.f32.mrb[23].mxu0 }
 0x297   :  { %v5912_v49 = vpop.f32.mrb[22].mxu1 }
 0x298   :  { %v5920_v50 = vadd.f32 %v5912_v49, %v5653_v47  ;;  %v7058_v51 = vpop.f32.mrb[23].mxu1 }
 0x29b   :  { %v6179_v52 = vpop.f32.mrb[24].mxu0 }
 0x29c   :  { %v6187_v53 = vadd.f32 %v6179_v52, %v5920_v50  ;;  %v7065_v55 = vpop.f32.mrb[25].mxu0 }
 0x2ac   :  { %v6571_v57 = vpop.f32.mrb[0].mxu0 }
 0x2ad   :  { %v6728_v58 = vadd.f32 %v6726_v56, %v6571_v57  ;;  %v6573_v12 = vpop.f32.mrb[1].mxu0 }
 0x2ae   :  { %v6729_v59 = vadd.f32 %v6726_v56, %v6573_v12 }
 0x2af   :  { %6733 = vst [vmem:[#allocation10] sm:$0xff] %v6728_v58  ;;  %v6446_v60 = vpop.f32.mrb[24].mxu1 }
 0x2b0   :  { %6734 = vst [vmem:[#allocation10 + $0x8] sm:$0xff] %v6729_v59  ;;  %v6454_v24 = vadd.f32 %v6446_v60, %v6187_v53  ;;  %v7072_v61 = vpop.f32.mrb[25].mxu1 }
 0x2b3   :  { %v6713_v20 = vpop.f32.mrb[26].mxu0 }
 0x2b4   :  { %v6721_v62 = vadd.f32 %v6713_v20, %v6454_v24  ;;  %v6642_v1 = vpop.f32.mrb[0].mxu1  ;;  %v7079_v63 = vpop.f32.mrb[27].mxu0 }
 0x2b5   :  { %v6730_v3 = vadd.f32 %v6726_v56, %v6642_v1  ;;  %v6644_v7 = vpop.f32.mrb[1].mxu1 }
 0x2b6   :  { %v6732_v54 = vadd.f32 %v6726_v56, %v6721_v62  ;;  %v6731_v10 = vadd.f32 %v6726_v56, %v6644_v7 }
 0x2b7   :  { %6735 = vst [vmem:[#allocation10 + $0x10] sm:$0xff] %v6730_v3 }
 0x2b8   :  { %6737 = vst [vmem:[#allocation10 + $0x20] sm:$0xff] %v6732_v54  ;;  %6736 = vst [vmem:[#allocation10 + $0x18] sm:$0xff] %v6731_v10 }
 0x2b9   :  { %8306 = shalt.err (!%p8303_p3)
}
 0x2ba   :  { %s8307_s10 = scalar_lea.hbm %s9313_s4, 640 }
 0x2bb   :  { %p8308_p4 = scmp.ne.s32.totalorder %s9313_s4, %s8307_s10  ;;  %p8311_p5 = scmp.lt.u32.totalorder %s8307_s10, %s9313_s4 }
 0x2bd   :  { %p8313_p6 = pnand %p8311_p5, %p8308_p4 }
 0x2bf   :  { %8316 = shalt.err (!%p8313_p6)
}
 0x2c0   :  { %6747 = dma.vmem_to_hbm [thread:$0]  %s6745_s6, 640, %s9313_s4, [#allocation4]  }
 0x2c1   :  { %8323 = dma.done.wait [#allocation4], 640  }
 0x2c2   :  { %8324 = vsyncadd [#allocation4], 4294966656 }
 0x2c3   :  { %6751 = vsyncpa [#allocation3], 1 }
 0x2c4   :  { %6752 = vsyncpa [#allocation7], 1 }
 0x2c5   :  { %6753 = vsyncpa [#allocation4], 1 }
 0x2c6   :  { %6754 = vsyncpa [#allocation5], 1 }

</bundles_post_ra>
